<compile_context>
chip_gen: v6e
topology: v6e:2x2x1
jax: 0.10.0
libtpu: 0.0.40
codegen_flags: <defaults>
</compile_context>

<pallas_src>
import functools

import jax
import jax.numpy as jnp
from jax.experimental import pallas as pl
from jax.experimental.pallas import tpu as pltpu


# ---------------------------------------------------------------------------
# Helpers
# ---------------------------------------------------------------------------

def _round_up(x, m):
    return ((x + m - 1) // m) * m


# ---------------------------------------------------------------------------
# Pallas kernels
# ---------------------------------------------------------------------------

def _gemm_kernel(x_ref, w_ref, shift_ref, o_ref, acc_ref, *, relu):
    """Tiled GEMM; epilogue = +shift (+ReLU). f32 accumulator in VMEM."""
    @pl.when(pl.program_id(2) == 0)
    def _():
        acc_ref[...] = jnp.zeros_like(acc_ref)

    acc_ref[...] += jnp.dot(x_ref[...], w_ref[...],
                            preferred_element_type=jnp.float32)

    @pl.when(pl.program_id(2) == pl.num_programs(2) - 1)
    def _():
        out = acc_ref[...] + shift_ref[...]
        if relu:
            out = jnp.maximum(out, 0.0)
        o_ref[...] = out.astype(o_ref.dtype)


def _gemm_res_kernel(x_ref, w_ref, shift_ref, res_ref, o_ref, acc_ref, *, relu):
    """Tiled GEMM; epilogue = +shift + residual (+ReLU)."""
    @pl.when(pl.program_id(2) == 0)
    def _():
        acc_ref[...] = jnp.zeros_like(acc_ref)

    acc_ref[...] += jnp.dot(x_ref[...], w_ref[...],
                            preferred_element_type=jnp.float32)

    @pl.when(pl.program_id(2) == pl.num_programs(2) - 1)
    def _():
        out = acc_ref[...] + shift_ref[...] + res_ref[...].astype(jnp.float32)
        if relu:
            out = jnp.maximum(out, 0.0)
        o_ref[...] = out.astype(o_ref.dtype)


def _max9_kernel(p_ref, o_ref):
    """p_ref: (9, tm, C) shifted windows; o_ref: (tm, C) = max over the 9 taps."""
    o_ref[...] = jnp.max(p_ref[...], axis=0)


def _avgpool_kernel(x_ref, o_ref):
    """x_ref: (N, H*W, C); o_ref: (N, C) f32 = mean over spatial axis."""
    o_ref[...] = jnp.mean(x_ref[...].astype(jnp.float32), axis=1)


# ---------------------------------------------------------------------------
# Tiled GEMM wrapper (bf16 MXU inputs, f32 accumulation)
# ---------------------------------------------------------------------------

def _pick_k_tile(K, k_full_max=2048, candidates=(512, 384, 256, 128)):
    """Use the whole K when small; otherwise pick a 128-granular divisor tile."""
    if K <= k_full_max:
        return K, K
    Kr = _round_up(K, 128)
    for cand in candidates:
        if Kr % cand == 0:
            return cand, Kr
    return 512, _round_up(Kr, 512)


def gemm_bias(x, w, shift, res=None, relu=True, out_dtype=jnp.bfloat16,
              tm_max=256, tn_max=256):
    """x: (M, K), w: (K, N), shift: (N,) f32, res: (M, N) or None.

    Returns (M, N) of out_dtype.  x/w/res are cast to bf16 for the MXU.
    """
    M, K = x.shape
    Kw, N = w.shape
    assert K == Kw

    Mr = _round_up(M, 16)                     # bf16-friendly sublane granularity
    tm = min(tm_max, Mr)
    Mp = _round_up(Mr, tm)

    Nr = _round_up(N, 128)
    tn = min(tn_max, Nr)
    Np = _round_up(Nr, tn)

    tk, Kp = _pick_k_tile(K)

    xp = x.astype(jnp.bfloat16)
    if (Mp, Kp) != (M, K):
        xp = jnp.pad(xp, ((0, Mp - M), (0, Kp - K)))
    wp = w.astype(jnp.bfloat16)
    if (Kp, Np) != (K, N):
        wp = jnp.pad(wp, ((0, Kp - K), (0, Np - N)))
    sp = shift.astype(jnp.float32).reshape(1, N)
    if Np != N:
        sp = jnp.pad(sp, ((0, 0), (0, Np - N)))

    in_specs = [
        pl.BlockSpec((tm, tk), lambda i, j, k: (i, k)),
        pl.BlockSpec((tk, tn), lambda i, j, k: (k, j)),
        pl.BlockSpec((1, tn), lambda i, j, k: (0, j)),
    ]
    args = [xp, wp, sp]

    if res is not None:
        rp = res.astype(jnp.bfloat16)
        if (Mp, Np) != tuple(res.shape):
            rp = jnp.pad(rp, ((0, Mp - M), (0, Np - N)))
        in_specs.append(pl.BlockSpec((tm, tn), lambda i, j, k: (i, j)))
        args.append(rp)
        kernel = functools.partial(_gemm_res_kernel, relu=relu)
    else:
        kernel = functools.partial(_gemm_kernel, relu=relu)

    grid = (Mp // tm, Np // tn, Kp // tk)

    out = pl.pallas_call(
        kernel,
        out_shape=jax.ShapeDtypeStruct((Mp, Np), out_dtype),
        grid=grid,
        in_specs=in_specs,
        out_specs=pl.BlockSpec((tm, tn), lambda i, j, k: (i, j)),
        scratch_shapes=[pltpu.VMEM((tm, tn), jnp.float32)],
        compiler_params=pltpu.CompilerParams(
            dimension_semantics=("parallel", "parallel", "arbitrary")),
    )(*args)

    if (Mp, Np) != (M, N):
        out = out[:M, :N]
    return out


# ---------------------------------------------------------------------------
# JAX glue: im2col, pooling wrappers, block/network composition
# ---------------------------------------------------------------------------

def im2col(x, kh, kw, stride, pad):
    """x: (N, H, W, C) NHWC bf16 -> (N*OH*OW, KH*KW*C), ordering (KH, KW, C)."""
    # TODO(synk): im2col is still materialized in HBM (kh*kw-fold activation
    # blow-up); a fully fused strided-window conv grid would remove it.
    x = jnp.pad(x, ((0, 0), (pad, pad), (pad, pad), (0, 0)))
    N, H, W, C = x.shape
    oh = (H - kh) // stride + 1
    ow = (W - kw) // stride + 1
    patches = []
    for i in range(kh):
        for j in range(kw):
            patches.append(
                x[:, i:i + stride * (oh - 1) + 1:stride,
                     j:j + stride * (ow - 1) + 1:stride, :])
    p = jnp.stack(patches, axis=3)               # (N, OH, OW, KH*KW, C)
    return p.reshape(N * oh * ow, kh * kw * C), oh, ow


def conv_bn(x, w_gemm, shift, kh, kw, stride, pad, relu, res=None):
    """Conv2d (no bias) + folded BN (+ residual) (+ ReLU) via the tiled GEMM."""
    N = x.shape[0]
    cols, oh, ow = im2col(x, kh, kw, stride, pad)
    cout = w_gemm.shape[1]
    res2d = None if res is None else res.reshape(N * oh * ow, cout)
    out = gemm_bias(cols, w_gemm, shift, res=res2d, relu=relu,
                    out_dtype=jnp.bfloat16)
    return out.reshape(N, oh, ow, cout)


def maxpool3x3s2(x):
    """nn.MaxPool2d(kernel_size=3, stride=2, padding=1) on NHWC, tiled Pallas."""
    N, H, W, C = x.shape
    xp = jnp.pad(x, ((0, 0), (1, 1), (1, 1), (0, 0)),
                 constant_values=float('-inf'))
    oh = (H + 2 - 3) // 2 + 1
    ow = (W + 2 - 3) // 2 + 1
    wins = []
    for i in range(3):
        for j in range(3):
            wins.append(xp[:, i:i + 2 * (oh - 1) + 1:2,
                              j:j + 2 * (ow - 1) + 1:2, :])
    M = N * oh * ow
    p = jnp.stack(wins, axis=0).reshape(9, M, C)

    tm = min(512, _round_up(M, 16))
    Mp = _round_up(M, tm)
    if Mp != M:
        p = jnp.pad(p, ((0, 0), (0, Mp - M), (0, 0)),
                    constant_values=float('-inf'))

    out = pl.pallas_call(
        _max9_kernel,
        out_shape=jax.ShapeDtypeStruct((Mp, C), x.dtype),
        grid=(Mp // tm,),
        in_specs=[pl.BlockSpec((9, tm, C), lambda i: (0, i, 0))],
        out_specs=pl.BlockSpec((tm, C), lambda i: (i, 0)),
        compiler_params=pltpu.CompilerParams(
            dimension_semantics=("parallel",)),
    )(p)
    out = out[:M]
    return out.reshape(N, oh, ow, C)


def global_avgpool(x):
    """nn.AdaptiveAvgPool2d((1, 1)) + flatten on NHWC -> (N, C) float32."""
    N, H, W, C = x.shape
    xr = x.reshape(N, H * W, C)
    return pl.pallas_call(
        _avgpool_kernel,
        out_shape=jax.ShapeDtypeStruct((N, C), jnp.float32),
        grid=(1,),
        in_specs=[pl.BlockSpec((N, H * W, C), lambda i: (0, 0, 0))],
        out_specs=pl.BlockSpec((N, C), lambda i: (0, 0)),
    )(xr)


def basic_block(x, p, stride):
    """ResNet BasicBlock (inference): conv-bn-relu, conv-bn, +identity, relu."""
    identity = x
    out = conv_bn(x, p['w1'], p['b1'], 3, 3, stride, 1, relu=True)
    if 'wd' in p:  # downsample path: 1x1 conv stride `stride` + BN
        identity = conv_bn(x, p['wd'], p['bd'], 1, 1, stride, 0, relu=False)
    out = conv_bn(out, p['w2'], p['b2'], 3, 3, 1, 1, relu=True, res=identity)
    return out


def starting_network_forward(x_nchw, params):
    """Forward of StartingNetwork: resnet18 features (no grad) -> Linear(512,5)."""
    # TODO(synk): torch.no_grad() only affects autograd; no kernel-side
    # equivalent is needed for the forward pass.
    x = jnp.transpose(x_nchw, (0, 2, 3, 1)).astype(jnp.bfloat16)  # NCHW->NHWC
    # Stem: conv7x7/2 + BN + ReLU + maxpool3x3/2
    x = conv_bn(x, params['conv1_w'], params['bn1_b'], 7, 7, 2, 3, relu=True)
    x = maxpool3x3s2(x)
    # layer1..layer4 (two BasicBlocks each)
    strides = (1, 2, 2, 2)
    for li, stride in enumerate(strides):
        blocks = params['layers'][li]
        x = basic_block(x, blocks[0], stride)
        x = basic_block(x, blocks[1], 1)
    feats = global_avgpool(x)                   # (N, 512) == model_resnet(x)
    # self.fc = nn.Linear(512, 5): tiled GEMM with lane-dense padded output.
    logits = gemm_bias(feats, params['fc_w'], params['fc_b'],
                       res=None, relu=False, out_dtype=jnp.float32)
    return logits


# ---------------------------------------------------------------------------
# Deterministic parameter construction (resnet18 shapes, synthetic values)
# BN scale is folded into the GEMM weight columns; weights stored in bf16.
# ---------------------------------------------------------------------------

def _make_conv_bn(key_w, key_bn, cout, cin, kh, kw):
    w = jax.random.normal(key_w, (cout, cin, kh, kw), jnp.float32)
    w = w * (2.0 / (cin * kh * kw)) ** 0.5
    # (Cout, Cin, KH, KW) -> (KH, KW, Cin, Cout) -> GEMM layout (KH*KW*Cin, Cout)
    w_gemm = jnp.transpose(w, (2, 3, 1, 0)).reshape(kh * kw * cin, cout)

    k1, k2, k3, k4 = jax.random.split(key_bn, 4)
    gamma = jax.random.uniform(k1, (cout,), minval=0.5, maxval=1.5)
    beta = 0.1 * jax.random.normal(k2, (cout,))
    mean = 0.1 * jax.random.normal(k3, (cout,))
    var = jax.random.uniform(k4, (cout,), minval=0.5, maxval=1.5)
    scale = gamma / jnp.sqrt(var + 1e-5)
    shift = (beta - mean * scale).astype(jnp.float32)

    w_folded = (w_gemm * scale[None, :]).astype(jnp.bfloat16)
    return w_folded, shift


def make_params(key):
    keys = iter(jax.random.split(key, 64))
    p = {}
    p['conv1_w'], p['bn1_b'] = _make_conv_bn(next(keys), next(keys), 64, 3, 7, 7)
    layers = []
    in_c = 64
    for li, out_c in enumerate((64, 128, 256, 512)):
        first_stride = 1 if li == 0 else 2
        blocks = []
        for bi in range(2):
            blk = {}
            s = first_stride if bi == 0 else 1
            cin = in_c if bi == 0 else out_c
            blk['w1'], blk['b1'] = _make_conv_bn(next(keys), next(keys),
                                                 out_c, cin, 3, 3)
            blk['w2'], blk['b2'] = _make_conv_bn(next(keys), next(keys),
                                                 out_c, out_c, 3, 3)
            if bi == 0 and (s != 1 or cin != out_c):
                blk['wd'], blk['bd'] = _make_conv_bn(next(keys), next(keys),
                                                     out_c, cin, 1, 1)
            blocks.append(blk)
        layers.append(blocks)
        in_c = out_c
    p['layers'] = layers
    num_ftrs = 512  # resnet18 fc.in_features
    kw_, kb = jax.random.split(next(keys))
    fc_w = jax.random.normal(kw_, (5, num_ftrs), jnp.float32) / (num_ftrs ** 0.5)
    p['fc_w'] = jnp.transpose(fc_w)                          # (512, 5)
    p['fc_b'] = 0.01 * jax.random.normal(kb, (5,), jnp.float32)
    return p


if __name__ == "__main__":
    key = jax.random.PRNGKey(0)
    k_params, k_x = jax.random.split(key)
    params = make_params(k_params)
    # Small NCHW input consistent with a 3-channel image model.
    x = jax.random.normal(k_x, (2, 3, 32, 32), jnp.float32)

    fwd = jax.jit(starting_network_forward)
    logits = fwd(x, params)
    jax.block_until_ready(logits)

    assert logits.shape == (2, 5) and logits.dtype == jnp.float32
    print("KERNEL_OK")
</pallas_src>

<mosaic_0001>
module attributes {stable_mosaic.version = 11 : i64} {
  func.func @_gemm_kernel(%arg0: i32, %arg1: i32, %arg2: i32, %arg3: memref<256x147xbf16, #tpu.memory_space<vmem>>, %arg4: memref<147x128xbf16, #tpu.memory_space<vmem>>, %arg5: memref<1x128xf32, #tpu.memory_space<vmem>>, %arg6: memref<256x128xbf16, #tpu.memory_space<vmem>>, %arg7: memref<256x128xf32, #tpu.memory_space<vmem>>) attributes {dimension_semantics = [#tpu.dimension_semantics<parallel>, #tpu.dimension_semantics<parallel>, #tpu.dimension_semantics<arbitrary>], iteration_bounds = array<i64: 2, 1, 1>, scalar_prefetch = 0 : i64, scratch_operands = 1 : i64, tpu.core_type = #tpu.core_type<tc>, window_params = [{transform_indices = @transform_0, window_bounds = array<i64: 256, 147>}, {transform_indices = @transform_1, window_bounds = array<i64: 147, 128>}, {transform_indices = @transform_2, window_bounds = array<i64: 1, 128>}, {transform_indices = @transform_3, window_bounds = array<i64: 256, 128>}]} {
    %c0_i32 = arith.constant 0 : i32
    %0 = arith.cmpi eq, %arg2, %c0_i32 : i32
    %1 = arith.extui %0 : i1 to i32
    %c0_i32_0 = arith.constant 0 : i32
    %2 = arith.cmpi ne, %1, %c0_i32_0 : i32
    scf.if %2 {
      %cst_10 = arith.constant 0.000000e+00 : f32
      %12 = vector.broadcast %cst_10 : f32 to vector<256x128xf32>
      %c0_11 = arith.constant 0 : index
      %c0_12 = arith.constant 0 : index
      %13 = vector.load %arg7[%c0_11, %c0_12] : memref<256x128xf32, #tpu.memory_space<vmem>>, vector<256x128xf32>
      tpu.vector_store %arg7[%c0_11, %c0_12], %12 {strides = array<i32>} : memref<256x128xf32, #tpu.memory_space<vmem>>, vector<256x128xf32>,
    } else {
    }
    %c0 = arith.constant 0 : index
    %c0_1 = arith.constant 0 : index
    %3 = vector.load %arg7[%c0, %c0_1] : memref<256x128xf32, #tpu.memory_space<vmem>>, vector<256x128xf32>
    %c0_2 = arith.constant 0 : index
    %c0_3 = arith.constant 0 : index
    %4 = vector.load %arg3[%c0_2, %c0_3] : memref<256x147xbf16, #tpu.memory_space<vmem>>, vector<256x147xbf16>
    %c0_4 = arith.constant 0 : index
    %c0_5 = arith.constant 0 : index
    %5 = vector.load %arg4[%c0_4, %c0_5] : memref<147x128xbf16, #tpu.memory_space<vmem>>, vector<147x128xbf16>
    %cst = arith.constant dense<0.000000e+00> : vector<256x128xf32>
    %6 = tpu.matmul %4, %5, %cst {dimension_numbers = #tpu.dot_dimension_numbers<[1], [0], [0], [1], [0, 0, 1, 1], [], []>} : vector<256x147xbf16>, vector<147x128xbf16>, vector<256x128xf32> -> vector<256x128xf32>
    %7 = arith.addf %3, %6 : vector<256x128xf32>
    %c0_6 = arith.constant 0 : index
    %c0_7 = arith.constant 0 : index
    %8 = vector.load %arg7[%c0_6, %c0_7] : memref<256x128xf32, #tpu.memory_space<vmem>>, vector<256x128xf32>
    tpu.vector_store %arg7[%c0_6, %c0_7], %7 {strides = array<i32>} : memref<256x128xf32, #tpu.memory_space<vmem>>, vector<256x128xf32>,
    %c0_i32_8 = arith.constant 0 : i32
    %9 = arith.cmpi eq, %arg2, %c0_i32_8 : i32
    %10 = arith.extui %9 : i1 to i32
    %c0_i32_9 = arith.constant 0 : i32
    %11 = arith.cmpi ne, %10, %c0_i32_9 : i32
    scf.if %11 {
      %c0_10 = arith.constant 0 : index
      %c0_11 = arith.constant 0 : index
      %12 = vector.load %arg7[%c0_10, %c0_11] : memref<256x128xf32, #tpu.memory_space<vmem>>, vector<256x128xf32>
      %c0_12 = arith.constant 0 : index
      %c0_13 = arith.constant 0 : index
      %13 = vector.load %arg5[%c0_12, %c0_13] : memref<1x128xf32, #tpu.memory_space<vmem>>, vector<1x128xf32>
      %14 = vector.broadcast %13 : vector<1x128xf32> to vector<256x128xf32>
      %15 = arith.addf %12, %14 : vector<256x128xf32>
      %cst_14 = arith.constant 0.000000e+00 : f32
      %16 = vector.broadcast %cst_14 : f32 to vector<256x128xf32>
      %17 = arith.maximumf %15, %16 : vector<256x128xf32>
      %18 = arith.truncf %17 : vector<256x128xf32> to vector<256x128xbf16>
      %c0_15 = arith.constant 0 : index
      %c0_16 = arith.constant 0 : index
      %19 = vector.load %arg6[%c0_15, %c0_16] : memref<256x128xbf16, #tpu.memory_space<vmem>>, vector<256x128xbf16>
      tpu.vector_store %arg6[%c0_15, %c0_16], %18 {strides = array<i32>} : memref<256x128xbf16, #tpu.memory_space<vmem>>, vector<256x128xbf16>,
    } else {
    }
    return
  }
  func.func @transform_0(%arg0: i32, %arg1: i32, %arg2: i32) -> (i32, i32) {
    %c0_i32 = arith.constant 0 : i32
    return %arg0, %arg2 : i32, i32
  }
  func.func @transform_1(%arg0: i32, %arg1: i32, %arg2: i32) -> (i32, i32) {
    %c0_i32 = arith.constant 0 : i32
    return %arg2, %arg1 : i32, i32
  }
  func.func @transform_2(%arg0: i32, %arg1: i32, %arg2: i32) -> (i32, i32) {
    %c0_i32 = arith.constant 0 : i32
    %c0_i32_0 = arith.constant 0 : i32
    return %c0_i32, %arg1 : i32, i32
  }
  func.func @transform_3(%arg0: i32, %arg1: i32, %arg2: i32) -> (i32, i32) {
    %c0_i32 = arith.constant 0 : i32
    return %arg0, %arg1 : i32, i32
  }
}

module attributes {stable_mosaic.version = 11 : i64} {
  func.func @_max9_kernel(%arg0: i32, %arg1: memref<9x128x64xbf16, #tpu.memory_space<vmem>>, %arg2: memref<128x64xbf16, #tpu.memory_space<vmem>>) attributes {dimension_semantics = [#tpu.dimension_semantics<parallel>], iteration_bounds = array<i64: 1>, scalar_prefetch = 0 : i64, scratch_operands = 0 : i64, tpu.core_type = #tpu.core_type<tc>, window_params = [{transform_indices = @transform_0, window_bounds = array<i64: 9, 128, 64>}, {transform_indices = @transform_1, window_bounds = array<i64: 128, 64>}]} {
    %c0 = arith.constant 0 : index
    %c0_0 = arith.constant 0 : index
    %c0_1 = arith.constant 0 : index
    %0 = vector.load %arg1[%c0, %c0_0, %c0_1] : memref<9x128x64xbf16, #tpu.memory_space<vmem>>, vector<9x128x64xbf16>
    %cst = arith.constant dense<0xFF80> : vector<128x64xbf16>
    %1 = vector.multi_reduction <maximumf>, %0, %cst [0] : vector<9x128x64xbf16> to vector<128x64xbf16>
    %c0_2 = arith.constant 0 : index
    %c0_3 = arith.constant 0 : index
    %2 = vector.load %arg2[%c0_2, %c0_3] : memref<128x64xbf16, #tpu.memory_space<vmem>>, vector<128x64xbf16>
    tpu.vector_store %arg2[%c0_2, %c0_3], %1 {strides = array<i32>} : memref<128x64xbf16, #tpu.memory_space<vmem>>, vector<128x64xbf16>,
    return
  }
  func.func @transform_0(%arg0: i32) -> (i32, i32, i32) {
    %c0_i32 = arith.constant 0 : i32
    %c0_i32_0 = arith.constant 0 : i32
    %c0_i32_1 = arith.constant 0 : i32
    return %c0_i32, %arg0, %c0_i32_0 : i32, i32, i32
  }
  func.func @transform_1(%arg0: i32) -> (i32, i32) {
    %c0_i32 = arith.constant 0 : i32
    %c0_i32_0 = arith.constant 0 : i32
    return %arg0, %c0_i32 : i32, i32
  }
}

module attributes {stable_mosaic.version = 11 : i64} {
  func.func @_gemm_kernel(%arg0: i32, %arg1: i32, %arg2: i32, %arg3: memref<128x576xbf16, #tpu.memory_space<vmem>>, %arg4: memref<576x128xbf16, #tpu.memory_space<vmem>>, %arg5: memref<1x128xf32, #tpu.memory_space<vmem>>, %arg6: memref<128x128xbf16, #tpu.memory_space<vmem>>, %arg7: memref<128x128xf32, #tpu.memory_space<vmem>>) attributes {dimension_semantics = [#tpu.dimension_semantics<parallel>, #tpu.dimension_semantics<parallel>, #tpu.dimension_semantics<arbitrary>], iteration_bounds = array<i64: 1, 1, 1>, scalar_prefetch = 0 : i64, scratch_operands = 1 : i64, tpu.core_type = #tpu.core_type<tc>, window_params = [{transform_indices = @transform_0, window_bounds = array<i64: 128, 576>}, {transform_indices = @transform_1, window_bounds = array<i64: 576, 128>}, {transform_indices = @transform_2, window_bounds = array<i64: 1, 128>}, {transform_indices = @transform_3, window_bounds = array<i64: 128, 128>}]} {
    %c0_i32 = arith.constant 0 : i32
    %0 = arith.cmpi eq, %arg2, %c0_i32 : i32
    %1 = arith.extui %0 : i1 to i32
    %c0_i32_0 = arith.constant 0 : i32
    %2 = arith.cmpi ne, %1, %c0_i32_0 : i32
    scf.if %2 {
      %cst_10 = arith.constant 0.000000e+00 : f32
      %12 = vector.broadcast %cst_10 : f32 to vector<128x128xf32>
      %c0_11 = arith.constant 0 : index
      %c0_12 = arith.constant 0 : index
      %13 = vector.load %arg7[%c0_11, %c0_12] : memref<128x128xf32, #tpu.memory_space<vmem>>, vector<128x128xf32>
      tpu.vector_store %arg7[%c0_11, %c0_12], %12 {strides = array<i32>} : memref<128x128xf32, #tpu.memory_space<vmem>>, vector<128x128xf32>,
    } else {
    }
    %c0 = arith.constant 0 : index
    %c0_1 = arith.constant 0 : index
    %3 = vector.load %arg7[%c0, %c0_1] : memref<128x128xf32, #tpu.memory_space<vmem>>, vector<128x128xf32>
    %c0_2 = arith.constant 0 : index
    %c0_3 = arith.constant 0 : index
    %4 = vector.load %arg3[%c0_2, %c0_3] : memref<128x576xbf16, #tpu.memory_space<vmem>>, vector<128x576xbf16>
    %c0_4 = arith.constant 0 : index
    %c0_5 = arith.constant 0 : index
    %5 = vector.load %arg4[%c0_4, %c0_5] : memref<576x128xbf16, #tpu.memory_space<vmem>>, vector<576x128xbf16>
    %cst = arith.constant dense<0.000000e+00> : vector<128x128xf32>
    %6 = tpu.matmul %4, %5, %cst {dimension_numbers = #tpu.dot_dimension_numbers<[1], [0], [0], [1], [0, 0, 1, 1], [], []>} : vector<128x576xbf16>, vector<576x128xbf16>, vector<128x128xf32> -> vector<128x128xf32>
    %7 = arith.addf %3, %6 : vector<128x128xf32>
    %c0_6 = arith.constant 0 : index
    %c0_7 = arith.constant 0 : index
    %8 = vector.load %arg7[%c0_6, %c0_7] : memref<128x128xf32, #tpu.memory_space<vmem>>, vector<128x128xf32>
    tpu.vector_store %arg7[%c0_6, %c0_7], %7 {strides = array<i32>} : memref<128x128xf32, #tpu.memory_space<vmem>>, vector<128x128xf32>,
    %c0_i32_8 = arith.constant 0 : i32
    %9 = arith.cmpi eq, %arg2, %c0_i32_8 : i32
    %10 = arith.extui %9 : i1 to i32
    %c0_i32_9 = arith.constant 0 : i32
    %11 = arith.cmpi ne, %10, %c0_i32_9 : i32
    scf.if %11 {
      %c0_10 = arith.constant 0 : index
      %c0_11 = arith.constant 0 : index
      %12 = vector.load %arg7[%c0_10, %c0_11] : memref<128x128xf32, #tpu.memory_space<vmem>>, vector<128x128xf32>
      %c0_12 = arith.constant 0 : index
      %c0_13 = arith.constant 0 : index
      %13 = vector.load %arg5[%c0_12, %c0_13] : memref<1x128xf32, #tpu.memory_space<vmem>>, vector<1x128xf32>
      %14 = vector.broadcast %13 : vector<1x128xf32> to vector<128x128xf32>
      %15 = arith.addf %12, %14 : vector<128x128xf32>
      %cst_14 = arith.constant 0.000000e+00 : f32
      %16 = vector.broadcast %cst_14 : f32 to vector<128x128xf32>
      %17 = arith.maximumf %15, %16 : vector<128x128xf32>
      %18 = arith.truncf %17 : vector<128x128xf32> to vector<128x128xbf16>
      %c0_15 = arith.constant 0 : index
      %c0_16 = arith.constant 0 : index
      %19 = vector.load %arg6[%c0_15, %c0_16] : memref<128x128xbf16, #tpu.memory_space<vmem>>, vector<128x128xbf16>
      tpu.vector_store %arg6[%c0_15, %c0_16], %18 {strides = array<i32>} : memref<128x128xbf16, #tpu.memory_space<vmem>>, vector<128x128xbf16>,
    } else {
    }
    return
  }
  func.func @transform_0(%arg0: i32, %arg1: i32, %arg2: i32) -> (i32, i32) {
    %c0_i32 = arith.constant 0 : i32
    return %arg0, %arg2 : i32, i32
  }
  func.func @transform_1(%arg0: i32, %arg1: i32, %arg2: i32) -> (i32, i32) {
    %c0_i32 = arith.constant 0 : i32
    return %arg2, %arg1 : i32, i32
  }
  func.func @transform_2(%arg0: i32, %arg1: i32, %arg2: i32) -> (i32, i32) {
    %c0_i32 = arith.constant 0 : i32
    %c0_i32_0 = arith.constant 0 : i32
    return %c0_i32, %arg1 : i32, i32
  }
  func.func @transform_3(%arg0: i32, %arg1: i32, %arg2: i32) -> (i32, i32) {
    %c0_i32 = arith.constant 0 : i32
    return %arg0, %arg1 : i32, i32
  }
}

module attributes {stable_mosaic.version = 11 : i64} {
  func.func @_gemm_res_kernel(%arg0: i32, %arg1: i32, %arg2: i32, %arg3: memref<128x576xbf16, #tpu.memory_space<vmem>>, %arg4: memref<576x128xbf16, #tpu.memory_space<vmem>>, %arg5: memref<1x128xf32, #tpu.memory_space<vmem>>, %arg6: memref<128x128xbf16, #tpu.memory_space<vmem>>, %arg7: memref<128x128xbf16, #tpu.memory_space<vmem>>, %arg8: memref<128x128xf32, #tpu.memory_space<vmem>>) attributes {dimension_semantics = [#tpu.dimension_semantics<parallel>, #tpu.dimension_semantics<parallel>, #tpu.dimension_semantics<arbitrary>], iteration_bounds = array<i64: 1, 1, 1>, scalar_prefetch = 0 : i64, scratch_operands = 1 : i64, tpu.core_type = #tpu.core_type<tc>, window_params = [{transform_indices = @transform_0, window_bounds = array<i64: 128, 576>}, {transform_indices = @transform_1, window_bounds = array<i64: 576, 128>}, {transform_indices = @transform_2, window_bounds = array<i64: 1, 128>}, {transform_indices = @transform_3, window_bounds = array<i64: 128, 128>}, {transform_indices = @transform_4, window_bounds = array<i64: 128, 128>}]} {
    %c0_i32 = arith.constant 0 : i32
    %0 = arith.cmpi eq, %arg2, %c0_i32 : i32
    %1 = arith.extui %0 : i1 to i32
    %c0_i32_0 = arith.constant 0 : i32
    %2 = arith.cmpi ne, %1, %c0_i32_0 : i32
    scf.if %2 {
      %cst_10 = arith.constant 0.000000e+00 : f32
      %12 = vector.broadcast %cst_10 : f32 to vector<128x128xf32>
      %c0_11 = arith.constant 0 : index
      %c0_12 = arith.constant 0 : index
      %13 = vector.load %arg8[%c0_11, %c0_12] : memref<128x128xf32, #tpu.memory_space<vmem>>, vector<128x128xf32>
      tpu.vector_store %arg8[%c0_11, %c0_12], %12 {strides = array<i32>} : memref<128x128xf32, #tpu.memory_space<vmem>>, vector<128x128xf32>,
    } else {
    }
    %c0 = arith.constant 0 : index
    %c0_1 = arith.constant 0 : index
    %3 = vector.load %arg8[%c0, %c0_1] : memref<128x128xf32, #tpu.memory_space<vmem>>, vector<128x128xf32>
    %c0_2 = arith.constant 0 : index
    %c0_3 = arith.constant 0 : index
    %4 = vector.load %arg3[%c0_2, %c0_3] : memref<128x576xbf16, #tpu.memory_space<vmem>>, vector<128x576xbf16>
    %c0_4 = arith.constant 0 : index
    %c0_5 = arith.constant 0 : index
    %5 = vector.load %arg4[%c0_4, %c0_5] : memref<576x128xbf16, #tpu.memory_space<vmem>>, vector<576x128xbf16>
    %cst = arith.constant dense<0.000000e+00> : vector<128x128xf32>
    %6 = tpu.matmul %4, %5, %cst {dimension_numbers = #tpu.dot_dimension_numbers<[1], [0], [0], [1], [0, 0, 1, 1], [], []>} : vector<128x576xbf16>, vector<576x128xbf16>, vector<128x128xf32> -> vector<128x128xf32>
    %7 = arith.addf %3, %6 : vector<128x128xf32>
    %c0_6 = arith.constant 0 : index
    %c0_7 = arith.constant 0 : index
    %8 = vector.load %arg8[%c0_6, %c0_7] : memref<128x128xf32, #tpu.memory_space<vmem>>, vector<128x128xf32>
    tpu.vector_store %arg8[%c0_6, %c0_7], %7 {strides = array<i32>} : memref<128x128xf32, #tpu.memory_space<vmem>>, vector<128x128xf32>,
    %c0_i32_8 = arith.constant 0 : i32
    %9 = arith.cmpi eq, %arg2, %c0_i32_8 : i32
    %10 = arith.extui %9 : i1 to i32
    %c0_i32_9 = arith.constant 0 : i32
    %11 = arith.cmpi ne, %10, %c0_i32_9 : i32
    scf.if %11 {
      %c0_10 = arith.constant 0 : index
      %c0_11 = arith.constant 0 : index
      %12 = vector.load %arg8[%c0_10, %c0_11] : memref<128x128xf32, #tpu.memory_space<vmem>>, vector<128x128xf32>
      %c0_12 = arith.constant 0 : index
      %c0_13 = arith.constant 0 : index
      %13 = vector.load %arg5[%c0_12, %c0_13] : memref<1x128xf32, #tpu.memory_space<vmem>>, vector<1x128xf32>
      %14 = vector.broadcast %13 : vector<1x128xf32> to vector<128x128xf32>
      %15 = arith.addf %12, %14 : vector<128x128xf32>
      %c0_14 = arith.constant 0 : index
      %c0_15 = arith.constant 0 : index
      %16 = vector.load %arg6[%c0_14, %c0_15] : memref<128x128xbf16, #tpu.memory_space<vmem>>, vector<128x128xbf16>
      %17 = arith.extf %16 : vector<128x128xbf16> to vector<128x128xf32>
      %18 = arith.addf %15, %17 : vector<128x128xf32>
      %cst_16 = arith.constant 0.000000e+00 : f32
      %19 = vector.broadcast %cst_16 : f32 to vector<128x128xf32>
      %20 = arith.maximumf %18, %19 : vector<128x128xf32>
      %21 = arith.truncf %20 : vector<128x128xf32> to vector<128x128xbf16>
      %c0_17 = arith.constant 0 : index
      %c0_18 = arith.constant 0 : index
      %22 = vector.load %arg7[%c0_17, %c0_18] : memref<128x128xbf16, #tpu.memory_space<vmem>>, vector<128x128xbf16>
      tpu.vector_store %arg7[%c0_17, %c0_18], %21 {strides = array<i32>} : memref<128x128xbf16, #tpu.memory_space<vmem>>, vector<128x128xbf16>,
    } else {
    }
    return
  }
  func.func @transform_0(%arg0: i32, %arg1: i32, %arg2: i32) -> (i32, i32) {
    %c0_i32 = arith.constant 0 : i32
    return %arg0, %arg2 : i32, i32
  }
  func.func @transform_1(%arg0: i32, %arg1: i32, %arg2: i32) -> (i32, i32) {
    %c0_i32 = arith.constant 0 : i32
    return %arg2, %arg1 : i32, i32
  }
  func.func @transform_2(%arg0: i32, %arg1: i32, %arg2: i32) -> (i32, i32) {
    %c0_i32 = arith.constant 0 : i32
    %c0_i32_0 = arith.constant 0 : i32
    return %c0_i32, %arg1 : i32, i32
  }
  func.func @transform_3(%arg0: i32, %arg1: i32, %arg2: i32) -> (i32, i32) {
    %c0_i32 = arith.constant 0 : i32
    return %arg0, %arg1 : i32, i32
  }
  func.func @transform_4(%arg0: i32, %arg1: i32, %arg2: i32) -> (i32, i32) {
    %c0_i32 = arith.constant 0 : i32
    return %arg0, %arg1 : i32, i32
  }
}

module attributes {stable_mosaic.version = 11 : i64} {
  func.func @_gemm_kernel(%arg0: i32, %arg1: i32, %arg2: i32, %arg3: memref<32x576xbf16, #tpu.memory_space<vmem>>, %arg4: memref<576x128xbf16, #tpu.memory_space<vmem>>, %arg5: memref<1x128xf32, #tpu.memory_space<vmem>>, %arg6: memref<32x128xbf16, #tpu.memory_space<vmem>>, %arg7: memref<32x128xf32, #tpu.memory_space<vmem>>) attributes {dimension_semantics = [#tpu.dimension_semantics<parallel>, #tpu.dimension_semantics<parallel>, #tpu.dimension_semantics<arbitrary>], iteration_bounds = array<i64: 1, 1, 1>, scalar_prefetch = 0 : i64, scratch_operands = 1 : i64, tpu.core_type = #tpu.core_type<tc>, window_params = [{transform_indices = @transform_0, window_bounds = array<i64: 32, 576>}, {transform_indices = @transform_1, window_bounds = array<i64: 576, 128>}, {transform_indices = @transform_2, window_bounds = array<i64: 1, 128>}, {transform_indices = @transform_3, window_bounds = array<i64: 32, 128>}]} {
    %c0_i32 = arith.constant 0 : i32
    %0 = arith.cmpi eq, %arg2, %c0_i32 : i32
    %1 = arith.extui %0 : i1 to i32
    %c0_i32_0 = arith.constant 0 : i32
    %2 = arith.cmpi ne, %1, %c0_i32_0 : i32
    scf.if %2 {
      %cst_10 = arith.constant 0.000000e+00 : f32
      %12 = vector.broadcast %cst_10 : f32 to vector<32x128xf32>
      %c0_11 = arith.constant 0 : index
      %c0_12 = arith.constant 0 : index
      %13 = vector.load %arg7[%c0_11, %c0_12] : memref<32x128xf32, #tpu.memory_space<vmem>>, vector<32x128xf32>
      tpu.vector_store %arg7[%c0_11, %c0_12], %12 {strides = array<i32>} : memref<32x128xf32, #tpu.memory_space<vmem>>, vector<32x128xf32>,
    } else {
    }
    %c0 = arith.constant 0 : index
    %c0_1 = arith.constant 0 : index
    %3 = vector.load %arg7[%c0, %c0_1] : memref<32x128xf32, #tpu.memory_space<vmem>>, vector<32x128xf32>
    %c0_2 = arith.constant 0 : index
    %c0_3 = arith.constant 0 : index
    %4 = vector.load %arg3[%c0_2, %c0_3] : memref<32x576xbf16, #tpu.memory_space<vmem>>, vector<32x576xbf16>
    %c0_4 = arith.constant 0 : index
    %c0_5 = arith.constant 0 : index
    %5 = vector.load %arg4[%c0_4, %c0_5] : memref<576x128xbf16, #tpu.memory_space<vmem>>, vector<576x128xbf16>
    %cst = arith.constant dense<0.000000e+00> : vector<32x128xf32>
    %6 = tpu.matmul %4, %5, %cst {dimension_numbers = #tpu.dot_dimension_numbers<[1], [0], [0], [1], [0, 0, 1, 1], [], []>} : vector<32x576xbf16>, vector<576x128xbf16>, vector<32x128xf32> -> vector<32x128xf32>
    %7 = arith.addf %3, %6 : vector<32x128xf32>
    %c0_6 = arith.constant 0 : index
    %c0_7 = arith.constant 0 : index
    %8 = vector.load %arg7[%c0_6, %c0_7] : memref<32x128xf32, #tpu.memory_space<vmem>>, vector<32x128xf32>
    tpu.vector_store %arg7[%c0_6, %c0_7], %7 {strides = array<i32>} : memref<32x128xf32, #tpu.memory_space<vmem>>, vector<32x128xf32>,
    %c0_i32_8 = arith.constant 0 : i32
    %9 = arith.cmpi eq, %arg2, %c0_i32_8 : i32
    %10 = arith.extui %9 : i1 to i32
    %c0_i32_9 = arith.constant 0 : i32
    %11 = arith.cmpi ne, %10, %c0_i32_9 : i32
    scf.if %11 {
      %c0_10 = arith.constant 0 : index
      %c0_11 = arith.constant 0 : index
      %12 = vector.load %arg7[%c0_10, %c0_11] : memref<32x128xf32, #tpu.memory_space<vmem>>, vector<32x128xf32>
      %c0_12 = arith.constant 0 : index
      %c0_13 = arith.constant 0 : index
      %13 = vector.load %arg5[%c0_12, %c0_13] : memref<1x128xf32, #tpu.memory_space<vmem>>, vector<1x128xf32>
      %14 = vector.broadcast %13 : vector<1x128xf32> to vector<32x128xf32>
      %15 = arith.addf %12, %14 : vector<32x128xf32>
      %cst_14 = arith.constant 0.000000e+00 : f32
      %16 = vector.broadcast %cst_14 : f32 to vector<32x128xf32>
      %17 = arith.maximumf %15, %16 : vector<32x128xf32>
      %18 = arith.truncf %17 : vector<32x128xf32> to vector<32x128xbf16>
      %c0_15 = arith.constant 0 : index
      %c0_16 = arith.constant 0 : index
      %19 = vector.load %arg6[%c0_15, %c0_16] : memref<32x128xbf16, #tpu.memory_space<vmem>>, vector<32x128xbf16>
      tpu.vector_store %arg6[%c0_15, %c0_16], %18 {strides = array<i32>} : memref<32x128xbf16, #tpu.memory_space<vmem>>, vector<32x128xbf16>,
    } else {
    }
    return
  }
  func.func @transform_0(%arg0: i32, %arg1: i32, %arg2: i32) -> (i32, i32) {
    %c0_i32 = arith.constant 0 : i32
    return %arg0, %arg2 : i32, i32
  }
  func.func @transform_1(%arg0: i32, %arg1: i32, %arg2: i32) -> (i32, i32) {
    %c0_i32 = arith.constant 0 : i32
    return %arg2, %arg1 : i32, i32
  }
  func.func @transform_2(%arg0: i32, %arg1: i32, %arg2: i32) -> (i32, i32) {
    %c0_i32 = arith.constant 0 : i32
    %c0_i32_0 = arith.constant 0 : i32
    return %c0_i32, %arg1 : i32, i32
  }
  func.func @transform_3(%arg0: i32, %arg1: i32, %arg2: i32) -> (i32, i32) {
    %c0_i32 = arith.constant 0 : i32
    return %arg0, %arg1 : i32, i32
  }
}

module attributes {stable_mosaic.version = 11 : i64} {
  func.func @_gemm_kernel(%arg0: i32, %arg1: i32, %arg2: i32, %arg3: memref<32x64xbf16, #tpu.memory_space<vmem>>, %arg4: memref<64x128xbf16, #tpu.memory_space<vmem>>, %arg5: memref<1x128xf32, #tpu.memory_space<vmem>>, %arg6: memref<32x128xbf16, #tpu.memory_space<vmem>>, %arg7: memref<32x128xf32, #tpu.memory_space<vmem>>) attributes {dimension_semantics = [#tpu.dimension_semantics<parallel>, #tpu.dimension_semantics<parallel>, #tpu.dimension_semantics<arbitrary>], iteration_bounds = array<i64: 1, 1, 1>, scalar_prefetch = 0 : i64, scratch_operands = 1 : i64, tpu.core_type = #tpu.core_type<tc>, window_params = [{transform_indices = @transform_0, window_bounds = array<i64: 32, 64>}, {transform_indices = @transform_1, window_bounds = array<i64: 64, 128>}, {transform_indices = @transform_2, window_bounds = array<i64: 1, 128>}, {transform_indices = @transform_3, window_bounds = array<i64: 32, 128>}]} {
    %c0_i32 = arith.constant 0 : i32
    %0 = arith.cmpi eq, %arg2, %c0_i32 : i32
    %1 = arith.extui %0 : i1 to i32
    %c0_i32_0 = arith.constant 0 : i32
    %2 = arith.cmpi ne, %1, %c0_i32_0 : i32
    scf.if %2 {
      %cst_10 = arith.constant 0.000000e+00 : f32
      %12 = vector.broadcast %cst_10 : f32 to vector<32x128xf32>
      %c0_11 = arith.constant 0 : index
      %c0_12 = arith.constant 0 : index
      %13 = vector.load %arg7[%c0_11, %c0_12] : memref<32x128xf32, #tpu.memory_space<vmem>>, vector<32x128xf32>
      tpu.vector_store %arg7[%c0_11, %c0_12], %12 {strides = array<i32>} : memref<32x128xf32, #tpu.memory_space<vmem>>, vector<32x128xf32>,
    } else {
    }
    %c0 = arith.constant 0 : index
    %c0_1 = arith.constant 0 : index
    %3 = vector.load %arg7[%c0, %c0_1] : memref<32x128xf32, #tpu.memory_space<vmem>>, vector<32x128xf32>
    %c0_2 = arith.constant 0 : index
    %c0_3 = arith.constant 0 : index
    %4 = vector.load %arg3[%c0_2, %c0_3] : memref<32x64xbf16, #tpu.memory_space<vmem>>, vector<32x64xbf16>
    %c0_4 = arith.constant 0 : index
    %c0_5 = arith.constant 0 : index
    %5 = vector.load %arg4[%c0_4, %c0_5] : memref<64x128xbf16, #tpu.memory_space<vmem>>, vector<64x128xbf16>
    %cst = arith.constant dense<0.000000e+00> : vector<32x128xf32>
    %6 = tpu.matmul %4, %5, %cst {dimension_numbers = #tpu.dot_dimension_numbers<[1], [0], [0], [1], [0, 0, 1, 1], [], []>} : vector<32x64xbf16>, vector<64x128xbf16>, vector<32x128xf32> -> vector<32x128xf32>
    %7 = arith.addf %3, %6 : vector<32x128xf32>
    %c0_6 = arith.constant 0 : index
    %c0_7 = arith.constant 0 : index
    %8 = vector.load %arg7[%c0_6, %c0_7] : memref<32x128xf32, #tpu.memory_space<vmem>>, vector<32x128xf32>
    tpu.vector_store %arg7[%c0_6, %c0_7], %7 {strides = array<i32>} : memref<32x128xf32, #tpu.memory_space<vmem>>, vector<32x128xf32>,
    %c0_i32_8 = arith.constant 0 : i32
    %9 = arith.cmpi eq, %arg2, %c0_i32_8 : i32
    %10 = arith.extui %9 : i1 to i32
    %c0_i32_9 = arith.constant 0 : i32
    %11 = arith.cmpi ne, %10, %c0_i32_9 : i32
    scf.if %11 {
      %c0_10 = arith.constant 0 : index
      %c0_11 = arith.constant 0 : index
      %12 = vector.load %arg7[%c0_10, %c0_11] : memref<32x128xf32, #tpu.memory_space<vmem>>, vector<32x128xf32>
      %c0_12 = arith.constant 0 : index
      %c0_13 = arith.constant 0 : index
      %13 = vector.load %arg5[%c0_12, %c0_13] : memref<1x128xf32, #tpu.memory_space<vmem>>, vector<1x128xf32>
      %14 = vector.broadcast %13 : vector<1x128xf32> to vector<32x128xf32>
      %15 = arith.addf %12, %14 : vector<32x128xf32>
      %16 = arith.truncf %15 : vector<32x128xf32> to vector<32x128xbf16>
      %c0_14 = arith.constant 0 : index
      %c0_15 = arith.constant 0 : index
      %17 = vector.load %arg6[%c0_14, %c0_15] : memref<32x128xbf16, #tpu.memory_space<vmem>>, vector<32x128xbf16>
      tpu.vector_store %arg6[%c0_14, %c0_15], %16 {strides = array<i32>} : memref<32x128xbf16, #tpu.memory_space<vmem>>, vector<32x128xbf16>,
    } else {
    }
    return
  }
  func.func @transform_0(%arg0: i32, %arg1: i32, %arg2: i32) -> (i32, i32) {
    %c0_i32 = arith.constant 0 : i32
    return %arg0, %arg2 : i32, i32
  }
  func.func @transform_1(%arg0: i32, %arg1: i32, %arg2: i32) -> (i32, i32) {
    %c0_i32 = arith.constant 0 : i32
    return %arg2, %arg1 : i32, i32
  }
  func.func @transform_2(%arg0: i32, %arg1: i32, %arg2: i32) -> (i32, i32) {
    %c0_i32 = arith.constant 0 : i32
    %c0_i32_0 = arith.constant 0 : i32
    return %c0_i32, %arg1 : i32, i32
  }
  func.func @transform_3(%arg0: i32, %arg1: i32, %arg2: i32) -> (i32, i32) {
    %c0_i32 = arith.constant 0 : i32
    return %arg0, %arg1 : i32, i32
  }
}

module attributes {stable_mosaic.version = 11 : i64} {
  func.func @_gemm_res_kernel(%arg0: i32, %arg1: i32, %arg2: i32, %arg3: memref<32x1152xbf16, #tpu.memory_space<vmem>>, %arg4: memref<1152x128xbf16, #tpu.memory_space<vmem>>, %arg5: memref<1x128xf32, #tpu.memory_space<vmem>>, %arg6: memref<32x128xbf16, #tpu.memory_space<vmem>>, %arg7: memref<32x128xbf16, #tpu.memory_space<vmem>>, %arg8: memref<32x128xf32, #tpu.memory_space<vmem>>) attributes {dimension_semantics = [#tpu.dimension_semantics<parallel>, #tpu.dimension_semantics<parallel>, #tpu.dimension_semantics<arbitrary>], iteration_bounds = array<i64: 1, 1, 1>, scalar_prefetch = 0 : i64, scratch_operands = 1 : i64, tpu.core_type = #tpu.core_type<tc>, window_params = [{transform_indices = @transform_0, window_bounds = array<i64: 32, 1152>}, {transform_indices = @transform_1, window_bounds = array<i64: 1152, 128>}, {transform_indices = @transform_2, window_bounds = array<i64: 1, 128>}, {transform_indices = @transform_3, window_bounds = array<i64: 32, 128>}, {transform_indices = @transform_4, window_bounds = array<i64: 32, 128>}]} {
    %c0_i32 = arith.constant 0 : i32
    %0 = arith.cmpi eq, %arg2, %c0_i32 : i32
    %1 = arith.extui %0 : i1 to i32
    %c0_i32_0 = arith.constant 0 : i32
    %2 = arith.cmpi ne, %1, %c0_i32_0 : i32
    scf.if %2 {
      %cst_10 = arith.constant 0.000000e+00 : f32
      %12 = vector.broadcast %cst_10 : f32 to vector<32x128xf32>
      %c0_11 = arith.constant 0 : index
      %c0_12 = arith.constant 0 : index
      %13 = vector.load %arg8[%c0_11, %c0_12] : memref<32x128xf32, #tpu.memory_space<vmem>>, vector<32x128xf32>
      tpu.vector_store %arg8[%c0_11, %c0_12], %12 {strides = array<i32>} : memref<32x128xf32, #tpu.memory_space<vmem>>, vector<32x128xf32>,
    } else {
    }
    %c0 = arith.constant 0 : index
    %c0_1 = arith.constant 0 : index
    %3 = vector.load %arg8[%c0, %c0_1] : memref<32x128xf32, #tpu.memory_space<vmem>>, vector<32x128xf32>
    %c0_2 = arith.constant 0 : index
    %c0_3 = arith.constant 0 : index
    %4 = vector.load %arg3[%c0_2, %c0_3] : memref<32x1152xbf16, #tpu.memory_space<vmem>>, vector<32x1152xbf16>
    %c0_4 = arith.constant 0 : index
    %c0_5 = arith.constant 0 : index
    %5 = vector.load %arg4[%c0_4, %c0_5] : memref<1152x128xbf16, #tpu.memory_space<vmem>>, vector<1152x128xbf16>
    %cst = arith.constant dense<0.000000e+00> : vector<32x128xf32>
    %6 = tpu.matmul %4, %5, %cst {dimension_numbers = #tpu.dot_dimension_numbers<[1], [0], [0], [1], [0, 0, 1, 1], [], []>} : vector<32x1152xbf16>, vector<1152x128xbf16>, vector<32x128xf32> -> vector<32x128xf32>
    %7 = arith.addf %3, %6 : vector<32x128xf32>
    %c0_6 = arith.constant 0 : index
    %c0_7 = arith.constant 0 : index
    %8 = vector.load %arg8[%c0_6, %c0_7] : memref<32x128xf32, #tpu.memory_space<vmem>>, vector<32x128xf32>
    tpu.vector_store %arg8[%c0_6, %c0_7], %7 {strides = array<i32>} : memref<32x128xf32, #tpu.memory_space<vmem>>, vector<32x128xf32>,
    %c0_i32_8 = arith.constant 0 : i32
    %9 = arith.cmpi eq, %arg2, %c0_i32_8 : i32
    %10 = arith.extui %9 : i1 to i32
    %c0_i32_9 = arith.constant 0 : i32
    %11 = arith.cmpi ne, %10, %c0_i32_9 : i32
    scf.if %11 {
      %c0_10 = arith.constant 0 : index
      %c0_11 = arith.constant 0 : index
      %12 = vector.load %arg8[%c0_10, %c0_11] : memref<32x128xf32, #tpu.memory_space<vmem>>, vector<32x128xf32>
      %c0_12 = arith.constant 0 : index
      %c0_13 = arith.constant 0 : index
      %13 = vector.load %arg5[%c0_12, %c0_13] : memref<1x128xf32, #tpu.memory_space<vmem>>, vector<1x128xf32>
      %14 = vector.broadcast %13 : vector<1x128xf32> to vector<32x128xf32>
      %15 = arith.addf %12, %14 : vector<32x128xf32>
      %c0_14 = arith.constant 0 : index
      %c0_15 = arith.constant 0 : index
      %16 = vector.load %arg6[%c0_14, %c0_15] : memref<32x128xbf16, #tpu.memory_space<vmem>>, vector<32x128xbf16>
      %17 = arith.extf %16 : vector<32x128xbf16> to vector<32x128xf32>
      %18 = arith.addf %15, %17 : vector<32x128xf32>
      %cst_16 = arith.constant 0.000000e+00 : f32
      %19 = vector.broadcast %cst_16 : f32 to vector<32x128xf32>
      %20 = arith.maximumf %18, %19 : vector<32x128xf32>
      %21 = arith.truncf %20 : vector<32x128xf32> to vector<32x128xbf16>
      %c0_17 = arith.constant 0 : index
      %c0_18 = arith.constant 0 : index
      %22 = vector.load %arg7[%c0_17, %c0_18] : memref<32x128xbf16, #tpu.memory_space<vmem>>, vector<32x128xbf16>
      tpu.vector_store %arg7[%c0_17, %c0_18], %21 {strides = array<i32>} : memref<32x128xbf16, #tpu.memory_space<vmem>>, vector<32x128xbf16>,
    } else {
    }
    return
  }
  func.func @transform_0(%arg0: i32, %arg1: i32, %arg2: i32) -> (i32, i32) {
    %c0_i32 = arith.constant 0 : i32
    return %arg0, %arg2 : i32, i32
  }
  func.func @transform_1(%arg0: i32, %arg1: i32, %arg2: i32) -> (i32, i32) {
    %c0_i32 = arith.constant 0 : i32
    return %arg2, %arg1 : i32, i32
  }
  func.func @transform_2(%arg0: i32, %arg1: i32, %arg2: i32) -> (i32, i32) {
    %c0_i32 = arith.constant 0 : i32
    %c0_i32_0 = arith.constant 0 : i32
    return %c0_i32, %arg1 : i32, i32
  }
  func.func @transform_3(%arg0: i32, %arg1: i32, %arg2: i32) -> (i32, i32) {
    %c0_i32 = arith.constant 0 : i32
    return %arg0, %arg1 : i32, i32
  }
  func.func @transform_4(%arg0: i32, %arg1: i32, %arg2: i32) -> (i32, i32) {
    %c0_i32 = arith.constant 0 : i32
    return %arg0, %arg1 : i32, i32
  }
}

module attributes {stable_mosaic.version = 11 : i64} {
  func.func @_gemm_kernel(%arg0: i32, %arg1: i32, %arg2: i32, %arg3: memref<32x1152xbf16, #tpu.memory_space<vmem>>, %arg4: memref<1152x128xbf16, #tpu.memory_space<vmem>>, %arg5: memref<1x128xf32, #tpu.memory_space<vmem>>, %arg6: memref<32x128xbf16, #tpu.memory_space<vmem>>, %arg7: memref<32x128xf32, #tpu.memory_space<vmem>>) attributes {dimension_semantics = [#tpu.dimension_semantics<parallel>, #tpu.dimension_semantics<parallel>, #tpu.dimension_semantics<arbitrary>], iteration_bounds = array<i64: 1, 1, 1>, scalar_prefetch = 0 : i64, scratch_operands = 1 : i64, tpu.core_type = #tpu.core_type<tc>, window_params = [{transform_indices = @transform_0, window_bounds = array<i64: 32, 1152>}, {transform_indices = @transform_1, window_bounds = array<i64: 1152, 128>}, {transform_indices = @transform_2, window_bounds = array<i64: 1, 128>}, {transform_indices = @transform_3, window_bounds = array<i64: 32, 128>}]} {
    %c0_i32 = arith.constant 0 : i32
    %0 = arith.cmpi eq, %arg2, %c0_i32 : i32
    %1 = arith.extui %0 : i1 to i32
    %c0_i32_0 = arith.constant 0 : i32
    %2 = arith.cmpi ne, %1, %c0_i32_0 : i32
    scf.if %2 {
      %cst_10 = arith.constant 0.000000e+00 : f32
      %12 = vector.broadcast %cst_10 : f32 to vector<32x128xf32>
      %c0_11 = arith.constant 0 : index
      %c0_12 = arith.constant 0 : index
      %13 = vector.load %arg7[%c0_11, %c0_12] : memref<32x128xf32, #tpu.memory_space<vmem>>, vector<32x128xf32>
      tpu.vector_store %arg7[%c0_11, %c0_12], %12 {strides = array<i32>} : memref<32x128xf32, #tpu.memory_space<vmem>>, vector<32x128xf32>,
    } else {
    }
    %c0 = arith.constant 0 : index
    %c0_1 = arith.constant 0 : index
    %3 = vector.load %arg7[%c0, %c0_1] : memref<32x128xf32, #tpu.memory_space<vmem>>, vector<32x128xf32>
    %c0_2 = arith.constant 0 : index
    %c0_3 = arith.constant 0 : index
    %4 = vector.load %arg3[%c0_2, %c0_3] : memref<32x1152xbf16, #tpu.memory_space<vmem>>, vector<32x1152xbf16>
    %c0_4 = arith.constant 0 : index
    %c0_5 = arith.constant 0 : index
    %5 = vector.load %arg4[%c0_4, %c0_5] : memref<1152x128xbf16, #tpu.memory_space<vmem>>, vector<1152x128xbf16>
    %cst = arith.constant dense<0.000000e+00> : vector<32x128xf32>
    %6 = tpu.matmul %4, %5, %cst {dimension_numbers = #tpu.dot_dimension_numbers<[1], [0], [0], [1], [0, 0, 1, 1], [], []>} : vector<32x1152xbf16>, vector<1152x128xbf16>, vector<32x128xf32> -> vector<32x128xf32>
    %7 = arith.addf %3, %6 : vector<32x128xf32>
    %c0_6 = arith.constant 0 : index
    %c0_7 = arith.constant 0 : index
    %8 = vector.load %arg7[%c0_6, %c0_7] : memref<32x128xf32, #tpu.memory_space<vmem>>, vector<32x128xf32>
    tpu.vector_store %arg7[%c0_6, %c0_7], %7 {strides = array<i32>} : memref<32x128xf32, #tpu.memory_space<vmem>>, vector<32x128xf32>,
    %c0_i32_8 = arith.constant 0 : i32
    %9 = arith.cmpi eq, %arg2, %c0_i32_8 : i32
    %10 = arith.extui %9 : i1 to i32
    %c0_i32_9 = arith.constant 0 : i32
    %11 = arith.cmpi ne, %10, %c0_i32_9 : i32
    scf.if %11 {
      %c0_10 = arith.constant 0 : index
      %c0_11 = arith.constant 0 : index
      %12 = vector.load %arg7[%c0_10, %c0_11] : memref<32x128xf32, #tpu.memory_space<vmem>>, vector<32x128xf32>
      %c0_12 = arith.constant 0 : index
      %c0_13 = arith.constant 0 : index
      %13 = vector.load %arg5[%c0_12, %c0_13] : memref<1x128xf32, #tpu.memory_space<vmem>>, vector<1x128xf32>
      %14 = vector.broadcast %13 : vector<1x128xf32> to vector<32x128xf32>
      %15 = arith.addf %12, %14 : vector<32x128xf32>
      %cst_14 = arith.constant 0.000000e+00 : f32
      %16 = vector.broadcast %cst_14 : f32 to vector<32x128xf32>
      %17 = arith.maximumf %15, %16 : vector<32x128xf32>
      %18 = arith.truncf %17 : vector<32x128xf32> to vector<32x128xbf16>
      %c0_15 = arith.constant 0 : index
      %c0_16 = arith.constant 0 : index
      %19 = vector.load %arg6[%c0_15, %c0_16] : memref<32x128xbf16, #tpu.memory_space<vmem>>, vector<32x128xbf16>
      tpu.vector_store %arg6[%c0_15, %c0_16], %18 {strides = array<i32>} : memref<32x128xbf16, #tpu.memory_space<vmem>>, vector<32x128xbf16>,
    } else {
    }
    return
  }
  func.func @transform_0(%arg0: i32, %arg1: i32, %arg2: i32) -> (i32, i32) {
    %c0_i32 = arith.constant 0 : i32
    return %arg0, %arg2 : i32, i32
  }
  func.func @transform_1(%arg0: i32, %arg1: i32, %arg2: i32) -> (i32, i32) {
    %c0_i32 = arith.constant 0 : i32
    return %arg2, %arg1 : i32, i32
  }
  func.func @transform_2(%arg0: i32, %arg1: i32, %arg2: i32) -> (i32, i32) {
    %c0_i32 = arith.constant 0 : i32
    %c0_i32_0 = arith.constant 0 : i32
    return %c0_i32, %arg1 : i32, i32
  }
  func.func @transform_3(%arg0: i32, %arg1: i32, %arg2: i32) -> (i32, i32) {
    %c0_i32 = arith.constant 0 : i32
    return %arg0, %arg1 : i32, i32
  }
}

module attributes {stable_mosaic.version = 11 : i64} {
  func.func @_gemm_kernel(%arg0: i32, %arg1: i32, %arg2: i32, %arg3: memref<16x1152xbf16, #tpu.memory_space<vmem>>, %arg4: memref<1152x256xbf16, #tpu.memory_space<vmem>>, %arg5: memref<1x256xf32, #tpu.memory_space<vmem>>, %arg6: memref<16x256xbf16, #tpu.memory_space<vmem>>, %arg7: memref<16x256xf32, #tpu.memory_space<vmem>>) attributes {dimension_semantics = [#tpu.dimension_semantics<parallel>, #tpu.dimension_semantics<parallel>, #tpu.dimension_semantics<arbitrary>], iteration_bounds = array<i64: 1, 1, 1>, scalar_prefetch = 0 : i64, scratch_operands = 1 : i64, tpu.core_type = #tpu.core_type<tc>, window_params = [{transform_indices = @transform_0, window_bounds = array<i64: 16, 1152>}, {transform_indices = @transform_1, window_bounds = array<i64: 1152, 256>}, {transform_indices = @transform_2, window_bounds = array<i64: 1, 256>}, {transform_indices = @transform_3, window_bounds = array<i64: 16, 256>}]} {
    %c0_i32 = arith.constant 0 : i32
    %0 = arith.cmpi eq, %arg2, %c0_i32 : i32
    %1 = arith.extui %0 : i1 to i32
    %c0_i32_0 = arith.constant 0 : i32
    %2 = arith.cmpi ne, %1, %c0_i32_0 : i32
    scf.if %2 {
      %cst_10 = arith.constant 0.000000e+00 : f32
      %12 = vector.broadcast %cst_10 : f32 to vector<16x256xf32>
      %c0_11 = arith.constant 0 : index
      %c0_12 = arith.constant 0 : index
      %13 = vector.load %arg7[%c0_11, %c0_12] : memref<16x256xf32, #tpu.memory_space<vmem>>, vector<16x256xf32>
      tpu.vector_store %arg7[%c0_11, %c0_12], %12 {strides = array<i32>} : memref<16x256xf32, #tpu.memory_space<vmem>>, vector<16x256xf32>,
    } else {
    }
    %c0 = arith.constant 0 : index
    %c0_1 = arith.constant 0 : index
    %3 = vector.load %arg7[%c0, %c0_1] : memref<16x256xf32, #tpu.memory_space<vmem>>, vector<16x256xf32>
    %c0_2 = arith.constant 0 : index
    %c0_3 = arith.constant 0 : index
    %4 = vector.load %arg3[%c0_2, %c0_3] : memref<16x1152xbf16, #tpu.memory_space<vmem>>, vector<16x1152xbf16>
    %c0_4 = arith.constant 0 : index
    %c0_5 = arith.constant 0 : index
    %5 = vector.load %arg4[%c0_4, %c0_5] : memref<1152x256xbf16, #tpu.memory_space<vmem>>, vector<1152x256xbf16>
    %cst = arith.constant dense<0.000000e+00> : vector<16x256xf32>
    %6 = tpu.matmul %4, %5, %cst {dimension_numbers = #tpu.dot_dimension_numbers<[1], [0], [0], [1], [0, 0, 1, 1], [], []>} : vector<16x1152xbf16>, vector<1152x256xbf16>, vector<16x256xf32> -> vector<16x256xf32>
    %7 = arith.addf %3, %6 : vector<16x256xf32>
    %c0_6 = arith.constant 0 : index
    %c0_7 = arith.constant 0 : index
    %8 = vector.load %arg7[%c0_6, %c0_7] : memref<16x256xf32, #tpu.memory_space<vmem>>, vector<16x256xf32>
    tpu.vector_store %arg7[%c0_6, %c0_7], %7 {strides = array<i32>} : memref<16x256xf32, #tpu.memory_space<vmem>>, vector<16x256xf32>,
    %c0_i32_8 = arith.constant 0 : i32
    %9 = arith.cmpi eq, %arg2, %c0_i32_8 : i32
    %10 = arith.extui %9 : i1 to i32
    %c0_i32_9 = arith.constant 0 : i32
    %11 = arith.cmpi ne, %10, %c0_i32_9 : i32
    scf.if %11 {
      %c0_10 = arith.constant 0 : index
      %c0_11 = arith.constant 0 : index
      %12 = vector.load %arg7[%c0_10, %c0_11] : memref<16x256xf32, #tpu.memory_space<vmem>>, vector<16x256xf32>
      %c0_12 = arith.constant 0 : index
      %c0_13 = arith.constant 0 : index
      %13 = vector.load %arg5[%c0_12, %c0_13] : memref<1x256xf32, #tpu.memory_space<vmem>>, vector<1x256xf32>
      %14 = vector.broadcast %13 : vector<1x256xf32> to vector<16x256xf32>
      %15 = arith.addf %12, %14 : vector<16x256xf32>
      %cst_14 = arith.constant 0.000000e+00 : f32
      %16 = vector.broadcast %cst_14 : f32 to vector<16x256xf32>
      %17 = arith.maximumf %15, %16 : vector<16x256xf32>
      %18 = arith.truncf %17 : vector<16x256xf32> to vector<16x256xbf16>
      %c0_15 = arith.constant 0 : index
      %c0_16 = arith.constant 0 : index
      %19 = vector.load %arg6[%c0_15, %c0_16] : memref<16x256xbf16, #tpu.memory_space<vmem>>, vector<16x256xbf16>
      tpu.vector_store %arg6[%c0_15, %c0_16], %18 {strides = array<i32>} : memref<16x256xbf16, #tpu.memory_space<vmem>>, vector<16x256xbf16>,
    } else {
    }
    return
  }
  func.func @transform_0(%arg0: i32, %arg1: i32, %arg2: i32) -> (i32, i32) {
    %c0_i32 = arith.constant 0 : i32
    return %arg0, %arg2 : i32, i32
  }
  func.func @transform_1(%arg0: i32, %arg1: i32, %arg2: i32) -> (i32, i32) {
    %c0_i32 = arith.constant 0 : i32
    return %arg2, %arg1 : i32, i32
  }
  func.func @transform_2(%arg0: i32, %arg1: i32, %arg2: i32) -> (i32, i32) {
    %c0_i32 = arith.constant 0 : i32
    %c0_i32_0 = arith.constant 0 : i32
    return %c0_i32, %arg1 : i32, i32
  }
  func.func @transform_3(%arg0: i32, %arg1: i32, %arg2: i32) -> (i32, i32) {
    %c0_i32 = arith.constant 0 : i32
    return %arg0, %arg1 : i32, i32
  }
}

module attributes {stable_mosaic.version = 11 : i64} {
  func.func @_gemm_res_kernel(%arg0: i32, %arg1: i32, %arg2: i32, %arg3: memref<16x384xbf16, #tpu.memory_space<vmem>>, %arg4: memref<384x256xbf16, #tpu.memory_space<vmem>>, %arg5: memref<1x256xf32, #tpu.memory_space<vmem>>, %arg6: memref<16x256xbf16, #tpu.memory_space<vmem>>, %arg7: memref<16x256xbf16, #tpu.memory_space<vmem>>, %arg8: memref<16x256xf32, #tpu.memory_space<vmem>>) attributes {dimension_semantics = [#tpu.dimension_semantics<parallel>, #tpu.dimension_semantics<parallel>, #tpu.dimension_semantics<arbitrary>], iteration_bounds = array<i64: 1, 1, 6>, scalar_prefetch = 0 : i64, scratch_operands = 1 : i64, tpu.core_type = #tpu.core_type<tc>, window_params = [{transform_indices = @transform_0, window_bounds = array<i64: 16, 384>}, {transform_indices = @transform_1, window_bounds = array<i64: 384, 256>}, {transform_indices = @transform_2, window_bounds = array<i64: 1, 256>}, {transform_indices = @transform_3, window_bounds = array<i64: 16, 256>}, {transform_indices = @transform_4, window_bounds = array<i64: 16, 256>}]} {
    %c0_i32 = arith.constant 0 : i32
    %0 = arith.cmpi eq, %arg2, %c0_i32 : i32
    %1 = arith.extui %0 : i1 to i32
    %c0_i32_0 = arith.constant 0 : i32
    %2 = arith.cmpi ne, %1, %c0_i32_0 : i32
    scf.if %2 {
      %cst_9 = arith.constant 0.000000e+00 : f32
      %12 = vector.broadcast %cst_9 : f32 to vector<16x256xf32>
      %c0_10 = arith.constant 0 : index
      %c0_11 = arith.constant 0 : index
      %13 = vector.load %arg8[%c0_10, %c0_11] : memref<16x256xf32, #tpu.memory_space<vmem>>, vector<16x256xf32>
      tpu.vector_store %arg8[%c0_10, %c0_11], %12 {strides = array<i32>} : memref<16x256xf32, #tpu.memory_space<vmem>>, vector<16x256xf32>,
    } else {
    }
    %c0 = arith.constant 0 : index
    %c0_1 = arith.constant 0 : index
    %3 = vector.load %arg8[%c0, %c0_1] : memref<16x256xf32, #tpu.memory_space<vmem>>, vector<16x256xf32>
    %c0_2 = arith.constant 0 : index
    %c0_3 = arith.constant 0 : index
    %4 = vector.load %arg3[%c0_2, %c0_3] : memref<16x384xbf16, #tpu.memory_space<vmem>>, vector<16x384xbf16>
    %c0_4 = arith.constant 0 : index
    %c0_5 = arith.constant 0 : index
    %5 = vector.load %arg4[%c0_4, %c0_5] : memref<384x256xbf16, #tpu.memory_space<vmem>>, vector<384x256xbf16>
    %cst = arith.constant dense<0.000000e+00> : vector<16x256xf32>
    %6 = tpu.matmul %4, %5, %cst {dimension_numbers = #tpu.dot_dimension_numbers<[1], [0], [0], [1], [0, 0, 1, 1], [], []>} : vector<16x384xbf16>, vector<384x256xbf16>, vector<16x256xf32> -> vector<16x256xf32>
    %7 = arith.addf %3, %6 : vector<16x256xf32>
    %c0_6 = arith.constant 0 : index
    %c0_7 = arith.constant 0 : index
    %8 = vector.load %arg8[%c0_6, %c0_7] : memref<16x256xf32, #tpu.memory_space<vmem>>, vector<16x256xf32>
    tpu.vector_store %arg8[%c0_6, %c0_7], %7 {strides = array<i32>} : memref<16x256xf32, #tpu.memory_space<vmem>>, vector<16x256xf32>,
    %c5_i32 = arith.constant 5 : i32
    %9 = arith.cmpi eq, %arg2, %c5_i32 : i32
    %10 = arith.extui %9 : i1 to i32
    %c0_i32_8 = arith.constant 0 : i32
    %11 = arith.cmpi ne, %10, %c0_i32_8 : i32
    scf.if %11 {
      %c0_9 = arith.constant 0 : index
      %c0_10 = arith.constant 0 : index
      %12 = vector.load %arg8[%c0_9, %c0_10] : memref<16x256xf32, #tpu.memory_space<vmem>>, vector<16x256xf32>
      %c0_11 = arith.constant 0 : index
      %c0_12 = arith.constant 0 : index
      %13 = vector.load %arg5[%c0_11, %c0_12] : memref<1x256xf32, #tpu.memory_space<vmem>>, vector<1x256xf32>
      %14 = vector.broadcast %13 : vector<1x256xf32> to vector<16x256xf32>
      %15 = arith.addf %12, %14 : vector<16x256xf32>
      %c0_13 = arith.constant 0 : index
      %c0_14 = arith.constant 0 : index
      %16 = vector.load %arg6[%c0_13, %c0_14] : memref<16x256xbf16, #tpu.memory_space<vmem>>, vector<16x256xbf16>
      %17 = arith.extf %16 : vector<16x256xbf16> to vector<16x256xf32>
      %18 = arith.addf %15, %17 : vector<16x256xf32>
      %cst_15 = arith.constant 0.000000e+00 : f32
      %19 = vector.broadcast %cst_15 : f32 to vector<16x256xf32>
      %20 = arith.maximumf %18, %19 : vector<16x256xf32>
      %21 = arith.truncf %20 : vector<16x256xf32> to vector<16x256xbf16>
      %c0_16 = arith.constant 0 : index
      %c0_17 = arith.constant 0 : index
      %22 = vector.load %arg7[%c0_16, %c0_17] : memref<16x256xbf16, #tpu.memory_space<vmem>>, vector<16x256xbf16>
      tpu.vector_store %arg7[%c0_16, %c0_17], %21 {strides = array<i32>} : memref<16x256xbf16, #tpu.memory_space<vmem>>, vector<16x256xbf16>,
    } else {
    }
    return
  }
  func.func @transform_0(%arg0: i32, %arg1: i32, %arg2: i32) -> (i32, i32) {
    %c0_i32 = arith.constant 0 : i32
    return %arg0, %arg2 : i32, i32
  }
  func.func @transform_1(%arg0: i32, %arg1: i32, %arg2: i32) -> (i32, i32) {
    %c0_i32 = arith.constant 0 : i32
    return %arg2, %arg1 : i32, i32
  }
  func.func @transform_2(%arg0: i32, %arg1: i32, %arg2: i32) -> (i32, i32) {
    %c0_i32 = arith.constant 0 : i32
    %c0_i32_0 = arith.constant 0 : i32
    return %c0_i32, %arg1 : i32, i32
  }
  func.func @transform_3(%arg0: i32, %arg1: i32, %arg2: i32) -> (i32, i32) {
    %c0_i32 = arith.constant 0 : i32
    return %arg0, %arg1 : i32, i32
  }
  func.func @transform_4(%arg0: i32, %arg1: i32, %arg2: i32) -> (i32, i32) {
    %c0_i32 = arith.constant 0 : i32
    return %arg0, %arg1 : i32, i32
  }
}

module attributes {stable_mosaic.version = 11 : i64} {
  func.func @_gemm_kernel(%arg0: i32, %arg1: i32, %arg2: i32, %arg3: memref<16x128xbf16, #tpu.memory_space<vmem>>, %arg4: memref<128x256xbf16, #tpu.memory_space<vmem>>, %arg5: memref<1x256xf32, #tpu.memory_space<vmem>>, %arg6: memref<16x256xbf16, #tpu.memory_space<vmem>>, %arg7: memref<16x256xf32, #tpu.memory_space<vmem>>) attributes {dimension_semantics = [#tpu.dimension_semantics<parallel>, #tpu.dimension_semantics<parallel>, #tpu.dimension_semantics<arbitrary>], iteration_bounds = array<i64: 1, 1, 1>, scalar_prefetch = 0 : i64, scratch_operands = 1 : i64, tpu.core_type = #tpu.core_type<tc>, window_params = [{transform_indices = @transform_0, window_bounds = array<i64: 16, 128>}, {transform_indices = @transform_1, window_bounds = array<i64: 128, 256>}, {transform_indices = @transform_2, window_bounds = array<i64: 1, 256>}, {transform_indices = @transform_3, window_bounds = array<i64: 16, 256>}]} {
    %c0_i32 = arith.constant 0 : i32
    %0 = arith.cmpi eq, %arg2, %c0_i32 : i32
    %1 = arith.extui %0 : i1 to i32
    %c0_i32_0 = arith.constant 0 : i32
    %2 = arith.cmpi ne, %1, %c0_i32_0 : i32
    scf.if %2 {
      %cst_10 = arith.constant 0.000000e+00 : f32
      %12 = vector.broadcast %cst_10 : f32 to vector<16x256xf32>
      %c0_11 = arith.constant 0 : index
      %c0_12 = arith.constant 0 : index
      %13 = vector.load %arg7[%c0_11, %c0_12] : memref<16x256xf32, #tpu.memory_space<vmem>>, vector<16x256xf32>
      tpu.vector_store %arg7[%c0_11, %c0_12], %12 {strides = array<i32>} : memref<16x256xf32, #tpu.memory_space<vmem>>, vector<16x256xf32>,
    } else {
    }
    %c0 = arith.constant 0 : index
    %c0_1 = arith.constant 0 : index
    %3 = vector.load %arg7[%c0, %c0_1] : memref<16x256xf32, #tpu.memory_space<vmem>>, vector<16x256xf32>
    %c0_2 = arith.constant 0 : index
    %c0_3 = arith.constant 0 : index
    %4 = vector.load %arg3[%c0_2, %c0_3] : memref<16x128xbf16, #tpu.memory_space<vmem>>, vector<16x128xbf16>
    %c0_4 = arith.constant 0 : index
    %c0_5 = arith.constant 0 : index
    %5 = vector.load %arg4[%c0_4, %c0_5] : memref<128x256xbf16, #tpu.memory_space<vmem>>, vector<128x256xbf16>
    %cst = arith.constant dense<0.000000e+00> : vector<16x256xf32>
    %6 = tpu.matmul %4, %5, %cst {dimension_numbers = #tpu.dot_dimension_numbers<[1], [0], [0], [1], [0, 0, 1, 1], [], []>} : vector<16x128xbf16>, vector<128x256xbf16>, vector<16x256xf32> -> vector<16x256xf32>
    %7 = arith.addf %3, %6 : vector<16x256xf32>
    %c0_6 = arith.constant 0 : index
    %c0_7 = arith.constant 0 : index
    %8 = vector.load %arg7[%c0_6, %c0_7] : memref<16x256xf32, #tpu.memory_space<vmem>>, vector<16x256xf32>
    tpu.vector_store %arg7[%c0_6, %c0_7], %7 {strides = array<i32>} : memref<16x256xf32, #tpu.memory_space<vmem>>, vector<16x256xf32>,
    %c0_i32_8 = arith.constant 0 : i32
    %9 = arith.cmpi eq, %arg2, %c0_i32_8 : i32
    %10 = arith.extui %9 : i1 to i32
    %c0_i32_9 = arith.constant 0 : i32
    %11 = arith.cmpi ne, %10, %c0_i32_9 : i32
    scf.if %11 {
      %c0_10 = arith.constant 0 : index
      %c0_11 = arith.constant 0 : index
      %12 = vector.load %arg7[%c0_10, %c0_11] : memref<16x256xf32, #tpu.memory_space<vmem>>, vector<16x256xf32>
      %c0_12 = arith.constant 0 : index
      %c0_13 = arith.constant 0 : index
      %13 = vector.load %arg5[%c0_12, %c0_13] : memref<1x256xf32, #tpu.memory_space<vmem>>, vector<1x256xf32>
      %14 = vector.broadcast %13 : vector<1x256xf32> to vector<16x256xf32>
      %15 = arith.addf %12, %14 : vector<16x256xf32>
      %16 = arith.truncf %15 : vector<16x256xf32> to vector<16x256xbf16>
      %c0_14 = arith.constant 0 : index
      %c0_15 = arith.constant 0 : index
      %17 = vector.load %arg6[%c0_14, %c0_15] : memref<16x256xbf16, #tpu.memory_space<vmem>>, vector<16x256xbf16>
      tpu.vector_store %arg6[%c0_14, %c0_15], %16 {strides = array<i32>} : memref<16x256xbf16, #tpu.memory_space<vmem>>, vector<16x256xbf16>,
    } else {
    }
    return
  }
  func.func @transform_0(%arg0: i32, %arg1: i32, %arg2: i32) -> (i32, i32) {
    %c0_i32 = arith.constant 0 : i32
    return %arg0, %arg2 : i32, i32
  }
  func.func @transform_1(%arg0: i32, %arg1: i32, %arg2: i32) -> (i32, i32) {
    %c0_i32 = arith.constant 0 : i32
    return %arg2, %arg1 : i32, i32
  }
  func.func @transform_2(%arg0: i32, %arg1: i32, %arg2: i32) -> (i32, i32) {
    %c0_i32 = arith.constant 0 : i32
    %c0_i32_0 = arith.constant 0 : i32
    return %c0_i32, %arg1 : i32, i32
  }
  func.func @transform_3(%arg0: i32, %arg1: i32, %arg2: i32) -> (i32, i32) {
    %c0_i32 = arith.constant 0 : i32
    return %arg0, %arg1 : i32, i32
  }
}

module attributes {stable_mosaic.version = 11 : i64} {
  func.func @_gemm_kernel(%arg0: i32, %arg1: i32, %arg2: i32, %arg3: memref<16x384xbf16, #tpu.memory_space<vmem>>, %arg4: memref<384x256xbf16, #tpu.memory_space<vmem>>, %arg5: memref<1x256xf32, #tpu.memory_space<vmem>>, %arg6: memref<16x256xbf16, #tpu.memory_space<vmem>>, %arg7: memref<16x256xf32, #tpu.memory_space<vmem>>) attributes {dimension_semantics = [#tpu.dimension_semantics<parallel>, #tpu.dimension_semantics<parallel>, #tpu.dimension_semantics<arbitrary>], iteration_bounds = array<i64: 1, 1, 6>, scalar_prefetch = 0 : i64, scratch_operands = 1 : i64, tpu.core_type = #tpu.core_type<tc>, window_params = [{transform_indices = @transform_0, window_bounds = array<i64: 16, 384>}, {transform_indices = @transform_1, window_bounds = array<i64: 384, 256>}, {transform_indices = @transform_2, window_bounds = array<i64: 1, 256>}, {transform_indices = @transform_3, window_bounds = array<i64: 16, 256>}]} {
    %c0_i32 = arith.constant 0 : i32
    %0 = arith.cmpi eq, %arg2, %c0_i32 : i32
    %1 = arith.extui %0 : i1 to i32
    %c0_i32_0 = arith.constant 0 : i32
    %2 = arith.cmpi ne, %1, %c0_i32_0 : i32
    scf.if %2 {
      %cst_9 = arith.constant 0.000000e+00 : f32
      %12 = vector.broadcast %cst_9 : f32 to vector<16x256xf32>
      %c0_10 = arith.constant 0 : index
      %c0_11 = arith.constant 0 : index
      %13 = vector.load %arg7[%c0_10, %c0_11] : memref<16x256xf32, #tpu.memory_space<vmem>>, vector<16x256xf32>
      tpu.vector_store %arg7[%c0_10, %c0_11], %12 {strides = array<i32>} : memref<16x256xf32, #tpu.memory_space<vmem>>, vector<16x256xf32>,
    } else {
    }
    %c0 = arith.constant 0 : index
    %c0_1 = arith.constant 0 : index
    %3 = vector.load %arg7[%c0, %c0_1] : memref<16x256xf32, #tpu.memory_space<vmem>>, vector<16x256xf32>
    %c0_2 = arith.constant 0 : index
    %c0_3 = arith.constant 0 : index
    %4 = vector.load %arg3[%c0_2, %c0_3] : memref<16x384xbf16, #tpu.memory_space<vmem>>, vector<16x384xbf16>
    %c0_4 = arith.constant 0 : index
    %c0_5 = arith.constant 0 : index
    %5 = vector.load %arg4[%c0_4, %c0_5] : memref<384x256xbf16, #tpu.memory_space<vmem>>, vector<384x256xbf16>
    %cst = arith.constant dense<0.000000e+00> : vector<16x256xf32>
    %6 = tpu.matmul %4, %5, %cst {dimension_numbers = #tpu.dot_dimension_numbers<[1], [0], [0], [1], [0, 0, 1, 1], [], []>} : vector<16x384xbf16>, vector<384x256xbf16>, vector<16x256xf32> -> vector<16x256xf32>
    %7 = arith.addf %3, %6 : vector<16x256xf32>
    %c0_6 = arith.constant 0 : index
    %c0_7 = arith.constant 0 : index
    %8 = vector.load %arg7[%c0_6, %c0_7] : memref<16x256xf32, #tpu.memory_space<vmem>>, vector<16x256xf32>
    tpu.vector_store %arg7[%c0_6, %c0_7], %7 {strides = array<i32>} : memref<16x256xf32, #tpu.memory_space<vmem>>, vector<16x256xf32>,
    %c5_i32 = arith.constant 5 : i32
    %9 = arith.cmpi eq, %arg2, %c5_i32 : i32
    %10 = arith.extui %9 : i1 to i32
    %c0_i32_8 = arith.constant 0 : i32
    %11 = arith.cmpi ne, %10, %c0_i32_8 : i32
    scf.if %11 {
      %c0_9 = arith.constant 0 : index
      %c0_10 = arith.constant 0 : index
      %12 = vector.load %arg7[%c0_9, %c0_10] : memref<16x256xf32, #tpu.memory_space<vmem>>, vector<16x256xf32>
      %c0_11 = arith.constant 0 : index
      %c0_12 = arith.constant 0 : index
      %13 = vector.load %arg5[%c0_11, %c0_12] : memref<1x256xf32, #tpu.memory_space<vmem>>, vector<1x256xf32>
      %14 = vector.broadcast %13 : vector<1x256xf32> to vector<16x256xf32>
      %15 = arith.addf %12, %14 : vector<16x256xf32>
      %cst_13 = arith.constant 0.000000e+00 : f32
      %16 = vector.broadcast %cst_13 : f32 to vector<16x256xf32>
      %17 = arith.maximumf %15, %16 : vector<16x256xf32>
      %18 = arith.truncf %17 : vector<16x256xf32> to vector<16x256xbf16>
      %c0_14 = arith.constant 0 : index
      %c0_15 = arith.constant 0 : index
      %19 = vector.load %arg6[%c0_14, %c0_15] : memref<16x256xbf16, #tpu.memory_space<vmem>>, vector<16x256xbf16>
      tpu.vector_store %arg6[%c0_14, %c0_15], %18 {strides = array<i32>} : memref<16x256xbf16, #tpu.memory_space<vmem>>, vector<16x256xbf16>,
    } else {
    }
    return
  }
  func.func @transform_0(%arg0: i32, %arg1: i32, %arg2: i32) -> (i32, i32) {
    %c0_i32 = arith.constant 0 : i32
    return %arg0, %arg2 : i32, i32
  }
  func.func @transform_1(%arg0: i32, %arg1: i32, %arg2: i32) -> (i32, i32) {
    %c0_i32 = arith.constant 0 : i32
    return %arg2, %arg1 : i32, i32
  }
  func.func @transform_2(%arg0: i32, %arg1: i32, %arg2: i32) -> (i32, i32) {
    %c0_i32 = arith.constant 0 : i32
    %c0_i32_0 = arith.constant 0 : i32
    return %c0_i32, %arg1 : i32, i32
  }
  func.func @transform_3(%arg0: i32, %arg1: i32, %arg2: i32) -> (i32, i32) {
    %c0_i32 = arith.constant 0 : i32
    return %arg0, %arg1 : i32, i32
  }
}

module attributes {stable_mosaic.version = 11 : i64} {
  func.func @_gemm_kernel(%arg0: i32, %arg1: i32, %arg2: i32, %arg3: memref<16x384xbf16, #tpu.memory_space<vmem>>, %arg4: memref<384x256xbf16, #tpu.memory_space<vmem>>, %arg5: memref<1x256xf32, #tpu.memory_space<vmem>>, %arg6: memref<16x256xbf16, #tpu.memory_space<vmem>>, %arg7: memref<16x256xf32, #tpu.memory_space<vmem>>) attributes {dimension_semantics = [#tpu.dimension_semantics<parallel>, #tpu.dimension_semantics<parallel>, #tpu.dimension_semantics<arbitrary>], iteration_bounds = array<i64: 1, 2, 6>, scalar_prefetch = 0 : i64, scratch_operands = 1 : i64, tpu.core_type = #tpu.core_type<tc>, window_params = [{transform_indices = @transform_0, window_bounds = array<i64: 16, 384>}, {transform_indices = @transform_1, window_bounds = array<i64: 384, 256>}, {transform_indices = @transform_2, window_bounds = array<i64: 1, 256>}, {transform_indices = @transform_3, window_bounds = array<i64: 16, 256>}]} {
    %c0_i32 = arith.constant 0 : i32
    %0 = arith.cmpi eq, %arg2, %c0_i32 : i32
    %1 = arith.extui %0 : i1 to i32
    %c0_i32_0 = arith.constant 0 : i32
    %2 = arith.cmpi ne, %1, %c0_i32_0 : i32
    scf.if %2 {
      %cst_9 = arith.constant 0.000000e+00 : f32
      %12 = vector.broadcast %cst_9 : f32 to vector<16x256xf32>
      %c0_10 = arith.constant 0 : index
      %c0_11 = arith.constant 0 : index
      %13 = vector.load %arg7[%c0_10, %c0_11] : memref<16x256xf32, #tpu.memory_space<vmem>>, vector<16x256xf32>
      tpu.vector_store %arg7[%c0_10, %c0_11], %12 {strides = array<i32>} : memref<16x256xf32, #tpu.memory_space<vmem>>, vector<16x256xf32>,
    } else {
    }
    %c0 = arith.constant 0 : index
    %c0_1 = arith.constant 0 : index
    %3 = vector.load %arg7[%c0, %c0_1] : memref<16x256xf32, #tpu.memory_space<vmem>>, vector<16x256xf32>
    %c0_2 = arith.constant 0 : index
    %c0_3 = arith.constant 0 : index
    %4 = vector.load %arg3[%c0_2, %c0_3] : memref<16x384xbf16, #tpu.memory_space<vmem>>, vector<16x384xbf16>
    %c0_4 = arith.constant 0 : index
    %c0_5 = arith.constant 0 : index
    %5 = vector.load %arg4[%c0_4, %c0_5] : memref<384x256xbf16, #tpu.memory_space<vmem>>, vector<384x256xbf16>
    %cst = arith.constant dense<0.000000e+00> : vector<16x256xf32>
    %6 = tpu.matmul %4, %5, %cst {dimension_numbers = #tpu.dot_dimension_numbers<[1], [0], [0], [1], [0, 0, 1, 1], [], []>} : vector<16x384xbf16>, vector<384x256xbf16>, vector<16x256xf32> -> vector<16x256xf32>
    %7 = arith.addf %3, %6 : vector<16x256xf32>
    %c0_6 = arith.constant 0 : index
    %c0_7 = arith.constant 0 : index
    %8 = vector.load %arg7[%c0_6, %c0_7] : memref<16x256xf32, #tpu.memory_space<vmem>>, vector<16x256xf32>
    tpu.vector_store %arg7[%c0_6, %c0_7], %7 {strides = array<i32>} : memref<16x256xf32, #tpu.memory_space<vmem>>, vector<16x256xf32>,
    %c5_i32 = arith.constant 5 : i32
    %9 = arith.cmpi eq, %arg2, %c5_i32 : i32
    %10 = arith.extui %9 : i1 to i32
    %c0_i32_8 = arith.constant 0 : i32
    %11 = arith.cmpi ne, %10, %c0_i32_8 : i32
    scf.if %11 {
      %c0_9 = arith.constant 0 : index
      %c0_10 = arith.constant 0 : index
      %12 = vector.load %arg7[%c0_9, %c0_10] : memref<16x256xf32, #tpu.memory_space<vmem>>, vector<16x256xf32>
      %c0_11 = arith.constant 0 : index
      %c0_12 = arith.constant 0 : index
      %13 = vector.load %arg5[%c0_11, %c0_12] : memref<1x256xf32, #tpu.memory_space<vmem>>, vector<1x256xf32>
      %14 = vector.broadcast %13 : vector<1x256xf32> to vector<16x256xf32>
      %15 = arith.addf %12, %14 : vector<16x256xf32>
      %cst_13 = arith.constant 0.000000e+00 : f32
      %16 = vector.broadcast %cst_13 : f32 to vector<16x256xf32>
      %17 = arith.maximumf %15, %16 : vector<16x256xf32>
      %18 = arith.truncf %17 : vector<16x256xf32> to vector<16x256xbf16>
      %c0_14 = arith.constant 0 : index
      %c0_15 = arith.constant 0 : index
      %19 = vector.load %arg6[%c0_14, %c0_15] : memref<16x256xbf16, #tpu.memory_space<vmem>>, vector<16x256xbf16>
      tpu.vector_store %arg6[%c0_14, %c0_15], %18 {strides = array<i32>} : memref<16x256xbf16, #tpu.memory_space<vmem>>, vector<16x256xbf16>,
    } else {
    }
    return
  }
  func.func @transform_0(%arg0: i32, %arg1: i32, %arg2: i32) -> (i32, i32) {
    %c0_i32 = arith.constant 0 : i32
    return %arg0, %arg2 : i32, i32
  }
  func.func @transform_1(%arg0: i32, %arg1: i32, %arg2: i32) -> (i32, i32) {
    %c0_i32 = arith.constant 0 : i32
    return %arg2, %arg1 : i32, i32
  }
  func.func @transform_2(%arg0: i32, %arg1: i32, %arg2: i32) -> (i32, i32) {
    %c0_i32 = arith.constant 0 : i32
    %c0_i32_0 = arith.constant 0 : i32
    return %c0_i32, %arg1 : i32, i32
  }
  func.func @transform_3(%arg0: i32, %arg1: i32, %arg2: i32) -> (i32, i32) {
    %c0_i32 = arith.constant 0 : i32
    return %arg0, %arg1 : i32, i32
  }
}

module attributes {stable_mosaic.version = 11 : i64} {
  func.func @_gemm_kernel(%arg0: i32, %arg1: i32, %arg2: i32, %arg3: memref<16x256xbf16, #tpu.memory_space<vmem>>, %arg4: memref<256x256xbf16, #tpu.memory_space<vmem>>, %arg5: memref<1x256xf32, #tpu.memory_space<vmem>>, %arg6: memref<16x256xbf16, #tpu.memory_space<vmem>>, %arg7: memref<16x256xf32, #tpu.memory_space<vmem>>) attributes {dimension_semantics = [#tpu.dimension_semantics<parallel>, #tpu.dimension_semantics<parallel>, #tpu.dimension_semantics<arbitrary>], iteration_bounds = array<i64: 1, 2, 1>, scalar_prefetch = 0 : i64, scratch_operands = 1 : i64, tpu.core_type = #tpu.core_type<tc>, window_params = [{transform_indices = @transform_0, window_bounds = array<i64: 16, 256>}, {transform_indices = @transform_1, window_bounds = array<i64: 256, 256>}, {transform_indices = @transform_2, window_bounds = array<i64: 1, 256>}, {transform_indices = @transform_3, window_bounds = array<i64: 16, 256>}]} {
    %c0_i32 = arith.constant 0 : i32
    %0 = arith.cmpi eq, %arg2, %c0_i32 : i32
    %1 = arith.extui %0 : i1 to i32
    %c0_i32_0 = arith.constant 0 : i32
    %2 = arith.cmpi ne, %1, %c0_i32_0 : i32
    scf.if %2 {
      %cst_10 = arith.constant 0.000000e+00 : f32
      %12 = vector.broadcast %cst_10 : f32 to vector<16x256xf32>
      %c0_11 = arith.constant 0 : index
      %c0_12 = arith.constant 0 : index
      %13 = vector.load %arg7[%c0_11, %c0_12] : memref<16x256xf32, #tpu.memory_space<vmem>>, vector<16x256xf32>
      tpu.vector_store %arg7[%c0_11, %c0_12], %12 {strides = array<i32>} : memref<16x256xf32, #tpu.memory_space<vmem>>, vector<16x256xf32>,
    } else {
    }
    %c0 = arith.constant 0 : index
    %c0_1 = arith.constant 0 : index
    %3 = vector.load %arg7[%c0, %c0_1] : memref<16x256xf32, #tpu.memory_space<vmem>>, vector<16x256xf32>
    %c0_2 = arith.constant 0 : index
    %c0_3 = arith.constant 0 : index
    %4 = vector.load %arg3[%c0_2, %c0_3] : memref<16x256xbf16, #tpu.memory_space<vmem>>, vector<16x256xbf16>
    %c0_4 = arith.constant 0 : index
    %c0_5 = arith.constant 0 : index
    %5 = vector.load %arg4[%c0_4, %c0_5] : memref<256x256xbf16, #tpu.memory_space<vmem>>, vector<256x256xbf16>
    %cst = arith.constant dense<0.000000e+00> : vector<16x256xf32>
    %6 = tpu.matmul %4, %5, %cst {dimension_numbers = #tpu.dot_dimension_numbers<[1], [0], [0], [1], [0, 0, 1, 1], [], []>} : vector<16x256xbf16>, vector<256x256xbf16>, vector<16x256xf32> -> vector<16x256xf32>
    %7 = arith.addf %3, %6 : vector<16x256xf32>
    %c0_6 = arith.constant 0 : index
    %c0_7 = arith.constant 0 : index
    %8 = vector.load %arg7[%c0_6, %c0_7] : memref<16x256xf32, #tpu.memory_space<vmem>>, vector<16x256xf32>
    tpu.vector_store %arg7[%c0_6, %c0_7], %7 {strides = array<i32>} : memref<16x256xf32, #tpu.memory_space<vmem>>, vector<16x256xf32>,
    %c0_i32_8 = arith.constant 0 : i32
    %9 = arith.cmpi eq, %arg2, %c0_i32_8 : i32
    %10 = arith.extui %9 : i1 to i32
    %c0_i32_9 = arith.constant 0 : i32
    %11 = arith.cmpi ne, %10, %c0_i32_9 : i32
    scf.if %11 {
      %c0_10 = arith.constant 0 : index
      %c0_11 = arith.constant 0 : index
      %12 = vector.load %arg7[%c0_10, %c0_11] : memref<16x256xf32, #tpu.memory_space<vmem>>, vector<16x256xf32>
      %c0_12 = arith.constant 0 : index
      %c0_13 = arith.constant 0 : index
      %13 = vector.load %arg5[%c0_12, %c0_13] : memref<1x256xf32, #tpu.memory_space<vmem>>, vector<1x256xf32>
      %14 = vector.broadcast %13 : vector<1x256xf32> to vector<16x256xf32>
      %15 = arith.addf %12, %14 : vector<16x256xf32>
      %16 = arith.truncf %15 : vector<16x256xf32> to vector<16x256xbf16>
      %c0_14 = arith.constant 0 : index
      %c0_15 = arith.constant 0 : index
      %17 = vector.load %arg6[%c0_14, %c0_15] : memref<16x256xbf16, #tpu.memory_space<vmem>>, vector<16x256xbf16>
      tpu.vector_store %arg6[%c0_14, %c0_15], %16 {strides = array<i32>} : memref<16x256xbf16, #tpu.memory_space<vmem>>, vector<16x256xbf16>,
    } else {
    }
    return
  }
  func.func @transform_0(%arg0: i32, %arg1: i32, %arg2: i32) -> (i32, i32) {
    %c0_i32 = arith.constant 0 : i32
    return %arg0, %arg2 : i32, i32
  }
  func.func @transform_1(%arg0: i32, %arg1: i32, %arg2: i32) -> (i32, i32) {
    %c0_i32 = arith.constant 0 : i32
    return %arg2, %arg1 : i32, i32
  }
  func.func @transform_2(%arg0: i32, %arg1: i32, %arg2: i32) -> (i32, i32) {
    %c0_i32 = arith.constant 0 : i32
    %c0_i32_0 = arith.constant 0 : i32
    return %c0_i32, %arg1 : i32, i32
  }
  func.func @transform_3(%arg0: i32, %arg1: i32, %arg2: i32) -> (i32, i32) {
    %c0_i32 = arith.constant 0 : i32
    return %arg0, %arg1 : i32, i32
  }
}

module attributes {stable_mosaic.version = 11 : i64} {
  func.func @_gemm_res_kernel(%arg0: i32, %arg1: i32, %arg2: i32, %arg3: memref<16x512xbf16, #tpu.memory_space<vmem>>, %arg4: memref<512x256xbf16, #tpu.memory_space<vmem>>, %arg5: memref<1x256xf32, #tpu.memory_space<vmem>>, %arg6: memref<16x256xbf16, #tpu.memory_space<vmem>>, %arg7: memref<16x256xbf16, #tpu.memory_space<vmem>>, %arg8: memref<16x256xf32, #tpu.memory_space<vmem>>) attributes {dimension_semantics = [#tpu.dimension_semantics<parallel>, #tpu.dimension_semantics<parallel>, #tpu.dimension_semantics<arbitrary>], iteration_bounds = array<i64: 1, 2, 9>, scalar_prefetch = 0 : i64, scratch_operands = 1 : i64, tpu.core_type = #tpu.core_type<tc>, window_params = [{transform_indices = @transform_0, window_bounds = array<i64: 16, 512>}, {transform_indices = @transform_1, window_bounds = array<i64: 512, 256>}, {transform_indices = @transform_2, window_bounds = array<i64: 1, 256>}, {transform_indices = @transform_3, window_bounds = array<i64: 16, 256>}, {transform_indices = @transform_4, window_bounds = array<i64: 16, 256>}]} {
    %c0_i32 = arith.constant 0 : i32
    %0 = arith.cmpi eq, %arg2, %c0_i32 : i32
    %1 = arith.extui %0 : i1 to i32
    %c0_i32_0 = arith.constant 0 : i32
    %2 = arith.cmpi ne, %1, %c0_i32_0 : i32
    scf.if %2 {
      %cst_9 = arith.constant 0.000000e+00 : f32
      %12 = vector.broadcast %cst_9 : f32 to vector<16x256xf32>
      %c0_10 = arith.constant 0 : index
      %c0_11 = arith.constant 0 : index
      %13 = vector.load %arg8[%c0_10, %c0_11] : memref<16x256xf32, #tpu.memory_space<vmem>>, vector<16x256xf32>
      tpu.vector_store %arg8[%c0_10, %c0_11], %12 {strides = array<i32>} : memref<16x256xf32, #tpu.memory_space<vmem>>, vector<16x256xf32>,
    } else {
    }
    %c0 = arith.constant 0 : index
    %c0_1 = arith.constant 0 : index
    %3 = vector.load %arg8[%c0, %c0_1] : memref<16x256xf32, #tpu.memory_space<vmem>>, vector<16x256xf32>
    %c0_2 = arith.constant 0 : index
    %c0_3 = arith.constant 0 : index
    %4 = vector.load %arg3[%c0_2, %c0_3] : memref<16x512xbf16, #tpu.memory_space<vmem>>, vector<16x512xbf16>
    %c0_4 = arith.constant 0 : index
    %c0_5 = arith.constant 0 : index
    %5 = vector.load %arg4[%c0_4, %c0_5] : memref<512x256xbf16, #tpu.memory_space<vmem>>, vector<512x256xbf16>
    %cst = arith.constant dense<0.000000e+00> : vector<16x256xf32>
    %6 = tpu.matmul %4, %5, %cst {dimension_numbers = #tpu.dot_dimension_numbers<[1], [0], [0], [1], [0, 0, 1, 1], [], []>} : vector<16x512xbf16>, vector<512x256xbf16>, vector<16x256xf32> -> vector<16x256xf32>
    %7 = arith.addf %3, %6 : vector<16x256xf32>
    %c0_6 = arith.constant 0 : index
    %c0_7 = arith.constant 0 : index
    %8 = vector.load %arg8[%c0_6, %c0_7] : memref<16x256xf32, #tpu.memory_space<vmem>>, vector<16x256xf32>
    tpu.vector_store %arg8[%c0_6, %c0_7], %7 {strides = array<i32>} : memref<16x256xf32, #tpu.memory_space<vmem>>, vector<16x256xf32>,
    %c8_i32 = arith.constant 8 : i32
    %9 = arith.cmpi eq, %arg2, %c8_i32 : i32
    %10 = arith.extui %9 : i1 to i32
    %c0_i32_8 = arith.constant 0 : i32
    %11 = arith.cmpi ne, %10, %c0_i32_8 : i32
    scf.if %11 {
      %c0_9 = arith.constant 0 : index
      %c0_10 = arith.constant 0 : index
      %12 = vector.load %arg8[%c0_9, %c0_10] : memref<16x256xf32, #tpu.memory_space<vmem>>, vector<16x256xf32>
      %c0_11 = arith.constant 0 : index
      %c0_12 = arith.constant 0 : index
      %13 = vector.load %arg5[%c0_11, %c0_12] : memref<1x256xf32, #tpu.memory_space<vmem>>, vector<1x256xf32>
      %14 = vector.broadcast %13 : vector<1x256xf32> to vector<16x256xf32>
      %15 = arith.addf %12, %14 : vector<16x256xf32>
      %c0_13 = arith.constant 0 : index
      %c0_14 = arith.constant 0 : index
      %16 = vector.load %arg6[%c0_13, %c0_14] : memref<16x256xbf16, #tpu.memory_space<vmem>>, vector<16x256xbf16>
      %17 = arith.extf %16 : vector<16x256xbf16> to vector<16x256xf32>
      %18 = arith.addf %15, %17 : vector<16x256xf32>
      %cst_15 = arith.constant 0.000000e+00 : f32
      %19 = vector.broadcast %cst_15 : f32 to vector<16x256xf32>
      %20 = arith.maximumf %18, %19 : vector<16x256xf32>
      %21 = arith.truncf %20 : vector<16x256xf32> to vector<16x256xbf16>
      %c0_16 = arith.constant 0 : index
      %c0_17 = arith.constant 0 : index
      %22 = vector.load %arg7[%c0_16, %c0_17] : memref<16x256xbf16, #tpu.memory_space<vmem>>, vector<16x256xbf16>
      tpu.vector_store %arg7[%c0_16, %c0_17], %21 {strides = array<i32>} : memref<16x256xbf16, #tpu.memory_space<vmem>>, vector<16x256xbf16>,
    } else {
    }
    return
  }
  func.func @transform_0(%arg0: i32, %arg1: i32, %arg2: i32) -> (i32, i32) {
    %c0_i32 = arith.constant 0 : i32
    return %arg0, %arg2 : i32, i32
  }
  func.func @transform_1(%arg0: i32, %arg1: i32, %arg2: i32) -> (i32, i32) {
    %c0_i32 = arith.constant 0 : i32
    return %arg2, %arg1 : i32, i32
  }
  func.func @transform_2(%arg0: i32, %arg1: i32, %arg2: i32) -> (i32, i32) {
    %c0_i32 = arith.constant 0 : i32
    %c0_i32_0 = arith.constant 0 : i32
    return %c0_i32, %arg1 : i32, i32
  }
  func.func @transform_3(%arg0: i32, %arg1: i32, %arg2: i32) -> (i32, i32) {
    %c0_i32 = arith.constant 0 : i32
    return %arg0, %arg1 : i32, i32
  }
  func.func @transform_4(%arg0: i32, %arg1: i32, %arg2: i32) -> (i32, i32) {
    %c0_i32 = arith.constant 0 : i32
    return %arg0, %arg1 : i32, i32
  }
}

module attributes {stable_mosaic.version = 11 : i64} {
  func.func @_gemm_kernel(%arg0: i32, %arg1: i32, %arg2: i32, %arg3: memref<16x512xbf16, #tpu.memory_space<vmem>>, %arg4: memref<512x256xbf16, #tpu.memory_space<vmem>>, %arg5: memref<1x256xf32, #tpu.memory_space<vmem>>, %arg6: memref<16x256xbf16, #tpu.memory_space<vmem>>, %arg7: memref<16x256xf32, #tpu.memory_space<vmem>>) attributes {dimension_semantics = [#tpu.dimension_semantics<parallel>, #tpu.dimension_semantics<parallel>, #tpu.dimension_semantics<arbitrary>], iteration_bounds = array<i64: 1, 2, 9>, scalar_prefetch = 0 : i64, scratch_operands = 1 : i64, tpu.core_type = #tpu.core_type<tc>, window_params = [{transform_indices = @transform_0, window_bounds = array<i64: 16, 512>}, {transform_indices = @transform_1, window_bounds = array<i64: 512, 256>}, {transform_indices = @transform_2, window_bounds = array<i64: 1, 256>}, {transform_indices = @transform_3, window_bounds = array<i64: 16, 256>}]} {
    %c0_i32 = arith.constant 0 : i32
    %0 = arith.cmpi eq, %arg2, %c0_i32 : i32
    %1 = arith.extui %0 : i1 to i32
    %c0_i32_0 = arith.constant 0 : i32
    %2 = arith.cmpi ne, %1, %c0_i32_0 : i32
    scf.if %2 {
      %cst_9 = arith.constant 0.000000e+00 : f32
      %12 = vector.broadcast %cst_9 : f32 to vector<16x256xf32>
      %c0_10 = arith.constant 0 : index
      %c0_11 = arith.constant 0 : index
      %13 = vector.load %arg7[%c0_10, %c0_11] : memref<16x256xf32, #tpu.memory_space<vmem>>, vector<16x256xf32>
      tpu.vector_store %arg7[%c0_10, %c0_11], %12 {strides = array<i32>} : memref<16x256xf32, #tpu.memory_space<vmem>>, vector<16x256xf32>,
    } else {
    }
    %c0 = arith.constant 0 : index
    %c0_1 = arith.constant 0 : index
    %3 = vector.load %arg7[%c0, %c0_1] : memref<16x256xf32, #tpu.memory_space<vmem>>, vector<16x256xf32>
    %c0_2 = arith.constant 0 : index
    %c0_3 = arith.constant 0 : index
    %4 = vector.load %arg3[%c0_2, %c0_3] : memref<16x512xbf16, #tpu.memory_space<vmem>>, vector<16x512xbf16>
    %c0_4 = arith.constant 0 : index
    %c0_5 = arith.constant 0 : index
    %5 = vector.load %arg4[%c0_4, %c0_5] : memref<512x256xbf16, #tpu.memory_space<vmem>>, vector<512x256xbf16>
    %cst = arith.constant dense<0.000000e+00> : vector<16x256xf32>
    %6 = tpu.matmul %4, %5, %cst {dimension_numbers = #tpu.dot_dimension_numbers<[1], [0], [0], [1], [0, 0, 1, 1], [], []>} : vector<16x512xbf16>, vector<512x256xbf16>, vector<16x256xf32> -> vector<16x256xf32>
    %7 = arith.addf %3, %6 : vector<16x256xf32>
    %c0_6 = arith.constant 0 : index
    %c0_7 = arith.constant 0 : index
    %8 = vector.load %arg7[%c0_6, %c0_7] : memref<16x256xf32, #tpu.memory_space<vmem>>, vector<16x256xf32>
    tpu.vector_store %arg7[%c0_6, %c0_7], %7 {strides = array<i32>} : memref<16x256xf32, #tpu.memory_space<vmem>>, vector<16x256xf32>,
    %c8_i32 = arith.constant 8 : i32
    %9 = arith.cmpi eq, %arg2, %c8_i32 : i32
    %10 = arith.extui %9 : i1 to i32
    %c0_i32_8 = arith.constant 0 : i32
    %11 = arith.cmpi ne, %10, %c0_i32_8 : i32
    scf.if %11 {
      %c0_9 = arith.constant 0 : index
      %c0_10 = arith.constant 0 : index
      %12 = vector.load %arg7[%c0_9, %c0_10] : memref<16x256xf32, #tpu.memory_space<vmem>>, vector<16x256xf32>
      %c0_11 = arith.constant 0 : index
      %c0_12 = arith.constant 0 : index
      %13 = vector.load %arg5[%c0_11, %c0_12] : memref<1x256xf32, #tpu.memory_space<vmem>>, vector<1x256xf32>
      %14 = vector.broadcast %13 : vector<1x256xf32> to vector<16x256xf32>
      %15 = arith.addf %12, %14 : vector<16x256xf32>
      %cst_13 = arith.constant 0.000000e+00 : f32
      %16 = vector.broadcast %cst_13 : f32 to vector<16x256xf32>
      %17 = arith.maximumf %15, %16 : vector<16x256xf32>
      %18 = arith.truncf %17 : vector<16x256xf32> to vector<16x256xbf16>
      %c0_14 = arith.constant 0 : index
      %c0_15 = arith.constant 0 : index
      %19 = vector.load %arg6[%c0_14, %c0_15] : memref<16x256xbf16, #tpu.memory_space<vmem>>, vector<16x256xbf16>
      tpu.vector_store %arg6[%c0_14, %c0_15], %18 {strides = array<i32>} : memref<16x256xbf16, #tpu.memory_space<vmem>>, vector<16x256xbf16>,
    } else {
    }
    return
  }
  func.func @transform_0(%arg0: i32, %arg1: i32, %arg2: i32) -> (i32, i32) {
    %c0_i32 = arith.constant 0 : i32
    return %arg0, %arg2 : i32, i32
  }
  func.func @transform_1(%arg0: i32, %arg1: i32, %arg2: i32) -> (i32, i32) {
    %c0_i32 = arith.constant 0 : i32
    return %arg2, %arg1 : i32, i32
  }
  func.func @transform_2(%arg0: i32, %arg1: i32, %arg2: i32) -> (i32, i32) {
    %c0_i32 = arith.constant 0 : i32
    %c0_i32_0 = arith.constant 0 : i32
    return %c0_i32, %arg1 : i32, i32
  }
  func.func @transform_3(%arg0: i32, %arg1: i32, %arg2: i32) -> (i32, i32) {
    %c0_i32 = arith.constant 0 : i32
    return %arg0, %arg1 : i32, i32
  }
}

module attributes {stable_mosaic.version = 11 : i64} {
  func.func @_avgpool_kernel(%arg0: i32, %arg1: memref<2x1x512xbf16, #tpu.memory_space<vmem>>, %arg2: memref<2x512xf32, #tpu.memory_space<vmem>>) attributes {dimension_semantics = [#tpu.dimension_semantics<arbitrary>], iteration_bounds = array<i64: 1>, scalar_prefetch = 0 : i64, scratch_operands = 0 : i64, tpu.core_type = #tpu.core_type<tc>, window_params = [{pipeline_mode = #tpu.pipeline_mode<synchronous>, transform_indices = @transform_0, window_bounds = array<i64: 2, 1, 512>}, {pipeline_mode = #tpu.pipeline_mode<synchronous>, transform_indices = @transform_1, window_bounds = array<i64: 2, 512>}]} {
    %c0 = arith.constant 0 : index
    %c0_0 = arith.constant 0 : index
    %c0_1 = arith.constant 0 : index
    %0 = vector.load %arg1[%c0, %c0_0, %c0_1] : memref<2x1x512xbf16, #tpu.memory_space<vmem>>, vector<2x1x512xbf16>
    %1 = arith.extf %0 : vector<2x1x512xbf16> to vector<2x1x512xf32>
    %cst = arith.constant dense<0.000000e+00> : vector<2x512xf32>
    %2 = vector.multi_reduction <add>, %1, %cst [1] : vector<2x1x512xf32> to vector<2x512xf32>
    %cst_2 = arith.constant 1.000000e+00 : f32
    %3 = vector.broadcast %cst_2 : f32 to vector<2x512xf32>
    %4 = arith.divf %2, %3 : vector<2x512xf32>
    %c0_3 = arith.constant 0 : index
    %c0_4 = arith.constant 0 : index
    %5 = vector.load %arg2[%c0_3, %c0_4] : memref<2x512xf32, #tpu.memory_space<vmem>>, vector<2x512xf32>
    tpu.vector_store %arg2[%c0_3, %c0_4], %4 {strides = array<i32>} : memref<2x512xf32, #tpu.memory_space<vmem>>, vector<2x512xf32>,
    return
  }
  func.func @transform_0(%arg0: i32) -> (i32, i32, i32) {
    %c0_i32 = arith.constant 0 : i32
    %c0_i32_0 = arith.constant 0 : i32
    %c0_i32_1 = arith.constant 0 : i32
    %c0_i32_2 = arith.constant 0 : i32
    return %c0_i32, %c0_i32_0, %c0_i32_1 : i32, i32, i32
  }
  func.func @transform_1(%arg0: i32) -> (i32, i32) {
    %c0_i32 = arith.constant 0 : i32
    %c0_i32_0 = arith.constant 0 : i32
    %c0_i32_1 = arith.constant 0 : i32
    return %c0_i32, %c0_i32_0 : i32, i32
  }
}

module attributes {stable_mosaic.version = 11 : i64} {
  func.func @_gemm_kernel(%arg0: i32, %arg1: i32, %arg2: i32, %arg3: memref<16x512xbf16, #tpu.memory_space<vmem>>, %arg4: memref<512x128xbf16, #tpu.memory_space<vmem>>, %arg5: memref<1x128xf32, #tpu.memory_space<vmem>>, %arg6: memref<16x128xf32, #tpu.memory_space<vmem>>, %arg7: memref<16x128xf32, #tpu.memory_space<vmem>>) attributes {dimension_semantics = [#tpu.dimension_semantics<parallel>, #tpu.dimension_semantics<parallel>, #tpu.dimension_semantics<arbitrary>], iteration_bounds = array<i64: 1, 1, 1>, scalar_prefetch = 0 : i64, scratch_operands = 1 : i64, tpu.core_type = #tpu.core_type<tc>, window_params = [{transform_indices = @transform_0, window_bounds = array<i64: 16, 512>}, {transform_indices = @transform_1, window_bounds = array<i64: 512, 128>}, {transform_indices = @transform_2, window_bounds = array<i64: 1, 128>}, {transform_indices = @transform_3, window_bounds = array<i64: 16, 128>}]} {
    %c0_i32 = arith.constant 0 : i32
    %0 = arith.cmpi eq, %arg2, %c0_i32 : i32
    %1 = arith.extui %0 : i1 to i32
    %c0_i32_0 = arith.constant 0 : i32
    %2 = arith.cmpi ne, %1, %c0_i32_0 : i32
    scf.if %2 {
      %cst_10 = arith.constant 0.000000e+00 : f32
      %12 = vector.broadcast %cst_10 : f32 to vector<16x128xf32>
      %c0_11 = arith.constant 0 : index
      %c0_12 = arith.constant 0 : index
      %13 = vector.load %arg7[%c0_11, %c0_12] : memref<16x128xf32, #tpu.memory_space<vmem>>, vector<16x128xf32>
      tpu.vector_store %arg7[%c0_11, %c0_12], %12 {strides = array<i32>} : memref<16x128xf32, #tpu.memory_space<vmem>>, vector<16x128xf32>,
    } else {
    }
    %c0 = arith.constant 0 : index
    %c0_1 = arith.constant 0 : index
    %3 = vector.load %arg7[%c0, %c0_1] : memref<16x128xf32, #tpu.memory_space<vmem>>, vector<16x128xf32>
    %c0_2 = arith.constant 0 : index
    %c0_3 = arith.constant 0 : index
    %4 = vector.load %arg3[%c0_2, %c0_3] : memref<16x512xbf16, #tpu.memory_space<vmem>>, vector<16x512xbf16>
    %c0_4 = arith.constant 0 : index
    %c0_5 = arith.constant 0 : index
    %5 = vector.load %arg4[%c0_4, %c0_5] : memref<512x128xbf16, #tpu.memory_space<vmem>>, vector<512x128xbf16>
    %cst = arith.constant dense<0.000000e+00> : vector<16x128xf32>
    %6 = tpu.matmul %4, %5, %cst {dimension_numbers = #tpu.dot_dimension_numbers<[1], [0], [0], [1], [0, 0, 1, 1], [], []>} : vector<16x512xbf16>, vector<512x128xbf16>, vector<16x128xf32> -> vector<16x128xf32>
    %7 = arith.addf %3, %6 : vector<16x128xf32>
    %c0_6 = arith.constant 0 : index
    %c0_7 = arith.constant 0 : index
    %8 = vector.load %arg7[%c0_6, %c0_7] : memref<16x128xf32, #tpu.memory_space<vmem>>, vector<16x128xf32>
    tpu.vector_store %arg7[%c0_6, %c0_7], %7 {strides = array<i32>} : memref<16x128xf32, #tpu.memory_space<vmem>>, vector<16x128xf32>,
    %c0_i32_8 = arith.constant 0 : i32
    %9 = arith.cmpi eq, %arg2, %c0_i32_8 : i32
    %10 = arith.extui %9 : i1 to i32
    %c0_i32_9 = arith.constant 0 : i32
    %11 = arith.cmpi ne, %10, %c0_i32_9 : i32
    scf.if %11 {
      %c0_10 = arith.constant 0 : index
      %c0_11 = arith.constant 0 : index
      %12 = vector.load %arg7[%c0_10, %c0_11] : memref<16x128xf32, #tpu.memory_space<vmem>>, vector<16x128xf32>
      %c0_12 = arith.constant 0 : index
      %c0_13 = arith.constant 0 : index
      %13 = vector.load %arg5[%c0_12, %c0_13] : memref<1x128xf32, #tpu.memory_space<vmem>>, vector<1x128xf32>
      %14 = vector.broadcast %13 : vector<1x128xf32> to vector<16x128xf32>
      %15 = arith.addf %12, %14 : vector<16x128xf32>
      %c0_14 = arith.constant 0 : index
      %c0_15 = arith.constant 0 : index
      %16 = vector.load %arg6[%c0_14, %c0_15] : memref<16x128xf32, #tpu.memory_space<vmem>>, vector<16x128xf32>
      tpu.vector_store %arg6[%c0_14, %c0_15], %15 {strides = array<i32>} : memref<16x128xf32, #tpu.memory_space<vmem>>, vector<16x128xf32>,
    } else {
    }
    return
  }
  func.func @transform_0(%arg0: i32, %arg1: i32, %arg2: i32) -> (i32, i32) {
    %c0_i32 = arith.constant 0 : i32
    return %arg0, %arg2 : i32, i32
  }
  func.func @transform_1(%arg0: i32, %arg1: i32, %arg2: i32) -> (i32, i32) {
    %c0_i32 = arith.constant 0 : i32
    return %arg2, %arg1 : i32, i32
  }
  func.func @transform_2(%arg0: i32, %arg1: i32, %arg2: i32) -> (i32, i32) {
    %c0_i32 = arith.constant 0 : i32
    %c0_i32_0 = arith.constant 0 : i32
    return %c0_i32, %arg1 : i32, i32
  }
  func.func @transform_3(%arg0: i32, %arg1: i32, %arg2: i32) -> (i32, i32) {
    %c0_i32 = arith.constant 0 : i32
    return %arg0, %arg1 : i32, i32
  }
}

</mosaic_0001>

<bundles_post_ra>
// kernel: starting_network_forward.23
= control target key start
LH: loop header
LB: loop body
LE: loop exit
PB: predicated region body
PF: predicated region fallthrough
CT: control target
= control target key end

     0   :  { %s1632_s12 = smov 0   ;;  %s1634_s13 = smov 0   ;;  %s1804_s0 = inlined_call_operand.vmem [shape: bf16[512,147], index: 0, kind: input, shape index: {}]   ;;  %s1805_s1 = inlined_call_operand.vmem [shape: bf16[147,128], index: 1, kind: input, shape index: {}]   ;;  %s1806_s2 = inlined_call_operand.vmem [shape: f32[1,128], index: 2, kind: input, shape index: {}]   ;;  %s1807_s3 = inlined_call_operand.vmem [shape: bf16[512,128], index: 3, kind: output, shape index: {}]  }
   0x1   :  { %s1636_s14 = smov 0  }
   0x2 LB: > { %s32_s15 = sadd.s32 1, %s1604_s13  ;;  %p1255_p0 = scmp.ge.s32.totalorder %s1608_s14, 1  ;;  %s1608_s14 = sphi %s1636_s14, %s13_s14   ;;  %s1604_s13 = sphi %s1634_s13, %s1809_s13   ;;  %s1600_s12 = sphi %s1632_s12, %s1808_s12  }
   0x3   : > { %p34_p1 = scmp.ge.s32.totalorder %s32_s15, 2  ;;  %p191_p2 = scmp.lt.s32.totalorder %s1608_s14, 3 }
   0x5   : > { %s1811_s15 = smov (%p34_p1, %s32_s15), 0  ;;  %p192_p3 = pnand %p1255_p0, %p191_p2 }
   0x6   : > { %s1256_s22 = sshll.u32 (!%p192_p3), %s1600_s12, 5 }
   0x7   : > { %195 = sbr.rel (%p192_p3) target bundleno = 313 (0x139), region = 32  ;;  %p236_p4 = scmp.lt.s32.totalorder (!%p192_p3), %s1256_s22, 63 }
   0xc   : > { %v1528_v0 = vld [vmem:[%s1805_s1 + $0x38] sm:$0xff]   ;;  %v1610_v1 = vmov 0   ;;  %v1529_v2 = vld [vmem:[%s1805_s1 + $0x30] sm:$0xff]   ;;  %v1530_v3 = vld [vmem:[%s1805_s1 + $0x28] sm:$0xff]   ;;  %s1813_s22 = smov (!%p236_p4, %s1256_s22), 63  ;;  %vm588_vm0 = vcmask 154624  }
   0xd   : > { %644 = vmatprep.subr.bf16.mxu0 %v1610_v1  ;;  %1482 = vmatprep.subr.bf16.mxu1 %v1610_v1  ;;  %v1531_v4 = vld [vmem:[%s1805_s1 + $0x20] sm:$0xff]   ;;  %s1354_s25 = sshll.u32 %s1813_s22, 3  ;;  %v1532_v5 = vld [vmem:[%s1805_s1 + $0x18] sm:$0xff]   ;;  %v1533_v8 = vld [vmem:[%s1805_s1 + $0x10] sm:$0xff]   ;;  %vm637_vm1 = vcmask 1040384   ;;  %vm638_vm2 = vcmask 1041408  }
   0xe   : > { %645 = vmatpush1.bf16.msra.mxu0 %v1528_v0  ;;  %1492 = vmatpush1.bf16.msra.mxu1 %v1528_v0  ;;  %s1668_s28 = scalar_lea.vmem %s1804_s0, %s1354_s25  ;;  %v1534_v9 = vld [vmem:[%s1805_s1 + $0x8] sm:$0xff]   ;;  %v1611_v10 = vmov 65535   ;;  %v1535_v12 = vld [vmem:[%s1805_s1] sm:$0xff]   ;;  %s1260_s19 = sshll.u32 %s1813_s22, 2 }
   0xf   : > { %646 = vmatprep.subr.bf16.mxu0 %v1610_v1  ;;  %1483 = vmatprep.subr.bf16.mxu1 %v1610_v1  ;;  %v1540_v6 = vld [vmem:[%s1668_s28 + $0x4] ss:$8 sps:$4 sm:$0xff]   ;;  %v639_v11 = vsel %vm637_vm1, 4294967295, %v1611_v10  ;;  %v1536_v13 = vld [vmem:[%s1805_s1 + $0x48] ss:$0 sps:$4 sm:$0x33]   ;;  %s1749_s23 = scalar_lea.vmem %s1807_s3, %s1260_s19 }
  0x10   : > { %v1543_v7 = vld [vmem:[%s1668_s28 + $0x84] ss:$8 sps:$4 sm:$0xff]   ;;  %1303 = vmatprep.mubr.msk.bf16.mxu0 %vm588_vm0, %v1540_v6  ;;  %v640_v14 = vsel %vm638_vm2, %v639_v11, 0  ;;  %v1538_v17 = vld [vmem:[%s1668_s28] ss:$8 sps:$4 sm:$0xff]  }
  0x11   : > { %1311 = vmatprep.mubr.msk.bf16.mxu1 %vm588_vm0, %v1543_v7  ;;  %v642_v15 = vand.u32 %v1536_v13, %v640_v14  ;;  %v1537_v16 = vld [vmem:[%s1805_s1 + $0x40] sm:$0xff]   ;;  %v1544_v19 = vld [vmem:[%s1668_s28 + $0x14] ss:$8 sps:$4 sm:$0xff]   ;;  %v1548_v21 = vld [vmem:[%s1668_s28 + $0x10] ss:$8 sps:$4 sm:$0xff]  }
  0x12   : > { %647 = vmatpush1.bf16.msra.mxu0 %v1529_v2  ;;  %1493 = vmatpush1.bf16.msra.mxu1 %v1529_v2  ;;  %v1541_v18 = vld [vmem:[%s1668_s28 + $0x80] ss:$8 sps:$4 sm:$0xff]   ;;  %v1546_v20 = vld [vmem:[%s1668_s28 + $0x94] ss:$8 sps:$4 sm:$0xff]   ;;  %v1549_v22 = vld [vmem:[%s1668_s28 + $0x90] ss:$8 sps:$4 sm:$0xff]  }
  0x13   : > { %648 = vmatprep.subr.bf16.mxu0 %v1610_v1  ;;  %1484 = vmatprep.subr.bf16.mxu1 %v1610_v1  ;;  %v1550_v23 = vld [vmem:[%s1668_s28 + $0x24] ss:$8 sps:$4 sm:$0xff]   ;;  %v1554_v25 = vld [vmem:[%s1668_s28 + $0x20] ss:$8 sps:$4 sm:$0xff]   ;;  %v1556_v27 = vld [vmem:[%s1668_s28 + $0x34] ss:$8 sps:$4 sm:$0xff]  }
  0x14   : > { %v1552_v24 = vld [vmem:[%s1668_s28 + $0xa4] ss:$8 sps:$4 sm:$0xff]   ;;  %v1555_v26 = vld [vmem:[%s1668_s28 + $0xa0] ss:$8 sps:$4 sm:$0xff]   ;;  %v1558_v28 = vld [vmem:[%s1668_s28 + $0xb4] ss:$8 sps:$4 sm:$0xff]  }
  0x15   : > { %v1560_v29 = vld [vmem:[%s1668_s28 + $0x30] ss:$8 sps:$4 sm:$0xff]   ;;  %v1562_v31 = vld [vmem:[%s1668_s28 + $0x44] ss:$8 sps:$4 sm:$0xff]   ;;  %v1566_v33 = vld [vmem:[%s1668_s28 + $0x40] ss:$8 sps:$4 sm:$0xff]  }
  0x16   : > { %649 = vmatpush1.bf16.msra.mxu0 %v1530_v3  ;;  %1494 = vmatpush1.bf16.msra.mxu1 %v1530_v3  ;;  %v1561_v30 = vld [vmem:[%s1668_s28 + $0xb0] ss:$8 sps:$4 sm:$0xff]   ;;  %v1564_v32 = vld [vmem:[%s1668_s28 + $0xc4] ss:$8 sps:$4 sm:$0xff]   ;;  %v1567_v34 = vld [vmem:[%s1668_s28 + $0xc0] ss:$8 sps:$4 sm:$0xff]  }
  0x17   : > { %650 = vmatprep.subr.bf16.mxu0 %v1610_v1  ;;  %1485 = vmatprep.subr.bf16.mxu1 %v1610_v1  ;;  %v1568_v35 = vld [vmem:[%s1668_s28 + $0x54] ss:$8 sps:$4 sm:$0xff]   ;;  %v1572_v37 = vld [vmem:[%s1668_s28 + $0x50] ss:$8 sps:$4 sm:$0xff]   ;;  %v1574_v39 = vld [vmem:[%s1668_s28 + $0x64] ss:$8 sps:$4 sm:$0xff]  }
  0x18   : > { %v1570_v36 = vld [vmem:[%s1668_s28 + $0xd4] ss:$8 sps:$4 sm:$0xff]   ;;  %v1573_v38 = vld [vmem:[%s1668_s28 + $0xd0] ss:$8 sps:$4 sm:$0xff]   ;;  %v1576_v40 = vld [vmem:[%s1668_s28 + $0xe4] ss:$8 sps:$4 sm:$0xff]  }
  0x19   : > { %v1578_v41 = vld [vmem:[%s1668_s28 + $0x60] ss:$8 sps:$4 sm:$0xff]   ;;  %v1580_v43 = vld [vmem:[%s1668_s28 + $0x74] ss:$8 sps:$4 sm:$0xff]   ;;  %v1584_v45 = vld [vmem:[%s1668_s28 + $0x70] ss:$8 sps:$4 sm:$0xff]  }
  0x1a   : > { %651 = vmatpush1.bf16.msra.mxu0 %v1531_v4  ;;  %1495 = vmatpush1.bf16.msra.mxu1 %v1531_v4  ;;  %v1579_v42 = vld [vmem:[%s1668_s28 + $0xe0] ss:$8 sps:$4 sm:$0xff]   ;;  %v1582_v44 = vld [vmem:[%s1668_s28 + $0xf4] ss:$8 sps:$4 sm:$0xff]   ;;  %v1585_v46 = vld [vmem:[%s1668_s28 + $0xf0] ss:$8 sps:$4 sm:$0xff]  }
  0x1b   : > { %652 = vmatprep.subr.bf16.mxu0 %v1610_v1  ;;  %1486 = vmatprep.subr.bf16.mxu1 %v1610_v1  ;;  %v1739_v48 = vld [vmem:[%s1806_s2] ss:$0 sm:$0xff] }
  0x1e   : > { %653 = vmatpush1.bf16.msra.mxu0 %v1532_v5  ;;  %1496 = vmatpush1.bf16.msra.mxu1 %v1532_v5 }
  0x1f   : > { %654 = vmatprep.subr.bf16.mxu0 %v1610_v1  ;;  %1487 = vmatprep.subr.bf16.mxu1 %v1610_v1 }
  0x22   : > { %655 = vmatpush1.bf16.msra.mxu0 %v1533_v8  ;;  %1497 = vmatpush1.bf16.msra.mxu1 %v1533_v8 }
  0x23   : > { %656 = vmatprep.subr.bf16.mxu0 %v1610_v1  ;;  %1488 = vmatprep.subr.bf16.mxu1 %v1610_v1 }
  0x26   : > { %657 = vmatpush1.bf16.msra.mxu0 %v1534_v9  ;;  %1498 = vmatpush1.bf16.msra.mxu1 %v1534_v9 }
  0x27   : > { %658 = vmatprep.subr.bf16.mxu0 %v1610_v1  ;;  %1489 = vmatprep.subr.bf16.mxu1 %v1610_v1 }
  0x2a   : > { %659 = vmatpush1.bf16.msra.mxu0 %v1535_v12  ;;  %1499 = vmatpush1.bf16.msra.mxu1 %v1535_v12 }
  0x2b   : > { %672 = vmatprep.subr.bf16.mxu0 %v1610_v1  ;;  %1490 = vmatprep.subr.bf16.mxu1 %v1610_v1 }
  0x2e   : > { %673 = vmatpush2.bf16.msra.mxu0 %v642_v15  ;;  %1500 = vmatpush2.bf16.msra.mxu1 %v642_v15 }
  0x2f   : > { %674 = vmatprep.subr.bf16.mxu0 %v1610_v1  ;;  %1491 = vmatprep.subr.bf16.mxu1 %v1610_v1 }
  0x32   : > { %675 = vmatpush2.bf16.msra.mxu0 %v1537_v16  ;;  %1501 = vmatpush2.bf16.msra.mxu1 %v1537_v16 }
  0x35   : > { %677 = vmatmul.mubr.bf16.vlgmr.msra.gmra.mxu0 %v1538_v17  ;;  %741 = vmatmul.mubr.bf16.vlgmr.msra.gmra.mxu1 %v1541_v18 }
  0x36   : > { %1304 = vmatprep.mubr.msk.bf16.mxu0 %vm588_vm0, %v1544_v19  ;;  %1312 = vmatprep.mubr.msk.bf16.mxu1 %vm588_vm0, %v1546_v20 }
  0x3d   : > { %685 = vmatmul.mubr.bf16.gmra.mxu0 %v1548_v21  ;;  %749 = vmatmul.mubr.bf16.gmra.mxu1 %v1549_v22 }
  0x3e   : > { %1305 = vmatprep.mubr.msk.bf16.mxu0 %vm588_vm0, %v1550_v23  ;;  %1313 = vmatprep.mubr.msk.bf16.mxu1 %vm588_vm0, %v1552_v24 }
  0x45   : > { %693 = vmatmul.mubr.bf16.gmra.mxu0 %v1554_v25  ;;  %757 = vmatmul.mubr.bf16.gmra.mxu1 %v1555_v26 }
  0x46   : > { %1306 = vmatprep.mubr.msk.bf16.mxu0 %vm588_vm0, %v1556_v27  ;;  %1314 = vmatprep.mubr.msk.bf16.mxu1 %vm588_vm0, %v1558_v28 }
  0x4d   : > { %701 = vmatmul.mubr.bf16.gmra.mxu0 %v1560_v29  ;;  %765 = vmatmul.mubr.bf16.gmra.mxu1 %v1561_v30 }
  0x4e   : > { %1307 = vmatprep.mubr.msk.bf16.mxu0 %vm588_vm0, %v1562_v31  ;;  %1315 = vmatprep.mubr.msk.bf16.mxu1 %vm588_vm0, %v1564_v32 }
  0x55   : > { %709 = vmatmul.mubr.bf16.gmra.mxu0 %v1566_v33  ;;  %773 = vmatmul.mubr.bf16.gmra.mxu1 %v1567_v34 }
  0x56   : > { %1308 = vmatprep.mubr.msk.bf16.mxu0 %vm588_vm0, %v1568_v35  ;;  %1316 = vmatprep.mubr.msk.bf16.mxu1 %vm588_vm0, %v1570_v36 }
  0x5d   : > { %717 = vmatmul.mubr.bf16.gmra.mxu0 %v1572_v37  ;;  %781 = vmatmul.mubr.bf16.gmra.mxu1 %v1573_v38 }
  0x5e   : > { %1309 = vmatprep.mubr.msk.bf16.mxu0 %vm588_vm0, %v1574_v39  ;;  %1317 = vmatprep.mubr.msk.bf16.mxu1 %vm588_vm0, %v1576_v40 }
  0x65   : > { %725 = vmatmul.mubr.bf16.gmra.mxu0 %v1578_v41  ;;  %789 = vmatmul.mubr.bf16.gmra.mxu1 %v1579_v42 }
  0x66   : > { %1310 = vmatprep.mubr.msk.bf16.mxu0 %vm588_vm0, %v1580_v43  ;;  %1318 = vmatprep.mubr.msk.bf16.mxu1 %vm588_vm0, %v1582_v44 }
  0x6d   : > { %733 = vmatmul.mubr.bf16.gmra.mxu0 %v1584_v45  ;;  %797 = vmatmul.mubr.bf16.gmra.mxu1 %v1585_v46 }
  0xf5   : > { %v678_v47 = vpop.f32.mrf.mxu0  ;;  %v742_v49 = vpop.f32.mrf.mxu1 }
  0xf6   : > { %v911_v52 = vadd.f32 %v1739_v48, %v678_v47  ;;  %v927_v53 = vadd.f32 %v1739_v48, %v742_v49 }
  0xf7   : > { %v680_v50 = vpop.f32.mrf.mxu0  ;;  %v744_v51 = vpop.f32.mrf.mxu1 }
  0xf8   : > { %v943_v60 = vmax.f32 %v911_v52, 0.0  ;;  %v959_v61 = vmax.f32 %v927_v53, 0.0 }
  0xf9   : > { %v681_v54 = vpop.f32.mrf.mxu0  ;;  %v745_v55 = vpop.f32.mrf.mxu1 }
  0xfa   : > { %v912_v56 = vadd.f32 %v1739_v48, %v681_v54  ;;  %v928_v57 = vadd.f32 %v1739_v48, %v745_v55 }
  0xfb   : > { %v683_v58 = vpop.f32.mrf.mxu0  ;;  %v747_v59 = vpop.f32.mrf.mxu1 }
  0xfc   : > { %v944_v62 = vmax.f32 %v912_v56, 0.0  ;;  %v960_v63 = vmax.f32 %v928_v57, 0.0 }
  0xfd   : > { %v686_v0 = vpop.f32.mrf.mxu0  ;;  %v750_v1 = vpop.f32.mrf.mxu1 }
  0xfe   : > { %v1390_v2 = vpack.c.bf16 %v944_v62, %v943_v60  ;;  %v1430_v3 = vpack.c.bf16 %v960_v63, %v959_v61  ;;  %v913_v6 = vadd.f32 %v1739_v48, %v686_v0  ;;  %v929_v7 = vadd.f32 %v1739_v48, %v750_v1 }
  0xff   : > { %v688_v4 = vpop.f32.mrf.mxu0  ;;  %v752_v5 = vpop.f32.mrf.mxu1 }
 0x100   : > { %1391 = vst [vmem:[%s1749_s23] sm:$0xff] %v1390_v2   ;;  %1474 = vst [vmem:[%s1749_s23 + $0x40] sm:$0xff] %v1430_v3   ;;  %v945_v14 = vmax.f32 %v913_v6, 0.0  ;;  %v961_v15 = vmax.f32 %v929_v7, 0.0 }
 0x101   : > { %v689_v8 = vpop.f32.mrf.mxu0  ;;  %v753_v9 = vpop.f32.mrf.mxu1 }
 0x102   : > { %v914_v10 = vadd.f32 %v1739_v48, %v689_v8  ;;  %v930_v11 = vadd.f32 %v1739_v48, %v753_v9 }
 0x103   : > { %v691_v12 = vpop.f32.mrf.mxu0  ;;  %v755_v13 = vpop.f32.mrf.mxu1 }
 0x104   : > { %v946_v16 = vmax.f32 %v914_v10, 0.0  ;;  %v962_v17 = vmax.f32 %v930_v11, 0.0 }
 0x105   : > { %v694_v18 = vpop.f32.mrf.mxu0  ;;  %v758_v19 = vpop.f32.mrf.mxu1 }
 0x106   : > { %v1395_v20 = vpack.c.bf16 %v946_v16, %v945_v14  ;;  %v1435_v21 = vpack.c.bf16 %v962_v17, %v961_v15  ;;  %v915_v24 = vadd.f32 %v1739_v48, %v694_v18  ;;  %v931_v25 = vadd.f32 %v1739_v48, %v758_v19 }
 0x107   : > { %v696_v22 = vpop.f32.mrf.mxu0  ;;  %v760_v23 = vpop.f32.mrf.mxu1 }
 0x108   : > { %1467 = vst [vmem:[%s1749_s23 + $0x8] sm:$0xff] %v1395_v20   ;;  %1475 = vst [vmem:[%s1749_s23 + $0x48] sm:$0xff] %v1435_v21   ;;  %v947_v32 = vmax.f32 %v915_v24, 0.0  ;;  %v963_v33 = vmax.f32 %v931_v25, 0.0 }
 0x109   : > { %v697_v26 = vpop.f32.mrf.mxu0  ;;  %v761_v27 = vpop.f32.mrf.mxu1 }
 0x10a   : > { %v916_v28 = vadd.f32 %v1739_v48, %v697_v26  ;;  %v932_v29 = vadd.f32 %v1739_v48, %v761_v27 }
 0x10b   : > { %v699_v30 = vpop.f32.mrf.mxu0  ;;  %v763_v31 = vpop.f32.mrf.mxu1 }
 0x10c   : > { %v948_v34 = vmax.f32 %v916_v28, 0.0  ;;  %v964_v35 = vmax.f32 %v932_v29, 0.0 }
 0x10d   : > { %v702_v36 = vpop.f32.mrf.mxu0  ;;  %v766_v37 = vpop.f32.mrf.mxu1 }
 0x10e   : > { %v1400_v38 = vpack.c.bf16 %v948_v34, %v947_v32  ;;  %v1440_v39 = vpack.c.bf16 %v964_v35, %v963_v33  ;;  %v917_v42 = vadd.f32 %v1739_v48, %v702_v36  ;;  %v933_v43 = vadd.f32 %v1739_v48, %v766_v37 }
 0x10f   : > { %v704_v40 = vpop.f32.mrf.mxu0  ;;  %v768_v41 = vpop.f32.mrf.mxu1 }
 0x110   : > { %1468 = vst [vmem:[%s1749_s23 + $0x10] sm:$0xff] %v1400_v38   ;;  %1476 = vst [vmem:[%s1749_s23 + $0x50] sm:$0xff] %v1440_v39   ;;  %v949_v51 = vmax.f32 %v917_v42, 0.0  ;;  %v965_v52 = vmax.f32 %v933_v43, 0.0 }
 0x111   : > { %v705_v44 = vpop.f32.mrf.mxu0  ;;  %v769_v45 = vpop.f32.mrf.mxu1 }
 0x112   : > { %v918_v46 = vadd.f32 %v1739_v48, %v705_v44  ;;  %v934_v47 = vadd.f32 %v1739_v48, %v769_v45 }
 0x113   : > { %v707_v49 = vpop.f32.mrf.mxu0  ;;  %v771_v50 = vpop.f32.mrf.mxu1 }
 0x114   : > { %v950_v53 = vmax.f32 %v918_v46, 0.0  ;;  %v966_v54 = vmax.f32 %v934_v47, 0.0 }
 0x115   : > { %v710_v55 = vpop.f32.mrf.mxu0  ;;  %v774_v56 = vpop.f32.mrf.mxu1 }
 0x116   : > { %v1405_v57 = vpack.c.bf16 %v950_v53, %v949_v51  ;;  %v1445_v58 = vpack.c.bf16 %v966_v54, %v965_v52  ;;  %v919_v61 = vadd.f32 %v1739_v48, %v710_v55  ;;  %v935_v62 = vadd.f32 %v1739_v48, %v774_v56 }
 0x117   : > { %v712_v59 = vpop.f32.mrf.mxu0  ;;  %v776_v60 = vpop.f32.mrf.mxu1 }
 0x118   : > { %1469 = vst [vmem:[%s1749_s23 + $0x18] sm:$0xff] %v1405_v57   ;;  %1477 = vst [vmem:[%s1749_s23 + $0x58] sm:$0xff] %v1445_v58   ;;  %v951_v5 = vmax.f32 %v919_v61, 0.0  ;;  %v967_v6 = vmax.f32 %v935_v62, 0.0 }
 0x119   : > { %v713_v63 = vpop.f32.mrf.mxu0  ;;  %v777_v0 = vpop.f32.mrf.mxu1 }
 0x11a   : > { %v920_v1 = vadd.f32 %v1739_v48, %v713_v63  ;;  %v936_v2 = vadd.f32 %v1739_v48, %v777_v0 }
 0x11b   : > { %v715_v3 = vpop.f32.mrf.mxu0  ;;  %v779_v4 = vpop.f32.mrf.mxu1 }
 0x11c   : > { %v952_v7 = vmax.f32 %v920_v1, 0.0  ;;  %v968_v8 = vmax.f32 %v936_v2, 0.0 }
 0x11d   : > { %v718_v9 = vpop.f32.mrf.mxu0  ;;  %v782_v10 = vpop.f32.mrf.mxu1 }
 0x11e   : > { %v1410_v11 = vpack.c.bf16 %v952_v7, %v951_v5  ;;  %v1450_v12 = vpack.c.bf16 %v968_v8, %v967_v6  ;;  %v921_v15 = vadd.f32 %v1739_v48, %v718_v9  ;;  %v937_v16 = vadd.f32 %v1739_v48, %v782_v10 }
 0x11f   : > { %v720_v13 = vpop.f32.mrf.mxu0  ;;  %v784_v14 = vpop.f32.mrf.mxu1 }
 0x120   : > { %1470 = vst [vmem:[%s1749_s23 + $0x20] sm:$0xff] %v1410_v11   ;;  %1478 = vst [vmem:[%s1749_s23 + $0x60] sm:$0xff] %v1450_v12   ;;  %v953_v23 = vmax.f32 %v921_v15, 0.0  ;;  %v969_v24 = vmax.f32 %v937_v16, 0.0 }
 0x121   : > { %v721_v17 = vpop.f32.mrf.mxu0  ;;  %v785_v18 = vpop.f32.mrf.mxu1 }
 0x122   : > { %v922_v19 = vadd.f32 %v1739_v48, %v721_v17  ;;  %v938_v20 = vadd.f32 %v1739_v48, %v785_v18 }
 0x123   : > { %v723_v21 = vpop.f32.mrf.mxu0  ;;  %v787_v22 = vpop.f32.mrf.mxu1 }
 0x124   : > { %v954_v25 = vmax.f32 %v922_v19, 0.0  ;;  %v970_v26 = vmax.f32 %v938_v20, 0.0 }
 0x125   : > { %v726_v27 = vpop.f32.mrf.mxu0  ;;  %v790_v28 = vpop.f32.mrf.mxu1 }
 0x126   : > { %v1415_v29 = vpack.c.bf16 %v954_v25, %v953_v23  ;;  %v1455_v30 = vpack.c.bf16 %v970_v26, %v969_v24  ;;  %v923_v33 = vadd.f32 %v1739_v48, %v726_v27  ;;  %v939_v34 = vadd.f32 %v1739_v48, %v790_v28 }
 0x127   : > { %v728_v31 = vpop.f32.mrf.mxu0  ;;  %v792_v32 = vpop.f32.mrf.mxu1 }
 0x128   : > { %1471 = vst [vmem:[%s1749_s23 + $0x28] sm:$0xff] %v1415_v29   ;;  %1479 = vst [vmem:[%s1749_s23 + $0x68] sm:$0xff] %v1455_v30   ;;  %v955_v41 = vmax.f32 %v923_v33, 0.0  ;;  %v971_v42 = vmax.f32 %v939_v34, 0.0 }
 0x129   : > { %v729_v35 = vpop.f32.mrf.mxu0  ;;  %v793_v36 = vpop.f32.mrf.mxu1 }
 0x12a   : > { %v924_v37 = vadd.f32 %v1739_v48, %v729_v35  ;;  %v940_v38 = vadd.f32 %v1739_v48, %v793_v36 }
 0x12b   : > { %v731_v39 = vpop.f32.mrf.mxu0  ;;  %v795_v40 = vpop.f32.mrf.mxu1 }
 0x12c   : > { %v956_v43 = vmax.f32 %v924_v37, 0.0  ;;  %v972_v44 = vmax.f32 %v940_v38, 0.0 }
 0x12d   : > { %v734_v45 = vpop.f32.mrf.mxu0  ;;  %v798_v46 = vpop.f32.mrf.mxu1 }
 0x12e   : > { %v1420_v47 = vpack.c.bf16 %v956_v43, %v955_v41  ;;  %v1460_v49 = vpack.c.bf16 %v972_v44, %v971_v42  ;;  %v925_v52 = vadd.f32 %v1739_v48, %v734_v45  ;;  %v941_v53 = vadd.f32 %v1739_v48, %v798_v46 }
 0x12f   : > { %v736_v50 = vpop.f32.mrf.mxu0  ;;  %v800_v51 = vpop.f32.mrf.mxu1 }
 0x130   : > { %1472 = vst [vmem:[%s1749_s23 + $0x30] sm:$0xff] %v1420_v47   ;;  %1480 = vst [vmem:[%s1749_s23 + $0x70] sm:$0xff] %v1460_v49   ;;  %v957_v60 = vmax.f32 %v925_v52, 0.0  ;;  %v973_v61 = vmax.f32 %v941_v53, 0.0 }
 0x131   : > { %v737_v54 = vpop.f32.mrf.mxu0  ;;  %v801_v55 = vpop.f32.mrf.mxu1 }
 0x132   : > { %v926_v56 = vadd.f32 %v1739_v48, %v737_v54  ;;  %v942_v57 = vadd.f32 %v1739_v48, %v801_v55 }
 0x133   : > { %v739_v58 = vpop.f32.mrf.mxu0  ;;  %v803_v59 = vpop.f32.mrf.mxu1 }
 0x134   : > { %v958_v62 = vmax.f32 %v926_v56, 0.0  ;;  %v974_v63 = vmax.f32 %v942_v57, 0.0 }
 0x136   : > { %v1425_v0 = vpack.c.bf16 %v958_v62, %v957_v60  ;;  %v1465_v1 = vpack.c.bf16 %v974_v63, %v973_v61 }
 0x138   : > { %1473 = vst [vmem:[%s1749_s23 + $0x38] sm:$0xff] %v1425_v0   ;;  %1481 = vst [vmem:[%s1749_s23 + $0x78] sm:$0xff] %v1465_v1  }
 0x139 PF: > { %s13_s14 = sadd.s32 1, %s1608_s14   ;;  %s1808_s12 = smov %s1604_s13 }
 0x13a   : > { %p10_p5 = scmp.ge.s32.totalorder %s13_s14, 4   ;;  %s1809_s13 = smov %s1811_s15 }
 0x13c   :  { %12 = sbr.rel (!%p10_p5) target bundleno = 2 (0x2), region = 76 }

// kernel: starting_network_forward.24
= control target key start
LH: loop header
LB: loop body
LE: loop exit
PB: predicated region body
PF: predicated region fallthrough
CT: control target
= control target key end

     0   :  { %vm153_vm0 = vcmask 519168   ;;  %s1385_s0 = inlined_call_operand.vmem [shape: bf16[9,128,64], index: 0, kind: input, shape index: {}]   ;;  %s1386_s1 = inlined_call_operand.vmem [shape: bf16[128,64], index: 1, kind: output, shape index: {}]  }
   0x1   :  { %v9_v0 = vld [vmem:[%s1385_s0] sm:$0xf]  ;;  %v10_v12 = vld [vmem:[%s1385_s0 + $0x4] sm:$0xf]  ;;  %v11_v33 = vld [vmem:[%s1385_s0 + $0x8] sm:$0xf] }
   0x2   :  { %v25_v1 = vld [vmem:[%s1385_s0 + $0x40] sm:$0xf]  ;;  %v156_v4 = vsel %vm153_vm0, %v9_v0, 4286644096  ;;  %v26_v13 = vld [vmem:[%s1385_s0 + $0x44] sm:$0xf] }
   0x3   :  { %v41_v2 = vld [vmem:[%s1385_s0 + $0x80] sm:$0xf]  ;;  %v159_v5 = vsel %vm153_vm0, %v25_v1, 4286644096  ;;  %v42_v14 = vld [vmem:[%s1385_s0 + $0x84] sm:$0xf] }
   0x4   :  { %v57_v3 = vld [vmem:[%s1385_s0 + $0xc0] sm:$0xf]  ;;  %v163_v6 = vsel %vm153_vm0, %v41_v2, 4286644096  ;;  %v161_v8 = vmax.bf16 %v159_v5, %v156_v4  ;;  %v58_v19 = vld [vmem:[%s1385_s0 + $0xc4] sm:$0xf] }
   0x5   :  { %v73_v7 = vld [vmem:[%s1385_s0 + $0x100] sm:$0xf]  ;;  %v167_v10 = vsel %vm153_vm0, %v57_v3, 4286644096  ;;  %v191_v20 = vsel %vm153_vm0, %v10_v12, 4286644096 }
   0x6   :  { %v89_v9 = vld [vmem:[%s1385_s0 + $0x140] sm:$0xf]  ;;  %v165_v11 = vmax.bf16 %v163_v6, %v161_v8  ;;  %v171_v15 = vsel %vm153_vm0, %v73_v7, 4286644096  ;;  %v194_v21 = vsel %vm153_vm0, %v26_v13, 4286644096 }
   0x7   :  { %v105_v16 = vld [vmem:[%s1385_s0 + $0x180] sm:$0xf]  ;;  %v175_v18 = vsel %vm153_vm0, %v89_v9, 4286644096  ;;  %v198_v22 = vsel %vm153_vm0, %v42_v14, 4286644096  ;;  %v196_v27 = vmax.bf16 %v194_v21, %v191_v20 }
   0x8   :  { %v169_v17 = vmax.bf16 %v167_v10, %v165_v11  ;;  %v121_v23 = vld [vmem:[%s1385_s0 + $0x1c0] sm:$0xf]  ;;  %v74_v26 = vld [vmem:[%s1385_s0 + $0x104] sm:$0xf]  ;;  %v179_v28 = vsel %vm153_vm0, %v105_v16, 4286644096 }
   0x9   :  { %v137_v24 = vld [vmem:[%s1385_s0 + $0x200] sm:$0xf]  ;;  %v90_v29 = vld [vmem:[%s1385_s0 + $0x144] sm:$0xf]  ;;  %v202_v30 = vsel %vm153_vm0, %v58_v19, 4286644096  ;;  %v200_v32 = vmax.bf16 %v198_v22, %v196_v27 }
   0xa   :  { %v173_v25 = vmax.bf16 %v171_v15, %v169_v17  ;;  %v27_v34 = vld [vmem:[%s1385_s0 + $0x48] sm:$0xf]  ;;  %v183_v36 = vsel %vm153_vm0, %v121_v23, 4286644096  ;;  %v187_v37 = vsel %vm153_vm0, %v137_v24, 4286644096 }
   0xb   :  { %v43_v35 = vld [vmem:[%s1385_s0 + $0x88] sm:$0xf]  ;;  %v206_v38 = vsel %vm153_vm0, %v74_v26, 4286644096  ;;  %v106_v40 = vld [vmem:[%s1385_s0 + $0x184] sm:$0xf]  ;;  %v204_v41 = vmax.bf16 %v202_v30, %v200_v32 }
   0xc   :  { %v177_v31 = vmax.bf16 %v175_v18, %v173_v25  ;;  %v210_v42 = vsel %vm153_vm0, %v90_v29, 4286644096  ;;  %v59_v43 = vld [vmem:[%s1385_s0 + $0xc8] sm:$0xf]  ;;  %v226_v44 = vsel %vm153_vm0, %v11_v33, 4286644096 }
   0xd   :  { %v229_v45 = vsel %vm153_vm0, %v27_v34, 4286644096  ;;  %v233_v46 = vsel %vm153_vm0, %v43_v35, 4286644096  ;;  %v122_v48 = vld [vmem:[%s1385_s0 + $0x1c4] sm:$0xf]  ;;  %v208_v50 = vmax.bf16 %v206_v38, %v204_v41 }
   0xe   :  { %v181_v39 = vmax.bf16 %v179_v28, %v177_v31  ;;  %v138_v49 = vld [vmem:[%s1385_s0 + $0x204] sm:$0xf]  ;;  %v75_v51 = vld [vmem:[%s1385_s0 + $0x108] sm:$0xf]  ;;  %v231_v52 = vmax.bf16 %v229_v45, %v226_v44  ;;  %v214_v53 = vsel %vm153_vm0, %v106_v40, 4286644096 }
   0xf   :  { %v91_v54 = vld [vmem:[%s1385_s0 + $0x148] sm:$0xf]  ;;  %v237_v55 = vsel %vm153_vm0, %v59_v43, 4286644096  ;;  %v212_v57 = vmax.bf16 %v210_v42, %v208_v50  ;;  %v12_v59 = vld [vmem:[%s1385_s0 + $0xc] sm:$0xf] }
  0x10   :  { %v185_v47 = vmax.bf16 %v183_v36, %v181_v39  ;;  %v235_v58 = vmax.bf16 %v233_v46, %v231_v52  ;;  %v28_v60 = vld [vmem:[%s1385_s0 + $0x4c] sm:$0xf]  ;;  %v218_v62 = vsel %vm153_vm0, %v122_v48, 4286644096  ;;  %v222_v63 = vsel %vm153_vm0, %v138_v49, 4286644096 }
  0x11   :  { %v44_v61 = vld [vmem:[%s1385_s0 + $0x8c] sm:$0xf]  ;;  %v241_v0 = vsel %vm153_vm0, %v75_v51, 4286644096  ;;  %v216_v1 = vmax.bf16 %v214_v53, %v212_v57  ;;  %v107_v2 = vld [vmem:[%s1385_s0 + $0x188] sm:$0xf] }
  0x12   :  { %v189_v56 = vmax.bf16 %v187_v37, %v185_v47  ;;  %v239_v3 = vmax.bf16 %v237_v55, %v235_v58  ;;  %v245_v4 = vsel %vm153_vm0, %v91_v54, 4286644096  ;;  %v60_v5 = vld [vmem:[%s1385_s0 + $0xcc] sm:$0xf]  ;;  %v261_v6 = vsel %vm153_vm0, %v12_v59, 4286644096 }
  0x13   :  { %v264_v7 = vsel %vm153_vm0, %v28_v60, 4286644096  ;;  %v268_v8 = vsel %vm153_vm0, %v44_v61, 4286644096  ;;  %v220_v9 = vmax.bf16 %v218_v62, %v216_v1  ;;  %v123_v10 = vld [vmem:[%s1385_s0 + $0x1c8] sm:$0xf] }
  0x14   :  { %715 = vst.msk [vmem:[%s1386_s1] sm:$0xf] %vm153_vm0, %v189_v56  ;;  %v139_v11 = vld [vmem:[%s1385_s0 + $0x208] sm:$0xf]  ;;  %v243_v12 = vmax.bf16 %v241_v0, %v239_v3  ;;  %v76_v13 = vld [vmem:[%s1385_s0 + $0x10c] sm:$0xf]  ;;  %v266_v14 = vmax.bf16 %v264_v7, %v261_v6 }
  0x15   :  { %v249_v15 = vsel %vm153_vm0, %v107_v2, 4286644096  ;;  %v92_v16 = vld [vmem:[%s1385_s0 + $0x14c] sm:$0xf]  ;;  %v272_v17 = vsel %vm153_vm0, %v60_v5, 4286644096  ;;  %v224_v18 = vmax.bf16 %v222_v63, %v220_v9 }
  0x16   :  { %v247_v19 = vmax.bf16 %v245_v4, %v243_v12  ;;  %v270_v20 = vmax.bf16 %v268_v8, %v266_v14  ;;  %v13_v21 = vld [vmem:[%s1385_s0 + $0x10] sm:$0xf]  ;;  %v253_v24 = vsel %vm153_vm0, %v123_v10, 4286644096  ;;  %v257_v25 = vsel %vm153_vm0, %v139_v11, 4286644096 }
  0x17   :  { %v29_v22 = vld [vmem:[%s1385_s0 + $0x50] sm:$0xf]  ;;  %v276_v26 = vsel %vm153_vm0, %v76_v13, 4286644096  ;;  %716 = vst.msk [vmem:[%s1386_s1 + $0x4] sm:$0xf] %vm153_vm0, %v224_v18 }
  0x18   :  { %v45_v23 = vld [vmem:[%s1385_s0 + $0x90] sm:$0xf]  ;;  %v251_v27 = vmax.bf16 %v249_v15, %v247_v19  ;;  %v108_v28 = vld [vmem:[%s1385_s0 + $0x18c] sm:$0xf]  ;;  %v274_v29 = vmax.bf16 %v272_v17, %v270_v20  ;;  %v280_v30 = vsel %vm153_vm0, %v92_v16, 4286644096 }
  0x19   :  { %v61_v31 = vld [vmem:[%s1385_s0 + $0xd0] sm:$0xf]  ;;  %v296_v32 = vsel %vm153_vm0, %v13_v21, 4286644096  ;;  %v299_v33 = vsel %vm153_vm0, %v29_v22, 4286644096 }
  0x1a   :  { %v303_v34 = vsel %vm153_vm0, %v45_v23, 4286644096  ;;  %v255_v35 = vmax.bf16 %v253_v24, %v251_v27  ;;  %v124_v36 = vld [vmem:[%s1385_s0 + $0x1cc] sm:$0xf]  ;;  %v278_v38 = vmax.bf16 %v276_v26, %v274_v29  ;;  %v77_v39 = vld [vmem:[%s1385_s0 + $0x110] sm:$0xf]  ;;  %v301_v40 = vmax.bf16 %v299_v33, %v296_v32 }
  0x1b   :  { %v140_v37 = vld [vmem:[%s1385_s0 + $0x20c] sm:$0xf]  ;;  %v284_v41 = vsel %vm153_vm0, %v108_v28, 4286644096  ;;  %v93_v42 = vld [vmem:[%s1385_s0 + $0x150] sm:$0xf] }
  0x1c   :  { %v307_v43 = vsel %vm153_vm0, %v61_v31, 4286644096  ;;  %v259_v44 = vmax.bf16 %v257_v25, %v255_v35  ;;  %v282_v45 = vmax.bf16 %v280_v30, %v278_v38  ;;  %v305_v46 = vmax.bf16 %v303_v34, %v301_v40  ;;  %v14_v47 = vld [vmem:[%s1385_s0 + $0x14] sm:$0xf]  ;;  %v109_v54 = vld [vmem:[%s1385_s0 + $0x190] sm:$0xf] }
  0x1d   :  { %v30_v48 = vld [vmem:[%s1385_s0 + $0x54] sm:$0xf]  ;;  %v288_v50 = vsel %vm153_vm0, %v124_v36, 4286644096  ;;  %v292_v51 = vsel %vm153_vm0, %v140_v37, 4286644096 }
  0x1e   :  { %v46_v49 = vld [vmem:[%s1385_s0 + $0x94] sm:$0xf]  ;;  %v311_v52 = vsel %vm153_vm0, %v77_v39, 4286644096  ;;  %717 = vst.msk [vmem:[%s1386_s1 + $0x8] sm:$0xf] %vm153_vm0, %v259_v44  ;;  %v286_v53 = vmax.bf16 %v284_v41, %v282_v45  ;;  %v309_v55 = vmax.bf16 %v307_v43, %v305_v46 }
  0x1f   :  { %v315_v56 = vsel %vm153_vm0, %v93_v42, 4286644096  ;;  %v62_v57 = vld [vmem:[%s1385_s0 + $0xd4] sm:$0xf]  ;;  %v331_v58 = vsel %vm153_vm0, %v14_v47, 4286644096 }
  0x20   :  { %v334_v59 = vsel %vm153_vm0, %v30_v48, 4286644096  ;;  %v338_v60 = vsel %vm153_vm0, %v46_v49, 4286644096  ;;  %v290_v61 = vmax.bf16 %v288_v50, %v286_v53  ;;  %v125_v62 = vld [vmem:[%s1385_s0 + $0x1d0] sm:$0xf]  ;;  %v313_v0 = vmax.bf16 %v311_v52, %v309_v55 }
  0x21   :  { %v141_v63 = vld [vmem:[%s1385_s0 + $0x210] sm:$0xf]  ;;  %v78_v1 = vld [vmem:[%s1385_s0 + $0x114] sm:$0xf]  ;;  %v336_v2 = vmax.bf16 %v334_v59, %v331_v58  ;;  %v319_v3 = vsel %vm153_vm0, %v109_v54, 4286644096 }
  0x22   :  { %v94_v4 = vld [vmem:[%s1385_s0 + $0x154] sm:$0xf]  ;;  %v342_v5 = vsel %vm153_vm0, %v62_v57, 4286644096  ;;  %v294_v6 = vmax.bf16 %v292_v51, %v290_v61  ;;  %v317_v7 = vmax.bf16 %v315_v56, %v313_v0  ;;  %v15_v9 = vld [vmem:[%s1385_s0 + $0x18] sm:$0xf] }
  0x23   :  { %v340_v8 = vmax.bf16 %v338_v60, %v336_v2  ;;  %v31_v10 = vld [vmem:[%s1385_s0 + $0x58] sm:$0xf]  ;;  %v323_v12 = vsel %vm153_vm0, %v125_v62, 4286644096  ;;  %v327_v13 = vsel %vm153_vm0, %v141_v63, 4286644096 }
  0x24   :  { %v47_v11 = vld [vmem:[%s1385_s0 + $0x98] sm:$0xf]  ;;  %v346_v14 = vsel %vm153_vm0, %v78_v1, 4286644096  ;;  %718 = vst.msk [vmem:[%s1386_s1 + $0xc] sm:$0xf] %vm153_vm0, %v294_v6  ;;  %v321_v15 = vmax.bf16 %v319_v3, %v317_v7 }
  0x25   :  { %v110_v16 = vld [vmem:[%s1385_s0 + $0x194] sm:$0xf]  ;;  %v344_v17 = vmax.bf16 %v342_v5, %v340_v8  ;;  %v350_v18 = vsel %vm153_vm0, %v94_v4, 4286644096  ;;  %v63_v19 = vld [vmem:[%s1385_s0 + $0xd8] sm:$0xf] }
  0x26   :  { %v366_v20 = vsel %vm153_vm0, %v15_v9, 4286644096  ;;  %v369_v21 = vsel %vm153_vm0, %v31_v10, 4286644096  ;;  %v373_v22 = vsel %vm153_vm0, %v47_v11, 4286644096  ;;  %v325_v23 = vmax.bf16 %v323_v12, %v321_v15 }
  0x27   :  { %v126_v24 = vld [vmem:[%s1385_s0 + $0x1d4] sm:$0xf]  ;;  %v348_v26 = vmax.bf16 %v346_v14, %v344_v17  ;;  %v79_v27 = vld [vmem:[%s1385_s0 + $0x118] sm:$0xf]  ;;  %v371_v28 = vmax.bf16 %v369_v21, %v366_v20  ;;  %v354_v29 = vsel %vm153_vm0, %v110_v16, 4286644096 }
  0x28   :  { %v142_v25 = vld [vmem:[%s1385_s0 + $0x214] sm:$0xf]  ;;  %v95_v30 = vld [vmem:[%s1385_s0 + $0x158] sm:$0xf]  ;;  %v377_v31 = vsel %vm153_vm0, %v63_v19, 4286644096  ;;  %v329_v32 = vmax.bf16 %v327_v13, %v325_v23 }
  0x29   :  { %v352_v33 = vmax.bf16 %v350_v18, %v348_v26  ;;  %v375_v34 = vmax.bf16 %v373_v22, %v371_v28  ;;  %v16_v35 = vld [vmem:[%s1385_s0 + $0x1c] sm:$0xf]  ;;  %v358_v38 = vsel %vm153_vm0, %v126_v24, 4286644096  ;;  %v362_v39 = vsel %vm153_vm0, %v142_v25, 4286644096 }
  0x2a   :  { %v32_v36 = vld [vmem:[%s1385_s0 + $0x5c] sm:$0xf]  ;;  %v381_v40 = vsel %vm153_vm0, %v79_v27, 4286644096  ;;  %719 = vst.msk [vmem:[%s1386_s1 + $0x10] sm:$0xf] %vm153_vm0, %v329_v32 }
  0x2b   :  { %v48_v37 = vld [vmem:[%s1385_s0 + $0x9c] sm:$0xf]  ;;  %v356_v41 = vmax.bf16 %v354_v29, %v352_v33  ;;  %v111_v42 = vld [vmem:[%s1385_s0 + $0x198] sm:$0xf]  ;;  %v379_v43 = vmax.bf16 %v377_v31, %v375_v34  ;;  %v385_v44 = vsel %vm153_vm0, %v95_v30, 4286644096 }
  0x2c   :  { %v64_v45 = vld [vmem:[%s1385_s0 + $0xdc] sm:$0xf]  ;;  %v401_v46 = vsel %vm153_vm0, %v16_v35, 4286644096  ;;  %v404_v47 = vsel %vm153_vm0, %v32_v36, 4286644096 }
  0x2d   :  { %v408_v48 = vsel %vm153_vm0, %v48_v37, 4286644096  ;;  %v360_v49 = vmax.bf16 %v358_v38, %v356_v41  ;;  %v127_v50 = vld [vmem:[%s1385_s0 + $0x1d8] sm:$0xf]  ;;  %v383_v52 = vmax.bf16 %v381_v40, %v379_v43  ;;  %v80_v53 = vld [vmem:[%s1385_s0 + $0x11c] sm:$0xf]  ;;  %v406_v54 = vmax.bf16 %v404_v47, %v401_v46 }
  0x2e   :  { %v143_v51 = vld [vmem:[%s1385_s0 + $0x218] sm:$0xf]  ;;  %v389_v55 = vsel %vm153_vm0, %v111_v42, 4286644096  ;;  %v96_v56 = vld [vmem:[%s1385_s0 + $0x15c] sm:$0xf] }
  0x2f   :  { %v412_v57 = vsel %vm153_vm0, %v64_v45, 4286644096  ;;  %v364_v58 = vmax.bf16 %v362_v39, %v360_v49  ;;  %v387_v59 = vmax.bf16 %v385_v44, %v383_v52  ;;  %v410_v60 = vmax.bf16 %v408_v48, %v406_v54  ;;  %v17_v61 = vld [vmem:[%s1385_s0 + $0x20] sm:$0xf]  ;;  %v112_v4 = vld [vmem:[%s1385_s0 + $0x19c] sm:$0xf] }
  0x30   :  { %v33_v62 = vld [vmem:[%s1385_s0 + $0x60] sm:$0xf]  ;;  %v393_v0 = vsel %vm153_vm0, %v127_v50, 4286644096  ;;  %v397_v1 = vsel %vm153_vm0, %v143_v51, 4286644096 }
  0x31   :  { %v49_v63 = vld [vmem:[%s1385_s0 + $0xa0] sm:$0xf]  ;;  %v416_v2 = vsel %vm153_vm0, %v80_v53, 4286644096  ;;  %720 = vst.msk [vmem:[%s1386_s1 + $0x14] sm:$0xf] %vm153_vm0, %v364_v58  ;;  %v391_v3 = vmax.bf16 %v389_v55, %v387_v59  ;;  %v414_v5 = vmax.bf16 %v412_v57, %v410_v60 }
  0x32   :  { %v420_v6 = vsel %vm153_vm0, %v96_v56, 4286644096  ;;  %v65_v7 = vld [vmem:[%s1385_s0 + $0xe0] sm:$0xf]  ;;  %v436_v8 = vsel %vm153_vm0, %v17_v61, 4286644096 }
  0x33   :  { %v439_v9 = vsel %vm153_vm0, %v33_v62, 4286644096  ;;  %v443_v10 = vsel %vm153_vm0, %v49_v63, 4286644096  ;;  %v395_v11 = vmax.bf16 %v393_v0, %v391_v3  ;;  %v128_v12 = vld [vmem:[%s1385_s0 + $0x1dc] sm:$0xf]  ;;  %v418_v14 = vmax.bf16 %v416_v2, %v414_v5 }
  0x34   :  { %v144_v13 = vld [vmem:[%s1385_s0 + $0x21c] sm:$0xf]  ;;  %v81_v15 = vld [vmem:[%s1385_s0 + $0x120] sm:$0xf]  ;;  %v441_v16 = vmax.bf16 %v439_v9, %v436_v8  ;;  %v424_v17 = vsel %vm153_vm0, %v112_v4, 4286644096 }
  0x35   :  { %v97_v18 = vld [vmem:[%s1385_s0 + $0x160] sm:$0xf]  ;;  %v447_v19 = vsel %vm153_vm0, %v65_v7, 4286644096  ;;  %v399_v20 = vmax.bf16 %v397_v1, %v395_v11  ;;  %v422_v21 = vmax.bf16 %v420_v6, %v418_v14  ;;  %v18_v23 = vld [vmem:[%s1385_s0 + $0x24] sm:$0xf] }
  0x36   :  { %v445_v22 = vmax.bf16 %v443_v10, %v441_v16  ;;  %v34_v24 = vld [vmem:[%s1385_s0 + $0x64] sm:$0xf]  ;;  %v428_v26 = vsel %vm153_vm0, %v128_v12, 4286644096  ;;  %v432_v27 = vsel %vm153_vm0, %v144_v13, 4286644096 }
  0x37   :  { %v50_v25 = vld [vmem:[%s1385_s0 + $0xa4] sm:$0xf]  ;;  %v451_v28 = vsel %vm153_vm0, %v81_v15, 4286644096  ;;  %721 = vst.msk [vmem:[%s1386_s1 + $0x18] sm:$0xf] %vm153_vm0, %v399_v20  ;;  %v426_v29 = vmax.bf16 %v424_v17, %v422_v21 }
  0x38   :  { %v113_v30 = vld [vmem:[%s1385_s0 + $0x1a0] sm:$0xf]  ;;  %v449_v31 = vmax.bf16 %v447_v19, %v445_v22  ;;  %v455_v32 = vsel %vm153_vm0, %v97_v18, 4286644096  ;;  %v66_v33 = vld [vmem:[%s1385_s0 + $0xe4] sm:$0xf] }
  0x39   :  { %v471_v34 = vsel %vm153_vm0, %v18_v23, 4286644096  ;;  %v474_v35 = vsel %vm153_vm0, %v34_v24, 4286644096  ;;  %v478_v36 = vsel %vm153_vm0, %v50_v25, 4286644096  ;;  %v430_v37 = vmax.bf16 %v428_v26, %v426_v29 }
  0x3a   :  { %v129_v38 = vld [vmem:[%s1385_s0 + $0x1e0] sm:$0xf]  ;;  %v453_v40 = vmax.bf16 %v451_v28, %v449_v31  ;;  %v82_v41 = vld [vmem:[%s1385_s0 + $0x124] sm:$0xf]  ;;  %v476_v42 = vmax.bf16 %v474_v35, %v471_v34  ;;  %v459_v43 = vsel %vm153_vm0, %v113_v30, 4286644096 }
  0x3b   :  { %v145_v39 = vld [vmem:[%s1385_s0 + $0x220] sm:$0xf]  ;;  %v98_v44 = vld [vmem:[%s1385_s0 + $0x164] sm:$0xf]  ;;  %v482_v45 = vsel %vm153_vm0, %v66_v33, 4286644096  ;;  %v434_v46 = vmax.bf16 %v432_v27, %v430_v37 }
  0x3c   :  { %v457_v47 = vmax.bf16 %v455_v32, %v453_v40  ;;  %v480_v48 = vmax.bf16 %v478_v36, %v476_v42  ;;  %v19_v49 = vld [vmem:[%s1385_s0 + $0x28] sm:$0xf]  ;;  %v463_v52 = vsel %vm153_vm0, %v129_v38, 4286644096  ;;  %v467_v53 = vsel %vm153_vm0, %v145_v39, 4286644096 }
  0x3d   :  { %v35_v50 = vld [vmem:[%s1385_s0 + $0x68] sm:$0xf]  ;;  %v486_v54 = vsel %vm153_vm0, %v82_v41, 4286644096  ;;  %722 = vst.msk [vmem:[%s1386_s1 + $0x1c] sm:$0xf] %vm153_vm0, %v434_v46 }
  0x3e   :  { %v51_v51 = vld [vmem:[%s1385_s0 + $0xa8] sm:$0xf]  ;;  %v461_v55 = vmax.bf16 %v459_v43, %v457_v47  ;;  %v114_v56 = vld [vmem:[%s1385_s0 + $0x1a4] sm:$0xf]  ;;  %v484_v57 = vmax.bf16 %v482_v45, %v480_v48  ;;  %v490_v58 = vsel %vm153_vm0, %v98_v44, 4286644096 }
  0x3f   :  { %v67_v59 = vld [vmem:[%s1385_s0 + $0xe8] sm:$0xf]  ;;  %v506_v60 = vsel %vm153_vm0, %v19_v49, 4286644096  ;;  %v509_v61 = vsel %vm153_vm0, %v35_v50, 4286644096 }
  0x40   :  { %v513_v62 = vsel %vm153_vm0, %v51_v51, 4286644096  ;;  %v465_v63 = vmax.bf16 %v463_v52, %v461_v55  ;;  %v130_v0 = vld [vmem:[%s1385_s0 + $0x1e4] sm:$0xf]  ;;  %v488_v2 = vmax.bf16 %v486_v54, %v484_v57  ;;  %v83_v3 = vld [vmem:[%s1385_s0 + $0x128] sm:$0xf]  ;;  %v511_v4 = vmax.bf16 %v509_v61, %v506_v60 }
  0x41   :  { %v146_v1 = vld [vmem:[%s1385_s0 + $0x224] sm:$0xf]  ;;  %v494_v5 = vsel %vm153_vm0, %v114_v56, 4286644096  ;;  %v99_v6 = vld [vmem:[%s1385_s0 + $0x168] sm:$0xf] }
  0x42   :  { %v517_v7 = vsel %vm153_vm0, %v67_v59, 4286644096  ;;  %v469_v8 = vmax.bf16 %v467_v53, %v465_v63  ;;  %v492_v9 = vmax.bf16 %v490_v58, %v488_v2  ;;  %v515_v10 = vmax.bf16 %v513_v62, %v511_v4  ;;  %v20_v11 = vld [vmem:[%s1385_s0 + $0x2c] sm:$0xf]  ;;  %v115_v18 = vld [vmem:[%s1385_s0 + $0x1a8] sm:$0xf] }
  0x43   :  { %v36_v12 = vld [vmem:[%s1385_s0 + $0x6c] sm:$0xf]  ;;  %v498_v14 = vsel %vm153_vm0, %v130_v0, 4286644096  ;;  %v502_v15 = vsel %vm153_vm0, %v146_v1, 4286644096 }
  0x44   :  { %v52_v13 = vld [vmem:[%s1385_s0 + $0xac] sm:$0xf]  ;;  %v521_v16 = vsel %vm153_vm0, %v83_v3, 4286644096  ;;  %723 = vst.msk [vmem:[%s1386_s1 + $0x20] sm:$0xf] %vm153_vm0, %v469_v8  ;;  %v496_v17 = vmax.bf16 %v494_v5, %v492_v9  ;;  %v519_v19 = vmax.bf16 %v517_v7, %v515_v10 }
  0x45   :  { %v525_v20 = vsel %vm153_vm0, %v99_v6, 4286644096  ;;  %v68_v21 = vld [vmem:[%s1385_s0 + $0xec] sm:$0xf]  ;;  %v541_v22 = vsel %vm153_vm0, %v20_v11, 4286644096 }
  0x46   :  { %v544_v23 = vsel %vm153_vm0, %v36_v12, 4286644096  ;;  %v548_v24 = vsel %vm153_vm0, %v52_v13, 4286644096  ;;  %v500_v25 = vmax.bf16 %v498_v14, %v496_v17  ;;  %v131_v26 = vld [vmem:[%s1385_s0 + $0x1e8] sm:$0xf]  ;;  %v523_v28 = vmax.bf16 %v521_v16, %v519_v19 }
  0x47   :  { %v147_v27 = vld [vmem:[%s1385_s0 + $0x228] sm:$0xf]  ;;  %v84_v29 = vld [vmem:[%s1385_s0 + $0x12c] sm:$0xf]  ;;  %v546_v30 = vmax.bf16 %v544_v23, %v541_v22  ;;  %v529_v31 = vsel %vm153_vm0, %v115_v18, 4286644096 }
  0x48   :  { %v100_v32 = vld [vmem:[%s1385_s0 + $0x16c] sm:$0xf]  ;;  %v552_v33 = vsel %vm153_vm0, %v68_v21, 4286644096  ;;  %v504_v34 = vmax.bf16 %v502_v15, %v500_v25  ;;  %v527_v35 = vmax.bf16 %v525_v20, %v523_v28  ;;  %v21_v37 = vld [vmem:[%s1385_s0 + $0x30] sm:$0xf] }
  0x49   :  { %v550_v36 = vmax.bf16 %v548_v24, %v546_v30  ;;  %v37_v38 = vld [vmem:[%s1385_s0 + $0x70] sm:$0xf]  ;;  %v533_v40 = vsel %vm153_vm0, %v131_v26, 4286644096  ;;  %v537_v41 = vsel %vm153_vm0, %v147_v27, 4286644096 }
  0x4a   :  { %v53_v39 = vld [vmem:[%s1385_s0 + $0xb0] sm:$0xf]  ;;  %v556_v42 = vsel %vm153_vm0, %v84_v29, 4286644096  ;;  %724 = vst.msk [vmem:[%s1386_s1 + $0x24] sm:$0xf] %vm153_vm0, %v504_v34  ;;  %v531_v43 = vmax.bf16 %v529_v31, %v527_v35 }
  0x4b   :  { %v116_v44 = vld [vmem:[%s1385_s0 + $0x1ac] sm:$0xf]  ;;  %v554_v45 = vmax.bf16 %v552_v33, %v550_v36  ;;  %v560_v46 = vsel %vm153_vm0, %v100_v32, 4286644096  ;;  %v69_v47 = vld [vmem:[%s1385_s0 + $0xf0] sm:$0xf] }
  0x4c   :  { %v576_v48 = vsel %vm153_vm0, %v21_v37, 4286644096  ;;  %v579_v49 = vsel %vm153_vm0, %v37_v38, 4286644096  ;;  %v583_v50 = vsel %vm153_vm0, %v53_v39, 4286644096  ;;  %v535_v51 = vmax.bf16 %v533_v40, %v531_v43 }
  0x4d   :  { %v132_v52 = vld [vmem:[%s1385_s0 + $0x1ec] sm:$0xf]  ;;  %v558_v54 = vmax.bf16 %v556_v42, %v554_v45  ;;  %v85_v55 = vld [vmem:[%s1385_s0 + $0x130] sm:$0xf]  ;;  %v581_v56 = vmax.bf16 %v579_v49, %v576_v48  ;;  %v564_v57 = vsel %vm153_vm0, %v116_v44, 4286644096 }
  0x4e   :  { %v148_v53 = vld [vmem:[%s1385_s0 + $0x22c] sm:$0xf]  ;;  %v101_v58 = vld [vmem:[%s1385_s0 + $0x170] sm:$0xf]  ;;  %v587_v59 = vsel %vm153_vm0, %v69_v47, 4286644096  ;;  %v539_v60 = vmax.bf16 %v537_v41, %v535_v51 }
  0x4f   :  { %v562_v61 = vmax.bf16 %v560_v46, %v558_v54  ;;  %v585_v62 = vmax.bf16 %v583_v50, %v581_v56  ;;  %v22_v63 = vld [vmem:[%s1385_s0 + $0x34] sm:$0xf]  ;;  %v568_v2 = vsel %vm153_vm0, %v132_v52, 4286644096  ;;  %v572_v3 = vsel %vm153_vm0, %v148_v53, 4286644096 }
  0x50   :  { %v38_v0 = vld [vmem:[%s1385_s0 + $0x74] sm:$0xf]  ;;  %v591_v4 = vsel %vm153_vm0, %v85_v55, 4286644096  ;;  %725 = vst.msk [vmem:[%s1386_s1 + $0x28] sm:$0xf] %vm153_vm0, %v539_v60 }
  0x51   :  { %v54_v1 = vld [vmem:[%s1385_s0 + $0xb4] sm:$0xf]  ;;  %v566_v5 = vmax.bf16 %v564_v57, %v562_v61  ;;  %v117_v6 = vld [vmem:[%s1385_s0 + $0x1b0] sm:$0xf]  ;;  %v589_v7 = vmax.bf16 %v587_v59, %v585_v62  ;;  %v595_v8 = vsel %vm153_vm0, %v101_v58, 4286644096 }
  0x52   :  { %v70_v9 = vld [vmem:[%s1385_s0 + $0xf4] sm:$0xf]  ;;  %v611_v10 = vsel %vm153_vm0, %v22_v63, 4286644096  ;;  %v614_v11 = vsel %vm153_vm0, %v38_v0, 4286644096 }
  0x53   :  { %v618_v12 = vsel %vm153_vm0, %v54_v1, 4286644096  ;;  %v570_v13 = vmax.bf16 %v568_v2, %v566_v5  ;;  %v133_v14 = vld [vmem:[%s1385_s0 + $0x1f0] sm:$0xf]  ;;  %v593_v16 = vmax.bf16 %v591_v4, %v589_v7  ;;  %v86_v17 = vld [vmem:[%s1385_s0 + $0x134] sm:$0xf]  ;;  %v616_v18 = vmax.bf16 %v614_v11, %v611_v10 }
  0x54   :  { %v149_v15 = vld [vmem:[%s1385_s0 + $0x230] sm:$0xf]  ;;  %v599_v19 = vsel %vm153_vm0, %v117_v6, 4286644096  ;;  %v102_v20 = vld [vmem:[%s1385_s0 + $0x174] sm:$0xf] }
  0x55   :  { %v622_v21 = vsel %vm153_vm0, %v70_v9, 4286644096  ;;  %v574_v22 = vmax.bf16 %v572_v3, %v570_v13  ;;  %v597_v23 = vmax.bf16 %v595_v8, %v593_v16  ;;  %v620_v24 = vmax.bf16 %v618_v12, %v616_v18  ;;  %v23_v25 = vld [vmem:[%s1385_s0 + $0x38] sm:$0xf]  ;;  %v118_v32 = vld [vmem:[%s1385_s0 + $0x1b4] sm:$0xf] }
  0x56   :  { %v39_v26 = vld [vmem:[%s1385_s0 + $0x78] sm:$0xf]  ;;  %v603_v28 = vsel %vm153_vm0, %v133_v14, 4286644096  ;;  %v607_v29 = vsel %vm153_vm0, %v149_v15, 4286644096 }
  0x57   :  { %v55_v27 = vld [vmem:[%s1385_s0 + $0xb8] sm:$0xf]  ;;  %v626_v30 = vsel %vm153_vm0, %v86_v17, 4286644096  ;;  %726 = vst.msk [vmem:[%s1386_s1 + $0x2c] sm:$0xf] %vm153_vm0, %v574_v22  ;;  %v601_v31 = vmax.bf16 %v599_v19, %v597_v23  ;;  %v624_v33 = vmax.bf16 %v622_v21, %v620_v24 }
  0x58   :  { %v630_v34 = vsel %vm153_vm0, %v102_v20, 4286644096  ;;  %v71_v35 = vld [vmem:[%s1385_s0 + $0xf8] sm:$0xf]  ;;  %v646_v36 = vsel %vm153_vm0, %v23_v25, 4286644096 }
  0x59   :  { %v649_v37 = vsel %vm153_vm0, %v39_v26, 4286644096  ;;  %v653_v38 = vsel %vm153_vm0, %v55_v27, 4286644096  ;;  %v605_v39 = vmax.bf16 %v603_v28, %v601_v31  ;;  %v134_v40 = vld [vmem:[%s1385_s0 + $0x1f4] sm:$0xf]  ;;  %v628_v42 = vmax.bf16 %v626_v30, %v624_v33 }
  0x5a   :  { %v150_v41 = vld [vmem:[%s1385_s0 + $0x234] sm:$0xf]  ;;  %v87_v43 = vld [vmem:[%s1385_s0 + $0x138] sm:$0xf]  ;;  %v651_v44 = vmax.bf16 %v649_v37, %v646_v36  ;;  %v634_v45 = vsel %vm153_vm0, %v118_v32, 4286644096 }
  0x5b   :  { %v103_v46 = vld [vmem:[%s1385_s0 + $0x178] sm:$0xf]  ;;  %v657_v47 = vsel %vm153_vm0, %v71_v35, 4286644096  ;;  %v609_v48 = vmax.bf16 %v607_v29, %v605_v39  ;;  %v632_v49 = vmax.bf16 %v630_v34, %v628_v42  ;;  %v24_v51 = vld [vmem:[%s1385_s0 + $0x3c] sm:$0xf] }
  0x5c   :  { %v655_v50 = vmax.bf16 %v653_v38, %v651_v44  ;;  %v40_v52 = vld [vmem:[%s1385_s0 + $0x7c] sm:$0xf]  ;;  %v638_v54 = vsel %vm153_vm0, %v134_v40, 4286644096  ;;  %v642_v55 = vsel %vm153_vm0, %v150_v41, 4286644096 }
  0x5d   :  { %v56_v53 = vld [vmem:[%s1385_s0 + $0xbc] sm:$0xf]  ;;  %v661_v56 = vsel %vm153_vm0, %v87_v43, 4286644096  ;;  %727 = vst.msk [vmem:[%s1386_s1 + $0x30] sm:$0xf] %vm153_vm0, %v609_v48  ;;  %v636_v57 = vmax.bf16 %v634_v45, %v632_v49 }
  0x5e   :  { %v119_v58 = vld [vmem:[%s1385_s0 + $0x1b8] sm:$0xf]  ;;  %v659_v59 = vmax.bf16 %v657_v47, %v655_v50  ;;  %v665_v60 = vsel %vm153_vm0, %v103_v46, 4286644096  ;;  %v72_v61 = vld [vmem:[%s1385_s0 + $0xfc] sm:$0xf] }
  0x5f   :  { %v681_v62 = vsel %vm153_vm0, %v24_v51, 4286644096  ;;  %v684_v63 = vsel %vm153_vm0, %v40_v52, 4286644096  ;;  %v688_v0 = vsel %vm153_vm0, %v56_v53, 4286644096  ;;  %v640_v1 = vmax.bf16 %v638_v54, %v636_v57 }
  0x60   :  { %v135_v2 = vld [vmem:[%s1385_s0 + $0x1f8] sm:$0xf]  ;;  %v663_v3 = vmax.bf16 %v661_v56, %v659_v59  ;;  %v88_v4 = vld [vmem:[%s1385_s0 + $0x13c] sm:$0xf]  ;;  %v686_v5 = vmax.bf16 %v684_v63, %v681_v62  ;;  %v669_v6 = vsel %vm153_vm0, %v119_v58, 4286644096 }
  0x61   :  { %v692_v7 = vsel %vm153_vm0, %v72_v61, 4286644096  ;;  %v644_v8 = vmax.bf16 %v642_v55, %v640_v1  ;;  %v151_v9 = vld [vmem:[%s1385_s0 + $0x238] sm:$0xf]  ;;  %v104_v11 = vld [vmem:[%s1385_s0 + $0x17c] sm:$0xf] }
  0x62   :  { %v667_v10 = vmax.bf16 %v665_v60, %v663_v3  ;;  %v690_v12 = vmax.bf16 %v688_v0, %v686_v5  ;;  %v673_v13 = vsel %vm153_vm0, %v135_v2, 4286644096  ;;  %v696_v14 = vsel %vm153_vm0, %v88_v4, 4286644096  ;;  %v120_v16 = vld [vmem:[%s1385_s0 + $0x1bc] sm:$0xf] }
  0x63   :  { %728 = vst.msk [vmem:[%s1386_s1 + $0x34] sm:$0xf] %vm153_vm0, %v644_v8  ;;  %v677_v18 = vsel %vm153_vm0, %v151_v9, 4286644096  ;;  %v700_v19 = vsel %vm153_vm0, %v104_v11, 4286644096 }
  0x64   :  { %v671_v15 = vmax.bf16 %v669_v6, %v667_v10  ;;  %v694_v17 = vmax.bf16 %v692_v7, %v690_v12  ;;  %v136_v21 = vld [vmem:[%s1385_s0 + $0x1fc] sm:$0xf]  ;;  %v704_v23 = vsel %vm153_vm0, %v120_v16, 4286644096 }
  0x65   :  { %v152_v25 = vld [vmem:[%s1385_s0 + $0x23c] sm:$0xf]  ;;  %v708_v27 = vsel %vm153_vm0, %v136_v21, 4286644096 }
  0x66   :  { %v675_v20 = vmax.bf16 %v673_v13, %v671_v15  ;;  %v698_v22 = vmax.bf16 %v696_v14, %v694_v17  ;;  %v712_v29 = vsel %vm153_vm0, %v152_v25, 4286644096 }
  0x68   :  { %v679_v24 = vmax.bf16 %v677_v18, %v675_v20  ;;  %v702_v26 = vmax.bf16 %v700_v19, %v698_v22 }
  0x6a   :  { %729 = vst.msk [vmem:[%s1386_s1 + $0x38] sm:$0xf] %vm153_vm0, %v679_v24  ;;  %v706_v28 = vmax.bf16 %v704_v23, %v702_v26 }
  0x6c   :  { %v710_v30 = vmax.bf16 %v708_v27, %v706_v28 }
  0x6e   :  { %v714_v31 = vmax.bf16 %v712_v29, %v710_v30 }
  0x70   :  { %730 = vst.msk [vmem:[%s1386_s1 + $0x3c] sm:$0xf] %vm153_vm0, %v714_v31 }

// kernel: starting_network_forward.25
= control target key start
LH: loop header
LB: loop body
LE: loop exit
PB: predicated region body
PF: predicated region fallthrough
CT: control target
= control target key end

     0   :  { %vm587_vm0 = vcmask 523264   ;;  %s1830_s1 = inlined_call_operand.vmem [shape: bf16[576,128], index: 1, kind: input, shape index: {}]   ;;  %s1831_s0 = inlined_call_operand.vmem [shape: bf16[128,576], index: 0, kind: input, shape index: {}]   ;;  %s1832_s2 = inlined_call_operand.vmem [shape: f32[1,128], index: 2, kind: input, shape index: {}]   ;;  %s1833_s3 = inlined_call_operand.vmem [shape: bf16[128,128], index: 3, kind: output, shape index: {}]  }
   0x1   :  { %v1413_v0 = vld [vmem:[%s1830_s1 + $0x78] sm:$0xff]   ;;  %v1417_v4 = vld [vmem:[%s1830_s1 + $0x70] sm:$0xff]   ;;  %v1421_v8 = vld [vmem:[%s1830_s1 + $0x68] sm:$0xff]  }
   0x2   :  { %v1414_v1 = vld [vmem:[%s1830_s1 + $0xf8] sm:$0xff]   ;;  %1241 = vmatprep.subr.bf16.mxu0 %v1413_v0  ;;  %v1418_v5 = vld [vmem:[%s1830_s1 + $0xf0] sm:$0xff]   ;;  %v1422_v9 = vld [vmem:[%s1830_s1 + $0xe8] sm:$0xff]  }
   0x3   :  { %v1415_v2 = vld [vmem:[%s1830_s1 + $0x38] sm:$0xff]   ;;  %1305 = vmatprep.subr.bf16.mxu1 %v1414_v1  ;;  %v1419_v6 = vld [vmem:[%s1830_s1 + $0x30] sm:$0xff]   ;;  %v1423_v10 = vld [vmem:[%s1830_s1 + $0x28] sm:$0xff]  }
   0x4   :  { %v1416_v3 = vld [vmem:[%s1830_s1 + $0xb8] sm:$0xff]   ;;  %1242 = vmatpush3.bf16.msra.mxu0 %v1415_v2  ;;  %v1420_v7 = vld [vmem:[%s1830_s1 + $0xb0] sm:$0xff]   ;;  %v1424_v11 = vld [vmem:[%s1830_s1 + $0xa8] sm:$0xff]  }
   0x5   :  { %1306 = vmatpush3.bf16.msra.mxu1 %v1416_v3  ;;  %1243 = vmatprep.subr.bf16.mxu0 %v1417_v4  ;;  %v1425_v12 = vld [vmem:[%s1830_s1 + $0x60] sm:$0xff]   ;;  %v1429_v16 = vld [vmem:[%s1830_s1 + $0x58] sm:$0xff]   ;;  %v1433_v20 = vld [vmem:[%s1830_s1 + $0x50] sm:$0xff]  }
   0x6   :  { %1307 = vmatprep.subr.bf16.mxu1 %v1418_v5  ;;  %v1426_v13 = vld [vmem:[%s1830_s1 + $0xe0] sm:$0xff]   ;;  %v1430_v17 = vld [vmem:[%s1830_s1 + $0xd8] sm:$0xff]   ;;  %v1434_v21 = vld [vmem:[%s1830_s1 + $0xd0] sm:$0xff]  }
   0x7   :  { %v1427_v14 = vld [vmem:[%s1830_s1 + $0x20] sm:$0xff]   ;;  %v1431_v18 = vld [vmem:[%s1830_s1 + $0x18] sm:$0xff]   ;;  %v1435_v22 = vld [vmem:[%s1830_s1 + $0x10] sm:$0xff]  }
   0x8   :  { %1244 = vmatpush3.bf16.msra.mxu0 %v1419_v6  ;;  %v1428_v15 = vld [vmem:[%s1830_s1 + $0xa0] sm:$0xff]   ;;  %v1432_v19 = vld [vmem:[%s1830_s1 + $0x98] sm:$0xff]   ;;  %v1436_v23 = vld [vmem:[%s1830_s1 + $0x90] sm:$0xff]  }
   0x9   :  { %1308 = vmatpush3.bf16.msra.mxu1 %v1420_v7  ;;  %1245 = vmatprep.subr.bf16.mxu0 %v1421_v8  ;;  %v1437_v24 = vld [vmem:[%s1830_s1 + $0x48] sm:$0xff]   ;;  %v1441_v28 = vld [vmem:[%s1830_s1 + $0x40] sm:$0xff]   ;;  %v1451_v36 = vld [vmem:[%s1830_s1 + $0x118] sm:$0xff]  }
   0xa   :  { %1309 = vmatprep.subr.bf16.mxu1 %v1422_v9  ;;  %v1438_v25 = vld [vmem:[%s1830_s1 + $0xc8] sm:$0xff]   ;;  %v1442_v29 = vld [vmem:[%s1830_s1 + $0xc0] sm:$0xff]   ;;  %v1464_v42 = vld [vmem:[%s1830_s1 + $0x110] sm:$0xff]  }
   0xb   :  { %v1439_v26 = vld [vmem:[%s1830_s1 + $0x8] sm:$0xff]   ;;  %v1443_v30 = vld [vmem:[%s1830_s1] sm:$0xff]   ;;  %v1460_v43 = vld [vmem:[%s1831_s0 + $0x5c] ss:$20 sps:$4 sm:$0xff]  }
   0xc   :  { %1246 = vmatpush3.bf16.msra.mxu0 %v1423_v10  ;;  %v1440_v27 = vld [vmem:[%s1830_s1 + $0x88] sm:$0xff]   ;;  %v1444_v31 = vld [vmem:[%s1830_s1 + $0x80] sm:$0xff]   ;;  %v1465_v47 = vld [vmem:[%s1831_s0 + $0x7c] ss:$20 sps:$4 sm:$0xff]  }
   0xd   :  { %1310 = vmatpush3.bf16.msra.mxu1 %v1424_v11  ;;  %1247 = vmatprep.subr.bf16.mxu0 %v1425_v12  ;;  %v1445_v32 = vld [vmem:[%s1831_s0] ss:$20 sps:$4 sm:$0xff]   ;;  %v1447_v33 = vld [vmem:[%s1831_s0 + $0x4] ss:$20 sps:$4 sm:$0xff]   ;;  %v1448_v34 = vld [vmem:[%s1831_s0 + $0x8] ss:$20 sps:$4 sm:$0xff]  }
   0xe   :  { %1311 = vmatprep.subr.bf16.mxu1 %v1426_v13  ;;  %v1450_v35 = vld [vmem:[%s1831_s0 + $0xc] ss:$20 sps:$4 sm:$0xff]   ;;  %644 = vmatprep.mubr.bf16.mxu0 %v1447_v33  ;;  %v1454_v38 = vld [vmem:[%s1831_s0 + $0x34] ss:$20 sps:$4 sm:$0xff]   ;;  %v1457_v40 = vld [vmem:[%s1831_s0 + $0x30] ss:$20 sps:$4 sm:$0xff]  }
   0xf   :  { %741 = vmatprep.mubr.bf16.mxu1 %v1450_v35  ;;  %v1452_v37 = vld [vmem:[%s1831_s0 + $0x2c] ss:$20 sps:$4 sm:$0xff]   ;;  %v1456_v39 = vld [vmem:[%s1831_s0 + $0x28] ss:$20 sps:$4 sm:$0xff]   ;;  %v1462_v44 = vld [vmem:[%s1831_s0 + $0x50] ss:$20 sps:$4 sm:$0xff]  }
  0x10   :  { %1248 = vmatpush3.bf16.msra.mxu0 %v1427_v14  ;;  %v1458_v41 = vld [vmem:[%s1831_s0 + $0x54] ss:$20 sps:$4 sm:$0xff]   ;;  %v1463_v45 = vld [vmem:[%s1831_s0 + $0x58] ss:$20 sps:$4 sm:$0xff]   ;;  %v1490_v49 = vld [vmem:[%s1830_s1 + $0x100] sm:$0xff]  }
  0x11   :  { %1312 = vmatpush3.bf16.msra.mxu1 %v1428_v15  ;;  %1249 = vmatprep.subr.bf16.mxu0 %v1429_v16  ;;  %v1477_v46 = vld [vmem:[%s1830_s1 + $0x108] sm:$0xff]   ;;  %v1467_v48 = vld [vmem:[%s1831_s0 + $0x84] ss:$20 sps:$4 sm:$0xff]   ;;  %v1470_v51 = vld [vmem:[%s1831_s0 + $0x80] ss:$20 sps:$4 sm:$0xff]  }
  0x12   :  { %1313 = vmatprep.subr.bf16.mxu1 %v1430_v17  ;;  %v1469_v50 = vld [vmem:[%s1831_s0 + $0x78] ss:$20 sps:$4 sm:$0xff]   ;;  %v1475_v54 = vld [vmem:[%s1831_s0 + $0xa0] ss:$20 sps:$4 sm:$0xff]   ;;  %v1476_v55 = vld [vmem:[%s1831_s0 + $0xa8] ss:$20 sps:$4 sm:$0xff]  }
  0x13   :  { %v1471_v52 = vld [vmem:[%s1831_s0 + $0xa4] ss:$20 sps:$4 sm:$0xff]   ;;  %v1473_v53 = vld [vmem:[%s1831_s0 + $0xac] ss:$20 sps:$4 sm:$0xff]   ;;  %v1480_v57 = vld [vmem:[%s1831_s0 + $0xd4] ss:$20 sps:$4 sm:$0xff]  }
  0x14   :  { %1250 = vmatpush3.bf16.msra.mxu0 %v1431_v18  ;;  %v1478_v56 = vld [vmem:[%s1831_s0 + $0xcc] ss:$20 sps:$4 sm:$0xff]   ;;  %v1482_v58 = vld [vmem:[%s1831_s0 + $0xc8] ss:$20 sps:$4 sm:$0xff]   ;;  %v1483_v59 = vld [vmem:[%s1831_s0 + $0xd0] ss:$20 sps:$4 sm:$0xff]  }
  0x15   :  { %1314 = vmatpush3.bf16.msra.mxu1 %v1432_v19  ;;  %1251 = vmatprep.subr.bf16.mxu0 %v1433_v20  ;;  %v1484_v60 = vld [vmem:[%s1831_s0 + $0xf4] ss:$20 sps:$4 sm:$0xff]   ;;  %v1486_v61 = vld [vmem:[%s1831_s0 + $0xfc] ss:$20 sps:$4 sm:$0xff]   ;;  %v1489_v63 = vld [vmem:[%s1831_s0 + $0xf8] ss:$20 sps:$4 sm:$0xff]  }
  0x16   :  { %1315 = vmatprep.subr.bf16.mxu1 %v1434_v21  ;;  %v1488_v62 = vld [vmem:[%s1831_s0 + $0xf0] ss:$20 sps:$4 sm:$0xff]   ;;  %v1495_v2 = vld [vmem:[%s1831_s0 + $0x118] ss:$20 sps:$4 sm:$0xff]   ;;  %v1496_v3 = vld [vmem:[%s1831_s0 + $0x120] ss:$20 sps:$4 sm:$0xff]  }
  0x17   :  { %v1491_v0 = vld [vmem:[%s1831_s0 + $0x11c] ss:$20 sps:$4 sm:$0xff]   ;;  %v1493_v1 = vld [vmem:[%s1831_s0 + $0x124] ss:$20 sps:$4 sm:$0xff]   ;;  %v1501_v8 = vld [vmem:[%s1831_s0 + $0x60] ss:$20 sps:$4 sm:$0xff]  }
  0x18   :  { %1252 = vmatpush3.bf16.msra.mxu0 %v1435_v22  ;;  %v1497_v4 = vld [vmem:[%s1831_s0 + $0x10] ss:$20 sps:$4 sm:$0xff]   ;;  %v1499_v6 = vld [vmem:[%s1831_s0 + $0x38] ss:$20 sps:$4 sm:$0xff]   ;;  %v1502_v9 = vld [vmem:[%s1831_s0 + $0x100] ss:$20 sps:$4 sm:$0xff]  }
  0x19   :  { %1316 = vmatpush3.bf16.msra.mxu1 %v1436_v23  ;;  %1253 = vmatprep.subr.bf16.mxu0 %v1437_v24  ;;  %v1498_v5 = vld [vmem:[%s1831_s0 + $0xb0] ss:$20 sps:$4 sm:$0xff]   ;;  %v1500_v7 = vld [vmem:[%s1831_s0 + $0xd8] ss:$20 sps:$4 sm:$0xff]   ;;  %v1503_v10 = vld [vmem:[%s1831_s0 + $0x88] ss:$20 sps:$4 sm:$0xff]  }
  0x1a   :  { %1317 = vmatprep.subr.bf16.mxu1 %v1438_v25  ;;  %v1504_v11 = vld [vmem:[%s1831_s0 + $0x128] ss:$20 sps:$4 sm:$0xff]  }
  0x1c   :  { %1254 = vmatpush3.bf16.msra.mxu0 %v1439_v26 }
  0x1d   :  { %1318 = vmatpush3.bf16.msra.mxu1 %v1440_v27  ;;  %1255 = vmatprep.subr.bf16.mxu0 %v1441_v28 }
  0x1e   :  { %1319 = vmatprep.subr.bf16.mxu1 %v1442_v29 }
  0x20   :  { %1256 = vmatpush3.bf16.msra.mxu0 %v1443_v30 }
  0x21   :  { %1320 = vmatpush3.bf16.msra.mxu1 %v1444_v31  ;;  %1381 = vmatprep.subr.bf16.mxu0 %v1451_v36 }
  0x22   :  { %1405 = vmatprep.subr.bf16.mxu1 %v1451_v36 }
  0x23   :  { %645 = vmatmul.mubr.bf16.vlgmr.msra.gmra.mxu0 %v1445_v32 }
  0x24   :  { %742 = vmatmul.mubr.bf16.vlgmr.msra.gmra.mxu1 %v1448_v34  ;;  %1382 = vmatpush3.bf16.msra.mxu0 %v1451_v36 }
  0x25   :  { %1409 = vmatpush3.bf16.msra.mxu1 %v1451_v36  ;;  %652 = vmatprep.mubr.bf16.mxu0 %v1452_v37 }
  0x26   :  { %749 = vmatprep.mubr.bf16.mxu1 %v1454_v38  ;;  %1383 = vmatprep.subr.bf16.mxu0 %v1464_v42 }
  0x27   :  { %1406 = vmatprep.subr.bf16.mxu1 %v1464_v42 }
  0x28   :  { %1384 = vmatpush3.bf16.msra.mxu0 %v1464_v42 }
  0x29   :  { %1410 = vmatpush3.bf16.msra.mxu1 %v1464_v42  ;;  %1385 = vmatprep.subr.bf16.mxu0 %v1477_v46 }
  0x2a   :  { %1407 = vmatprep.subr.bf16.mxu1 %v1477_v46 }
  0x2b   :  { %653 = vmatmul.mubr.bf16.gmra.mxu0 %v1456_v39 }
  0x2c   :  { %750 = vmatmul.mubr.bf16.gmra.mxu1 %v1457_v40  ;;  %660 = vmatprep.mubr.bf16.mxu0 %v1458_v41 }
  0x2d   :  { %757 = vmatprep.mubr.bf16.mxu1 %v1460_v43  ;;  %1386 = vmatpush3.bf16.msra.mxu0 %v1477_v46 }
  0x2e   :  { %1411 = vmatpush3.bf16.msra.mxu1 %v1477_v46  ;;  %1387 = vmatprep.subr.bf16.mxu0 %v1490_v49 }
  0x2f   :  { %1408 = vmatprep.subr.bf16.mxu1 %v1490_v49 }
  0x31   :  { %1388 = vmatpush3.bf16.msra.mxu0 %v1490_v49 }
  0x32   :  { %1412 = vmatpush3.bf16.msra.mxu1 %v1490_v49 }
  0x33   :  { %661 = vmatmul.mubr.bf16.gmra.mxu0 %v1462_v44 }
  0x34   :  { %758 = vmatmul.mubr.bf16.gmra.mxu1 %v1463_v45  ;;  %668 = vmatprep.mubr.bf16.mxu0 %v1465_v47 }
  0x35   :  { %765 = vmatprep.mubr.bf16.mxu1 %v1467_v48 }
  0x3b   :  { %669 = vmatmul.mubr.bf16.gmra.mxu0 %v1469_v50 }
  0x3c   :  { %766 = vmatmul.mubr.bf16.gmra.mxu1 %v1470_v51  ;;  %676 = vmatprep.mubr.bf16.mxu0 %v1471_v52 }
  0x3d   :  { %773 = vmatprep.mubr.bf16.mxu1 %v1473_v53 }
  0x43   :  { %677 = vmatmul.mubr.bf16.gmra.mxu0 %v1475_v54 }
  0x44   :  { %774 = vmatmul.mubr.bf16.gmra.mxu1 %v1476_v55  ;;  %684 = vmatprep.mubr.bf16.mxu0 %v1478_v56 }
  0x45   :  { %781 = vmatprep.mubr.bf16.mxu1 %v1480_v57 }
  0x4b   :  { %685 = vmatmul.mubr.bf16.gmra.mxu0 %v1482_v58 }
  0x4c   :  { %782 = vmatmul.mubr.bf16.gmra.mxu1 %v1483_v59  ;;  %692 = vmatprep.mubr.bf16.mxu0 %v1484_v60 }
  0x4d   :  { %789 = vmatprep.mubr.bf16.mxu1 %v1486_v61 }
  0x53   :  { %693 = vmatmul.mubr.bf16.gmra.mxu0 %v1488_v62 }
  0x54   :  { %790 = vmatmul.mubr.bf16.gmra.mxu1 %v1489_v63  ;;  %700 = vmatprep.mubr.bf16.mxu0 %v1491_v0 }
  0x55   :  { %797 = vmatprep.mubr.bf16.mxu1 %v1493_v1 }
  0x5b   :  { %701 = vmatmul.mubr.bf16.gmra.mxu0 %v1495_v2 }
  0x5c   :  { %798 = vmatmul.mubr.bf16.gmra.mxu1 %v1496_v3  ;;  %1389 = vmatprep.mubr.msk.bf16.mxu0 %vm587_vm0, %v1497_v4 }
  0x5d   :  { %1397 = vmatprep.mubr.msk.bf16.mxu1 %vm587_vm0, %v1498_v5 }
  0x63   :  { %1390 = vmatmul.mubr.msk.bf16.vlgmr.msra.gmra.mxu0 %vm587_vm0, %v1499_v6 }
  0x64   :  { %1398 = vmatmul.mubr.msk.bf16.vlgmr.msra.gmra.mxu1 %vm587_vm0, %v1500_v7  ;;  %1393 = vmatprep.mubr.msk.bf16.mxu0 %vm587_vm0, %v1501_v8 }
  0x65   :  { %1401 = vmatprep.mubr.msk.bf16.mxu1 %vm587_vm0, %v1502_v9 }
  0x6b   :  { %1394 = vmatmul.mubr.msk.bf16.gmra.mxu0 %vm587_vm0, %v1503_v10 }
  0x6c   :  { %1402 = vmatmul.mubr.msk.bf16.gmra.mxu1 %vm587_vm0, %v1504_v11 }
  0xe3   :  { %v1257_v12 = vpop.f32.mrf.mxu0 }
  0xe4   :  { %v1321_v13 = vpop.f32.mrf.mxu1 }
  0xe5   :  { %v1258_v14 = vpop.f32.mrf.mxu0 }
  0xe6   :  { %v1259_v15 = vadd.f32 %v1258_v14, %v1257_v12  ;;  %v1322_v16 = vpop.f32.mrf.mxu1 }
  0xe7   :  { %v1323_v17 = vadd.f32 %v1322_v16, %v1321_v13  ;;  %v1260_v18 = vpop.f32.mrf.mxu0 }
  0xe8   :  { %v1324_v19 = vpop.f32.mrf.mxu1 }
  0xe9   :  { %v1261_v20 = vpop.f32.mrf.mxu0  ;;  %v1761_v21 = vadd.f32 %v1323_v17, %v1259_v15 }
  0xea   :  { %v1325_v22 = vpop.f32.mrf.mxu1  ;;  %v1262_v7 = vadd.f32 %v1261_v20, %v1260_v18 }
  0xeb   :  { %1834 = vst [vmem:[#allocation3_spill] sm:$0xff] %v1761_v21  ;;  %v1263_v23 = vpop.f32.mrf.mxu0  ;;  %v1326_v8 = vadd.f32 %v1325_v22, %v1324_v19 }
  0xec   :  { %v1327_v24 = vpop.f32.mrf.mxu1 }
  0xed   :  { %v1264_v25 = vpop.f32.mrf.mxu0  ;;  %v747_v18 = vadd.f32 %v1326_v8, %v1262_v7 }
  0xee   :  { %v1328_v26 = vpop.f32.mrf.mxu1  ;;  %v1265_v10 = vadd.f32 %v1264_v25, %v1263_v23 }
  0xef   :  { %v1266_v27 = vpop.f32.mrf.mxu0  ;;  %v1329_v11 = vadd.f32 %v1328_v26, %v1327_v24 }
  0xf0   :  { %v1330_v28 = vpop.f32.mrf.mxu1 }
  0xf1   :  { %v1267_v29 = vpop.f32.mrf.mxu0 }
  0xf2   :  { %v1331_v30 = vpop.f32.mrf.mxu1  ;;  %v1268_v12 = vadd.f32 %v1267_v29, %v1266_v27 }
  0xf3   :  { %v1269_v31 = vpop.f32.mrf.mxu0  ;;  %v1332_v13 = vadd.f32 %v1331_v30, %v1330_v28 }
  0xf4   :  { %v1333_v32 = vpop.f32.mrf.mxu1 }
  0xf5   :  { %v1270_v33 = vpop.f32.mrf.mxu0 }
  0xf6   :  { %v1334_v34 = vpop.f32.mrf.mxu1  ;;  %v1271_v16 = vadd.f32 %v1270_v33, %v1269_v31 }
  0xf7   :  { %v1272_v35 = vpop.f32.mrf.mxu0  ;;  %v1335_v17 = vadd.f32 %v1334_v34, %v1333_v32 }
  0xf8   :  { %v1763_v36 = vpop.f32.mrf.mxu1 }
  0xf9   :  { %1835 = vst [vmem:[#allocation4_spill] sm:$0xff] %v1763_v36  ;;  %v1273_v37 = vpop.f32.mrf.mxu0  ;;  %v760_v29 = vadd.f32 %v1335_v17, %v1271_v16 }
  0xfa   :  { %v1765_v38 = vpop.f32.mrf.mxu1  ;;  %v1775_v24 = vadd.f32 %v1273_v37, %v1272_v35  ;;  %v1782_v35 = vld [vmem:[%s1832_s2] ss:$0 sm:$0xff] }
  0xfb   :  { %1836 = vst [vmem:[#allocation5_spill] sm:$0xff] %v1765_v38  ;;  %v1275_v39 = vpop.f32.mrf.mxu0 }
  0xfc   :  { %v1339_v40 = vpop.f32.mrf.mxu1 }
  0xfd   :  { %v1276_v41 = vpop.f32.mrf.mxu0 }
  0xfe   :  { %v1340_v42 = vpop.f32.mrf.mxu1  ;;  %v1277_v20 = vadd.f32 %v1276_v41, %v1275_v39 }
  0xff   :  { %v1278_v43 = vpop.f32.mrf.mxu0  ;;  %v1341_v19 = vadd.f32 %v1340_v42, %v1339_v40 }
 0x100   :  { %v1342_v44 = vpop.f32.mrf.mxu1  ;;  %v1841_v40 = vld [vmem:[#allocation4_spill] sm:$0xff] }
 0x101   :  { %v1279_v45 = vpop.f32.mrf.mxu0 }
 0x102   :  { %v1343_v46 = vpop.f32.mrf.mxu1  ;;  %v1280_v26 = vadd.f32 %v1279_v45, %v1278_v43  ;;  %v1842_v41 = vld [vmem:[#allocation5_spill] sm:$0xff]  ;;  %v768_v45 = vadd.f32 %v1341_v19, %v1277_v20 }
 0x103   :  { %v1281_v47 = vpop.f32.mrf.mxu0  ;;  %v1344_v27 = vadd.f32 %v1343_v46, %v1342_v44  ;;  %v1338_v42 = vadd.f32 %v1842_v41, %v1841_v40 }
 0x104   :  { %v1345_v48 = vpop.f32.mrf.mxu1 }
 0x105   :  { %v1282_v49 = vpop.f32.mrf.mxu0 }
 0x106   :  { %v1346_v50 = vpop.f32.mrf.mxu1  ;;  %v1283_v22 = vadd.f32 %v1282_v49, %v1281_v47 }
 0x107   :  { %v1284_v51 = vpop.f32.mrf.mxu0  ;;  %v1347_v23 = vadd.f32 %v1346_v50, %v1345_v48  ;;  %v771_v50 = vadd.f32 %v1344_v27, %v1280_v26 }
 0x108   :  { %v1348_v52 = vpop.f32.mrf.mxu1 }
 0x109   :  { %v1285_v53 = vpop.f32.mrf.mxu0  ;;  %v776_v44 = vadd.f32 %v1347_v23, %v1283_v22 }
 0x10a   :  { %v1349_v54 = vpop.f32.mrf.mxu1  ;;  %v1286_v30 = vadd.f32 %v1285_v53, %v1284_v51 }
 0x10b   :  { %v1287_v55 = vpop.f32.mrf.mxu0 }
 0x10c   :  { %v1351_v56 = vpop.f32.mrf.mxu1 }
 0x10d   :  { %v1288_v57 = vpop.f32.mrf.mxu0 }
 0x10e   :  { %v1352_v58 = vpop.f32.mrf.mxu1  ;;  %v1289_v38 = vadd.f32 %v1288_v57, %v1287_v55  ;;  %v1350_v55 = vadd.f32 %v1349_v54, %v1348_v52 }
 0x10f   :  { %v1290_v59 = vpop.f32.mrf.mxu0 }
 0x110   :  { %v1354_v60 = vpop.f32.mrf.mxu1 }
 0x111   :  { %v1291_v61 = vpop.f32.mrf.mxu0 }
 0x112   :  { %v1355_v62 = vpop.f32.mrf.mxu1  ;;  %v1292_v31 = vadd.f32 %v1291_v61, %v1290_v59 }
 0x113   :  { %v1293_v63 = vpop.f32.mrf.mxu0  ;;  %v1356_v32 = vadd.f32 %v1355_v62, %v1354_v60 }
 0x114   :  { %v1357_v0 = vpop.f32.mrf.mxu1 }
 0x115   :  { %v1294_v1 = vpop.f32.mrf.mxu0  ;;  %v787_v59 = vadd.f32 %v1356_v32, %v1292_v31 }
 0x116   :  { %v1358_v2 = vpop.f32.mrf.mxu1 }
 0x117   :  { %v1767_v3 = vpop.f32.mrf.mxu0  ;;  %v1359_v57 = vadd.f32 %v1358_v2, %v1357_v0 }
 0x118   :  { %1837 = vst [vmem:[#allocation6_spill] sm:$0xff] %v1767_v3  ;;  %v1769_v4 = vpop.f32.mrf.mxu1  ;;  %v1353_v3 = vadd.f32 %v1352_v58, %v1351_v56  ;;  %v1295_v56 = vadd.f32 %v1294_v1, %v1293_v63  ;;  %v779_v63 = vadd.f32 %v1350_v55, %v1286_v30 }
 0x119   :  { %1838 = vst [vmem:[#allocation7_spill] sm:$0xff] %v1769_v4  ;;  %v1771_v5 = vpop.f32.mrf.mxu0 }
 0x11a   :  { %1839 = vst [vmem:[#allocation8_spill] sm:$0xff] %v1771_v5  ;;  %v1773_v6 = vpop.f32.mrf.mxu1  ;;  %v752_v5 = vadd.f32 %v1329_v11, %v1265_v10  ;;  %v784_v34 = vadd.f32 %v1353_v3, %v1289_v38  ;;  %v1843_v38 = vld [vmem:[#allocation3_spill] sm:$0xff]  ;;  %v792_v0 = vadd.f32 %v1359_v57, %v1295_v56 }
 0x11b   :  { %1840 = vst [vmem:[#allocation9_spill] sm:$0xff] %v1773_v6  ;;  %v1299_v9 = vpop.f32.mrf.mxu0  ;;  %v755_v6 = vadd.f32 %v1332_v13, %v1268_v12 }
 0x11c   :  { %v1363_v14 = vpop.f32.mrf.mxu1 }
 0x11d   :  { %v1300_v15 = vpop.f32.mrf.mxu0 }
 0x11e   :  { %v1364_v21 = vpop.f32.mrf.mxu1  ;;  %v1301_v46 = vadd.f32 %v1300_v15, %v1299_v9 }
 0x11f   :  { %v1302_v36 = vpop.f32.mrf.mxu0  ;;  %v1365_v47 = vadd.f32 %v1364_v21, %v1363_v14  ;;  %v1844_v1 = vld [vmem:[#allocation6_spill] sm:$0xff] }
 0x120   :  { %v1366_v4 = vpop.f32.mrf.mxu1 }
 0x121   :  { %v1303_v25 = vpop.f32.mrf.mxu0  ;;  %v1845_v2 = vld [vmem:[#allocation8_spill] sm:$0xff] }
 0x122   :  { %v1367_v28 = vpop.f32.mrf.mxu1  ;;  %v1304_v51 = vadd.f32 %v1303_v25, %v1302_v36  ;;  %v1298_v3 = vadd.f32 %v1845_v2, %v1844_v1  ;;  %v1847_v21 = vld [vmem:[#allocation9_spill] sm:$0xff] }
 0x123   :  { %v1391_v33 = vpop.f32.mrf.mxu0  ;;  %v1368_v52 = vadd.f32 %v1367_v28, %v1366_v4 }
 0x124   :  { %v849_v58 = vadd.f32 %v1391_v33, %v752_v5  ;;  %v1399_v39 = vpop.f32.mrf.mxu1  ;;  %v1846_v5 = vld [vmem:[#allocation7_spill] sm:$0xff] }
 0x125   :  { %v881_v37 = vadd.f32 %v1399_v39, %v784_v34  ;;  %v840_v43 = vpop.f32.mrf.mxu0  ;;  %v1362_v7 = vadd.f32 %v1847_v21, %v1846_v5  ;;  %v803_v17 = vadd.f32 %v1368_v52, %v1304_v51 }
 0x126   :  { %v841_v48 = vadd.f32 %v840_v43, %v1843_v38  ;;  %v872_v49 = vpop.f32.mrf.mxu1  ;;  %v963_v60 = vadd.f32 %v1782_v35, %v849_v58 }
 0x127   :  { %v873_v53 = vadd.f32 %v872_v49, %v776_v44  ;;  %v1392_v54 = vpop.f32.mrf.mxu0  ;;  %v971_v8 = vadd.f32 %v1782_v35, %v881_v37 }
 0x128   :  { %v852_v61 = vadd.f32 %v1392_v54, %v755_v6  ;;  %v1400_v62 = vpop.f32.mrf.mxu1  ;;  %v961_v4 = vadd.f32 %v1782_v35, %v841_v48  ;;  %v800_v6 = vadd.f32 %v1365_v47, %v1301_v46  ;;  %v979_v20 = vmax.f32 %v963_v60, 0.0 }
 0x129   :  { %v884_v9 = vadd.f32 %v1400_v62, %v787_v59  ;;  %v843_v36 = vpop.f32.mrf.mxu0  ;;  %v969_v13 = vadd.f32 %v1782_v35, %v873_v53  ;;  %v987_v26 = vmax.f32 %v971_v8, 0.0  ;;  %v795_v48 = vadd.f32 %v1362_v7, %v1298_v3 }
 0x12a   :  { %v964_v10 = vadd.f32 %v1782_v35, %v852_v61  ;;  %v844_v11 = vadd.f32 %v843_v36, %v747_v18  ;;  %v875_v12 = vpop.f32.mrf.mxu1  ;;  %v977_v31 = vmax.f32 %v961_v4, 0.0 }
 0x12b   :  { %v972_v14 = vadd.f32 %v1782_v35, %v884_v9  ;;  %v876_v15 = vadd.f32 %v875_v12, %v779_v63  ;;  %v1395_v16 = vpop.f32.mrf.mxu0  ;;  %v985_v56 = vmax.f32 %v969_v13, 0.0 }
 0x12c   :  { %v980_v19 = vmax.f32 %v964_v10, 0.0  ;;  %v962_v22 = vadd.f32 %v1782_v35, %v844_v11  ;;  %v865_v23 = vadd.f32 %v1395_v16, %v768_v45  ;;  %v1403_v25 = vpop.f32.mrf.mxu1  ;;  %v763_v45 = vadd.f32 %v1338_v42, %v1775_v24 }
 0x12d   :  { %v988_v27 = vmax.f32 %v972_v14, 0.0  ;;  %v970_v28 = vadd.f32 %v1782_v35, %v876_v15  ;;  %v897_v18 = vadd.f32 %v1403_v25, %v800_v6  ;;  %v856_v30 = vpop.f32.mrf.mxu0 }
 0x12e   :  { %v1202_v32 = vpack.c.bf16 %v980_v19, %v979_v20  ;;  %v978_v33 = vmax.f32 %v962_v22, 0.0  ;;  %v857_v34 = vadd.f32 %v856_v30, %v760_v29  ;;  %v888_v55 = vpop.f32.mrf.mxu1  ;;  %v967_v37 = vadd.f32 %v1782_v35, %v865_v23 }
 0x12f   :  { %v1222_v57 = vpack.c.bf16 %v988_v27, %v987_v26  ;;  %v986_v58 = vmax.f32 %v970_v28, 0.0  ;;  %v889_v39 = vadd.f32 %v888_v55, %v792_v0  ;;  %v1396_v40 = vpop.f32.mrf.mxu0  ;;  %v975_v46 = vadd.f32 %v1782_v35, %v897_v18 }
 0x130   :  { %1234 = vst [vmem:[%s1833_s3 + $0x8] sm:$0xff] %v1202_v32   ;;  %v1197_v41 = vpack.c.bf16 %v978_v33, %v977_v31  ;;  %v868_v43 = vadd.f32 %v1396_v40, %v771_v50  ;;  %v1404_v44 = vpop.f32.mrf.mxu1  ;;  %v965_v49 = vadd.f32 %v1782_v35, %v857_v34  ;;  %v983_v54 = vmax.f32 %v967_v37, 0.0 }
 0x131   :  { %1238 = vst [vmem:[%s1833_s3 + $0x28] sm:$0xff] %v1222_v57   ;;  %v1217_v29 = vpack.c.bf16 %v986_v58, %v985_v56  ;;  %v900_v47 = vadd.f32 %v1404_v44, %v803_v17  ;;  %v859_v38 = vpop.f32.mrf.mxu0  ;;  %v973_v42 = vadd.f32 %v1782_v35, %v889_v39  ;;  %v991_v61 = vmax.f32 %v975_v46, 0.0 }
 0x132   :  { %1198 = vst [vmem:[%s1833_s3] sm:$0xff] %v1197_v41   ;;  %v968_v50 = vadd.f32 %v1782_v35, %v868_v43  ;;  %v860_v51 = vadd.f32 %v859_v38, %v763_v45  ;;  %v891_v24 = vpop.f32.mrf.mxu1  ;;  %v981_v0 = vmax.f32 %v965_v49, 0.0 }
 0x133   :  { %1237 = vst [vmem:[%s1833_s3 + $0x20] sm:$0xff] %v1217_v29   ;;  %v976_v52 = vadd.f32 %v1782_v35, %v900_v47  ;;  %v892_v53 = vadd.f32 %v891_v24, %v795_v48  ;;  %v989_v3 = vmax.f32 %v973_v42, 0.0 }
 0x134   :  { %v984_v59 = vmax.f32 %v968_v50, 0.0  ;;  %v966_v60 = vadd.f32 %v1782_v35, %v860_v51 }
 0x135   :  { %v992_v62 = vmax.f32 %v976_v52, 0.0  ;;  %v974_v63 = vadd.f32 %v1782_v35, %v892_v53 }
 0x136   :  { %v1212_v1 = vpack.c.bf16 %v984_v59, %v983_v54  ;;  %v982_v2 = vmax.f32 %v966_v60, 0.0 }
 0x137   :  { %v1232_v5 = vpack.c.bf16 %v992_v62, %v991_v61  ;;  %v990_v21 = vmax.f32 %v974_v63, 0.0 }
 0x138   :  { %1236 = vst [vmem:[%s1833_s3 + $0x18] sm:$0xff] %v1212_v1   ;;  %v1207_v7 = vpack.c.bf16 %v982_v2, %v981_v0 }
 0x139   :  { %1240 = vst [vmem:[%s1833_s3 + $0x38] sm:$0xff] %v1232_v5   ;;  %v1227_v8 = vpack.c.bf16 %v990_v21, %v989_v3 }
 0x13a   :  { %1235 = vst [vmem:[%s1833_s3 + $0x10] sm:$0xff] %v1207_v7  }
 0x13b   :  { %1239 = vst [vmem:[%s1833_s3 + $0x30] sm:$0xff] %v1227_v8  }

// kernel: starting_network_forward.26
= control target key start
LH: loop header
LB: loop body
LE: loop exit
PB: predicated region body
PF: predicated region fallthrough
CT: control target
= control target key end

     0   :  { %vm590_vm0 = vcmask 523264   ;;  %s2126_s1 = inlined_call_operand.vmem [shape: bf16[576,128], index: 1, kind: input, shape index: {}]   ;;  %s2127_s0 = inlined_call_operand.vmem [shape: bf16[128,576], index: 0, kind: input, shape index: {}]   ;;  %s2128_s3 = inlined_call_operand.vmem [shape: bf16[128,128], index: 3, kind: input, shape index: {}]   ;;  %s2129_s2 = inlined_call_operand.vmem [shape: f32[1,128], index: 2, kind: input, shape index: {}]   ;;  %s2130_s4 = inlined_call_operand.vmem [shape: bf16[128,128], index: 4, kind: output, shape index: {}]  }
   0x1   :  { %v1503_v0 = vld [vmem:[%s2126_s1 + $0x78] sm:$0xff]   ;;  %v1507_v4 = vld [vmem:[%s2126_s1 + $0x70] sm:$0xff]   ;;  %v1511_v8 = vld [vmem:[%s2126_s1 + $0x68] sm:$0xff]  }
   0x2   :  { %v1504_v1 = vld [vmem:[%s2126_s1 + $0xf8] sm:$0xff]   ;;  %1331 = vmatprep.subr.bf16.mxu0 %v1503_v0  ;;  %v1508_v5 = vld [vmem:[%s2126_s1 + $0xf0] sm:$0xff]   ;;  %v1512_v9 = vld [vmem:[%s2126_s1 + $0xe8] sm:$0xff]  }
   0x3   :  { %v1505_v2 = vld [vmem:[%s2126_s1 + $0x38] sm:$0xff]   ;;  %1395 = vmatprep.subr.bf16.mxu1 %v1504_v1  ;;  %v1509_v6 = vld [vmem:[%s2126_s1 + $0x30] sm:$0xff]   ;;  %v1513_v10 = vld [vmem:[%s2126_s1 + $0x28] sm:$0xff]  }
   0x4   :  { %v1506_v3 = vld [vmem:[%s2126_s1 + $0xb8] sm:$0xff]   ;;  %1332 = vmatpush3.bf16.msra.mxu0 %v1505_v2  ;;  %v1510_v7 = vld [vmem:[%s2126_s1 + $0xb0] sm:$0xff]   ;;  %v1514_v11 = vld [vmem:[%s2126_s1 + $0xa8] sm:$0xff]  }
   0x5   :  { %1396 = vmatpush3.bf16.msra.mxu1 %v1506_v3  ;;  %1333 = vmatprep.subr.bf16.mxu0 %v1507_v4  ;;  %v1515_v12 = vld [vmem:[%s2126_s1 + $0x60] sm:$0xff]   ;;  %v1519_v16 = vld [vmem:[%s2126_s1 + $0x58] sm:$0xff]   ;;  %v1523_v20 = vld [vmem:[%s2126_s1 + $0x50] sm:$0xff]  }
   0x6   :  { %1397 = vmatprep.subr.bf16.mxu1 %v1508_v5  ;;  %v1516_v13 = vld [vmem:[%s2126_s1 + $0xe0] sm:$0xff]   ;;  %v1520_v17 = vld [vmem:[%s2126_s1 + $0xd8] sm:$0xff]   ;;  %v1524_v21 = vld [vmem:[%s2126_s1 + $0xd0] sm:$0xff]  }
   0x7   :  { %v1517_v14 = vld [vmem:[%s2126_s1 + $0x20] sm:$0xff]   ;;  %v1521_v18 = vld [vmem:[%s2126_s1 + $0x18] sm:$0xff]   ;;  %v1525_v22 = vld [vmem:[%s2126_s1 + $0x10] sm:$0xff]  }
   0x8   :  { %1334 = vmatpush3.bf16.msra.mxu0 %v1509_v6  ;;  %v1518_v15 = vld [vmem:[%s2126_s1 + $0xa0] sm:$0xff]   ;;  %v1522_v19 = vld [vmem:[%s2126_s1 + $0x98] sm:$0xff]   ;;  %v1526_v23 = vld [vmem:[%s2126_s1 + $0x90] sm:$0xff]  }
   0x9   :  { %1398 = vmatpush3.bf16.msra.mxu1 %v1510_v7  ;;  %1335 = vmatprep.subr.bf16.mxu0 %v1511_v8  ;;  %v1527_v24 = vld [vmem:[%s2126_s1 + $0x48] sm:$0xff]   ;;  %v1531_v28 = vld [vmem:[%s2126_s1 + $0x40] sm:$0xff]   ;;  %v1541_v36 = vld [vmem:[%s2126_s1 + $0x118] sm:$0xff]  }
   0xa   :  { %1399 = vmatprep.subr.bf16.mxu1 %v1512_v9  ;;  %v1528_v25 = vld [vmem:[%s2126_s1 + $0xc8] sm:$0xff]   ;;  %v1532_v29 = vld [vmem:[%s2126_s1 + $0xc0] sm:$0xff]   ;;  %v1554_v42 = vld [vmem:[%s2126_s1 + $0x110] sm:$0xff]  }
   0xb   :  { %v1529_v26 = vld [vmem:[%s2126_s1 + $0x8] sm:$0xff]   ;;  %v1533_v30 = vld [vmem:[%s2126_s1] sm:$0xff]   ;;  %v1550_v43 = vld [vmem:[%s2127_s0 + $0x5c] ss:$20 sps:$4 sm:$0xff]  }
   0xc   :  { %1336 = vmatpush3.bf16.msra.mxu0 %v1513_v10  ;;  %v1530_v27 = vld [vmem:[%s2126_s1 + $0x88] sm:$0xff]   ;;  %v1534_v31 = vld [vmem:[%s2126_s1 + $0x80] sm:$0xff]   ;;  %v1555_v47 = vld [vmem:[%s2127_s0 + $0x7c] ss:$20 sps:$4 sm:$0xff]  }
   0xd   :  { %1400 = vmatpush3.bf16.msra.mxu1 %v1514_v11  ;;  %1337 = vmatprep.subr.bf16.mxu0 %v1515_v12  ;;  %v1535_v32 = vld [vmem:[%s2127_s0] ss:$20 sps:$4 sm:$0xff]   ;;  %v1537_v33 = vld [vmem:[%s2127_s0 + $0x4] ss:$20 sps:$4 sm:$0xff]   ;;  %v1538_v34 = vld [vmem:[%s2127_s0 + $0x8] ss:$20 sps:$4 sm:$0xff]  }
   0xe   :  { %1401 = vmatprep.subr.bf16.mxu1 %v1516_v13  ;;  %v1540_v35 = vld [vmem:[%s2127_s0 + $0xc] ss:$20 sps:$4 sm:$0xff]   ;;  %647 = vmatprep.mubr.bf16.mxu0 %v1537_v33  ;;  %v1544_v38 = vld [vmem:[%s2127_s0 + $0x34] ss:$20 sps:$4 sm:$0xff]   ;;  %v1547_v40 = vld [vmem:[%s2127_s0 + $0x30] ss:$20 sps:$4 sm:$0xff]  }
   0xf   :  { %744 = vmatprep.mubr.bf16.mxu1 %v1540_v35  ;;  %v1542_v37 = vld [vmem:[%s2127_s0 + $0x2c] ss:$20 sps:$4 sm:$0xff]   ;;  %v1546_v39 = vld [vmem:[%s2127_s0 + $0x28] ss:$20 sps:$4 sm:$0xff]   ;;  %v1552_v44 = vld [vmem:[%s2127_s0 + $0x50] ss:$20 sps:$4 sm:$0xff]  }
  0x10   :  { %1338 = vmatpush3.bf16.msra.mxu0 %v1517_v14  ;;  %v1548_v41 = vld [vmem:[%s2127_s0 + $0x54] ss:$20 sps:$4 sm:$0xff]   ;;  %v1553_v45 = vld [vmem:[%s2127_s0 + $0x58] ss:$20 sps:$4 sm:$0xff]   ;;  %v1580_v49 = vld [vmem:[%s2126_s1 + $0x100] sm:$0xff]  }
  0x11   :  { %1402 = vmatpush3.bf16.msra.mxu1 %v1518_v15  ;;  %1339 = vmatprep.subr.bf16.mxu0 %v1519_v16  ;;  %v1567_v46 = vld [vmem:[%s2126_s1 + $0x108] sm:$0xff]   ;;  %v1557_v48 = vld [vmem:[%s2127_s0 + $0x84] ss:$20 sps:$4 sm:$0xff]   ;;  %v1560_v51 = vld [vmem:[%s2127_s0 + $0x80] ss:$20 sps:$4 sm:$0xff]  }
  0x12   :  { %1403 = vmatprep.subr.bf16.mxu1 %v1520_v17  ;;  %v1559_v50 = vld [vmem:[%s2127_s0 + $0x78] ss:$20 sps:$4 sm:$0xff]   ;;  %v1565_v54 = vld [vmem:[%s2127_s0 + $0xa0] ss:$20 sps:$4 sm:$0xff]   ;;  %v1566_v55 = vld [vmem:[%s2127_s0 + $0xa8] ss:$20 sps:$4 sm:$0xff]  }
  0x13   :  { %v1561_v52 = vld [vmem:[%s2127_s0 + $0xa4] ss:$20 sps:$4 sm:$0xff]   ;;  %v1563_v53 = vld [vmem:[%s2127_s0 + $0xac] ss:$20 sps:$4 sm:$0xff]   ;;  %v1570_v57 = vld [vmem:[%s2127_s0 + $0xd4] ss:$20 sps:$4 sm:$0xff]  }
  0x14   :  { %1340 = vmatpush3.bf16.msra.mxu0 %v1521_v18  ;;  %v1568_v56 = vld [vmem:[%s2127_s0 + $0xcc] ss:$20 sps:$4 sm:$0xff]   ;;  %v1572_v58 = vld [vmem:[%s2127_s0 + $0xc8] ss:$20 sps:$4 sm:$0xff]   ;;  %v1573_v59 = vld [vmem:[%s2127_s0 + $0xd0] ss:$20 sps:$4 sm:$0xff]  }
  0x15   :  { %1404 = vmatpush3.bf16.msra.mxu1 %v1522_v19  ;;  %1341 = vmatprep.subr.bf16.mxu0 %v1523_v20  ;;  %v1574_v60 = vld [vmem:[%s2127_s0 + $0xf4] ss:$20 sps:$4 sm:$0xff]   ;;  %v1576_v61 = vld [vmem:[%s2127_s0 + $0xfc] ss:$20 sps:$4 sm:$0xff]   ;;  %v1579_v63 = vld [vmem:[%s2127_s0 + $0xf8] ss:$20 sps:$4 sm:$0xff]  }
  0x16   :  { %1405 = vmatprep.subr.bf16.mxu1 %v1524_v21  ;;  %v1578_v62 = vld [vmem:[%s2127_s0 + $0xf0] ss:$20 sps:$4 sm:$0xff]   ;;  %v1585_v2 = vld [vmem:[%s2127_s0 + $0x118] ss:$20 sps:$4 sm:$0xff]   ;;  %v1586_v3 = vld [vmem:[%s2127_s0 + $0x120] ss:$20 sps:$4 sm:$0xff]  }
  0x17   :  { %v1581_v0 = vld [vmem:[%s2127_s0 + $0x11c] ss:$20 sps:$4 sm:$0xff]   ;;  %v1583_v1 = vld [vmem:[%s2127_s0 + $0x124] ss:$20 sps:$4 sm:$0xff]   ;;  %v1591_v8 = vld [vmem:[%s2127_s0 + $0x60] ss:$20 sps:$4 sm:$0xff]  }
  0x18   :  { %1342 = vmatpush3.bf16.msra.mxu0 %v1525_v22  ;;  %v1587_v4 = vld [vmem:[%s2127_s0 + $0x10] ss:$20 sps:$4 sm:$0xff]   ;;  %v1589_v6 = vld [vmem:[%s2127_s0 + $0x38] ss:$20 sps:$4 sm:$0xff]   ;;  %v1592_v9 = vld [vmem:[%s2127_s0 + $0x100] ss:$20 sps:$4 sm:$0xff]  }
  0x19   :  { %1406 = vmatpush3.bf16.msra.mxu1 %v1526_v23  ;;  %1343 = vmatprep.subr.bf16.mxu0 %v1527_v24  ;;  %v1588_v5 = vld [vmem:[%s2127_s0 + $0xb0] ss:$20 sps:$4 sm:$0xff]   ;;  %v1590_v7 = vld [vmem:[%s2127_s0 + $0xd8] ss:$20 sps:$4 sm:$0xff]   ;;  %v1593_v10 = vld [vmem:[%s2127_s0 + $0x88] ss:$20 sps:$4 sm:$0xff]  }
  0x1a   :  { %1407 = vmatprep.subr.bf16.mxu1 %v1528_v25  ;;  %v1594_v11 = vld [vmem:[%s2127_s0 + $0x128] ss:$20 sps:$4 sm:$0xff]  }
  0x1c   :  { %1344 = vmatpush3.bf16.msra.mxu0 %v1529_v26 }
  0x1d   :  { %1408 = vmatpush3.bf16.msra.mxu1 %v1530_v27  ;;  %1345 = vmatprep.subr.bf16.mxu0 %v1531_v28 }
  0x1e   :  { %1409 = vmatprep.subr.bf16.mxu1 %v1532_v29 }
  0x20   :  { %1346 = vmatpush3.bf16.msra.mxu0 %v1533_v30 }
  0x21   :  { %1410 = vmatpush3.bf16.msra.mxu1 %v1534_v31  ;;  %1471 = vmatprep.subr.bf16.mxu0 %v1541_v36 }
  0x22   :  { %1495 = vmatprep.subr.bf16.mxu1 %v1541_v36 }
  0x23   :  { %648 = vmatmul.mubr.bf16.vlgmr.msra.gmra.mxu0 %v1535_v32 }
  0x24   :  { %745 = vmatmul.mubr.bf16.vlgmr.msra.gmra.mxu1 %v1538_v34  ;;  %1472 = vmatpush3.bf16.msra.mxu0 %v1541_v36 }
  0x25   :  { %1499 = vmatpush3.bf16.msra.mxu1 %v1541_v36  ;;  %655 = vmatprep.mubr.bf16.mxu0 %v1542_v37 }
  0x26   :  { %752 = vmatprep.mubr.bf16.mxu1 %v1544_v38  ;;  %1473 = vmatprep.subr.bf16.mxu0 %v1554_v42 }
  0x27   :  { %1496 = vmatprep.subr.bf16.mxu1 %v1554_v42 }
  0x28   :  { %1474 = vmatpush3.bf16.msra.mxu0 %v1554_v42 }
  0x29   :  { %1500 = vmatpush3.bf16.msra.mxu1 %v1554_v42  ;;  %1475 = vmatprep.subr.bf16.mxu0 %v1567_v46 }
  0x2a   :  { %1497 = vmatprep.subr.bf16.mxu1 %v1567_v46 }
  0x2b   :  { %656 = vmatmul.mubr.bf16.gmra.mxu0 %v1546_v39 }
  0x2c   :  { %753 = vmatmul.mubr.bf16.gmra.mxu1 %v1547_v40  ;;  %663 = vmatprep.mubr.bf16.mxu0 %v1548_v41 }
  0x2d   :  { %760 = vmatprep.mubr.bf16.mxu1 %v1550_v43  ;;  %1476 = vmatpush3.bf16.msra.mxu0 %v1567_v46 }
  0x2e   :  { %1501 = vmatpush3.bf16.msra.mxu1 %v1567_v46  ;;  %1477 = vmatprep.subr.bf16.mxu0 %v1580_v49 }
  0x2f   :  { %1498 = vmatprep.subr.bf16.mxu1 %v1580_v49 }
  0x31   :  { %1478 = vmatpush3.bf16.msra.mxu0 %v1580_v49 }
  0x32   :  { %1502 = vmatpush3.bf16.msra.mxu1 %v1580_v49 }
  0x33   :  { %664 = vmatmul.mubr.bf16.gmra.mxu0 %v1552_v44 }
  0x34   :  { %761 = vmatmul.mubr.bf16.gmra.mxu1 %v1553_v45  ;;  %671 = vmatprep.mubr.bf16.mxu0 %v1555_v47 }
  0x35   :  { %768 = vmatprep.mubr.bf16.mxu1 %v1557_v48 }
  0x3b   :  { %672 = vmatmul.mubr.bf16.gmra.mxu0 %v1559_v50 }
  0x3c   :  { %769 = vmatmul.mubr.bf16.gmra.mxu1 %v1560_v51  ;;  %679 = vmatprep.mubr.bf16.mxu0 %v1561_v52 }
  0x3d   :  { %776 = vmatprep.mubr.bf16.mxu1 %v1563_v53 }
  0x43   :  { %680 = vmatmul.mubr.bf16.gmra.mxu0 %v1565_v54 }
  0x44   :  { %777 = vmatmul.mubr.bf16.gmra.mxu1 %v1566_v55  ;;  %687 = vmatprep.mubr.bf16.mxu0 %v1568_v56 }
  0x45   :  { %784 = vmatprep.mubr.bf16.mxu1 %v1570_v57 }
  0x4b   :  { %688 = vmatmul.mubr.bf16.gmra.mxu0 %v1572_v58 }
  0x4c   :  { %785 = vmatmul.mubr.bf16.gmra.mxu1 %v1573_v59  ;;  %695 = vmatprep.mubr.bf16.mxu0 %v1574_v60 }
  0x4d   :  { %792 = vmatprep.mubr.bf16.mxu1 %v1576_v61 }
  0x53   :  { %696 = vmatmul.mubr.bf16.gmra.mxu0 %v1578_v62 }
  0x54   :  { %793 = vmatmul.mubr.bf16.gmra.mxu1 %v1579_v63  ;;  %703 = vmatprep.mubr.bf16.mxu0 %v1581_v0 }
  0x55   :  { %800 = vmatprep.mubr.bf16.mxu1 %v1583_v1 }
  0x5b   :  { %704 = vmatmul.mubr.bf16.gmra.mxu0 %v1585_v2 }
  0x5c   :  { %801 = vmatmul.mubr.bf16.gmra.mxu1 %v1586_v3  ;;  %1479 = vmatprep.mubr.msk.bf16.mxu0 %vm590_vm0, %v1587_v4  ;;  %v1941_v3 = vld [vmem:[%s2128_s3 + $0x8] sm:$0xff]  }
  0x5d   :  { %1487 = vmatprep.mubr.msk.bf16.mxu1 %vm590_vm0, %v1588_v5  ;;  %v1946_v4 = vld [vmem:[%s2128_s3 + $0x28] sm:$0xff]   ;;  %v1951_v5 = vld [vmem:[%s2128_s3] sm:$0xff]  }
  0x63   :  { %1480 = vmatmul.mubr.msk.bf16.vlgmr.msra.gmra.mxu0 %vm590_vm0, %v1589_v6 }
  0x64   :  { %1488 = vmatmul.mubr.msk.bf16.vlgmr.msra.gmra.mxu1 %vm590_vm0, %v1590_v7  ;;  %1483 = vmatprep.mubr.msk.bf16.mxu0 %vm590_vm0, %v1591_v8  ;;  %v1958_v7 = vld [vmem:[%s2128_s3 + $0x20] sm:$0xff]  }
  0x65   :  { %1491 = vmatprep.mubr.msk.bf16.mxu1 %vm590_vm0, %v1592_v9  ;;  %v1965_v9 = vld [vmem:[%s2128_s3 + $0x18] sm:$0xff]  }
  0x6b   :  { %1484 = vmatmul.mubr.msk.bf16.gmra.mxu0 %vm590_vm0, %v1593_v10  ;;  %v1970_v10 = vld [vmem:[%s2128_s3 + $0x38] sm:$0xff]  }
  0x6c   :  { %1492 = vmatmul.mubr.msk.bf16.gmra.mxu1 %vm590_vm0, %v1594_v11  ;;  %v1975_v11 = vld [vmem:[%s2128_s3 + $0x10] sm:$0xff]  }
  0xe3   :  { %v1347_v12 = vpop.f32.mrf.mxu0 }
  0xe4   :  { %v1411_v13 = vpop.f32.mrf.mxu1 }
  0xe5   :  { %v1348_v14 = vpop.f32.mrf.mxu0 }
  0xe6   :  { %v1349_v15 = vadd.f32 %v1348_v14, %v1347_v12  ;;  %v1412_v16 = vpop.f32.mrf.mxu1 }
  0xe7   :  { %v1413_v17 = vadd.f32 %v1412_v16, %v1411_v13  ;;  %v1856_v18 = vpop.f32.mrf.mxu0  ;;  %v1985_v16 = vld [vmem:[%s2128_s3 + $0x30] sm:$0xff]  }
  0xe8   :  { %v1858_v19 = vpop.f32.mrf.mxu1 }
  0xe9   :  { %v1860_v20 = vpop.f32.mrf.mxu0  ;;  %v1862_v21 = vadd.f32 %v1413_v17, %v1349_v15 }
  0xea   :  { %v1864_v22 = vpop.f32.mrf.mxu1 }
  0xeb   :  { %2131 = vst [vmem:[#allocation3_spill] sm:$0xff] %v1862_v21  ;;  %v1866_v23 = vpop.f32.mrf.mxu0  ;;  %v1271_v21 = vunpack.c.l.bf16 %v1985_v16 }
  0xec   :  { %v1868_v24 = vpop.f32.mrf.mxu1 }
  0xed   :  { %v1870_v25 = vpop.f32.mrf.mxu0 }
  0xee   :  { %v1872_v26 = vpop.f32.mrf.mxu1  ;;  %v1355_v14 = vadd.f32 %v1870_v25, %v1866_v23 }
  0xef   :  { %v1874_v27 = vpop.f32.mrf.mxu0  ;;  %v1419_v15 = vadd.f32 %v1872_v26, %v1868_v24 }
  0xf0   :  { %v1876_v28 = vpop.f32.mrf.mxu1 }
  0xf1   :  { %v1878_v29 = vpop.f32.mrf.mxu0 }
  0xf2   :  { %v1880_v30 = vpop.f32.mrf.mxu1 }
  0xf3   :  { %v1882_v31 = vpop.f32.mrf.mxu0 }
  0xf4   :  { %v1884_v32 = vpop.f32.mrf.mxu1 }
  0xf5   :  { %v1886_v33 = vpop.f32.mrf.mxu0 }
  0xf6   :  { %v1888_v34 = vpop.f32.mrf.mxu1 }
  0xf7   :  { %v1890_v35 = vpop.f32.mrf.mxu0 }
  0xf8   :  { %v1892_v36 = vpop.f32.mrf.mxu1 }
  0xf9   :  { %v1894_v37 = vpop.f32.mrf.mxu0 }
  0xfa   :  { %v1896_v38 = vpop.f32.mrf.mxu1 }
  0xfb   :  { %v1898_v39 = vpop.f32.mrf.mxu0  ;;  %v1428_v23 = vadd.f32 %v1896_v38, %v1892_v36 }
  0xfc   :  { %v1900_v40 = vpop.f32.mrf.mxu1 }
  0xfd   :  { %v1902_v41 = vpop.f32.mrf.mxu0 }
  0xfe   :  { %v1904_v42 = vpop.f32.mrf.mxu1  ;;  %v1367_v25 = vadd.f32 %v1902_v41, %v1898_v39  ;;  %v755_v41 = vadd.f32 %v1419_v15, %v1355_v14  ;;  %v2140_v14 = vld [vmem:[#allocation3_spill] sm:$0xff] }
  0xff   :  { %v1906_v43 = vpop.f32.mrf.mxu0  ;;  %v1431_v26 = vadd.f32 %v1904_v42, %v1900_v40 }
 0x100   :  { %v1908_v44 = vpop.f32.mrf.mxu1 }
 0x101   :  { %v1910_v45 = vpop.f32.mrf.mxu0 }
 0x102   :  { %v1912_v46 = vpop.f32.mrf.mxu1 }
 0x103   :  { %v1914_v47 = vpop.f32.mrf.mxu0 }
 0x104   :  { %v1916_v48 = vpop.f32.mrf.mxu1 }
 0x105   :  { %v1918_v49 = vpop.f32.mrf.mxu0 }
 0x106   :  { %v1920_v50 = vpop.f32.mrf.mxu1 }
 0x107   :  { %v1922_v51 = vpop.f32.mrf.mxu0 }
 0x108   :  { %v1924_v52 = vpop.f32.mrf.mxu1 }
 0x109   :  { %v1926_v53 = vpop.f32.mrf.mxu0 }
 0x10a   :  { %v1928_v54 = vpop.f32.mrf.mxu1 }
 0x10b   :  { %v1377_v55 = vpop.f32.mrf.mxu0  ;;  %v1440_v36 = vadd.f32 %v1928_v54, %v1924_v52 }
 0x10c   :  { %v1441_v56 = vpop.f32.mrf.mxu1 }
 0x10d   :  { %v1378_v57 = vpop.f32.mrf.mxu0 }
 0x10e   :  { %v1442_v58 = vpop.f32.mrf.mxu1 }
 0x10f   :  { %v1380_v59 = vpop.f32.mrf.mxu0 }
 0x110   :  { %v1444_v60 = vpop.f32.mrf.mxu1 }
 0x111   :  { %v1381_v61 = vpop.f32.mrf.mxu0 }
 0x112   :  { %v1445_v62 = vpop.f32.mrf.mxu1 }
 0x113   :  { %v1930_v63 = vpop.f32.mrf.mxu0  ;;  %v1446_v38 = vadd.f32 %v1445_v62, %v1444_v60 }
 0x114   :  { %v1932_v0 = vpop.f32.mrf.mxu1 }
 0x115   :  { %2132 = vst [vmem:[#allocation4_spill] sm:$0xff] %v1932_v0  ;;  %v1934_v1 = vpop.f32.mrf.mxu0  ;;  %v1358_v0 = vadd.f32 %v1878_v29, %v1874_v27  ;;  %v1379_v27 = vadd.f32 %v1378_v57, %v1377_v55 }
 0x116   :  { %v1936_v2 = vpop.f32.mrf.mxu1 }
 0x117   :  { %2133 = vst [vmem:[#allocation5_spill] sm:$0xff] %v1936_v2  ;;  %v1953_v6 = vpop.f32.mrf.mxu0  ;;  %v1275_v2 = vunpack.c.l.bf16 %v1970_v10 }
 0x118   :  { %2134 = vst [vmem:[#allocation6_spill] sm:$0xff] %v1953_v6  ;;  %v1960_v8 = vpop.f32.mrf.mxu1 }
 0x119   :  { %2135 = vst [vmem:[#allocation7_spill] sm:$0xff] %v1960_v8  ;;  %v1977_v12 = vpop.f32.mrf.mxu0  ;;  %v1416_v8 = vadd.f32 %v1864_v22, %v1858_v19  ;;  %v1361_v19 = vadd.f32 %v1886_v33, %v1882_v31  ;;  %v1425_v22 = vadd.f32 %v1888_v34, %v1884_v32  ;;  %v1434_v31 = vadd.f32 %v1912_v46, %v1908_v44  ;;  %v2039_v46 = vld [vmem:[%s2129_s2] ss:$0 sm:$0xff] }
 0x11a   :  { %2136 = vst [vmem:[#allocation8_spill] sm:$0xff] %v1977_v12  ;;  %v1987_v17 = vpop.f32.mrf.mxu1  ;;  %v1364_v12 = vadd.f32 %v1894_v37, %v1890_v35  ;;  %v1373_v32 = vadd.f32 %v1918_v49, %v1914_v47  ;;  %v1437_v33 = vadd.f32 %v1920_v50, %v1916_v48  ;;  %v1376_v35 = vadd.f32 %v1926_v53, %v1922_v51 }
 0x11b   :  { %2137 = vst [vmem:[#allocation9_spill] sm:$0xff] %v1987_v17  ;;  %v1389_v13 = vpop.f32.mrf.mxu0  ;;  %v1352_v17 = vadd.f32 %v1860_v20, %v1856_v18  ;;  %v1422_v18 = vadd.f32 %v1880_v30, %v1876_v28  ;;  %v1443_v28 = vadd.f32 %v1442_v58, %v1441_v56  ;;  %v1370_v30 = vadd.f32 %v1910_v45, %v1906_v43 }
 0x11c   :  { %v1453_v6 = vpop.f32.mrf.mxu1  ;;  %v1382_v37 = vadd.f32 %v1381_v61, %v1380_v59  ;;  %v1276_v44 = vunpack.c.h.bf16 %v1970_v10  ;;  %v771_v48 = vadd.f32 %v1431_v26, %v1367_v25  ;;  %v763_v49 = vadd.f32 %v1425_v22, %v1361_v19  ;;  %v2138_v52 = vld [vmem:[#allocation4_spill] sm:$0xff] }
 0x11d   :  { %v1390_v20 = vpop.f32.mrf.mxu0  ;;  %v758_v42 = vadd.f32 %v1422_v18, %v1358_v0  ;;  %v750_v43 = vadd.f32 %v1416_v8, %v1352_v17  ;;  %v787_v47 = vadd.f32 %v1443_v28, %v1379_v27  ;;  %v2041_v50 = vadd.f32 %v1428_v23, %v1364_v12 }
 0x11e   :  { %v1454_v24 = vpop.f32.mrf.mxu1  ;;  %v1385_v51 = vadd.f32 %v1934_v1, %v1930_v63  ;;  %v2139_v53 = vld [vmem:[#allocation5_spill] sm:$0xff]  ;;  %v2047_v57 = vadd.f32 %v1434_v31, %v1370_v30  ;;  %v779_v60 = vadd.f32 %v1437_v33, %v1373_v32  ;;  %v790_v61 = vadd.f32 %v1446_v38, %v1382_v37 }
 0x11f   :  { %v1392_v29 = vpop.f32.mrf.mxu0  ;;  %v1449_v54 = vadd.f32 %v2139_v53, %v2138_v52  ;;  %v782_v62 = vadd.f32 %v1440_v36, %v1376_v35  ;;  %v1391_v0 = vadd.f32 %v1390_v20, %v1389_v13  ;;  %v1455_v8 = vadd.f32 %v1454_v24, %v1453_v6  ;;  %v2141_v23 = vld [vmem:[#allocation6_spill] sm:$0xff] }
 0x120   :  { %v1456_v34 = vpop.f32.mrf.mxu1  ;;  %v2143_v6 = vld [vmem:[#allocation7_spill] sm:$0xff]  ;;  %v2145_v31 = vunpack.c.l.bf16 %v1941_v3  ;;  %v2146_v35 = vunpack.c.l.bf16 %v1946_v4  ;;  %v2148_v53 = vunpack.c.l.bf16 %v1958_v7 }
 0x121   :  { %v1393_v39 = vpop.f32.mrf.mxu0  ;;  %v2142_v25 = vld [vmem:[#allocation8_spill] sm:$0xff]  ;;  %v795_v13 = vadd.f32 %v1449_v54, %v1385_v51 }
 0x122   :  { %v1457_v40 = vpop.f32.mrf.mxu1  ;;  %v1394_v63 = vadd.f32 %v1393_v39, %v1392_v29  ;;  %v1388_v26 = vadd.f32 %v2142_v25, %v2141_v23  ;;  %v2144_v20 = vld [vmem:[#allocation9_spill] sm:$0xff] }
 0x123   :  { %v1481_v45 = vpop.f32.mrf.mxu0  ;;  %v1458_v1 = vadd.f32 %v1457_v40, %v1456_v34  ;;  %v1452_v24 = vadd.f32 %v2144_v20, %v2143_v6  ;;  %v803_v40 = vadd.f32 %v1455_v8, %v1391_v0 }
 0x124   :  { %v852_v55 = vadd.f32 %v1481_v45, %v755_v41  ;;  %v1489_v56 = vpop.f32.mrf.mxu1  ;;  %v2147_v41 = vunpack.c.l.bf16 %v1951_v5 }
 0x125   :  { %v884_v58 = vadd.f32 %v1489_v56, %v787_v47  ;;  %v843_v59 = vpop.f32.mrf.mxu0  ;;  %v806_v52 = vadd.f32 %v1458_v1, %v1394_v63 }
 0x126   :  { %v966_v12 = vadd.f32 %v2039_v46, %v852_v55  ;;  %v844_v15 = vadd.f32 %v843_v59, %v2140_v14  ;;  %v875_v17 = vpop.f32.mrf.mxu1  ;;  %v2149_v55 = vunpack.c.h.bf16 %v1941_v3 }
 0x127   :  { %v974_v18 = vadd.f32 %v2039_v46, %v884_v58  ;;  %v876_v19 = vadd.f32 %v875_v17, %v779_v60  ;;  %v1482_v22 = vpop.f32.mrf.mxu0  ;;  %v2151_v17 = vunpack.c.h.bf16 %v1951_v5 }
 0x128   :  { %v964_v27 = vadd.f32 %v2039_v46, %v844_v15  ;;  %v855_v28 = vadd.f32 %v1482_v22, %v758_v42  ;;  %v1490_v30 = vpop.f32.mrf.mxu1  ;;  %v1014_v32 = vadd.f32 %v2145_v31, %v966_v12 }
 0x129   :  { %v972_v29 = vadd.f32 %v2039_v46, %v876_v19  ;;  %v887_v33 = vadd.f32 %v1490_v30, %v790_v61  ;;  %v846_v34 = vpop.f32.mrf.mxu0  ;;  %v1022_v36 = vadd.f32 %v2146_v35, %v974_v18  ;;  %v2150_v61 = vunpack.c.h.bf16 %v1946_v4 }
 0x12a   :  { %v967_v37 = vadd.f32 %v2039_v46, %v855_v28  ;;  %v847_v38 = vadd.f32 %v846_v34, %v750_v43  ;;  %v878_v39 = vpop.f32.mrf.mxu1  ;;  %v1012_v42 = vadd.f32 %v2147_v41, %v964_v27  ;;  %v1030_v60 = vmax.f32 %v1014_v32, 0.0 }
 0x12b   :  { %v975_v45 = vadd.f32 %v2039_v46, %v887_v33  ;;  %v879_v47 = vadd.f32 %v878_v39, %v782_v62  ;;  %v1485_v51 = vpop.f32.mrf.mxu0  ;;  %v1020_v54 = vadd.f32 %v2148_v53, %v972_v29  ;;  %v1038_v14 = vmax.f32 %v1022_v36, 0.0 }
 0x12c   :  { %v1015_v56 = vadd.f32 %v2149_v55, %v967_v37  ;;  %v965_v58 = vadd.f32 %v2039_v46, %v847_v38  ;;  %v868_v59 = vadd.f32 %v1485_v51, %v771_v48  ;;  %v1493_v43 = vpop.f32.mrf.mxu1  ;;  %v1028_v18 = vmax.f32 %v1012_v42, 0.0 }
 0x12d   :  { %v1023_v0 = vadd.f32 %v2150_v61, %v975_v45  ;;  %v973_v8 = vadd.f32 %v2039_v46, %v879_v47  ;;  %v900_v12 = vadd.f32 %v1493_v43, %v803_v40  ;;  %v859_v62 = vpop.f32.mrf.mxu0  ;;  %v2152_v48 = vunpack.c.h.bf16 %v1958_v7 }
 0x12e   :  { %v1031_v15 = vmax.f32 %v1015_v56, 0.0  ;;  %v1013_v63 = vadd.f32 %v2151_v17, %v965_v58  ;;  %v860_v1 = vadd.f32 %v859_v62, %v763_v49  ;;  %v891_v3 = vpop.f32.mrf.mxu1  ;;  %v1036_v4 = vmax.f32 %v1020_v54, 0.0 }
 0x12f   :  { %v1039_v19 = vmax.f32 %v1023_v0, 0.0  ;;  %v1021_v22 = vadd.f32 %v2152_v48, %v973_v8  ;;  %v892_v23 = vadd.f32 %v891_v3, %v795_v13  ;;  %v1486_v25 = vpop.f32.mrf.mxu0  ;;  %v970_v30 = vadd.f32 %v2039_v46, %v868_v59 }
 0x130   :  { %v1285_v27 = vpack.c.bf16 %v1031_v15, %v1030_v60  ;;  %v1029_v28 = vmax.f32 %v1013_v63, 0.0  ;;  %v1494_v6 = vpop.f32.mrf.mxu1  ;;  %v978_v5 = vadd.f32 %v2039_v46, %v900_v12  ;;  %v968_v49 = vadd.f32 %v2039_v46, %v860_v1 }
 0x131   :  { %v1305_v20 = vpack.c.bf16 %v1039_v19, %v1038_v14  ;;  %v1037_v31 = vmax.f32 %v1021_v22, 0.0  ;;  %v862_v32 = vpop.f32.mrf.mxu0  ;;  %v976_v13 = vadd.f32 %v2039_v46, %v892_v23  ;;  %v871_v29 = vadd.f32 %v1486_v25, %v2047_v57 }
 0x132   :  { %1324 = vst [vmem:[%s2130_s4 + $0x8] sm:$0xff] %v1285_v27   ;;  %v1280_v7 = vpack.c.bf16 %v1029_v28, %v1028_v18  ;;  %v798_v33 = vadd.f32 %v1452_v24, %v1388_v26  ;;  %v894_v34 = vpop.f32.mrf.mxu1  ;;  %v903_v36 = vadd.f32 %v1494_v6, %v806_v52  ;;  %v1256_v37 = vunpack.c.h.bf16 %v1975_v11 }
 0x133   :  { %1328 = vst [vmem:[%s2130_s4 + $0x28] sm:$0xff] %v1305_v20   ;;  %v1300_v35 = vpack.c.bf16 %v1037_v31, %v1036_v4  ;;  %v1272_v38 = vunpack.c.h.bf16 %v1985_v16  ;;  %v2153_v39 = vunpack.c.l.bf16 %v1965_v9  ;;  %v971_v57 = vadd.f32 %v2039_v46, %v871_v29 }
 0x134   :  { %1281 = vst [vmem:[%s2130_s4] sm:$0xff] %v1280_v7   ;;  %v863_v26 = vadd.f32 %v862_v32, %v2041_v50  ;;  %v895_v24 = vadd.f32 %v894_v34, %v798_v33  ;;  %v1026_v41 = vadd.f32 %v1275_v2, %v978_v5  ;;  %v2154_v42 = vunpack.c.l.bf16 %v1975_v11 }
 0x135   :  { %v1018_v40 = vadd.f32 %v2153_v39, %v970_v30  ;;  %1327 = vst [vmem:[%s2130_s4 + $0x20] sm:$0xff] %v1300_v35   ;;  %v979_v47 = vadd.f32 %v2039_v46, %v903_v36  ;;  %v1024_v51 = vadd.f32 %v1271_v21, %v976_v13  ;;  %v2155_v52 = vunpack.c.h.bf16 %v1965_v9 }
 0x136   :  { %v1016_v45 = vadd.f32 %v2154_v42, %v968_v49  ;;  %v969_v50 = vadd.f32 %v2039_v46, %v863_v26  ;;  %v977_v54 = vadd.f32 %v2039_v46, %v895_v24  ;;  %v1042_v59 = vmax.f32 %v1026_v41, 0.0 }
 0x137   :  { %v1019_v53 = vadd.f32 %v2155_v52, %v971_v57  ;;  %v1027_v55 = vadd.f32 %v1276_v44, %v979_v47  ;;  %v1034_v56 = vmax.f32 %v1018_v40, 0.0  ;;  %v1040_v61 = vmax.f32 %v1024_v51, 0.0 }
 0x138   :  { %v1017_v58 = vadd.f32 %v1256_v37, %v969_v50  ;;  %v1025_v11 = vadd.f32 %v1272_v38, %v977_v54  ;;  %v1032_v43 = vmax.f32 %v1016_v45, 0.0 }
 0x139   :  { %v1035_v2 = vmax.f32 %v1019_v53, 0.0  ;;  %v1043_v60 = vmax.f32 %v1027_v55, 0.0 }
 0x13a   :  { %v1033_v21 = vmax.f32 %v1017_v58, 0.0  ;;  %v1041_v0 = vmax.f32 %v1025_v11, 0.0 }
 0x13b   :  { %v1295_v16 = vpack.c.bf16 %v1035_v2, %v1034_v56  ;;  %v1315_v9 = vpack.c.bf16 %v1043_v60, %v1042_v59 }
 0x13c   :  { %v1290_v46 = vpack.c.bf16 %v1033_v21, %v1032_v43  ;;  %v1310_v8 = vpack.c.bf16 %v1041_v0, %v1040_v61 }
 0x13d   :  { %1326 = vst [vmem:[%s2130_s4 + $0x18] sm:$0xff] %v1295_v16   ;;  %1330 = vst [vmem:[%s2130_s4 + $0x38] sm:$0xff] %v1315_v9  }
 0x13e   :  { %1325 = vst [vmem:[%s2130_s4 + $0x10] sm:$0xff] %v1290_v46   ;;  %1329 = vst [vmem:[%s2130_s4 + $0x30] sm:$0xff] %v1310_v8  }

// kernel: starting_network_forward.29
= control target key start
LH: loop header
LB: loop body
LE: loop exit
PB: predicated region body
PF: predicated region fallthrough
CT: control target
= control target key end

     0   :  { %vm377_vm0 = vcmask 523264   ;;  %s944_s1 = inlined_call_operand.vmem [shape: bf16[576,128], index: 1, kind: input, shape index: {}]   ;;  %s945_s0 = inlined_call_operand.vmem [shape: bf16[32,576], index: 0, kind: input, shape index: {}]   ;;  %s946_s2 = inlined_call_operand.vmem [shape: f32[1,128], index: 2, kind: input, shape index: {}]   ;;  %s947_s3 = inlined_call_operand.vmem [shape: bf16[32,128], index: 3, kind: output, shape index: {}]  }
   0x1   :  { %v727_v0 = vld [vmem:[%s944_s1 + $0x78] sm:$0xff]   ;;  %v731_v4 = vld [vmem:[%s944_s1 + $0x70] sm:$0xff]   ;;  %v735_v8 = vld [vmem:[%s944_s1 + $0x68] sm:$0xff]  }
   0x2   :  { %v728_v1 = vld [vmem:[%s944_s1 + $0xf8] sm:$0xff]   ;;  %653 = vmatprep.subr.bf16.mxu0 %v727_v0  ;;  %v732_v5 = vld [vmem:[%s944_s1 + $0xf0] sm:$0xff]   ;;  %v736_v9 = vld [vmem:[%s944_s1 + $0xe8] sm:$0xff]  }
   0x3   :  { %v729_v2 = vld [vmem:[%s944_s1 + $0x38] sm:$0xff]   ;;  %681 = vmatprep.subr.bf16.mxu1 %v728_v1  ;;  %v733_v6 = vld [vmem:[%s944_s1 + $0x30] sm:$0xff]   ;;  %v737_v10 = vld [vmem:[%s944_s1 + $0x28] sm:$0xff]  }
   0x4   :  { %v730_v3 = vld [vmem:[%s944_s1 + $0xb8] sm:$0xff]   ;;  %654 = vmatpush3.bf16.msra.mxu0 %v729_v2  ;;  %v734_v7 = vld [vmem:[%s944_s1 + $0xb0] sm:$0xff]   ;;  %v738_v11 = vld [vmem:[%s944_s1 + $0xa8] sm:$0xff]  }
   0x5   :  { %682 = vmatpush3.bf16.msra.mxu1 %v730_v3  ;;  %655 = vmatprep.subr.bf16.mxu0 %v731_v4  ;;  %v739_v12 = vld [vmem:[%s944_s1 + $0x60] sm:$0xff]   ;;  %v743_v16 = vld [vmem:[%s944_s1 + $0x58] sm:$0xff]   ;;  %v747_v20 = vld [vmem:[%s944_s1 + $0x50] sm:$0xff]  }
   0x6   :  { %683 = vmatprep.subr.bf16.mxu1 %v732_v5  ;;  %v740_v13 = vld [vmem:[%s944_s1 + $0xe0] sm:$0xff]   ;;  %v744_v17 = vld [vmem:[%s944_s1 + $0xd8] sm:$0xff]   ;;  %v748_v21 = vld [vmem:[%s944_s1 + $0xd0] sm:$0xff]  }
   0x7   :  { %v741_v14 = vld [vmem:[%s944_s1 + $0x20] sm:$0xff]   ;;  %v745_v18 = vld [vmem:[%s944_s1 + $0x18] sm:$0xff]   ;;  %v749_v22 = vld [vmem:[%s944_s1 + $0x10] sm:$0xff]  }
   0x8   :  { %656 = vmatpush3.bf16.msra.mxu0 %v733_v6  ;;  %v742_v15 = vld [vmem:[%s944_s1 + $0xa0] sm:$0xff]   ;;  %v746_v19 = vld [vmem:[%s944_s1 + $0x98] sm:$0xff]   ;;  %v750_v23 = vld [vmem:[%s944_s1 + $0x90] sm:$0xff]  }
   0x9   :  { %684 = vmatpush3.bf16.msra.mxu1 %v734_v7  ;;  %657 = vmatprep.subr.bf16.mxu0 %v735_v8  ;;  %v751_v24 = vld [vmem:[%s944_s1 + $0x48] sm:$0xff]   ;;  %v755_v28 = vld [vmem:[%s944_s1 + $0x40] sm:$0xff]   ;;  %v765_v36 = vld [vmem:[%s944_s1 + $0x118] sm:$0xff]  }
   0xa   :  { %685 = vmatprep.subr.bf16.mxu1 %v736_v9  ;;  %v752_v25 = vld [vmem:[%s944_s1 + $0xc8] sm:$0xff]   ;;  %v756_v29 = vld [vmem:[%s944_s1 + $0xc0] sm:$0xff]   ;;  %v766_v37 = vld [vmem:[%s944_s1 + $0x110] sm:$0xff]  }
   0xb   :  { %v753_v26 = vld [vmem:[%s944_s1 + $0x8] sm:$0xff]   ;;  %v757_v30 = vld [vmem:[%s944_s1] sm:$0xff]  }
   0xc   :  { %658 = vmatpush3.bf16.msra.mxu0 %v737_v10  ;;  %v754_v27 = vld [vmem:[%s944_s1 + $0x88] sm:$0xff]   ;;  %v758_v31 = vld [vmem:[%s944_s1 + $0x80] sm:$0xff]  }
   0xd   :  { %686 = vmatpush3.bf16.msra.mxu1 %v738_v11  ;;  %659 = vmatprep.subr.bf16.mxu0 %v739_v12  ;;  %v759_v32 = vld [vmem:[%s945_s0] ss:$20 sps:$4 sm:$0xff]   ;;  %v761_v33 = vld [vmem:[%s945_s0 + $0x4] ss:$20 sps:$4 sm:$0xff]   ;;  %v762_v34 = vld [vmem:[%s945_s0 + $0x8] ss:$20 sps:$4 sm:$0xff]  }
   0xe   :  { %687 = vmatprep.subr.bf16.mxu1 %v740_v13  ;;  %v764_v35 = vld [vmem:[%s945_s0 + $0xc] ss:$20 sps:$4 sm:$0xff]   ;;  %416 = vmatprep.mubr.bf16.mxu0 %v761_v33  ;;  %v769_v39 = vld [vmem:[%s945_s0 + $0x34] ss:$20 sps:$4 sm:$0xff]   ;;  %v772_v42 = vld [vmem:[%s945_s0 + $0x30] ss:$20 sps:$4 sm:$0xff]  }
   0xf   :  { %465 = vmatprep.mubr.bf16.mxu1 %v764_v35  ;;  %v767_v38 = vld [vmem:[%s945_s0 + $0x2c] ss:$20 sps:$4 sm:$0xff]   ;;  %v771_v40 = vld [vmem:[%s945_s0 + $0x28] ss:$20 sps:$4 sm:$0xff]   ;;  %v775_v43 = vld [vmem:[%s945_s0 + $0x10] ss:$20 sps:$4 sm:$0xff]  }
  0x10   :  { %660 = vmatpush3.bf16.msra.mxu0 %v741_v14  ;;  %v773_v41 = vld [vmem:[%s944_s1 + $0x108] sm:$0xff]   ;;  %v774_v44 = vld [vmem:[%s944_s1 + $0x100] sm:$0xff]  }
  0x11   :  { %688 = vmatpush3.bf16.msra.mxu1 %v742_v15  ;;  %661 = vmatprep.subr.bf16.mxu0 %v743_v16  ;;  %v776_v45 = vld [vmem:[%s945_s0 + $0x38] ss:$20 sps:$4 sm:$0xff]   ;;  %v633_v10 = vld [vmem:[%s946_s2] ss:$0 sm:$0xff] }
  0x12   :  { %689 = vmatprep.subr.bf16.mxu1 %v744_v17 }
  0x14   :  { %662 = vmatpush3.bf16.msra.mxu0 %v745_v18 }
  0x15   :  { %690 = vmatpush3.bf16.msra.mxu1 %v746_v19  ;;  %663 = vmatprep.subr.bf16.mxu0 %v747_v20 }
  0x16   :  { %691 = vmatprep.subr.bf16.mxu1 %v748_v21 }
  0x18   :  { %664 = vmatpush3.bf16.msra.mxu0 %v749_v22 }
  0x19   :  { %692 = vmatpush3.bf16.msra.mxu1 %v750_v23  ;;  %665 = vmatprep.subr.bf16.mxu0 %v751_v24 }
  0x1a   :  { %693 = vmatprep.subr.bf16.mxu1 %v752_v25 }
  0x1c   :  { %666 = vmatpush3.bf16.msra.mxu0 %v753_v26 }
  0x1d   :  { %694 = vmatpush3.bf16.msra.mxu1 %v754_v27  ;;  %667 = vmatprep.subr.bf16.mxu0 %v755_v28 }
  0x1e   :  { %695 = vmatprep.subr.bf16.mxu1 %v756_v29 }
  0x20   :  { %668 = vmatpush3.bf16.msra.mxu0 %v757_v30 }
  0x21   :  { %696 = vmatpush3.bf16.msra.mxu1 %v758_v31  ;;  %715 = vmatprep.subr.bf16.mxu0 %v765_v36 }
  0x23   :  { %417 = vmatmul.mubr.bf16.vlgmr.msra.gmra.mxu0 %v759_v32 }
  0x24   :  { %466 = vmatmul.mubr.bf16.vlgmr.msra.gmra.mxu1 %v762_v34  ;;  %716 = vmatpush3.bf16.msra.mxu0 %v765_v36 }
  0x25   :  { %717 = vmatprep.subr.bf16.mxu0 %v766_v37  ;;  %424 = vmatprep.mubr.bf16.mxu0 %v767_v38 }
  0x26   :  { %473 = vmatprep.mubr.bf16.mxu1 %v769_v39 }
  0x28   :  { %718 = vmatpush3.bf16.msra.mxu0 %v766_v37 }
  0x29   :  { %719 = vmatprep.subr.bf16.mxu0 %v773_v41 }
  0x2b   :  { %425 = vmatmul.mubr.bf16.gmra.mxu0 %v771_v40 }
  0x2c   :  { %474 = vmatmul.mubr.bf16.gmra.mxu1 %v772_v42  ;;  %723 = vmatprep.mubr.msk.bf16.mxu0 %vm377_vm0, %v775_v43 }
  0x2d   :  { %720 = vmatpush3.bf16.msra.mxu0 %v773_v41 }
  0x2e   :  { %721 = vmatprep.subr.bf16.mxu0 %v774_v44 }
  0x31   :  { %722 = vmatpush3.bf16.msra.mxu0 %v774_v44 }
  0x34   :  { %724 = vmatmul.mubr.msk.bf16.vlgmr.msra.gmra.mxu0 %vm377_vm0, %v776_v45 }
  0xe3   :  { %v669_v46 = vpop.f32.mrf.mxu0 }
  0xe4   :  { %v697_v47 = vpop.f32.mrf.mxu1 }
  0xe5   :  { %v670_v48 = vpop.f32.mrf.mxu0 }
  0xe6   :  { %v698_v49 = vpop.f32.mrf.mxu1  ;;  %v671_v62 = vadd.f32 %v670_v48, %v669_v46 }
  0xe7   :  { %v672_v50 = vpop.f32.mrf.mxu0  ;;  %v699_v63 = vadd.f32 %v698_v49, %v697_v47 }
  0xe8   :  { %v700_v51 = vpop.f32.mrf.mxu1 }
  0xe9   :  { %v673_v52 = vpop.f32.mrf.mxu0  ;;  %v468_v9 = vadd.f32 %v699_v63, %v671_v62 }
  0xea   :  { %v701_v53 = vpop.f32.mrf.mxu1  ;;  %v674_v6 = vadd.f32 %v673_v52, %v672_v50 }
  0xeb   :  { %v675_v54 = vpop.f32.mrf.mxu0  ;;  %v702_v7 = vadd.f32 %v701_v53, %v700_v51 }
  0xec   :  { %v703_v55 = vpop.f32.mrf.mxu1 }
  0xed   :  { %v676_v56 = vpop.f32.mrf.mxu0  ;;  %v471_v17 = vadd.f32 %v702_v7, %v674_v6 }
  0xee   :  { %v704_v57 = vpop.f32.mrf.mxu1  ;;  %v677_v58 = vadd.f32 %v676_v56, %v675_v54 }
  0xef   :  { %v705_v59 = vadd.f32 %v704_v57, %v703_v55  ;;  %v678_v60 = vpop.f32.mrf.mxu0 }
  0xf0   :  { %v706_v61 = vpop.f32.mrf.mxu1 }
  0xf1   :  { %v679_v0 = vpop.f32.mrf.mxu0  ;;  %v476_v4 = vadd.f32 %v705_v59, %v677_v58 }
  0xf2   :  { %v707_v1 = vpop.f32.mrf.mxu1  ;;  %v680_v2 = vadd.f32 %v679_v0, %v678_v60 }
  0xf3   :  { %v708_v3 = vadd.f32 %v707_v1, %v706_v61 }
  0xf4   :  { %v725_v5 = vpop.f32.mrf.mxu0 }
  0xf5   :  { %v525_v8 = vadd.f32 %v725_v5, %v476_v4  ;;  %v479_v13 = vadd.f32 %v708_v3, %v680_v2 }
  0xf6   :  { %v516_v11 = vpop.f32.mrf.mxu0 }
  0xf7   :  { %v517_v12 = vadd.f32 %v516_v11, %v468_v9  ;;  %v555_v15 = vadd.f32 %v633_v10, %v525_v8 }
  0xf8   :  { %v726_v14 = vpop.f32.mrf.mxu0 }
  0xf9   :  { %v528_v16 = vadd.f32 %v726_v14, %v479_v13  ;;  %v553_v19 = vadd.f32 %v633_v10, %v517_v12  ;;  %v559_v22 = vmax.f32 %v555_v15, 0.0 }
  0xfa   :  { %v519_v18 = vpop.f32.mrf.mxu0 }
  0xfb   :  { %v556_v20 = vadd.f32 %v633_v10, %v528_v16  ;;  %v520_v21 = vadd.f32 %v519_v18, %v471_v17  ;;  %v557_v25 = vmax.f32 %v553_v19, 0.0 }
  0xfd   :  { %v560_v23 = vmax.f32 %v556_v20, 0.0  ;;  %v554_v24 = vadd.f32 %v633_v10, %v520_v21 }
  0xff   :  { %v650_v26 = vpack.c.bf16 %v560_v23, %v559_v22  ;;  %v558_v27 = vmax.f32 %v554_v24, 0.0 }
 0x101   :  { %652 = vst [vmem:[%s947_s3 + $0x8] sm:$0xff] %v650_v26   ;;  %v645_v28 = vpack.c.bf16 %v558_v27, %v557_v25 }
 0x103   :  { %646 = vst [vmem:[%s947_s3] sm:$0xff] %v645_v28  }

// kernel: starting_network_forward.30
= control target key start
LH: loop header
LB: loop body
LE: loop exit
PB: predicated region body
PF: predicated region fallthrough
CT: control target
= control target key end

     0   :  { %vm73_vm0 = vcmask 523264   ;;  %s278_s1 = inlined_call_operand.vmem [shape: bf16[64,128], index: 1, kind: input, shape index: {}]   ;;  %s279_s0 = inlined_call_operand.vmem [shape: bf16[32,64], index: 0, kind: input, shape index: {}]   ;;  %s280_s2 = inlined_call_operand.vmem [shape: f32[1,128], index: 2, kind: input, shape index: {}]   ;;  %s281_s3 = inlined_call_operand.vmem [shape: bf16[32,128], index: 3, kind: output, shape index: {}]  }
   0x1   :  { %v225_v0 = vld [vmem:[%s278_s1 + $0x18] sm:$0xff]   ;;  %v226_v1 = vld [vmem:[%s278_s1 + $0x10] sm:$0xff]   ;;  %v227_v2 = vld [vmem:[%s278_s1 + $0x8] sm:$0xff]  }
   0x2   :  { %213 = vmatprep.subr.bf16.mxu0 %v225_v0  ;;  %v229_v3 = vld [vmem:[%s279_s0] sm:$0xff]   ;;  %v230_v5 = vld [vmem:[%s279_s0 + $0x8] sm:$0xff]  }
   0x3   :  { %214 = vmatpush3.bf16.msra.mxu0 %v225_v0  ;;  %221 = vmatprep.mubr.msk.bf16.mxu0 %vm73_vm0, %v229_v3  ;;  %v228_v4 = vld [vmem:[%s278_s1] sm:$0xff]  }
   0x4   :  { %215 = vmatprep.subr.bf16.mxu0 %v226_v1  ;;  %v187_v7 = vld [vmem:[%s280_s2] ss:$0 sm:$0xff] }
   0x7   :  { %216 = vmatpush3.bf16.msra.mxu0 %v226_v1 }
   0x8   :  { %217 = vmatprep.subr.bf16.mxu0 %v227_v2 }
   0xb   :  { %218 = vmatpush3.bf16.msra.mxu0 %v227_v2 }
   0xc   :  { %219 = vmatprep.subr.bf16.mxu0 %v228_v4 }
   0xf   :  { %220 = vmatpush3.bf16.msra.mxu0 %v228_v4 }
  0x12   :  { %222 = vmatmul.mubr.msk.bf16.vlgmr.msra.gmra.mxu0 %vm73_vm0, %v230_v5 }
  0xd2   :  { %v223_v6 = vpop.f32.mrf.mxu0 }
  0xd3   :  { %v153_v10 = vadd.f32 %v223_v6, %v187_v7 }
  0xd4   :  { %v114_v8 = vpop.f32.mrf.mxu0 }
  0xd5   :  { %v151_v13 = vadd.f32 %v187_v7, %v114_v8 }
  0xd6   :  { %v224_v9 = vpop.f32.mrf.mxu0 }
  0xd7   :  { %v154_v11 = vadd.f32 %v224_v9, %v187_v7 }
  0xd8   :  { %v117_v12 = vpop.f32.mrf.mxu0 }
  0xd9   :  { %v204_v14 = vpack.c.bf16 %v154_v11, %v153_v10  ;;  %v152_v15 = vadd.f32 %v187_v7, %v117_v12 }
  0xdb   :  { %206 = vst [vmem:[%s281_s3 + $0x8] sm:$0xff] %v204_v14   ;;  %v199_v16 = vpack.c.bf16 %v152_v15, %v151_v13 }
  0xdd   :  { %200 = vst [vmem:[%s281_s3] sm:$0xff] %v199_v16  }

// kernel: starting_network_forward.31
= control target key start
LH: loop header
LB: loop body
LE: loop exit
PB: predicated region body
PF: predicated region fallthrough
CT: control target
= control target key end

     0   :  { %s1698_s1 = inlined_call_operand.vmem [shape: bf16[1152,128], index: 1, kind: input, shape index: {}]   ;;  %s1699_s0 = inlined_call_operand.vmem [shape: bf16[32,1152], index: 0, kind: input, shape index: {}]   ;;  %s1700_s2 = inlined_call_operand.vmem [shape: f32[1,128], index: 2, kind: input, shape index: {}]   ;;  %s1701_s3 = inlined_call_operand.vmem [shape: bf16[32,128], index: 3, kind: input, shape index: {}]   ;;  %s1702_s4 = inlined_call_operand.vmem [shape: bf16[32,128], index: 4, kind: output, shape index: {}]  }
   0x1   :  { %v1290_v0 = vld [vmem:[%s1698_s1 + $0x78] sm:$0xff]   ;;  %v1294_v4 = vld [vmem:[%s1698_s1 + $0x70] sm:$0xff]   ;;  %v1298_v8 = vld [vmem:[%s1698_s1 + $0x68] sm:$0xff]  }
   0x2   :  { %v1291_v1 = vld [vmem:[%s1698_s1 + $0xf8] sm:$0xff]   ;;  %1148 = vmatprep.subr.bf16.mxu0 %v1290_v0  ;;  %v1295_v5 = vld [vmem:[%s1698_s1 + $0xf0] sm:$0xff]   ;;  %v1299_v9 = vld [vmem:[%s1698_s1 + $0xe8] sm:$0xff]  }
   0x3   :  { %v1292_v2 = vld [vmem:[%s1698_s1 + $0x38] sm:$0xff]   ;;  %1176 = vmatprep.subr.bf16.mxu1 %v1291_v1  ;;  %v1296_v6 = vld [vmem:[%s1698_s1 + $0x30] sm:$0xff]   ;;  %v1300_v10 = vld [vmem:[%s1698_s1 + $0x28] sm:$0xff]  }
   0x4   :  { %v1293_v3 = vld [vmem:[%s1698_s1 + $0xb8] sm:$0xff]   ;;  %1149 = vmatpush3.bf16.msra.mxu0 %v1292_v2  ;;  %v1297_v7 = vld [vmem:[%s1698_s1 + $0xb0] sm:$0xff]   ;;  %v1301_v11 = vld [vmem:[%s1698_s1 + $0xa8] sm:$0xff]  }
   0x5   :  { %1177 = vmatpush3.bf16.msra.mxu1 %v1293_v3  ;;  %1150 = vmatprep.subr.bf16.mxu0 %v1294_v4  ;;  %v1302_v12 = vld [vmem:[%s1698_s1 + $0x60] sm:$0xff]   ;;  %v1306_v16 = vld [vmem:[%s1698_s1 + $0x58] sm:$0xff]   ;;  %v1310_v20 = vld [vmem:[%s1698_s1 + $0x50] sm:$0xff]  }
   0x6   :  { %1178 = vmatprep.subr.bf16.mxu1 %v1295_v5  ;;  %v1303_v13 = vld [vmem:[%s1698_s1 + $0xe0] sm:$0xff]   ;;  %v1307_v17 = vld [vmem:[%s1698_s1 + $0xd8] sm:$0xff]   ;;  %v1311_v21 = vld [vmem:[%s1698_s1 + $0xd0] sm:$0xff]  }
   0x7   :  { %v1304_v14 = vld [vmem:[%s1698_s1 + $0x20] sm:$0xff]   ;;  %v1308_v18 = vld [vmem:[%s1698_s1 + $0x18] sm:$0xff]   ;;  %v1312_v22 = vld [vmem:[%s1698_s1 + $0x10] sm:$0xff]  }
   0x8   :  { %1151 = vmatpush3.bf16.msra.mxu0 %v1296_v6  ;;  %v1305_v15 = vld [vmem:[%s1698_s1 + $0xa0] sm:$0xff]   ;;  %v1309_v19 = vld [vmem:[%s1698_s1 + $0x98] sm:$0xff]   ;;  %v1313_v23 = vld [vmem:[%s1698_s1 + $0x90] sm:$0xff]  }
   0x9   :  { %1179 = vmatpush3.bf16.msra.mxu1 %v1297_v7  ;;  %1152 = vmatprep.subr.bf16.mxu0 %v1298_v8  ;;  %v1314_v24 = vld [vmem:[%s1698_s1 + $0x48] sm:$0xff]   ;;  %v1318_v28 = vld [vmem:[%s1698_s1 + $0x40] sm:$0xff]   ;;  %v1328_v36 = vld [vmem:[%s1698_s1 + $0x178] sm:$0xff]  }
   0xa   :  { %1180 = vmatprep.subr.bf16.mxu1 %v1299_v9  ;;  %v1315_v25 = vld [vmem:[%s1698_s1 + $0xc8] sm:$0xff]   ;;  %v1319_v29 = vld [vmem:[%s1698_s1 + $0xc0] sm:$0xff]   ;;  %v1329_v37 = vld [vmem:[%s1698_s1 + $0x138] sm:$0xff]  }
   0xb   :  { %v1316_v26 = vld [vmem:[%s1698_s1 + $0x8] sm:$0xff]   ;;  %v1320_v30 = vld [vmem:[%s1698_s1] sm:$0xff]   ;;  %v1330_v38 = vld [vmem:[%s1698_s1 + $0x1f8] sm:$0xff]  }
   0xc   :  { %1153 = vmatpush3.bf16.msra.mxu0 %v1300_v10  ;;  %v1317_v27 = vld [vmem:[%s1698_s1 + $0x88] sm:$0xff]   ;;  %v1321_v31 = vld [vmem:[%s1698_s1 + $0x80] sm:$0xff]   ;;  %v1331_v39 = vld [vmem:[%s1698_s1 + $0x1b8] sm:$0xff]  }
   0xd   :  { %1181 = vmatpush3.bf16.msra.mxu1 %v1301_v11  ;;  %1154 = vmatprep.subr.bf16.mxu0 %v1302_v12  ;;  %v1322_v32 = vld [vmem:[%s1699_s0] ss:$36 sps:$4 sm:$0xff]   ;;  %v1325_v34 = vld [vmem:[%s1699_s0 + $0x8] ss:$36 sps:$4 sm:$0xff]   ;;  %v1332_v40 = vld [vmem:[%s1698_s1 + $0x170] sm:$0xff]  }
   0xe   :  { %1182 = vmatprep.subr.bf16.mxu1 %v1303_v13  ;;  %v1324_v33 = vld [vmem:[%s1699_s0 + $0x4] ss:$36 sps:$4 sm:$0xff]   ;;  %v1327_v35 = vld [vmem:[%s1699_s0 + $0xc] ss:$36 sps:$4 sm:$0xff]   ;;  %v1344_v52 = vld [vmem:[%s1698_s1 + $0x158] sm:$0xff]  }
   0xf   :  { %750 = vmatprep.mubr.bf16.mxu0 %v1324_v33  ;;  %799 = vmatprep.mubr.bf16.mxu1 %v1327_v35  ;;  %v1333_v41 = vld [vmem:[%s1698_s1 + $0x130] sm:$0xff]   ;;  %v1336_v44 = vld [vmem:[%s1698_s1 + $0x168] sm:$0xff]   ;;  %v1340_v48 = vld [vmem:[%s1698_s1 + $0x160] sm:$0xff]  }
  0x10   :  { %1155 = vmatpush3.bf16.msra.mxu0 %v1304_v14  ;;  %v1334_v42 = vld [vmem:[%s1698_s1 + $0x1f0] sm:$0xff]   ;;  %v1337_v45 = vld [vmem:[%s1698_s1 + $0x128] sm:$0xff]   ;;  %v1341_v49 = vld [vmem:[%s1698_s1 + $0x120] sm:$0xff]  }
  0x11   :  { %1183 = vmatpush3.bf16.msra.mxu1 %v1305_v15  ;;  %1156 = vmatprep.subr.bf16.mxu0 %v1306_v16  ;;  %v1335_v43 = vld [vmem:[%s1698_s1 + $0x1b0] sm:$0xff]   ;;  %v1338_v46 = vld [vmem:[%s1698_s1 + $0x1e8] sm:$0xff]   ;;  %v1342_v50 = vld [vmem:[%s1698_s1 + $0x1e0] sm:$0xff]  }
  0x12   :  { %1184 = vmatprep.subr.bf16.mxu1 %v1307_v17  ;;  %v1339_v47 = vld [vmem:[%s1698_s1 + $0x1a8] sm:$0xff]   ;;  %v1343_v51 = vld [vmem:[%s1698_s1 + $0x1a0] sm:$0xff]   ;;  %v1345_v53 = vld [vmem:[%s1698_s1 + $0x118] sm:$0xff]  }
  0x13   :  { %v1346_v54 = vld [vmem:[%s1699_s0 + $0x4c] ss:$36 sps:$4 sm:$0xff]   ;;  %v1348_v55 = vld [vmem:[%s1699_s0 + $0x54] ss:$36 sps:$4 sm:$0xff]   ;;  %v1362_v4 = vld [vmem:[%s1698_s1 + $0x140] sm:$0xff]  }
  0x14   :  { %1157 = vmatpush3.bf16.msra.mxu0 %v1308_v18  ;;  %v1350_v56 = vld [vmem:[%s1698_s1 + $0x1d8] sm:$0xff]   ;;  %v1351_v57 = vld [vmem:[%s1699_s0 + $0x48] ss:$36 sps:$4 sm:$0xff]   ;;  %v1352_v58 = vld [vmem:[%s1699_s0 + $0x50] ss:$36 sps:$4 sm:$0xff]  }
  0x15   :  { %1185 = vmatpush3.bf16.msra.mxu1 %v1309_v19  ;;  %1158 = vmatprep.subr.bf16.mxu0 %v1310_v20  ;;  %v1353_v59 = vld [vmem:[%s1698_s1 + $0x198] sm:$0xff]   ;;  %v1354_v60 = vld [vmem:[%s1698_s1 + $0x150] sm:$0xff]   ;;  %v1358_v0 = vld [vmem:[%s1698_s1 + $0x148] sm:$0xff]  }
  0x16   :  { %1186 = vmatprep.subr.bf16.mxu1 %v1311_v21  ;;  %v1355_v61 = vld [vmem:[%s1698_s1 + $0x110] sm:$0xff]   ;;  %v1359_v1 = vld [vmem:[%s1698_s1 + $0x108] sm:$0xff]   ;;  %v1363_v5 = vld [vmem:[%s1698_s1 + $0x100] sm:$0xff]  }
  0x17   :  { %v1356_v62 = vld [vmem:[%s1698_s1 + $0x1d0] sm:$0xff]   ;;  %v1360_v2 = vld [vmem:[%s1698_s1 + $0x1c8] sm:$0xff]   ;;  %v1364_v6 = vld [vmem:[%s1698_s1 + $0x1c0] sm:$0xff]  }
  0x18   :  { %1159 = vmatpush3.bf16.msra.mxu0 %v1312_v22  ;;  %v1357_v63 = vld [vmem:[%s1698_s1 + $0x190] sm:$0xff]   ;;  %v1361_v3 = vld [vmem:[%s1698_s1 + $0x188] sm:$0xff]   ;;  %v1368_v9 = vld [vmem:[%s1698_s1 + $0x180] sm:$0xff]  }
  0x19   :  { %1187 = vmatpush3.bf16.msra.mxu1 %v1313_v23  ;;  %1160 = vmatprep.subr.bf16.mxu0 %v1314_v24  ;;  %v1365_v7 = vld [vmem:[%s1699_s0 + $0x10] ss:$36 sps:$4 sm:$0xff]   ;;  %v1369_v10 = vld [vmem:[%s1698_s1 + $0x238] sm:$0xff]   ;;  %v1377_v16 = vld [vmem:[%s1698_s1 + $0x228] sm:$0xff]  }
  0x1a   :  { %1188 = vmatprep.subr.bf16.mxu1 %v1315_v25  ;;  %v1367_v8 = vld [vmem:[%s1699_s0 + $0x14] ss:$36 sps:$4 sm:$0xff]   ;;  %v1372_v12 = vld [vmem:[%s1699_s0 + $0x1c] ss:$36 sps:$4 sm:$0xff]   ;;  %v1378_v17 = vld [vmem:[%s1699_s0 + $0x64] ss:$36 sps:$4 sm:$0xff]  }
  0x1b   :  { %v1370_v11 = vld [vmem:[%s1699_s0 + $0x18] ss:$36 sps:$4 sm:$0xff]   ;;  %v1373_v13 = vld [vmem:[%s1698_s1 + $0x230] sm:$0xff]   ;;  %v1380_v18 = vld [vmem:[%s1699_s0 + $0x60] ss:$36 sps:$4 sm:$0xff]  }
  0x1c   :  { %1161 = vmatpush3.bf16.msra.mxu0 %v1316_v26  ;;  %v1374_v14 = vld [vmem:[%s1699_s0 + $0x5c] ss:$36 sps:$4 sm:$0xff]   ;;  %v1383_v22 = vld [vmem:[%s1698_s1 + $0x210] sm:$0xff]   ;;  %v1384_v23 = vld [vmem:[%s1698_s1 + $0x208] sm:$0xff]  }
  0x1d   :  { %1189 = vmatpush3.bf16.msra.mxu1 %v1317_v27  ;;  %1162 = vmatprep.subr.bf16.mxu0 %v1318_v28  ;;  %v1376_v15 = vld [vmem:[%s1699_s0 + $0x58] ss:$36 sps:$4 sm:$0xff]   ;;  %v1381_v19 = vld [vmem:[%s1698_s1 + $0x220] sm:$0xff]   ;;  %v1387_v25 = vld [vmem:[%s1699_s0 + $0x68] ss:$36 sps:$4 sm:$0xff]  }
  0x1e   :  { %1190 = vmatprep.subr.bf16.mxu1 %v1319_v29  ;;  %v1382_v20 = vld [vmem:[%s1698_s1 + $0x218] sm:$0xff]   ;;  %v1386_v21 = vld [vmem:[%s1699_s0 + $0x20] ss:$36 sps:$4 sm:$0xff]  }
  0x1f   :  { %v1385_v24 = vld [vmem:[%s1698_s1 + $0x200] sm:$0xff]  }
  0x20   :  { %1163 = vmatpush3.bf16.msra.mxu0 %v1320_v30 }
  0x21   :  { %1191 = vmatpush3.bf16.msra.mxu1 %v1321_v31  ;;  %1204 = vmatprep.subr.bf16.mxu0 %v1328_v36 }
  0x22   :  { %1232 = vmatprep.subr.bf16.mxu1 %v1330_v38 }
  0x23   :  { %751 = vmatmul.mubr.bf16.vlgmr.msra.gmra.mxu0 %v1322_v32 }
  0x24   :  { %800 = vmatmul.mubr.bf16.vlgmr.msra.gmra.mxu1 %v1325_v34  ;;  %1205 = vmatpush3.bf16.msra.mxu0 %v1329_v37 }
  0x25   :  { %1233 = vmatpush3.bf16.msra.mxu1 %v1331_v39  ;;  %1206 = vmatprep.subr.bf16.mxu0 %v1332_v40 }
  0x26   :  { %1234 = vmatprep.subr.bf16.mxu1 %v1334_v42  ;;  %758 = vmatprep.mubr.bf16.mxu0 %v1346_v54 }
  0x27   :  { %807 = vmatprep.mubr.bf16.mxu1 %v1348_v55 }
  0x28   :  { %1207 = vmatpush3.bf16.msra.mxu0 %v1333_v41 }
  0x29   :  { %1235 = vmatpush3.bf16.msra.mxu1 %v1335_v43  ;;  %1208 = vmatprep.subr.bf16.mxu0 %v1336_v44 }
  0x2a   :  { %1236 = vmatprep.subr.bf16.mxu1 %v1338_v46 }
  0x2b   :  { %759 = vmatmul.mubr.bf16.gmra.mxu0 %v1351_v57 }
  0x2c   :  { %1209 = vmatpush3.bf16.msra.mxu0 %v1337_v45  ;;  %808 = vmatmul.mubr.bf16.gmra.mxu1 %v1352_v58 }
  0x2d   :  { %1237 = vmatpush3.bf16.msra.mxu1 %v1339_v47  ;;  %1210 = vmatprep.subr.bf16.mxu0 %v1340_v48 }
  0x2e   :  { %1238 = vmatprep.subr.bf16.mxu1 %v1342_v50  ;;  %848 = vmatprep.mubr.bf16.mxu0 %v1367_v8 }
  0x2f   :  { %897 = vmatprep.mubr.bf16.mxu1 %v1372_v12 }
  0x30   :  { %1211 = vmatpush3.bf16.msra.mxu0 %v1341_v49 }
  0x31   :  { %1239 = vmatpush3.bf16.msra.mxu1 %v1343_v51  ;;  %1212 = vmatprep.subr.bf16.mxu0 %v1344_v52 }
  0x32   :  { %1240 = vmatprep.subr.bf16.mxu1 %v1350_v56 }
  0x34   :  { %1213 = vmatpush3.bf16.msra.mxu0 %v1345_v53 }
  0x35   :  { %1241 = vmatpush3.bf16.msra.mxu1 %v1353_v59  ;;  %1214 = vmatprep.subr.bf16.mxu0 %v1354_v60 }
  0x36   :  { %1242 = vmatprep.subr.bf16.mxu1 %v1356_v62 }
  0x38   :  { %1215 = vmatpush3.bf16.msra.mxu0 %v1355_v61 }
  0x39   :  { %1243 = vmatpush3.bf16.msra.mxu1 %v1357_v63  ;;  %1216 = vmatprep.subr.bf16.mxu0 %v1358_v0 }
  0x3a   :  { %1244 = vmatprep.subr.bf16.mxu1 %v1360_v2 }
  0x3c   :  { %1217 = vmatpush3.bf16.msra.mxu0 %v1359_v1 }
  0x3d   :  { %1245 = vmatpush3.bf16.msra.mxu1 %v1361_v3  ;;  %1218 = vmatprep.subr.bf16.mxu0 %v1362_v4 }
  0x3e   :  { %1246 = vmatprep.subr.bf16.mxu1 %v1364_v6 }
  0x40   :  { %1219 = vmatpush3.bf16.msra.mxu0 %v1363_v5 }
  0x41   :  { %1247 = vmatpush3.bf16.msra.mxu1 %v1368_v9  ;;  %1270 = vmatprep.subr.bf16.mxu0 %v1369_v10 }
  0x43   :  { %849 = vmatmul.mubr.bf16.vlgmr.msra.gmra.mxu0 %v1365_v7 }
  0x44   :  { %1271 = vmatpush3.bf16.msra.mxu0 %v1369_v10  ;;  %898 = vmatmul.mubr.bf16.vlgmr.msra.gmra.mxu1 %v1370_v11 }
  0x45   :  { %1272 = vmatprep.subr.bf16.mxu0 %v1373_v13  ;;  %856 = vmatprep.mubr.bf16.mxu0 %v1374_v14 }
  0x46   :  { %905 = vmatprep.mubr.bf16.mxu1 %v1378_v17 }
  0x48   :  { %1273 = vmatpush3.bf16.msra.mxu0 %v1373_v13 }
  0x49   :  { %1274 = vmatprep.subr.bf16.mxu0 %v1377_v16 }
  0x4b   :  { %857 = vmatmul.mubr.bf16.gmra.mxu0 %v1376_v15 }
  0x4c   :  { %1275 = vmatpush3.bf16.msra.mxu0 %v1377_v16  ;;  %906 = vmatmul.mubr.bf16.gmra.mxu1 %v1380_v18  ;;  %v1119_v18 = vld [vmem:[%s1700_s2] ss:$0 sm:$0xff] }
  0x4d   :  { %1276 = vmatprep.subr.bf16.mxu0 %v1381_v19  ;;  %1286 = vmatprep.mubr.bf16.mxu0 %v1386_v21 }
  0x50   :  { %1277 = vmatpush3.bf16.msra.mxu0 %v1381_v19  ;;  %v1146_v19 = vld [vmem:[%s1701_s3 + $0x8] sm:$0xff]  }
  0x51   :  { %1278 = vmatprep.subr.bf16.mxu0 %v1382_v20 }
  0x54   :  { %1279 = vmatpush3.bf16.msra.mxu0 %v1382_v20 }
  0x55   :  { %1280 = vmatprep.subr.bf16.mxu0 %v1383_v22 }
  0x58   :  { %1281 = vmatpush3.bf16.msra.mxu0 %v1383_v22 }
  0x59   :  { %1282 = vmatprep.subr.bf16.mxu0 %v1384_v23 }
  0x5c   :  { %1283 = vmatpush3.bf16.msra.mxu0 %v1384_v23 }
  0x5d   :  { %1284 = vmatprep.subr.bf16.mxu0 %v1385_v24 }
  0x60   :  { %1285 = vmatpush3.bf16.msra.mxu0 %v1385_v24  ;;  %v1129_v24 = vld [vmem:[%s1701_s3] sm:$0xff]  }
  0x63   :  { %1287 = vmatmul.mubr.bf16.vlgmr.msra.gmra.mxu0 %v1387_v25 }
  0xe3   :  { %v1164_v26 = vpop.f32.mrf.mxu0 }
  0xe4   :  { %v1192_v27 = vpop.f32.mrf.mxu1 }
  0xe5   :  { %v1165_v28 = vpop.f32.mrf.mxu0 }
  0xe6   :  { %v1193_v29 = vpop.f32.mrf.mxu1  ;;  %v1166_v57 = vadd.f32 %v1165_v28, %v1164_v26 }
  0xe7   :  { %v1167_v30 = vpop.f32.mrf.mxu0  ;;  %v1194_v58 = vadd.f32 %v1193_v29, %v1192_v27  ;;  %v1134_v27 = vunpack.c.l.bf16 %v1146_v19 }
  0xe8   :  { %v1195_v31 = vpop.f32.mrf.mxu1 }
  0xe9   :  { %v1168_v32 = vpop.f32.mrf.mxu0  ;;  %v802_v2 = vadd.f32 %v1194_v58, %v1166_v57 }
  0xea   :  { %v1196_v34 = vpop.f32.mrf.mxu1  ;;  %v1169_v3 = vadd.f32 %v1168_v32, %v1167_v30  ;;  %v1130_v30 = vunpack.c.l.bf16 %v1129_v24 }
  0xeb   :  { %v1170_v33 = vpop.f32.mrf.mxu0  ;;  %v1197_v4 = vadd.f32 %v1196_v34, %v1195_v31  ;;  %v1135_v34 = vunpack.c.h.bf16 %v1146_v19 }
  0xec   :  { %v1198_v35 = vpop.f32.mrf.mxu1 }
  0xed   :  { %v1171_v36 = vpop.f32.mrf.mxu0  ;;  %v805_v13 = vadd.f32 %v1197_v4, %v1169_v3 }
  0xee   :  { %v1199_v37 = vpop.f32.mrf.mxu1  ;;  %v1172_v55 = vadd.f32 %v1171_v36, %v1170_v33 }
  0xef   :  { %v1173_v38 = vpop.f32.mrf.mxu0  ;;  %v1200_v56 = vadd.f32 %v1199_v37, %v1198_v35 }
  0xf0   :  { %v1201_v39 = vpop.f32.mrf.mxu1 }
  0xf1   :  { %v1174_v40 = vpop.f32.mrf.mxu0  ;;  %v810_v62 = vadd.f32 %v1200_v56, %v1172_v55 }
  0xf2   :  { %v1202_v42 = vpop.f32.mrf.mxu1  ;;  %v1175_v63 = vadd.f32 %v1174_v40, %v1173_v38  ;;  %v1131_v40 = vunpack.c.h.bf16 %v1129_v24 }
  0xf3   :  { %v1203_v0 = vadd.f32 %v1202_v42, %v1201_v39 }
  0xf5   :  { %v813_v9 = vadd.f32 %v1203_v0, %v1175_v63 }
 0x103   :  { %v1220_v41 = vpop.f32.mrf.mxu0 }
 0x104   :  { %v1248_v44 = vpop.f32.mrf.mxu1 }
 0x105   :  { %v1221_v43 = vpop.f32.mrf.mxu0 }
 0x106   :  { %v1249_v46 = vpop.f32.mrf.mxu1  ;;  %v1222_v1 = vadd.f32 %v1221_v43, %v1220_v41 }
 0x107   :  { %v1223_v45 = vpop.f32.mrf.mxu0  ;;  %v1250_v11 = vadd.f32 %v1249_v46, %v1248_v44 }
 0x108   :  { %v1251_v48 = vpop.f32.mrf.mxu1  ;;  %v851_v10 = vadd.f32 %v1222_v1, %v802_v2 }
 0x109   :  { %v1224_v47 = vpop.f32.mrf.mxu0 }
 0x10a   :  { %v1252_v50 = vpop.f32.mrf.mxu1  ;;  %v1225_v12 = vadd.f32 %v1224_v47, %v1223_v45  ;;  %v900_v23 = vadd.f32 %v1250_v11, %v851_v10 }
 0x10b   :  { %v1226_v49 = vpop.f32.mrf.mxu0  ;;  %v1253_v21 = vadd.f32 %v1252_v50, %v1251_v48 }
 0x10c   :  { %v1254_v52 = vpop.f32.mrf.mxu1  ;;  %v854_v20 = vadd.f32 %v1225_v12, %v805_v13 }
 0x10d   :  { %v1227_v51 = vpop.f32.mrf.mxu0 }
 0x10e   :  { %v1255_v54 = vpop.f32.mrf.mxu1  ;;  %v1228_v59 = vadd.f32 %v1227_v51, %v1226_v49  ;;  %v903_v35 = vadd.f32 %v1253_v21, %v854_v20 }
 0x10f   :  { %v1229_v53 = vpop.f32.mrf.mxu0  ;;  %v1256_v6 = vadd.f32 %v1255_v54, %v1254_v52 }
 0x110   :  { %v1257_v61 = vpop.f32.mrf.mxu1  ;;  %v859_v5 = vadd.f32 %v1228_v59, %v810_v62 }
 0x111   :  { %v1230_v60 = vpop.f32.mrf.mxu0 }
 0x112   :  { %v1231_v7 = vadd.f32 %v1230_v60, %v1229_v53  ;;  %v1258_v8 = vpop.f32.mrf.mxu1  ;;  %v908_v16 = vadd.f32 %v1256_v6, %v859_v5 }
 0x113   :  { %v1259_v15 = vadd.f32 %v1258_v8, %v1257_v61 }
 0x114   :  { %v862_v14 = vadd.f32 %v1231_v7, %v813_v9 }
 0x116   :  { %v911_v29 = vadd.f32 %v1259_v15, %v862_v14 }
 0x123   :  { %v1288_v17 = vpop.f32.mrf.mxu0 }
 0x124   :  { %v957_v22 = vadd.f32 %v1288_v17, %v908_v16 }
 0x125   :  { %v948_v25 = vpop.f32.mrf.mxu0 }
 0x126   :  { %v987_v26 = vadd.f32 %v1119_v18, %v957_v22  ;;  %v949_v28 = vadd.f32 %v948_v25, %v900_v23 }
 0x127   :  { %v1289_v31 = vpop.f32.mrf.mxu0 }
 0x128   :  { %v985_v32 = vadd.f32 %v1119_v18, %v949_v28  ;;  %v960_v33 = vadd.f32 %v1289_v31, %v911_v29  ;;  %v999_v37 = vadd.f32 %v1134_v27, %v987_v26 }
 0x129   :  { %v951_v36 = vpop.f32.mrf.mxu0 }
 0x12a   :  { %v988_v38 = vadd.f32 %v1119_v18, %v960_v33  ;;  %v952_v39 = vadd.f32 %v951_v36, %v903_v35  ;;  %v997_v41 = vadd.f32 %v1130_v30, %v985_v32  ;;  %v1003_v44 = vmax.f32 %v999_v37, 0.0 }
 0x12c   :  { %v1000_v42 = vadd.f32 %v1135_v34, %v988_v38  ;;  %v986_v43 = vadd.f32 %v1119_v18, %v952_v39  ;;  %v1001_v47 = vmax.f32 %v997_v41, 0.0 }
 0x12e   :  { %v1004_v45 = vmax.f32 %v1000_v42, 0.0  ;;  %v998_v46 = vadd.f32 %v1131_v40, %v986_v43 }
 0x130   :  { %v1144_v48 = vpack.c.bf16 %v1004_v45, %v1003_v44  ;;  %v1002_v49 = vmax.f32 %v998_v46, 0.0 }
 0x132   :  { %1147 = vst [vmem:[%s1702_s4 + $0x8] sm:$0xff] %v1144_v48   ;;  %v1139_v50 = vpack.c.bf16 %v1002_v49, %v1001_v47 }
 0x134   :  { %1140 = vst [vmem:[%s1702_s4] sm:$0xff] %v1139_v50  }

// kernel: starting_network_forward.32
= control target key start
LH: loop header
LB: loop body
LE: loop exit
PB: predicated region body
PF: predicated region fallthrough
CT: control target
= control target key end

     0   :  { %s1663_s1 = inlined_call_operand.vmem [shape: bf16[1152,128], index: 1, kind: input, shape index: {}]   ;;  %s1664_s0 = inlined_call_operand.vmem [shape: bf16[32,1152], index: 0, kind: input, shape index: {}]   ;;  %s1665_s2 = inlined_call_operand.vmem [shape: f32[1,128], index: 2, kind: input, shape index: {}]   ;;  %s1666_s3 = inlined_call_operand.vmem [shape: bf16[32,128], index: 3, kind: output, shape index: {}]  }
   0x1   :  { %v1266_v0 = vld [vmem:[%s1663_s1 + $0x78] sm:$0xff]   ;;  %v1270_v4 = vld [vmem:[%s1663_s1 + $0x70] sm:$0xff]   ;;  %v1274_v8 = vld [vmem:[%s1663_s1 + $0x68] sm:$0xff]  }
   0x2   :  { %v1267_v1 = vld [vmem:[%s1663_s1 + $0xf8] sm:$0xff]   ;;  %1124 = vmatprep.subr.bf16.mxu0 %v1266_v0  ;;  %v1271_v5 = vld [vmem:[%s1663_s1 + $0xf0] sm:$0xff]   ;;  %v1275_v9 = vld [vmem:[%s1663_s1 + $0xe8] sm:$0xff]  }
   0x3   :  { %v1268_v2 = vld [vmem:[%s1663_s1 + $0x38] sm:$0xff]   ;;  %1152 = vmatprep.subr.bf16.mxu1 %v1267_v1  ;;  %v1272_v6 = vld [vmem:[%s1663_s1 + $0x30] sm:$0xff]   ;;  %v1276_v10 = vld [vmem:[%s1663_s1 + $0x28] sm:$0xff]  }
   0x4   :  { %v1269_v3 = vld [vmem:[%s1663_s1 + $0xb8] sm:$0xff]   ;;  %1125 = vmatpush3.bf16.msra.mxu0 %v1268_v2  ;;  %v1273_v7 = vld [vmem:[%s1663_s1 + $0xb0] sm:$0xff]   ;;  %v1277_v11 = vld [vmem:[%s1663_s1 + $0xa8] sm:$0xff]  }
   0x5   :  { %1153 = vmatpush3.bf16.msra.mxu1 %v1269_v3  ;;  %1126 = vmatprep.subr.bf16.mxu0 %v1270_v4  ;;  %v1278_v12 = vld [vmem:[%s1663_s1 + $0x60] sm:$0xff]   ;;  %v1282_v16 = vld [vmem:[%s1663_s1 + $0x58] sm:$0xff]   ;;  %v1286_v20 = vld [vmem:[%s1663_s1 + $0x50] sm:$0xff]  }
   0x6   :  { %1154 = vmatprep.subr.bf16.mxu1 %v1271_v5  ;;  %v1279_v13 = vld [vmem:[%s1663_s1 + $0xe0] sm:$0xff]   ;;  %v1283_v17 = vld [vmem:[%s1663_s1 + $0xd8] sm:$0xff]   ;;  %v1287_v21 = vld [vmem:[%s1663_s1 + $0xd0] sm:$0xff]  }
   0x7   :  { %v1280_v14 = vld [vmem:[%s1663_s1 + $0x20] sm:$0xff]   ;;  %v1284_v18 = vld [vmem:[%s1663_s1 + $0x18] sm:$0xff]   ;;  %v1288_v22 = vld [vmem:[%s1663_s1 + $0x10] sm:$0xff]  }
   0x8   :  { %1127 = vmatpush3.bf16.msra.mxu0 %v1272_v6  ;;  %v1281_v15 = vld [vmem:[%s1663_s1 + $0xa0] sm:$0xff]   ;;  %v1285_v19 = vld [vmem:[%s1663_s1 + $0x98] sm:$0xff]   ;;  %v1289_v23 = vld [vmem:[%s1663_s1 + $0x90] sm:$0xff]  }
   0x9   :  { %1155 = vmatpush3.bf16.msra.mxu1 %v1273_v7  ;;  %1128 = vmatprep.subr.bf16.mxu0 %v1274_v8  ;;  %v1290_v24 = vld [vmem:[%s1663_s1 + $0x48] sm:$0xff]   ;;  %v1294_v28 = vld [vmem:[%s1663_s1 + $0x40] sm:$0xff]   ;;  %v1304_v36 = vld [vmem:[%s1663_s1 + $0x178] sm:$0xff]  }
   0xa   :  { %1156 = vmatprep.subr.bf16.mxu1 %v1275_v9  ;;  %v1291_v25 = vld [vmem:[%s1663_s1 + $0xc8] sm:$0xff]   ;;  %v1295_v29 = vld [vmem:[%s1663_s1 + $0xc0] sm:$0xff]   ;;  %v1305_v37 = vld [vmem:[%s1663_s1 + $0x138] sm:$0xff]  }
   0xb   :  { %v1292_v26 = vld [vmem:[%s1663_s1 + $0x8] sm:$0xff]   ;;  %v1296_v30 = vld [vmem:[%s1663_s1] sm:$0xff]   ;;  %v1306_v38 = vld [vmem:[%s1663_s1 + $0x1f8] sm:$0xff]  }
   0xc   :  { %1129 = vmatpush3.bf16.msra.mxu0 %v1276_v10  ;;  %v1293_v27 = vld [vmem:[%s1663_s1 + $0x88] sm:$0xff]   ;;  %v1297_v31 = vld [vmem:[%s1663_s1 + $0x80] sm:$0xff]   ;;  %v1307_v39 = vld [vmem:[%s1663_s1 + $0x1b8] sm:$0xff]  }
   0xd   :  { %1157 = vmatpush3.bf16.msra.mxu1 %v1277_v11  ;;  %1130 = vmatprep.subr.bf16.mxu0 %v1278_v12  ;;  %v1298_v32 = vld [vmem:[%s1664_s0] ss:$36 sps:$4 sm:$0xff]   ;;  %v1301_v34 = vld [vmem:[%s1664_s0 + $0x8] ss:$36 sps:$4 sm:$0xff]   ;;  %v1308_v40 = vld [vmem:[%s1663_s1 + $0x170] sm:$0xff]  }
   0xe   :  { %1158 = vmatprep.subr.bf16.mxu1 %v1279_v13  ;;  %v1300_v33 = vld [vmem:[%s1664_s0 + $0x4] ss:$36 sps:$4 sm:$0xff]   ;;  %v1303_v35 = vld [vmem:[%s1664_s0 + $0xc] ss:$36 sps:$4 sm:$0xff]   ;;  %v1320_v52 = vld [vmem:[%s1663_s1 + $0x158] sm:$0xff]  }
   0xf   :  { %747 = vmatprep.mubr.bf16.mxu0 %v1300_v33  ;;  %796 = vmatprep.mubr.bf16.mxu1 %v1303_v35  ;;  %v1309_v41 = vld [vmem:[%s1663_s1 + $0x130] sm:$0xff]   ;;  %v1312_v44 = vld [vmem:[%s1663_s1 + $0x168] sm:$0xff]   ;;  %v1316_v48 = vld [vmem:[%s1663_s1 + $0x160] sm:$0xff]  }
  0x10   :  { %1131 = vmatpush3.bf16.msra.mxu0 %v1280_v14  ;;  %v1310_v42 = vld [vmem:[%s1663_s1 + $0x1f0] sm:$0xff]   ;;  %v1313_v45 = vld [vmem:[%s1663_s1 + $0x128] sm:$0xff]   ;;  %v1317_v49 = vld [vmem:[%s1663_s1 + $0x120] sm:$0xff]  }
  0x11   :  { %1159 = vmatpush3.bf16.msra.mxu1 %v1281_v15  ;;  %1132 = vmatprep.subr.bf16.mxu0 %v1282_v16  ;;  %v1311_v43 = vld [vmem:[%s1663_s1 + $0x1b0] sm:$0xff]   ;;  %v1314_v46 = vld [vmem:[%s1663_s1 + $0x1e8] sm:$0xff]   ;;  %v1318_v50 = vld [vmem:[%s1663_s1 + $0x1e0] sm:$0xff]  }
  0x12   :  { %1160 = vmatprep.subr.bf16.mxu1 %v1283_v17  ;;  %v1315_v47 = vld [vmem:[%s1663_s1 + $0x1a8] sm:$0xff]   ;;  %v1319_v51 = vld [vmem:[%s1663_s1 + $0x1a0] sm:$0xff]   ;;  %v1321_v53 = vld [vmem:[%s1663_s1 + $0x118] sm:$0xff]  }
  0x13   :  { %v1322_v54 = vld [vmem:[%s1664_s0 + $0x4c] ss:$36 sps:$4 sm:$0xff]   ;;  %v1324_v55 = vld [vmem:[%s1664_s0 + $0x54] ss:$36 sps:$4 sm:$0xff]   ;;  %v1338_v4 = vld [vmem:[%s1663_s1 + $0x140] sm:$0xff]  }
  0x14   :  { %1133 = vmatpush3.bf16.msra.mxu0 %v1284_v18  ;;  %v1326_v56 = vld [vmem:[%s1663_s1 + $0x1d8] sm:$0xff]   ;;  %v1327_v57 = vld [vmem:[%s1664_s0 + $0x48] ss:$36 sps:$4 sm:$0xff]   ;;  %v1328_v58 = vld [vmem:[%s1664_s0 + $0x50] ss:$36 sps:$4 sm:$0xff]  }
  0x15   :  { %1161 = vmatpush3.bf16.msra.mxu1 %v1285_v19  ;;  %1134 = vmatprep.subr.bf16.mxu0 %v1286_v20  ;;  %v1329_v59 = vld [vmem:[%s1663_s1 + $0x198] sm:$0xff]   ;;  %v1330_v60 = vld [vmem:[%s1663_s1 + $0x150] sm:$0xff]   ;;  %v1334_v0 = vld [vmem:[%s1663_s1 + $0x148] sm:$0xff]  }
  0x16   :  { %1162 = vmatprep.subr.bf16.mxu1 %v1287_v21  ;;  %v1331_v61 = vld [vmem:[%s1663_s1 + $0x110] sm:$0xff]   ;;  %v1335_v1 = vld [vmem:[%s1663_s1 + $0x108] sm:$0xff]   ;;  %v1339_v5 = vld [vmem:[%s1663_s1 + $0x100] sm:$0xff]  }
  0x17   :  { %v1332_v62 = vld [vmem:[%s1663_s1 + $0x1d0] sm:$0xff]   ;;  %v1336_v2 = vld [vmem:[%s1663_s1 + $0x1c8] sm:$0xff]   ;;  %v1340_v6 = vld [vmem:[%s1663_s1 + $0x1c0] sm:$0xff]  }
  0x18   :  { %1135 = vmatpush3.bf16.msra.mxu0 %v1288_v22  ;;  %v1333_v63 = vld [vmem:[%s1663_s1 + $0x190] sm:$0xff]   ;;  %v1337_v3 = vld [vmem:[%s1663_s1 + $0x188] sm:$0xff]   ;;  %v1344_v9 = vld [vmem:[%s1663_s1 + $0x180] sm:$0xff]  }
  0x19   :  { %1163 = vmatpush3.bf16.msra.mxu1 %v1289_v23  ;;  %1136 = vmatprep.subr.bf16.mxu0 %v1290_v24  ;;  %v1341_v7 = vld [vmem:[%s1664_s0 + $0x10] ss:$36 sps:$4 sm:$0xff]   ;;  %v1345_v10 = vld [vmem:[%s1663_s1 + $0x238] sm:$0xff]   ;;  %v1353_v16 = vld [vmem:[%s1663_s1 + $0x228] sm:$0xff]  }
  0x1a   :  { %1164 = vmatprep.subr.bf16.mxu1 %v1291_v25  ;;  %v1343_v8 = vld [vmem:[%s1664_s0 + $0x14] ss:$36 sps:$4 sm:$0xff]   ;;  %v1348_v12 = vld [vmem:[%s1664_s0 + $0x1c] ss:$36 sps:$4 sm:$0xff]   ;;  %v1354_v17 = vld [vmem:[%s1664_s0 + $0x64] ss:$36 sps:$4 sm:$0xff]  }
  0x1b   :  { %v1346_v11 = vld [vmem:[%s1664_s0 + $0x18] ss:$36 sps:$4 sm:$0xff]   ;;  %v1349_v13 = vld [vmem:[%s1663_s1 + $0x230] sm:$0xff]   ;;  %v1356_v18 = vld [vmem:[%s1664_s0 + $0x60] ss:$36 sps:$4 sm:$0xff]  }
  0x1c   :  { %1137 = vmatpush3.bf16.msra.mxu0 %v1292_v26  ;;  %v1350_v14 = vld [vmem:[%s1664_s0 + $0x5c] ss:$36 sps:$4 sm:$0xff]   ;;  %v1359_v22 = vld [vmem:[%s1663_s1 + $0x210] sm:$0xff]   ;;  %v1360_v23 = vld [vmem:[%s1663_s1 + $0x208] sm:$0xff]  }
  0x1d   :  { %1165 = vmatpush3.bf16.msra.mxu1 %v1293_v27  ;;  %1138 = vmatprep.subr.bf16.mxu0 %v1294_v28  ;;  %v1352_v15 = vld [vmem:[%s1664_s0 + $0x58] ss:$36 sps:$4 sm:$0xff]   ;;  %v1357_v19 = vld [vmem:[%s1663_s1 + $0x220] sm:$0xff]   ;;  %v1363_v25 = vld [vmem:[%s1664_s0 + $0x68] ss:$36 sps:$4 sm:$0xff]  }
  0x1e   :  { %1166 = vmatprep.subr.bf16.mxu1 %v1295_v29  ;;  %v1358_v20 = vld [vmem:[%s1663_s1 + $0x218] sm:$0xff]   ;;  %v1362_v21 = vld [vmem:[%s1664_s0 + $0x20] ss:$36 sps:$4 sm:$0xff]  }
  0x1f   :  { %v1361_v24 = vld [vmem:[%s1663_s1 + $0x200] sm:$0xff]  }
  0x20   :  { %1139 = vmatpush3.bf16.msra.mxu0 %v1296_v30 }
  0x21   :  { %1167 = vmatpush3.bf16.msra.mxu1 %v1297_v31  ;;  %1180 = vmatprep.subr.bf16.mxu0 %v1304_v36 }
  0x22   :  { %1208 = vmatprep.subr.bf16.mxu1 %v1306_v38 }
  0x23   :  { %748 = vmatmul.mubr.bf16.vlgmr.msra.gmra.mxu0 %v1298_v32 }
  0x24   :  { %797 = vmatmul.mubr.bf16.vlgmr.msra.gmra.mxu1 %v1301_v34  ;;  %1181 = vmatpush3.bf16.msra.mxu0 %v1305_v37 }
  0x25   :  { %1209 = vmatpush3.bf16.msra.mxu1 %v1307_v39  ;;  %1182 = vmatprep.subr.bf16.mxu0 %v1308_v40 }
  0x26   :  { %1210 = vmatprep.subr.bf16.mxu1 %v1310_v42  ;;  %755 = vmatprep.mubr.bf16.mxu0 %v1322_v54 }
  0x27   :  { %804 = vmatprep.mubr.bf16.mxu1 %v1324_v55 }
  0x28   :  { %1183 = vmatpush3.bf16.msra.mxu0 %v1309_v41 }
  0x29   :  { %1211 = vmatpush3.bf16.msra.mxu1 %v1311_v43  ;;  %1184 = vmatprep.subr.bf16.mxu0 %v1312_v44 }
  0x2a   :  { %1212 = vmatprep.subr.bf16.mxu1 %v1314_v46 }
  0x2b   :  { %756 = vmatmul.mubr.bf16.gmra.mxu0 %v1327_v57 }
  0x2c   :  { %1185 = vmatpush3.bf16.msra.mxu0 %v1313_v45  ;;  %805 = vmatmul.mubr.bf16.gmra.mxu1 %v1328_v58 }
  0x2d   :  { %1213 = vmatpush3.bf16.msra.mxu1 %v1315_v47  ;;  %1186 = vmatprep.subr.bf16.mxu0 %v1316_v48 }
  0x2e   :  { %1214 = vmatprep.subr.bf16.mxu1 %v1318_v50  ;;  %845 = vmatprep.mubr.bf16.mxu0 %v1343_v8 }
  0x2f   :  { %894 = vmatprep.mubr.bf16.mxu1 %v1348_v12 }
  0x30   :  { %1187 = vmatpush3.bf16.msra.mxu0 %v1317_v49 }
  0x31   :  { %1215 = vmatpush3.bf16.msra.mxu1 %v1319_v51  ;;  %1188 = vmatprep.subr.bf16.mxu0 %v1320_v52 }
  0x32   :  { %1216 = vmatprep.subr.bf16.mxu1 %v1326_v56 }
  0x34   :  { %1189 = vmatpush3.bf16.msra.mxu0 %v1321_v53 }
  0x35   :  { %1217 = vmatpush3.bf16.msra.mxu1 %v1329_v59  ;;  %1190 = vmatprep.subr.bf16.mxu0 %v1330_v60 }
  0x36   :  { %1218 = vmatprep.subr.bf16.mxu1 %v1332_v62 }
  0x38   :  { %1191 = vmatpush3.bf16.msra.mxu0 %v1331_v61 }
  0x39   :  { %1219 = vmatpush3.bf16.msra.mxu1 %v1333_v63  ;;  %1192 = vmatprep.subr.bf16.mxu0 %v1334_v0 }
  0x3a   :  { %1220 = vmatprep.subr.bf16.mxu1 %v1336_v2 }
  0x3c   :  { %1193 = vmatpush3.bf16.msra.mxu0 %v1335_v1 }
  0x3d   :  { %1221 = vmatpush3.bf16.msra.mxu1 %v1337_v3  ;;  %1194 = vmatprep.subr.bf16.mxu0 %v1338_v4 }
  0x3e   :  { %1222 = vmatprep.subr.bf16.mxu1 %v1340_v6 }
  0x40   :  { %1195 = vmatpush3.bf16.msra.mxu0 %v1339_v5 }
  0x41   :  { %1223 = vmatpush3.bf16.msra.mxu1 %v1344_v9  ;;  %1246 = vmatprep.subr.bf16.mxu0 %v1345_v10 }
  0x43   :  { %846 = vmatmul.mubr.bf16.vlgmr.msra.gmra.mxu0 %v1341_v7 }
  0x44   :  { %1247 = vmatpush3.bf16.msra.mxu0 %v1345_v10  ;;  %895 = vmatmul.mubr.bf16.vlgmr.msra.gmra.mxu1 %v1346_v11 }
  0x45   :  { %1248 = vmatprep.subr.bf16.mxu0 %v1349_v13  ;;  %853 = vmatprep.mubr.bf16.mxu0 %v1350_v14 }
  0x46   :  { %902 = vmatprep.mubr.bf16.mxu1 %v1354_v17 }
  0x48   :  { %1249 = vmatpush3.bf16.msra.mxu0 %v1349_v13 }
  0x49   :  { %1250 = vmatprep.subr.bf16.mxu0 %v1353_v16 }
  0x4b   :  { %854 = vmatmul.mubr.bf16.gmra.mxu0 %v1352_v15 }
  0x4c   :  { %1251 = vmatpush3.bf16.msra.mxu0 %v1353_v16  ;;  %903 = vmatmul.mubr.bf16.gmra.mxu1 %v1356_v18 }
  0x4d   :  { %1252 = vmatprep.subr.bf16.mxu0 %v1357_v19  ;;  %1262 = vmatprep.mubr.bf16.mxu0 %v1362_v21 }
  0x50   :  { %1253 = vmatpush3.bf16.msra.mxu0 %v1357_v19 }
  0x51   :  { %1254 = vmatprep.subr.bf16.mxu0 %v1358_v20 }
  0x54   :  { %1255 = vmatpush3.bf16.msra.mxu0 %v1358_v20 }
  0x55   :  { %1256 = vmatprep.subr.bf16.mxu0 %v1359_v22 }
  0x58   :  { %1257 = vmatpush3.bf16.msra.mxu0 %v1359_v22  ;;  %v1104_v22 = vld [vmem:[%s1665_s2] ss:$0 sm:$0xff] }
  0x59   :  { %1258 = vmatprep.subr.bf16.mxu0 %v1360_v23 }
  0x5c   :  { %1259 = vmatpush3.bf16.msra.mxu0 %v1360_v23 }
  0x5d   :  { %1260 = vmatprep.subr.bf16.mxu0 %v1361_v24 }
  0x60   :  { %1261 = vmatpush3.bf16.msra.mxu0 %v1361_v24 }
  0x63   :  { %1263 = vmatmul.mubr.bf16.vlgmr.msra.gmra.mxu0 %v1363_v25 }
  0xe3   :  { %v1140_v26 = vpop.f32.mrf.mxu0 }
  0xe4   :  { %v1168_v27 = vpop.f32.mrf.mxu1 }
  0xe5   :  { %v1141_v28 = vpop.f32.mrf.mxu0 }
  0xe6   :  { %v1169_v29 = vpop.f32.mrf.mxu1  ;;  %v1142_v57 = vadd.f32 %v1141_v28, %v1140_v26 }
  0xe7   :  { %v1143_v30 = vpop.f32.mrf.mxu0  ;;  %v1170_v58 = vadd.f32 %v1169_v29, %v1168_v27 }
  0xe8   :  { %v1171_v31 = vpop.f32.mrf.mxu1 }
  0xe9   :  { %v1144_v32 = vpop.f32.mrf.mxu0  ;;  %v799_v2 = vadd.f32 %v1170_v58, %v1142_v57 }
  0xea   :  { %v1172_v34 = vpop.f32.mrf.mxu1  ;;  %v1145_v3 = vadd.f32 %v1144_v32, %v1143_v30 }
  0xeb   :  { %v1146_v33 = vpop.f32.mrf.mxu0  ;;  %v1173_v4 = vadd.f32 %v1172_v34, %v1171_v31 }
  0xec   :  { %v1174_v35 = vpop.f32.mrf.mxu1 }
  0xed   :  { %v1147_v36 = vpop.f32.mrf.mxu0  ;;  %v802_v13 = vadd.f32 %v1173_v4, %v1145_v3 }
  0xee   :  { %v1175_v37 = vpop.f32.mrf.mxu1  ;;  %v1148_v55 = vadd.f32 %v1147_v36, %v1146_v33 }
  0xef   :  { %v1149_v38 = vpop.f32.mrf.mxu0  ;;  %v1176_v56 = vadd.f32 %v1175_v37, %v1174_v35 }
  0xf0   :  { %v1177_v39 = vpop.f32.mrf.mxu1 }
  0xf1   :  { %v1150_v40 = vpop.f32.mrf.mxu0  ;;  %v807_v62 = vadd.f32 %v1176_v56, %v1148_v55 }
  0xf2   :  { %v1178_v42 = vpop.f32.mrf.mxu1  ;;  %v1151_v63 = vadd.f32 %v1150_v40, %v1149_v38 }
  0xf3   :  { %v1179_v0 = vadd.f32 %v1178_v42, %v1177_v39 }
  0xf5   :  { %v810_v9 = vadd.f32 %v1179_v0, %v1151_v63 }
 0x103   :  { %v1196_v41 = vpop.f32.mrf.mxu0 }
 0x104   :  { %v1224_v44 = vpop.f32.mrf.mxu1 }
 0x105   :  { %v1197_v43 = vpop.f32.mrf.mxu0 }
 0x106   :  { %v1225_v46 = vpop.f32.mrf.mxu1  ;;  %v1198_v1 = vadd.f32 %v1197_v43, %v1196_v41 }
 0x107   :  { %v1199_v45 = vpop.f32.mrf.mxu0  ;;  %v1226_v11 = vadd.f32 %v1225_v46, %v1224_v44 }
 0x108   :  { %v1227_v48 = vpop.f32.mrf.mxu1  ;;  %v848_v10 = vadd.f32 %v1198_v1, %v799_v2 }
 0x109   :  { %v1200_v47 = vpop.f32.mrf.mxu0 }
 0x10a   :  { %v1228_v50 = vpop.f32.mrf.mxu1  ;;  %v1201_v12 = vadd.f32 %v1200_v47, %v1199_v45  ;;  %v897_v21 = vadd.f32 %v1226_v11, %v848_v10 }
 0x10b   :  { %v1202_v49 = vpop.f32.mrf.mxu0  ;;  %v1229_v19 = vadd.f32 %v1228_v50, %v1227_v48 }
 0x10c   :  { %v1230_v52 = vpop.f32.mrf.mxu1  ;;  %v851_v18 = vadd.f32 %v1201_v12, %v802_v13 }
 0x10d   :  { %v1203_v51 = vpop.f32.mrf.mxu0 }
 0x10e   :  { %v1231_v54 = vpop.f32.mrf.mxu1  ;;  %v1204_v59 = vadd.f32 %v1203_v51, %v1202_v49  ;;  %v900_v29 = vadd.f32 %v1229_v19, %v851_v18 }
 0x10f   :  { %v1205_v53 = vpop.f32.mrf.mxu0  ;;  %v1232_v6 = vadd.f32 %v1231_v54, %v1230_v52 }
 0x110   :  { %v1233_v61 = vpop.f32.mrf.mxu1  ;;  %v856_v5 = vadd.f32 %v1204_v59, %v807_v62 }
 0x111   :  { %v1206_v60 = vpop.f32.mrf.mxu0 }
 0x112   :  { %v1207_v7 = vadd.f32 %v1206_v60, %v1205_v53  ;;  %v1234_v8 = vpop.f32.mrf.mxu1  ;;  %v905_v16 = vadd.f32 %v1232_v6, %v856_v5 }
 0x113   :  { %v1235_v15 = vadd.f32 %v1234_v8, %v1233_v61 }
 0x114   :  { %v859_v14 = vadd.f32 %v1207_v7, %v810_v9 }
 0x116   :  { %v908_v25 = vadd.f32 %v1235_v15, %v859_v14 }
 0x123   :  { %v1264_v17 = vpop.f32.mrf.mxu0 }
 0x124   :  { %v954_v20 = vadd.f32 %v1264_v17, %v905_v16 }
 0x125   :  { %v945_v23 = vpop.f32.mrf.mxu0 }
 0x126   :  { %v946_v24 = vadd.f32 %v945_v23, %v897_v21  ;;  %v984_v27 = vadd.f32 %v1104_v22, %v954_v20 }
 0x127   :  { %v1265_v26 = vpop.f32.mrf.mxu0 }
 0x128   :  { %v957_v28 = vadd.f32 %v1265_v26, %v908_v25  ;;  %v982_v31 = vadd.f32 %v1104_v22, %v946_v24  ;;  %v988_v34 = vmax.f32 %v984_v27, 0.0 }
 0x129   :  { %v948_v30 = vpop.f32.mrf.mxu0 }
 0x12a   :  { %v985_v32 = vadd.f32 %v1104_v22, %v957_v28  ;;  %v949_v33 = vadd.f32 %v948_v30, %v900_v29  ;;  %v986_v37 = vmax.f32 %v982_v31, 0.0 }
 0x12c   :  { %v989_v35 = vmax.f32 %v985_v32, 0.0  ;;  %v983_v36 = vadd.f32 %v1104_v22, %v949_v33 }
 0x12e   :  { %v1121_v38 = vpack.c.bf16 %v989_v35, %v988_v34  ;;  %v987_v39 = vmax.f32 %v983_v36, 0.0 }
 0x130   :  { %1123 = vst [vmem:[%s1666_s3 + $0x8] sm:$0xff] %v1121_v38   ;;  %v1116_v40 = vpack.c.bf16 %v987_v39, %v986_v37 }
 0x132   :  { %1117 = vst [vmem:[%s1666_s3] sm:$0xff] %v1116_v40  }

// kernel: starting_network_forward.34
= control target key start
LH: loop header
LB: loop body
LE: loop exit
PB: predicated region body
PF: predicated region fallthrough
CT: control target
= control target key end

     0   :  { %s2091_s1 = inlined_call_operand.vmem [shape: bf16[1152,256], index: 1, kind: input, shape index: {}]   ;;  %s2092_s0 = inlined_call_operand.vmem [shape: bf16[16,1152], index: 0, kind: input, shape index: {}]   ;;  %s2093_s2 = inlined_call_operand.vmem [shape: f32[1,256], index: 2, kind: input, shape index: {}]   ;;  %s2094_s3 = inlined_call_operand.vmem [shape: bf16[16,256], index: 3, kind: output, shape index: {}]  }
   0x1   :  { %v1373_v0 = vld [vmem:[%s2091_s1 + $0x74] ss:$8 sps:$4 sm:$0xff]   ;;  %v1377_v2 = vld [vmem:[%s2091_s1 + $0x70] ss:$8 sps:$4 sm:$0xff]   ;;  %v1379_v4 = vld [vmem:[%s2091_s1 + $0x64] ss:$8 sps:$4 sm:$0xff]  }
   0x2   :  { %v1375_v1 = vld [vmem:[%s2091_s1 + $0x174] ss:$8 sps:$4 sm:$0xff]   ;;  %947 = vmatprep.subr.bf16.mxu0 %v1373_v0  ;;  %v1378_v3 = vld [vmem:[%s2091_s1 + $0x170] ss:$8 sps:$4 sm:$0xff]   ;;  %v1381_v5 = vld [vmem:[%s2091_s1 + $0x164] ss:$8 sps:$4 sm:$0xff]  }
   0x3   :  { %990 = vmatprep.subr.bf16.mxu1 %v1375_v1  ;;  %948 = vmatpush1.bf16.msra.mxu0 %v1377_v2  ;;  %v1383_v6 = vld [vmem:[%s2091_s1 + $0x60] ss:$8 sps:$4 sm:$0xff]   ;;  %v1385_v8 = vld [vmem:[%s2091_s1 + $0x54] ss:$8 sps:$4 sm:$0xff]   ;;  %v1389_v10 = vld [vmem:[%s2091_s1 + $0x50] ss:$8 sps:$4 sm:$0xff]  }
   0x4   :  { %991 = vmatpush1.bf16.msra.mxu1 %v1378_v3  ;;  %949 = vmatprep.subr.bf16.mxu0 %v1379_v4  ;;  %v1384_v7 = vld [vmem:[%s2091_s1 + $0x160] ss:$8 sps:$4 sm:$0xff]   ;;  %v1387_v9 = vld [vmem:[%s2091_s1 + $0x154] ss:$8 sps:$4 sm:$0xff]   ;;  %v1390_v11 = vld [vmem:[%s2091_s1 + $0x150] ss:$8 sps:$4 sm:$0xff]  }
   0x5   :  { %992 = vmatprep.subr.bf16.mxu1 %v1381_v5  ;;  %v1391_v12 = vld [vmem:[%s2091_s1 + $0x44] ss:$8 sps:$4 sm:$0xff]   ;;  %v1395_v14 = vld [vmem:[%s2091_s1 + $0x40] ss:$8 sps:$4 sm:$0xff]   ;;  %v1397_v16 = vld [vmem:[%s2091_s1 + $0x34] ss:$8 sps:$4 sm:$0xff]  }
   0x6   :  { %v1393_v13 = vld [vmem:[%s2091_s1 + $0x144] ss:$8 sps:$4 sm:$0xff]   ;;  %v1396_v15 = vld [vmem:[%s2091_s1 + $0x140] ss:$8 sps:$4 sm:$0xff]   ;;  %v1399_v17 = vld [vmem:[%s2091_s1 + $0x134] ss:$8 sps:$4 sm:$0xff]  }
   0x7   :  { %950 = vmatpush1.bf16.msra.mxu0 %v1383_v6  ;;  %v1401_v18 = vld [vmem:[%s2091_s1 + $0x30] ss:$8 sps:$4 sm:$0xff]   ;;  %v1403_v20 = vld [vmem:[%s2091_s1 + $0x24] ss:$8 sps:$4 sm:$0xff]   ;;  %v1407_v22 = vld [vmem:[%s2091_s1 + $0x20] ss:$8 sps:$4 sm:$0xff]  }
   0x8   :  { %993 = vmatpush1.bf16.msra.mxu1 %v1384_v7  ;;  %951 = vmatprep.subr.bf16.mxu0 %v1385_v8  ;;  %v1402_v19 = vld [vmem:[%s2091_s1 + $0x130] ss:$8 sps:$4 sm:$0xff]   ;;  %v1405_v21 = vld [vmem:[%s2091_s1 + $0x124] ss:$8 sps:$4 sm:$0xff]   ;;  %v1408_v23 = vld [vmem:[%s2091_s1 + $0x120] ss:$8 sps:$4 sm:$0xff]  }
   0x9   :  { %994 = vmatprep.subr.bf16.mxu1 %v1387_v9  ;;  %v1409_v24 = vld [vmem:[%s2091_s1 + $0x14] ss:$8 sps:$4 sm:$0xff]   ;;  %v1413_v26 = vld [vmem:[%s2091_s1 + $0x10] ss:$8 sps:$4 sm:$0xff]   ;;  %v1415_v28 = vld [vmem:[%s2091_s1 + $0x4] ss:$8 sps:$4 sm:$0xff]  }
   0xa   :  { %v1411_v25 = vld [vmem:[%s2091_s1 + $0x114] ss:$8 sps:$4 sm:$0xff]   ;;  %v1414_v27 = vld [vmem:[%s2091_s1 + $0x110] ss:$8 sps:$4 sm:$0xff]   ;;  %v1417_v29 = vld [vmem:[%s2091_s1 + $0x104] ss:$8 sps:$4 sm:$0xff]  }
   0xb   :  { %952 = vmatpush1.bf16.msra.mxu0 %v1389_v10  ;;  %v1419_v30 = vld [vmem:[%s2091_s1] ss:$8 sps:$4 sm:$0xff]   ;;  %v1421_v32 = vld [vmem:[%s2091_s1 + $0xf4] ss:$8 sps:$4 sm:$0xff]   ;;  %v1425_v34 = vld [vmem:[%s2091_s1 + $0xf0] ss:$8 sps:$4 sm:$0xff]  }
   0xc   :  { %995 = vmatpush1.bf16.msra.mxu1 %v1390_v11  ;;  %953 = vmatprep.subr.bf16.mxu0 %v1391_v12  ;;  %v1420_v31 = vld [vmem:[%s2091_s1 + $0x100] ss:$8 sps:$4 sm:$0xff]   ;;  %v1423_v33 = vld [vmem:[%s2091_s1 + $0x1f4] ss:$8 sps:$4 sm:$0xff]   ;;  %v1426_v35 = vld [vmem:[%s2091_s1 + $0x1f0] ss:$8 sps:$4 sm:$0xff]  }
   0xd   :  { %996 = vmatprep.subr.bf16.mxu1 %v1393_v13  ;;  %v1427_v36 = vld [vmem:[%s2091_s1 + $0xe4] ss:$8 sps:$4 sm:$0xff]   ;;  %v1431_v38 = vld [vmem:[%s2091_s1 + $0xe0] ss:$8 sps:$4 sm:$0xff]   ;;  %v1433_v40 = vld [vmem:[%s2091_s1 + $0xd4] ss:$8 sps:$4 sm:$0xff]  }
   0xe   :  { %v1429_v37 = vld [vmem:[%s2091_s1 + $0x1e4] ss:$8 sps:$4 sm:$0xff]   ;;  %v1432_v39 = vld [vmem:[%s2091_s1 + $0x1e0] ss:$8 sps:$4 sm:$0xff]   ;;  %v1435_v41 = vld [vmem:[%s2091_s1 + $0x1d4] ss:$8 sps:$4 sm:$0xff]  }
   0xf   :  { %954 = vmatpush1.bf16.msra.mxu0 %v1395_v14  ;;  %v1437_v42 = vld [vmem:[%s2091_s1 + $0xd0] ss:$8 sps:$4 sm:$0xff]   ;;  %v1439_v44 = vld [vmem:[%s2091_s1 + $0xc4] ss:$8 sps:$4 sm:$0xff]   ;;  %v1443_v46 = vld [vmem:[%s2091_s1 + $0xc0] ss:$8 sps:$4 sm:$0xff]  }
  0x10   :  { %997 = vmatpush1.bf16.msra.mxu1 %v1396_v15  ;;  %955 = vmatprep.subr.bf16.mxu0 %v1397_v16  ;;  %v1438_v43 = vld [vmem:[%s2091_s1 + $0x1d0] ss:$8 sps:$4 sm:$0xff]   ;;  %v1441_v45 = vld [vmem:[%s2091_s1 + $0x1c4] ss:$8 sps:$4 sm:$0xff]   ;;  %v1444_v47 = vld [vmem:[%s2091_s1 + $0x1c0] ss:$8 sps:$4 sm:$0xff]  }
  0x11   :  { %998 = vmatprep.subr.bf16.mxu1 %v1399_v17  ;;  %v1445_v48 = vld [vmem:[%s2091_s1 + $0xb4] ss:$8 sps:$4 sm:$0xff]   ;;  %v1471_v49 = vld [vmem:[%s2092_s0 + $0x4] ss:$36 sps:$4 sm:$0xff]   ;;  %v1474_v51 = vld [vmem:[%s2092_s0 + $0xc] ss:$36 sps:$4 sm:$0xff]  }
  0x12   :  { %v1447_v50 = vld [vmem:[%s2091_s1 + $0x1b4] ss:$8 sps:$4 sm:$0xff]   ;;  %979 = vmatprep.mubr.bf16.mxu0 %v1471_v49  ;;  %v1449_v52 = vld [vmem:[%s2091_s1 + $0xb0] ss:$8 sps:$4 sm:$0xff]   ;;  %1022 = vmatprep.mubr.bf16.mxu1 %v1474_v51  ;;  %v1451_v54 = vld [vmem:[%s2091_s1 + $0xa4] ss:$8 sps:$4 sm:$0xff]  }
  0x13   :  { %956 = vmatpush1.bf16.msra.mxu0 %v1401_v18  ;;  %v1450_v53 = vld [vmem:[%s2091_s1 + $0x1b0] ss:$8 sps:$4 sm:$0xff]   ;;  %v1453_v55 = vld [vmem:[%s2091_s1 + $0x1a4] ss:$8 sps:$4 sm:$0xff]   ;;  %v1455_v56 = vld [vmem:[%s2091_s1 + $0xa0] ss:$8 sps:$4 sm:$0xff]  }
  0x14   :  { %999 = vmatpush1.bf16.msra.mxu1 %v1402_v19  ;;  %957 = vmatprep.subr.bf16.mxu0 %v1403_v20  ;;  %v1456_v57 = vld [vmem:[%s2091_s1 + $0x1a0] ss:$8 sps:$4 sm:$0xff]   ;;  %v1457_v58 = vld [vmem:[%s2091_s1 + $0x94] ss:$8 sps:$4 sm:$0xff]   ;;  %v1461_v60 = vld [vmem:[%s2091_s1 + $0x90] ss:$8 sps:$4 sm:$0xff]  }
  0x15   :  { %1000 = vmatprep.subr.bf16.mxu1 %v1405_v21  ;;  %v1459_v59 = vld [vmem:[%s2091_s1 + $0x194] ss:$8 sps:$4 sm:$0xff]   ;;  %v1462_v61 = vld [vmem:[%s2091_s1 + $0x190] ss:$8 sps:$4 sm:$0xff]   ;;  %v1463_v62 = vld [vmem:[%s2091_s1 + $0x84] ss:$8 sps:$4 sm:$0xff]  }
  0x16   :  { %v1465_v63 = vld [vmem:[%s2091_s1 + $0x184] ss:$8 sps:$4 sm:$0xff]   ;;  %v1467_v0 = vld [vmem:[%s2091_s1 + $0x80] ss:$8 sps:$4 sm:$0xff]   ;;  %v1477_v2 = vld [vmem:[%s2091_s1 + $0x274] ss:$8 sps:$4 sm:$0xff]  }
  0x17   :  { %958 = vmatpush1.bf16.msra.mxu0 %v1407_v22  ;;  %v1468_v1 = vld [vmem:[%s2091_s1 + $0x180] ss:$8 sps:$4 sm:$0xff]   ;;  %v1480_v3 = vld [vmem:[%s2091_s1 + $0x374] ss:$8 sps:$4 sm:$0xff]   ;;  %v1475_v6 = vld [vmem:[%s2091_s1 + $0x270] ss:$8 sps:$4 sm:$0xff]  }
  0x18   :  { %1001 = vmatpush1.bf16.msra.mxu1 %v1408_v23  ;;  %959 = vmatprep.subr.bf16.mxu0 %v1409_v24  ;;  %v1469_v4 = vld [vmem:[%s2092_s0] ss:$36 sps:$4 sm:$0xff]   ;;  %v1472_v5 = vld [vmem:[%s2092_s0 + $0x8] ss:$36 sps:$4 sm:$0xff]   ;;  %v1478_v7 = vld [vmem:[%s2091_s1 + $0x370] ss:$8 sps:$4 sm:$0xff]  }
  0x19   :  { %1002 = vmatprep.subr.bf16.mxu1 %v1411_v25  ;;  %v1483_v8 = vld [vmem:[%s2091_s1 + $0x264] ss:$8 sps:$4 sm:$0xff]   ;;  %v1481_v10 = vld [vmem:[%s2091_s1 + $0x260] ss:$8 sps:$4 sm:$0xff]   ;;  %v1489_v12 = vld [vmem:[%s2091_s1 + $0x254] ss:$8 sps:$4 sm:$0xff]  }
  0x1a   :  { %v1486_v9 = vld [vmem:[%s2091_s1 + $0x364] ss:$8 sps:$4 sm:$0xff]   ;;  %v1484_v11 = vld [vmem:[%s2091_s1 + $0x360] ss:$8 sps:$4 sm:$0xff]   ;;  %v1492_v13 = vld [vmem:[%s2091_s1 + $0x354] ss:$8 sps:$4 sm:$0xff]  }
  0x1b   :  { %960 = vmatpush1.bf16.msra.mxu0 %v1413_v26  ;;  %v1487_v14 = vld [vmem:[%s2091_s1 + $0x250] ss:$8 sps:$4 sm:$0xff]   ;;  %v1495_v16 = vld [vmem:[%s2091_s1 + $0x244] ss:$8 sps:$4 sm:$0xff]   ;;  %v1493_v18 = vld [vmem:[%s2091_s1 + $0x240] ss:$8 sps:$4 sm:$0xff]  }
  0x1c   :  { %1003 = vmatpush1.bf16.msra.mxu1 %v1414_v27  ;;  %961 = vmatprep.subr.bf16.mxu0 %v1415_v28  ;;  %v1490_v15 = vld [vmem:[%s2091_s1 + $0x350] ss:$8 sps:$4 sm:$0xff]   ;;  %v1498_v17 = vld [vmem:[%s2091_s1 + $0x344] ss:$8 sps:$4 sm:$0xff]   ;;  %v1496_v19 = vld [vmem:[%s2091_s1 + $0x340] ss:$8 sps:$4 sm:$0xff]  }
  0x1d   :  { %1004 = vmatprep.subr.bf16.mxu1 %v1417_v29  ;;  %v1501_v20 = vld [vmem:[%s2091_s1 + $0x234] ss:$8 sps:$4 sm:$0xff]   ;;  %v1499_v22 = vld [vmem:[%s2091_s1 + $0x230] ss:$8 sps:$4 sm:$0xff]   ;;  %v1507_v24 = vld [vmem:[%s2091_s1 + $0x224] ss:$8 sps:$4 sm:$0xff]  }
  0x1e   :  { %v1504_v21 = vld [vmem:[%s2091_s1 + $0x334] ss:$8 sps:$4 sm:$0xff]   ;;  %v1502_v23 = vld [vmem:[%s2091_s1 + $0x330] ss:$8 sps:$4 sm:$0xff]   ;;  %v1510_v25 = vld [vmem:[%s2091_s1 + $0x324] ss:$8 sps:$4 sm:$0xff]  }
  0x1f   :  { %962 = vmatpush1.bf16.msra.mxu0 %v1419_v30  ;;  %v1505_v26 = vld [vmem:[%s2091_s1 + $0x220] ss:$8 sps:$4 sm:$0xff]   ;;  %v1513_v28 = vld [vmem:[%s2091_s1 + $0x214] ss:$8 sps:$4 sm:$0xff]   ;;  %v1511_v30 = vld [vmem:[%s2091_s1 + $0x210] ss:$8 sps:$4 sm:$0xff]  }
  0x20   :  { %1005 = vmatpush1.bf16.msra.mxu1 %v1420_v31  ;;  %963 = vmatprep.subr.bf16.mxu0 %v1421_v32  ;;  %v1508_v27 = vld [vmem:[%s2091_s1 + $0x320] ss:$8 sps:$4 sm:$0xff]   ;;  %v1516_v29 = vld [vmem:[%s2091_s1 + $0x314] ss:$8 sps:$4 sm:$0xff]   ;;  %v1514_v31 = vld [vmem:[%s2091_s1 + $0x310] ss:$8 sps:$4 sm:$0xff]  }
  0x21   :  { %1006 = vmatprep.subr.bf16.mxu1 %v1423_v33  ;;  %v1519_v32 = vld [vmem:[%s2091_s1 + $0x204] ss:$8 sps:$4 sm:$0xff]   ;;  %v1538_v49 = vld [vmem:[%s2091_s1 + $0x3d0] ss:$8 sps:$4 sm:$0xff]  }
  0x22   :  { %v1522_v33 = vld [vmem:[%s2091_s1 + $0x304] ss:$8 sps:$4 sm:$0xff]  }
  0x23   :  { %964 = vmatpush2.bf16.msra.mxu0 %v1425_v34  ;;  %v1573_v34 = vld [vmem:[%s2092_s0 + $0x14] ss:$36 sps:$4 sm:$0xff]   ;;  %v1546_v51 = vld [vmem:[%s2091_s1 + $0x3c4] ss:$8 sps:$4 sm:$0xff]  }
  0x24   :  { %1007 = vmatpush2.bf16.msra.mxu1 %v1426_v35  ;;  %965 = vmatprep.subr.bf16.mxu0 %v1427_v36  ;;  %v1517_v35 = vld [vmem:[%s2091_s1 + $0x200] ss:$8 sps:$4 sm:$0xff]  }
  0x25   :  { %1008 = vmatprep.subr.bf16.mxu1 %v1429_v37  ;;  %v1520_v36 = vld [vmem:[%s2091_s1 + $0x300] ss:$8 sps:$4 sm:$0xff]  }
  0x26   :  { %v1579_v37 = vld [vmem:[%s2092_s0 + $0x1c] ss:$36 sps:$4 sm:$0xff]  }
  0x27   :  { %966 = vmatpush2.bf16.msra.mxu0 %v1431_v38  ;;  %v1525_v38 = vld [vmem:[%s2091_s1 + $0x2f4] ss:$8 sps:$4 sm:$0xff]  }
  0x28   :  { %1009 = vmatpush2.bf16.msra.mxu1 %v1432_v39  ;;  %967 = vmatprep.subr.bf16.mxu0 %v1433_v40  ;;  %v1528_v39 = vld [vmem:[%s2091_s1 + $0x3f4] ss:$8 sps:$4 sm:$0xff]   ;;  %v1523_v40 = vld [vmem:[%s2091_s1 + $0x2f0] ss:$8 sps:$4 sm:$0xff]  }
  0x29   :  { %1010 = vmatprep.subr.bf16.mxu1 %v1435_v41  ;;  %v1526_v41 = vld [vmem:[%s2091_s1 + $0x3f0] ss:$8 sps:$4 sm:$0xff]  }
  0x2b   :  { %968 = vmatpush2.bf16.msra.mxu0 %v1437_v42  ;;  %v1531_v42 = vld [vmem:[%s2091_s1 + $0x2e4] ss:$8 sps:$4 sm:$0xff]  }
  0x2c   :  { %1011 = vmatpush2.bf16.msra.mxu1 %v1438_v43  ;;  %969 = vmatprep.subr.bf16.mxu0 %v1439_v44  ;;  %v1534_v43 = vld [vmem:[%s2091_s1 + $0x3e4] ss:$8 sps:$4 sm:$0xff]   ;;  %v1529_v44 = vld [vmem:[%s2091_s1 + $0x2e0] ss:$8 sps:$4 sm:$0xff]  }
  0x2d   :  { %1012 = vmatprep.subr.bf16.mxu1 %v1441_v45  ;;  %v1532_v45 = vld [vmem:[%s2091_s1 + $0x3e0] ss:$8 sps:$4 sm:$0xff]  }
  0x2f   :  { %970 = vmatpush2.bf16.msra.mxu0 %v1443_v46  ;;  %v1537_v46 = vld [vmem:[%s2091_s1 + $0x2d4] ss:$8 sps:$4 sm:$0xff]  }
  0x30   :  { %1013 = vmatpush2.bf16.msra.mxu1 %v1444_v47  ;;  %971 = vmatprep.subr.bf16.mxu0 %v1445_v48  ;;  %v1540_v47 = vld [vmem:[%s2091_s1 + $0x3d4] ss:$8 sps:$4 sm:$0xff]   ;;  %v1535_v48 = vld [vmem:[%s2091_s1 + $0x2d0] ss:$8 sps:$4 sm:$0xff]  }
  0x31   :  { %1014 = vmatprep.subr.bf16.mxu1 %v1447_v50  ;;  %v1543_v50 = vld [vmem:[%s2091_s1 + $0x2c4] ss:$8 sps:$4 sm:$0xff]  }
  0x33   :  { %972 = vmatpush2.bf16.msra.mxu0 %v1449_v52  ;;  %v1541_v52 = vld [vmem:[%s2091_s1 + $0x2c0] ss:$8 sps:$4 sm:$0xff]  }
  0x34   :  { %1015 = vmatpush2.bf16.msra.mxu1 %v1450_v53  ;;  %973 = vmatprep.subr.bf16.mxu0 %v1451_v54  ;;  %v1544_v53 = vld [vmem:[%s2091_s1 + $0x3c0] ss:$8 sps:$4 sm:$0xff]   ;;  %v1549_v54 = vld [vmem:[%s2091_s1 + $0x2b4] ss:$8 sps:$4 sm:$0xff]  }
  0x35   :  { %1016 = vmatprep.subr.bf16.mxu1 %v1453_v55  ;;  %v1552_v55 = vld [vmem:[%s2091_s1 + $0x3b4] ss:$8 sps:$4 sm:$0xff]  }
  0x37   :  { %974 = vmatpush2.bf16.msra.mxu0 %v1455_v56  ;;  %v1547_v56 = vld [vmem:[%s2091_s1 + $0x2b0] ss:$8 sps:$4 sm:$0xff]  }
  0x38   :  { %1017 = vmatpush2.bf16.msra.mxu1 %v1456_v57  ;;  %975 = vmatprep.subr.bf16.mxu0 %v1457_v58  ;;  %v1550_v57 = vld [vmem:[%s2091_s1 + $0x3b0] ss:$8 sps:$4 sm:$0xff]   ;;  %v1555_v58 = vld [vmem:[%s2091_s1 + $0x2a4] ss:$8 sps:$4 sm:$0xff]  }
  0x39   :  { %1018 = vmatprep.subr.bf16.mxu1 %v1459_v59  ;;  %v1558_v59 = vld [vmem:[%s2091_s1 + $0x3a4] ss:$8 sps:$4 sm:$0xff]  }
  0x3b   :  { %976 = vmatpush2.bf16.msra.mxu0 %v1461_v60  ;;  %v1553_v60 = vld [vmem:[%s2091_s1 + $0x2a0] ss:$8 sps:$4 sm:$0xff]  }
  0x3c   :  { %1019 = vmatpush2.bf16.msra.mxu1 %v1462_v61  ;;  %977 = vmatprep.subr.bf16.mxu0 %v1463_v62  ;;  %v1556_v61 = vld [vmem:[%s2091_s1 + $0x3a0] ss:$8 sps:$4 sm:$0xff]   ;;  %v1561_v62 = vld [vmem:[%s2091_s1 + $0x294] ss:$8 sps:$4 sm:$0xff]  }
  0x3d   :  { %1020 = vmatprep.subr.bf16.mxu1 %v1465_v63  ;;  %v1564_v63 = vld [vmem:[%s2091_s1 + $0x394] ss:$8 sps:$4 sm:$0xff]  }
  0x3f   :  { %978 = vmatpush2.bf16.msra.mxu0 %v1467_v0  ;;  %v1559_v0 = vld [vmem:[%s2091_s1 + $0x290] ss:$8 sps:$4 sm:$0xff]  }
  0x40   :  { %1021 = vmatpush2.bf16.msra.mxu1 %v1468_v1  ;;  %1033 = vmatprep.subr.bf16.mxu0 %v1477_v2  ;;  %v1562_v1 = vld [vmem:[%s2091_s1 + $0x390] ss:$8 sps:$4 sm:$0xff]   ;;  %v1567_v2 = vld [vmem:[%s2091_s1 + $0x284] ss:$8 sps:$4 sm:$0xff]  }
  0x41   :  { %1076 = vmatprep.subr.bf16.mxu1 %v1480_v3  ;;  %v1570_v3 = vld [vmem:[%s2091_s1 + $0x384] ss:$8 sps:$4 sm:$0xff]  }
  0x42   :  { %980 = vmatmul.mubr.bf16.vlgmr.msra.gmra.mxu0 %v1469_v4  ;;  %v1565_v4 = vld [vmem:[%s2091_s1 + $0x280] ss:$8 sps:$4 sm:$0xff]  }
  0x43   :  { %1023 = vmatmul.mubr.bf16.vlgmr.msra.gmra.mxu1 %v1472_v5  ;;  %1034 = vmatpush1.bf16.msra.mxu0 %v1475_v6  ;;  %v1568_v5 = vld [vmem:[%s2091_s1 + $0x380] ss:$8 sps:$4 sm:$0xff]   ;;  %v1576_v6 = vld [vmem:[%s2091_s1 + $0x474] ss:$8 sps:$4 sm:$0xff]  }
  0x44   :  { %1077 = vmatpush1.bf16.msra.mxu1 %v1478_v7  ;;  %1035 = vmatprep.subr.bf16.mxu0 %v1483_v8  ;;  %v1571_v7 = vld [vmem:[%s2092_s0 + $0x10] ss:$36 sps:$4 sm:$0xff]   ;;  %v1577_v8 = vld [vmem:[%s2092_s0 + $0x18] ss:$36 sps:$4 sm:$0xff]  }
  0x45   :  { %1078 = vmatprep.subr.bf16.mxu1 %v1486_v9  ;;  %1065 = vmatprep.mubr.bf16.mxu0 %v1573_v34  ;;  %v1574_v9 = vld [vmem:[%s2091_s1 + $0x470] ss:$8 sps:$4 sm:$0xff]   ;;  %v1179_v34 = vlaneseq }
  0x46   :  { %1108 = vmatprep.mubr.bf16.mxu1 %v1579_v37 }
  0x47   :  { %1036 = vmatpush1.bf16.msra.mxu0 %v1481_v10  ;;  %v1582_v10 = vld [vmem:[%s2091_s1 + $0x464] ss:$8 sps:$4 sm:$0xff]  }
  0x48   :  { %1079 = vmatpush1.bf16.msra.mxu1 %v1484_v11  ;;  %1037 = vmatprep.subr.bf16.mxu0 %v1489_v12  ;;  %v1580_v11 = vld [vmem:[%s2091_s1 + $0x460] ss:$8 sps:$4 sm:$0xff]   ;;  %v1602_v12 = vmov 0  }
  0x49   :  { %1080 = vmatprep.subr.bf16.mxu1 %v1492_v13  ;;  %v1585_v13 = vld [vmem:[%s2091_s1 + $0x454] ss:$8 sps:$4 sm:$0xff]  }
  0x4b   :  { %1038 = vmatpush1.bf16.msra.mxu0 %v1487_v14  ;;  %v1583_v14 = vld [vmem:[%s2091_s1 + $0x450] ss:$8 sps:$4 sm:$0xff]  }
  0x4c   :  { %1081 = vmatpush1.bf16.msra.mxu1 %v1490_v15  ;;  %1039 = vmatprep.subr.bf16.mxu0 %v1495_v16  ;;  %v1588_v15 = vld [vmem:[%s2091_s1 + $0x444] ss:$8 sps:$4 sm:$0xff]   ;;  %v1586_v16 = vld [vmem:[%s2091_s1 + $0x440] ss:$8 sps:$4 sm:$0xff]  }
  0x4d   :  { %1082 = vmatprep.subr.bf16.mxu1 %v1498_v17  ;;  %v1591_v17 = vld [vmem:[%s2091_s1 + $0x434] ss:$8 sps:$4 sm:$0xff]  }
  0x4f   :  { %1040 = vmatpush1.bf16.msra.mxu0 %v1493_v18  ;;  %v1589_v18 = vld [vmem:[%s2091_s1 + $0x430] ss:$8 sps:$4 sm:$0xff]  }
  0x50   :  { %1083 = vmatpush1.bf16.msra.mxu1 %v1496_v19  ;;  %1041 = vmatprep.subr.bf16.mxu0 %v1501_v20  ;;  %v1594_v19 = vld [vmem:[%s2091_s1 + $0x424] ss:$8 sps:$4 sm:$0xff]   ;;  %v1592_v20 = vld [vmem:[%s2091_s1 + $0x420] ss:$8 sps:$4 sm:$0xff]  }
  0x51   :  { %1084 = vmatprep.subr.bf16.mxu1 %v1504_v21  ;;  %v1597_v21 = vld [vmem:[%s2091_s1 + $0x414] ss:$8 sps:$4 sm:$0xff]  }
  0x53   :  { %1042 = vmatpush1.bf16.msra.mxu0 %v1499_v22  ;;  %v1595_v22 = vld [vmem:[%s2091_s1 + $0x410] ss:$8 sps:$4 sm:$0xff]  }
  0x54   :  { %1085 = vmatpush1.bf16.msra.mxu1 %v1502_v23  ;;  %1043 = vmatprep.subr.bf16.mxu0 %v1507_v24  ;;  %v1600_v23 = vld [vmem:[%s2091_s1 + $0x404] ss:$8 sps:$4 sm:$0xff]   ;;  %v1598_v24 = vld [vmem:[%s2091_s1 + $0x400] ss:$8 sps:$4 sm:$0xff]  }
  0x55   :  { %1086 = vmatprep.subr.bf16.mxu1 %v1510_v25  ;;  %v1601_v25 = vld [vmem:[%s2092_s0 + $0x20] ss:$36 sps:$4 sm:$0xff]  }
  0x57   :  { %1044 = vmatpush1.bf16.msra.mxu0 %v1505_v26 }
  0x58   :  { %1087 = vmatpush1.bf16.msra.mxu1 %v1508_v27  ;;  %1045 = vmatprep.subr.bf16.mxu0 %v1513_v28 }
  0x59   :  { %1088 = vmatprep.subr.bf16.mxu1 %v1516_v29 }
  0x5b   :  { %1046 = vmatpush1.bf16.msra.mxu0 %v1511_v30 }
  0x5c   :  { %1089 = vmatpush1.bf16.msra.mxu1 %v1514_v31  ;;  %1047 = vmatprep.subr.bf16.mxu0 %v1519_v32 }
  0x5d   :  { %1090 = vmatprep.subr.bf16.mxu1 %v1522_v33 }
  0x5f   :  { %1048 = vmatpush1.bf16.msra.mxu0 %v1517_v35 }
  0x60   :  { %1091 = vmatpush1.bf16.msra.mxu1 %v1520_v36  ;;  %1049 = vmatprep.subr.bf16.mxu0 %v1525_v38  ;;  %v1180_v38 = vshrl.u32 %v1179_v34, 7 }
  0x61   :  { %1092 = vmatprep.subr.bf16.mxu1 %v1528_v39 }
  0x63   :  { %1050 = vmatpush2.bf16.msra.mxu0 %v1523_v40 }
  0x64   :  { %1093 = vmatpush2.bf16.msra.mxu1 %v1526_v41  ;;  %1051 = vmatprep.subr.bf16.mxu0 %v1531_v42 }
  0x65   :  { %1094 = vmatprep.subr.bf16.mxu1 %v1534_v43 }
  0x67   :  { %1052 = vmatpush2.bf16.msra.mxu0 %v1529_v44  ;;  %v1181_v44 = vsub.s32 0, %v1180_v38 }
  0x68   :  { %1095 = vmatpush2.bf16.msra.mxu1 %v1532_v45  ;;  %1053 = vmatprep.subr.bf16.mxu0 %v1537_v46  ;;  %v1177_v45 = vld [vmem:[%s2093_s2] sm:$0x3] }
  0x69   :  { %1096 = vmatprep.subr.bf16.mxu1 %v1540_v47 }
  0x6b   :  { %1054 = vmatpush2.bf16.msra.mxu0 %v1535_v48  ;;  %v1185_v48 = vsub.s32 1, %v1180_v38 }
  0x6c   :  { %1097 = vmatpush2.bf16.msra.mxu1 %v1538_v49  ;;  %1055 = vmatprep.subr.bf16.mxu0 %v1543_v50 }
  0x6d   :  { %1098 = vmatprep.subr.bf16.mxu1 %v1546_v51 }
  0x6f   :  { %1056 = vmatpush2.bf16.msra.mxu0 %v1541_v52 }
  0x70   :  { %1099 = vmatpush2.bf16.msra.mxu1 %v1544_v53  ;;  %1057 = vmatprep.subr.bf16.mxu0 %v1549_v54  ;;  %v1182_v54 = vrot.slane %v1177_v45, %v1181_v44 }
  0x71   :  { %1100 = vmatprep.subr.bf16.mxu1 %v1552_v55 }
  0x73   :  { %1058 = vmatpush2.bf16.msra.mxu0 %v1547_v56 }
  0x74   :  { %1101 = vmatpush2.bf16.msra.mxu1 %v1550_v57  ;;  %1059 = vmatprep.subr.bf16.mxu0 %v1555_v58 }
  0x75   :  { %1102 = vmatprep.subr.bf16.mxu1 %v1558_v59  ;;  %v1186_v59 = vrot.slane %v1177_v45, %v1185_v48 }
  0x77   :  { %1060 = vmatpush2.bf16.msra.mxu0 %v1553_v60 }
  0x78   :  { %1103 = vmatpush2.bf16.msra.mxu1 %v1556_v61  ;;  %1061 = vmatprep.subr.bf16.mxu0 %v1561_v62 }
  0x79   :  { %1104 = vmatprep.subr.bf16.mxu1 %v1564_v63 }
  0x7b   :  { %1062 = vmatpush2.bf16.msra.mxu0 %v1559_v0 }
  0x7c   :  { %1105 = vmatpush2.bf16.msra.mxu1 %v1562_v1  ;;  %1063 = vmatprep.subr.bf16.mxu0 %v1567_v2 }
  0x7d   :  { %1106 = vmatprep.subr.bf16.mxu1 %v1570_v3 }
  0x7f   :  { %1064 = vmatpush2.bf16.msra.mxu0 %v1565_v4 }
  0x80   :  { %1107 = vmatpush2.bf16.msra.mxu1 %v1568_v5  ;;  %1119 = vmatprep.subr.bf16.mxu0 %v1576_v6 }
  0x82   :  { %1066 = vmatmul.mubr.bf16.vlgmr.msra.gmra.mxu0 %v1571_v7 }
  0x83   :  { %1109 = vmatmul.mubr.bf16.vlgmr.msra.gmra.mxu1 %v1577_v8  ;;  %1120 = vmatpush1.bf16.msra.mxu0 %v1574_v9 }
  0x84   :  { %1151 = vmatprep.mubr.bf16.mxu0 %v1602_v12  ;;  %1121 = vmatprep.subr.bf16.mxu0 %v1582_v10 }
  0x87   :  { %1122 = vmatpush1.bf16.msra.mxu0 %v1580_v11 }
  0x88   :  { %1123 = vmatprep.subr.bf16.mxu0 %v1585_v13 }
  0x8b   :  { %1124 = vmatpush1.bf16.msra.mxu0 %v1583_v14 }
  0x8c   :  { %1125 = vmatprep.subr.bf16.mxu0 %v1588_v15 }
  0x8f   :  { %1126 = vmatpush1.bf16.msra.mxu0 %v1586_v16 }
  0x90   :  { %1127 = vmatprep.subr.bf16.mxu0 %v1591_v17 }
  0x93   :  { %1128 = vmatpush1.bf16.msra.mxu0 %v1589_v18 }
  0x94   :  { %1129 = vmatprep.subr.bf16.mxu0 %v1594_v19 }
  0x97   :  { %1130 = vmatpush1.bf16.msra.mxu0 %v1592_v20 }
  0x98   :  { %1131 = vmatprep.subr.bf16.mxu0 %v1597_v21 }
  0x9b   :  { %1132 = vmatpush1.bf16.msra.mxu0 %v1595_v22 }
  0x9c   :  { %1133 = vmatprep.subr.bf16.mxu0 %v1600_v23 }
  0x9f   :  { %1134 = vmatpush1.bf16.msra.mxu0 %v1598_v24 }
  0xa2   :  { %1152 = vmatmul.mubr.bf16.vlgmr.msra.gmra.mxu0 %v1601_v25 }
 0x102   :  { %v981_v26 = vpop.f32.mrf.mxu0 }
 0x103   :  { %v1024_v27 = vpop.f32.mrf.mxu1 }
 0x104   :  { %v983_v28 = vpop.f32.mrf.mxu0  ;;  %v1025_v39 = vadd.f32 %v1024_v27, %v981_v26 }
 0x105   :  { %v1026_v29 = vpop.f32.mrf.mxu1 }
 0x106   :  { %v985_v30 = vpop.f32.mrf.mxu0  ;;  %v1027_v42 = vadd.f32 %v1026_v29, %v983_v28 }
 0x107   :  { %v1028_v31 = vpop.f32.mrf.mxu1 }
 0x108   :  { %v987_v32 = vpop.f32.mrf.mxu0  ;;  %v1029_v46 = vadd.f32 %v1028_v31, %v985_v30 }
 0x109   :  { %v1030_v35 = vpop.f32.mrf.mxu1 }
 0x10a   :  { %v1031_v51 = vadd.f32 %v1030_v35, %v987_v32 }
 0x142   :  { %v1067_v33 = vpop.f32.mrf.mxu0 }
 0x143   :  { %v1110_v37 = vpop.f32.mrf.mxu1  ;;  %v1068_v43 = vadd.f32 %v1067_v33, %v1025_v39 }
 0x144   :  { %v1069_v36 = vpop.f32.mrf.mxu0 }
 0x145   :  { %v1112_v41 = vpop.f32.mrf.mxu1  ;;  %v1070_v47 = vadd.f32 %v1069_v36, %v1027_v42  ;;  %v1111_v52 = vadd.f32 %v1110_v37, %v1068_v43 }
 0x146   :  { %v1071_v40 = vpop.f32.mrf.mxu0 }
 0x147   :  { %v1114_v50 = vpop.f32.mrf.mxu1  ;;  %v1072_v53 = vadd.f32 %v1071_v40, %v1029_v46  ;;  %v1113_v56 = vadd.f32 %v1112_v41, %v1070_v47 }
 0x148   :  { %v1073_v49 = vpop.f32.mrf.mxu0 }
 0x149   :  { %v1074_v57 = vadd.f32 %v1073_v49, %v1031_v51  ;;  %v1116_v60 = vpop.f32.mrf.mxu1  ;;  %v1115_v62 = vadd.f32 %v1114_v50, %v1072_v53 }
 0x14b   :  { %v1117_v2 = vadd.f32 %v1116_v60, %v1074_v57 }
 0x162   :  { %v1153_v55 = vpop.f32.mrf.mxu0 }
 0x163   :  { %v1154_v58 = vadd.f32 %v1153_v55, %v1111_v52 }
 0x164   :  { %v1155_v61 = vpop.f32.mrf.mxu0 }
 0x165   :  { %v1189_v63 = vadd.f32 %v1182_v54, %v1154_v58  ;;  %v1156_v0 = vadd.f32 %v1155_v61, %v1113_v56 }
 0x166   :  { %v1157_v1 = vpop.f32.mrf.mxu0 }
 0x167   :  { %v1190_v3 = vadd.f32 %v1186_v59, %v1156_v0  ;;  %v1158_v4 = vadd.f32 %v1157_v1, %v1115_v62  ;;  %v1193_v6 = vmax.f32 %v1189_v63, 0.0 }
 0x168   :  { %v1159_v5 = vpop.f32.mrf.mxu0 }
 0x169   :  { %v1194_v7 = vmax.f32 %v1190_v3, 0.0  ;;  %v1191_v8 = vadd.f32 %v1182_v54, %v1158_v4  ;;  %v1160_v9 = vadd.f32 %v1159_v5, %v1117_v2 }
 0x16b   :  { %v1370_v10 = vpack.c.bf16 %v1194_v7, %v1193_v6  ;;  %v1192_v11 = vadd.f32 %v1186_v59, %v1160_v9  ;;  %v1195_v12 = vmax.f32 %v1191_v8, 0.0 }
 0x16d   :  { %1209 = vst [vmem:[%s2094_s3] sm:$0xff] %v1370_v10  ;;  %v1196_v13 = vmax.f32 %v1192_v11, 0.0 }
 0x16f   :  { %v1371_v14 = vpack.c.bf16 %v1196_v13, %v1195_v12 }
 0x171   :  { %1210 = vst [vmem:[%s2094_s3 + $0x8] sm:$0xff] %v1371_v14 }

// kernel: starting_network_forward.35
= control target key start
LH: loop header
LB: loop body
LE: loop exit
PB: predicated region body
PF: predicated region fallthrough
CT: control target
= control target key end

     0   :  { %v270_v1 = vmov 0   ;;  %v191_v18 = vlaneseq  ;;  %s351_s1 = inlined_call_operand.vmem [shape: bf16[128,256], index: 1, kind: input, shape index: {}]   ;;  %s352_s0 = inlined_call_operand.vmem [shape: bf16[16,128], index: 0, kind: input, shape index: {}]   ;;  %s353_s2 = inlined_call_operand.vmem [shape: f32[1,256], index: 2, kind: input, shape index: {}]   ;;  %s354_s3 = inlined_call_operand.vmem [shape: bf16[16,256], index: 3, kind: output, shape index: {}]  }
   0x1   :  { %v245_v0 = vld [vmem:[%s351_s1 + $0x74] ss:$8 sps:$4 sm:$0xff]   ;;  %163 = vmatprep.mubr.bf16.mxu0 %v270_v1  ;;  %v247_v2 = vld [vmem:[%s351_s1 + $0x70] ss:$8 sps:$4 sm:$0xff]   ;;  %v248_v3 = vld [vmem:[%s351_s1 + $0x64] ss:$8 sps:$4 sm:$0xff]  }
   0x2   :  { %131 = vmatprep.subr.bf16.mxu0 %v245_v0  ;;  %v250_v4 = vld [vmem:[%s351_s1 + $0x60] ss:$8 sps:$4 sm:$0xff]   ;;  %v251_v5 = vld [vmem:[%s351_s1 + $0x54] ss:$8 sps:$4 sm:$0xff]   ;;  %v253_v6 = vld [vmem:[%s351_s1 + $0x50] ss:$8 sps:$4 sm:$0xff]  }
   0x3   :  { %132 = vmatpush1.bf16.msra.mxu0 %v247_v2  ;;  %v254_v7 = vld [vmem:[%s351_s1 + $0x44] ss:$8 sps:$4 sm:$0xff]   ;;  %v256_v8 = vld [vmem:[%s351_s1 + $0x40] ss:$8 sps:$4 sm:$0xff]   ;;  %v257_v9 = vld [vmem:[%s351_s1 + $0x34] ss:$8 sps:$4 sm:$0xff]  }
   0x4   :  { %133 = vmatprep.subr.bf16.mxu0 %v248_v3  ;;  %v259_v10 = vld [vmem:[%s351_s1 + $0x30] ss:$8 sps:$4 sm:$0xff]   ;;  %v260_v11 = vld [vmem:[%s351_s1 + $0x24] ss:$8 sps:$4 sm:$0xff]   ;;  %v262_v12 = vld [vmem:[%s351_s1 + $0x20] ss:$8 sps:$4 sm:$0xff]  }
   0x5   :  { %v263_v13 = vld [vmem:[%s351_s1 + $0x14] ss:$8 sps:$4 sm:$0xff]   ;;  %v265_v14 = vld [vmem:[%s351_s1 + $0x10] ss:$8 sps:$4 sm:$0xff]   ;;  %v266_v15 = vld [vmem:[%s351_s1 + $0x4] ss:$8 sps:$4 sm:$0xff]  }
   0x6   :  { %v268_v16 = vld [vmem:[%s351_s1] ss:$8 sps:$4 sm:$0xff]   ;;  %v192_v19 = vshrl.u32 %v191_v18, 7 }
   0x7   :  { %134 = vmatpush1.bf16.msra.mxu0 %v250_v4  ;;  %v269_v17 = vld [vmem:[%s352_s0] sm:$0xff]  }
   0x8   :  { %135 = vmatprep.subr.bf16.mxu0 %v251_v5  ;;  %v193_v20 = vsub.s32 0, %v192_v19  ;;  %v197_v21 = vsub.s32 1, %v192_v19  ;;  %v189_v22 = vld [vmem:[%s353_s2] sm:$0x3] }
   0xa   :  { %v194_v23 = vrot.slane %v189_v22, %v193_v20  ;;  %v198_v24 = vrot.slane %v189_v22, %v197_v21 }
   0xb   :  { %136 = vmatpush1.bf16.msra.mxu0 %v253_v6 }
   0xc   :  { %137 = vmatprep.subr.bf16.mxu0 %v254_v7 }
   0xf   :  { %138 = vmatpush1.bf16.msra.mxu0 %v256_v8 }
  0x10   :  { %139 = vmatprep.subr.bf16.mxu0 %v257_v9 }
  0x13   :  { %140 = vmatpush1.bf16.msra.mxu0 %v259_v10 }
  0x14   :  { %141 = vmatprep.subr.bf16.mxu0 %v260_v11 }
  0x17   :  { %142 = vmatpush1.bf16.msra.mxu0 %v262_v12 }
  0x18   :  { %143 = vmatprep.subr.bf16.mxu0 %v263_v13 }
  0x1b   :  { %144 = vmatpush1.bf16.msra.mxu0 %v265_v14 }
  0x1c   :  { %145 = vmatprep.subr.bf16.mxu0 %v266_v15 }
  0x1f   :  { %146 = vmatpush1.bf16.msra.mxu0 %v268_v16 }
  0x22   :  { %164 = vmatmul.mubr.bf16.vlgmr.msra.gmra.mxu0 %v269_v17 }
  0xe2   :  { %v165_v25 = vpop.f32.mrf.mxu0 }
  0xe3   :  { %v201_v27 = vadd.f32 %v194_v23, %v165_v25 }
  0xe4   :  { %v167_v26 = vpop.f32.mrf.mxu0 }
  0xe5   :  { %v202_v28 = vadd.f32 %v198_v24, %v167_v26 }
  0xe6   :  { %v169_v29 = vpop.f32.mrf.mxu0 }
  0xe7   :  { %v242_v30 = vpack.c.bf16 %v202_v28, %v201_v27  ;;  %v203_v32 = vadd.f32 %v194_v23, %v169_v29 }
  0xe8   :  { %v171_v31 = vpop.f32.mrf.mxu0 }
  0xe9   :  { %217 = vst [vmem:[%s354_s3] sm:$0xff] %v242_v30  ;;  %v204_v33 = vadd.f32 %v198_v24, %v171_v31 }
  0xeb   :  { %v243_v34 = vpack.c.bf16 %v204_v33, %v203_v32 }
  0xed   :  { %218 = vst [vmem:[%s354_s3 + $0x8] sm:$0xff] %v243_v34 }

// kernel: starting_network_forward.36
= control target key start
LH: loop header
LB: loop body
LE: loop exit
PB: predicated region body
PF: predicated region fallthrough
CT: control target
= control target key end

     0   :  { %s1253_s15 = smov 0   ;;  %s1255_s16 = smov 0   ;;  %s1390_s0 = inlined_call_operand.vmem [shape: bf16[16,2304], index: 0, kind: input, shape index: {}]   ;;  %s1391_s1 = inlined_call_operand.vmem [shape: bf16[2304,256], index: 1, kind: input, shape index: {}]   ;;  %s1392_s2 = inlined_call_operand.vmem [shape: f32[1,256], index: 2, kind: input, shape index: {}]   ;;  %s1393_s3 = inlined_call_operand.vmem [shape: bf16[16,256], index: 3, kind: input, shape index: {}]   ;;  %s1394_s4 = inlined_call_operand.vmem [shape: bf16[16,256], index: 4, kind: output, shape index: {}]  }
   0x1   :  { %s1257_s17 = smov 0   ;;  %s1259_s18 = smov 0  }
   0x2   :  { %s1261_s19 = smov 0  }
   0x3 LB: > { %s26_s20 = sadd.s32 1, %s1220_s18  ;;  %p49_p1 = scmp.ne.s32.totalorder %s1212_s16, %s1208_s15  ;;  %s1224_s19 = sphi %s1261_s19, %s14_s19   ;;  %s1220_s18 = sphi %s1259_s18, %s1398_s18   ;;  %s1216_s17 = sphi %s1257_s17, %s1397_s17   ;;  %s1212_s16 = sphi %s1255_s16, %s1396_s16   ;;  %s1208_s15 = sphi %s1253_s15, %s1395_s15  }
   0x4   : > { %p27_p0 = scmp.ge.s32.totalorder %s26_s20, 6  ;;  %p50_p2 = scmp.eq.s32.totalorder %s1224_s19, 0 }
   0x5   : > { %s42_s22 = sadd.s32 1, %s1212_s16  ;;  %p994_p5 = scmp.ge.s32.totalorder %s1224_s19, 6 }
   0x6   : > { %s1400_s20 = smov (%p27_p0, %s26_s20), 0  ;;  %p51_p3 = por %p50_p2, %p49_p1 }
   0x7   : > { %s38_s21 = ssub.s32 %s1220_s18, %s1400_s20  ;;  %208 = sbr.rel (%p994_p5) target bundleno = 19 (0x13), region = 24 }
   0x8   : > { %p40_p4 = scmp.eq.s32.totalorder %s38_s21, 0 }
   0xa   : > { %s1288_s23 = scalar_select %p40_p4, %s1212_s16, %s42_s22  }
   0xc   : > { %211 = sbr.rel (!%p51_p3) target bundleno = 19 (0x13), region = 28  ;;  %s213_s24 = sand.u32 (%p51_p3), 1, %s1212_s16  }
   0xd   : > { %s1062_s25 = smul.u32 (%p51_p3), 12, %s1220_s18 }
   0xe   : > { %s1066_s26 = smul.u32 (%p51_p3), 24, %s213_s24 }
   0xf   : > { %s221_s29 = scalar_lea.vmem (%p51_p3), %s1390_s0, %s1062_s25 }
  0x10   : > { %v236_v0 = vld [vmem:[%s221_s29] sm:$0xff] (%p51_p3)  ;;  %v238_v1 = vld [vmem:[%s221_s29 + $0x48] sm:$0xff] (%p51_p3)  ;;  %s215_s30 = scalar_lea.vmem (%p51_p3), [#allocation3], %s1066_s26  ;;  %v998_v3 = vld [vmem:[%s221_s29 + $0x50] sm:$0xf] (%p51_p3) }
  0x11   : > { %v996_v2 = vld [vmem:[%s221_s29 + $0x8] sm:$0xf]  ;;  %237 = vst [vmem:[%s215_s30] sm:$0xff] %v236_v0  ;;  %239 = vst [vmem:[%s215_s30 + $0xc] sm:$0xff] %v238_v1 }
  0x12   : > { %997 = vst [vmem:[%s215_s30 + $0x8] sm:$0xf] %v996_v2  ;;  %999 = vst [vmem:[%s215_s30 + $0x14] sm:$0xf] %v998_v3 }
  0x13 PF: > { %p1000_p6 = scmp.ge.s32.totalorder %s1224_s19, 1  ;;  %p271_p7 = scmp.lt.s32.totalorder %s1224_s19, 7 }
  0x15   : > { %p272_p8 = pnand %p1000_p6, %p271_p7 }
  0x16   : > { %s278_s5 = sand.u32 (!%p272_p8), 1, %s1208_s15   ;;  %s334_s6 = smul.u32 (!%p272_p8), 48, %s1216_s17 }
  0x17   : > { %275 = sbr.rel (%p272_p8) target bundleno = 322 (0x142), region = 58  ;;  %p1003_p10 = scmp.ne.s32.totalorder (!%p272_p8), %s1216_s17, 0 }
  0x18   : > { %s1067_s7 = smul.u32 (!%p272_p8), 24, %s278_s5  ;;  %p336_p9 = scmp.lt.s32.totalorder (!%p272_p8), %s334_s6, 287 }
  0x1a   : > { %s1305_s12 = scalar_lea.vmem (!%p272_p8), [#allocation3], %s1067_s7 }
  0x1c   : > { %s1402_s6 = smov (!%p336_p9, %s334_s6), 287  ;;  %379 = sbr.rel (%p1003_p10) target bundleno = 36 (0x24), region = 66 }
  0x1d   : > { %s1063_s8 = sshll.u32 %s1402_s6, 3 }
  0x1e   : > { %s1303_s11 = scalar_lea.vmem %s1391_s1, %s1063_s8 }
  0x21   : > { %v1226_v4 = vmov 0.0  }
  0x22   : > { %380 = vst [vmem:[#allocation2 + $0x10] sm:$0xff] %v1226_v4  ;;  %381 = vst [vmem:[#allocation2] sm:$0xff] %v1226_v4 }
  0x23   : > { %382 = vst [vmem:[#allocation2 + $0x18] sm:$0xff] %v1226_v4  ;;  %383 = vst [vmem:[#allocation2 + $0x8] sm:$0xff] %v1226_v4 }
  0x24 PF: > { %v1110_v5 = vld [vmem:[%s1303_s11 + $0x74] ss:$8 sps:$4 sm:$0xff]   ;;  %v1112_v6 = vld [vmem:[%s1303_s11 + $0x70] ss:$8 sps:$4 sm:$0xff]   ;;  %v1227_v7 = vmov 0   ;;  %p1055_p11 = scmp.ne.s32.totalorder %s1216_s17, 5 }
  0x25   : > { %771 = vmatprep.mubr.bf16.mxu1 %v1227_v7  ;;  %696 = vmatprep.subr.bf16.mxu0 %v1110_v5  ;;  %v1113_v8 = vld [vmem:[%s1303_s11 + $0x64] ss:$8 sps:$4 sm:$0xff]   ;;  %v1115_v9 = vld [vmem:[%s1303_s11 + $0x60] ss:$8 sps:$4 sm:$0xff]   ;;  %v1116_v10 = vld [vmem:[%s1303_s11 + $0x54] ss:$8 sps:$4 sm:$0xff]  }
  0x26   : > { %697 = vmatpush1.bf16.msra.mxu0 %v1112_v6  ;;  %v1118_v11 = vld [vmem:[%s1303_s11 + $0x50] ss:$8 sps:$4 sm:$0xff]   ;;  %v1119_v12 = vld [vmem:[%s1303_s11 + $0x44] ss:$8 sps:$4 sm:$0xff]   ;;  %v1131_v13 = vld [vmem:[%s1303_s11 + $0x174] ss:$8 sps:$4 sm:$0xff]  }
  0x27   : > { %698 = vmatprep.subr.bf16.mxu0 %v1113_v8  ;;  %v1133_v14 = vld [vmem:[%s1303_s11 + $0x170] ss:$8 sps:$4 sm:$0xff]   ;;  %v1121_v15 = vld [vmem:[%s1303_s11 + $0x40] ss:$8 sps:$4 sm:$0xff]   ;;  %v1122_v16 = vld [vmem:[%s1303_s11 + $0x34] ss:$8 sps:$4 sm:$0xff]   ;;  %739 = vmatprep.subr.bf16.mxu1 %v1131_v13 }
  0x28   : > { %v1137_v17 = vld [vmem:[%s1303_s11 + $0x164] ss:$8 sps:$4 sm:$0xff]   ;;  %740 = vmatpush1.bf16.msra.mxu1 %v1133_v14  ;;  %v1139_v18 = vld [vmem:[%s1303_s11 + $0x160] ss:$8 sps:$4 sm:$0xff]   ;;  %v1124_v19 = vld [vmem:[%s1303_s11 + $0x30] ss:$8 sps:$4 sm:$0xff]  }
  0x29   : > { %741 = vmatprep.subr.bf16.mxu1 %v1137_v17  ;;  %v1143_v20 = vld [vmem:[%s1303_s11 + $0x154] ss:$8 sps:$4 sm:$0xff]   ;;  %v1125_v21 = vld [vmem:[%s1303_s11 + $0x24] ss:$8 sps:$4 sm:$0xff]   ;;  %v1145_v22 = vld [vmem:[%s1303_s11 + $0x150] ss:$8 sps:$4 sm:$0xff]  }
  0x2a   : > { %699 = vmatpush1.bf16.msra.mxu0 %v1115_v9  ;;  %v1149_v23 = vld [vmem:[%s1303_s11 + $0x144] ss:$8 sps:$4 sm:$0xff]   ;;  %v1127_v24 = vld [vmem:[%s1303_s11 + $0x20] ss:$8 sps:$4 sm:$0xff]   ;;  %v1128_v25 = vld [vmem:[%s1303_s11 + $0x14] ss:$8 sps:$4 sm:$0xff]  }
  0x2b   : > { %700 = vmatprep.subr.bf16.mxu0 %v1116_v10  ;;  %v1151_v26 = vld [vmem:[%s1303_s11 + $0x140] ss:$8 sps:$4 sm:$0xff]   ;;  %v1155_v27 = vld [vmem:[%s1303_s11 + $0x134] ss:$8 sps:$4 sm:$0xff]   ;;  %v1130_v28 = vld [vmem:[%s1303_s11 + $0x10] ss:$8 sps:$4 sm:$0xff]  }
  0x2c   : > { %742 = vmatpush1.bf16.msra.mxu1 %v1139_v18  ;;  %v1134_v29 = vld [vmem:[%s1303_s11 + $0x4] ss:$8 sps:$4 sm:$0xff]   ;;  %v1157_v30 = vld [vmem:[%s1303_s11 + $0x130] ss:$8 sps:$4 sm:$0xff]   ;;  %v1136_v32 = vld [vmem:[%s1303_s11] ss:$8 sps:$4 sm:$0xff]  }
  0x2d   : > { %743 = vmatprep.subr.bf16.mxu1 %v1143_v20  ;;  %v1161_v31 = vld [vmem:[%s1303_s11 + $0x124] ss:$8 sps:$4 sm:$0xff]   ;;  %v1140_v33 = vld [vmem:[%s1303_s11 + $0xf4] ss:$8 sps:$4 sm:$0xff]   ;;  %v1163_v34 = vld [vmem:[%s1303_s11 + $0x120] ss:$8 sps:$4 sm:$0xff]  }
  0x2e   : > { %701 = vmatpush1.bf16.msra.mxu0 %v1118_v11  ;;  %v1167_v35 = vld [vmem:[%s1303_s11 + $0x114] ss:$8 sps:$4 sm:$0xff]   ;;  %v1142_v36 = vld [vmem:[%s1303_s11 + $0xf0] ss:$8 sps:$4 sm:$0xff]   ;;  %v1146_v37 = vld [vmem:[%s1303_s11 + $0xe4] ss:$8 sps:$4 sm:$0xff]  }
  0x2f   : > { %702 = vmatprep.subr.bf16.mxu0 %v1119_v12  ;;  %v1169_v38 = vld [vmem:[%s1303_s11 + $0x110] ss:$8 sps:$4 sm:$0xff]   ;;  %v1173_v39 = vld [vmem:[%s1303_s11 + $0x104] ss:$8 sps:$4 sm:$0xff]   ;;  %v1148_v41 = vld [vmem:[%s1303_s11 + $0xe0] ss:$8 sps:$4 sm:$0xff]  }
  0x30   : > { %744 = vmatpush1.bf16.msra.mxu1 %v1145_v22  ;;  %v1185_v40 = vld [vmem:[%s1305_s12 + $0x4] ss:$12 sps:$4 sm:$0xff]   ;;  %v1179_v46 = vld [vmem:[%s1305_s12 + $0x8] ss:$12 sps:$4 sm:$0xff]   ;;  %v1183_v56 = vld [vmem:[%s1305_s12] ss:$12 sps:$4 sm:$0xff]  }
  0x31   : > { %745 = vmatprep.subr.bf16.mxu1 %v1149_v23  ;;  %v1152_v42 = vld [vmem:[%s1303_s11 + $0xd4] ss:$8 sps:$4 sm:$0xff]   ;;  %728 = vmatprep.mubr.bf16.mxu0 %v1185_v40  ;;  %v1175_v43 = vld [vmem:[%s1303_s11 + $0x100] ss:$8 sps:$4 sm:$0xff]   ;;  %v1154_v44 = vld [vmem:[%s1303_s11 + $0xd0] ss:$8 sps:$4 sm:$0xff]  }
  0x32   : > { %703 = vmatpush1.bf16.msra.mxu0 %v1121_v15  ;;  %v1158_v45 = vld [vmem:[%s1303_s11 + $0xc4] ss:$8 sps:$4 sm:$0xff]   ;;  %v1160_v47 = vld [vmem:[%s1303_s11 + $0xc0] ss:$8 sps:$4 sm:$0xff]   ;;  %v1164_v48 = vld [vmem:[%s1303_s11 + $0xb4] ss:$8 sps:$4 sm:$0xff]  }
  0x33   : > { %704 = vmatprep.subr.bf16.mxu0 %v1122_v16  ;;  %v1166_v49 = vld [vmem:[%s1303_s11 + $0xb0] ss:$8 sps:$4 sm:$0xff]   ;;  %v1170_v50 = vld [vmem:[%s1303_s11 + $0xa4] ss:$8 sps:$4 sm:$0xff]   ;;  %v1172_v51 = vld [vmem:[%s1303_s11 + $0xa0] ss:$8 sps:$4 sm:$0xff]  }
  0x34   : > { %746 = vmatpush1.bf16.msra.mxu1 %v1151_v26  ;;  %v1176_v52 = vld [vmem:[%s1303_s11 + $0x94] ss:$8 sps:$4 sm:$0xff]   ;;  %v1178_v53 = vld [vmem:[%s1303_s11 + $0x90] ss:$8 sps:$4 sm:$0xff]   ;;  %v1180_v54 = vld [vmem:[%s1303_s11 + $0x84] ss:$8 sps:$4 sm:$0xff]  }
  0x35   : > { %747 = vmatprep.subr.bf16.mxu1 %v1155_v27  ;;  %v1182_v55 = vld [vmem:[%s1303_s11 + $0x80] ss:$8 sps:$4 sm:$0xff]   ;;  %v384_v59 = vld [vmem:[#allocation2 + $0x10] sm:$0xff]  ;;  %v386_v3 = vld [vmem:[#allocation2 + $0x18] sm:$0xff] }
  0x36   : > { %705 = vmatpush1.bf16.msra.mxu0 %v1124_v19  ;;  %v385_v63 = vld [vmem:[#allocation2] sm:$0xff]  ;;  %v387_v8 = vld [vmem:[#allocation2 + $0x8] sm:$0xff] }
  0x37   : > { %706 = vmatprep.subr.bf16.mxu0 %v1125_v21 }
  0x38   : > { %748 = vmatpush1.bf16.msra.mxu1 %v1157_v30 }
  0x39   : > { %749 = vmatprep.subr.bf16.mxu1 %v1161_v31 }
  0x3a   : > { %707 = vmatpush1.bf16.msra.mxu0 %v1127_v24 }
  0x3b   : > { %708 = vmatprep.subr.bf16.mxu0 %v1128_v25 }
  0x3c   : > { %750 = vmatpush1.bf16.msra.mxu1 %v1163_v34 }
  0x3d   : > { %751 = vmatprep.subr.bf16.mxu1 %v1167_v35 }
  0x3e   : > { %709 = vmatpush1.bf16.msra.mxu0 %v1130_v28 }
  0x3f   : > { %710 = vmatprep.subr.bf16.mxu0 %v1134_v29 }
  0x40   : > { %752 = vmatpush1.bf16.msra.mxu1 %v1169_v38 }
  0x41   : > { %753 = vmatprep.subr.bf16.mxu1 %v1173_v39 }
  0x42   : > { %711 = vmatpush1.bf16.msra.mxu0 %v1136_v32 }
  0x43   : > { %712 = vmatprep.subr.bf16.mxu0 %v1140_v33 }
  0x44   : > { %754 = vmatpush1.bf16.msra.mxu1 %v1175_v43 }
  0x46   : > { %713 = vmatpush2.bf16.msra.mxu0 %v1142_v36 }
  0x47   : > { %714 = vmatprep.subr.bf16.mxu0 %v1146_v37  ;;  %772 = vmatmul.mubr.bf16.vlgmr.msra.gmra.mxu1 %v1179_v46 }
  0x4a   : > { %715 = vmatpush2.bf16.msra.mxu0 %v1148_v41 }
  0x4b   : > { %716 = vmatprep.subr.bf16.mxu0 %v1152_v42 }
  0x4e   : > { %717 = vmatpush2.bf16.msra.mxu0 %v1154_v44 }
  0x4f   : > { %718 = vmatprep.subr.bf16.mxu0 %v1158_v45 }
  0x52   : > { %719 = vmatpush2.bf16.msra.mxu0 %v1160_v47 }
  0x53   : > { %720 = vmatprep.subr.bf16.mxu0 %v1164_v48 }
  0x56   : > { %721 = vmatpush2.bf16.msra.mxu0 %v1166_v49 }
  0x57   : > { %722 = vmatprep.subr.bf16.mxu0 %v1170_v50 }
  0x5a   : > { %723 = vmatpush2.bf16.msra.mxu0 %v1172_v51 }
  0x5b   : > { %724 = vmatprep.subr.bf16.mxu0 %v1176_v52 }
  0x5e   : > { %725 = vmatpush2.bf16.msra.mxu0 %v1178_v53 }
  0x5f   : > { %726 = vmatprep.subr.bf16.mxu0 %v1180_v54 }
  0x62   : > { %727 = vmatpush2.bf16.msra.mxu0 %v1182_v55 }
  0x65   : > { %729 = vmatmul.mubr.bf16.vlgmr.msra.gmra.mxu0 %v1183_v56 }
 0x107   : > { %v773_v57 = vpop.f32.mrf.mxu1 }
 0x109   : > { %v775_v58 = vpop.f32.mrf.mxu1 }
 0x10b   : > { %v777_v62 = vpop.f32.mrf.mxu1 }
 0x10d   : > { %v779_v7 = vpop.f32.mrf.mxu1 }
 0x125   : > { %v730_v60 = vpop.f32.mrf.mxu0 }
 0x126   : > { %v774_v61 = vadd.f32 %v773_v57, %v730_v60 }
 0x127   : > { %v732_v0 = vpop.f32.mrf.mxu0 }
 0x128   : > { %v782_v1 = vadd.f32 %v774_v61, %v384_v59  ;;  %v776_v2 = vadd.f32 %v775_v58, %v732_v0 }
 0x129   : > { %v734_v4 = vpop.f32.mrf.mxu0 }
 0x12a   : > { %786 = vst [vmem:[#allocation2 + $0x10] sm:$0xff] %v782_v1  ;;  %v783_v5 = vadd.f32 %v776_v2, %v385_v63  ;;  %v778_v6 = vadd.f32 %v777_v62, %v734_v4 }
 0x12b   : > { %v736_v9 = vpop.f32.mrf.mxu0 }
 0x12c   : > { %787 = vst [vmem:[#allocation2] sm:$0xff] %v783_v5  ;;  %v784_v10 = vadd.f32 %v778_v6, %v386_v3  ;;  %v780_v11 = vadd.f32 %v779_v7, %v736_v9  ;;  %793 = sbr.rel (%p1055_p11) target bundleno = 322 (0x142), region = 70 }
 0x12e   : > { %788 = vst [vmem:[#allocation2 + $0x18] sm:$0xff] %v784_v10  ;;  %v785_v12 = vadd.f32 %v780_v11, %v387_v8 }
 0x130   : > { %789 = vst [vmem:[#allocation2 + $0x8] sm:$0xff] %v785_v12 }
 0x131   : > { %v800_v13 = vlaneseq  ;;  %v814_v15 = vld [vmem:[%s1393_s3] sm:$0xff]  ;;  %v815_v17 = vld [vmem:[%s1393_s3 + $0x8] sm:$0xff]  ;;  %v794_v18 = vld [vmem:[#allocation2 + $0x10] sm:$0xff] }
 0x132   : > { %v798_v16 = vld [vmem:[%s1392_s2] sm:$0x3]  ;;  %v816_v22 = vunpack.c.l.bf16 %v814_v15  ;;  %v817_v23 = vunpack.c.h.bf16 %v814_v15  ;;  %v818_v28 = vunpack.c.l.bf16 %v815_v17  ;;  %v819_v29 = vunpack.c.h.bf16 %v815_v17 }
 0x133   : > { %v801_v14 = vshrl.u32 %v800_v13, 7  ;;  %v795_v21 = vld [vmem:[#allocation2] sm:$0xff] }
 0x135   : > { %v802_v19 = vsub.s32 0, %v801_v14  ;;  %v806_v20 = vsub.s32 1, %v801_v14  ;;  %v796_v24 = vld [vmem:[#allocation2 + $0x18] sm:$0xff] }
 0x137   : > { %v797_v25 = vld [vmem:[#allocation2 + $0x8] sm:$0xff]  ;;  %v803_v26 = vrot.slane %v798_v16, %v802_v19  ;;  %v807_v27 = vrot.slane %v798_v16, %v806_v20 }
 0x139   : > { %v810_v30 = vadd.f32 %v803_v26, %v794_v18  ;;  %v811_v31 = vadd.f32 %v807_v27, %v795_v21  ;;  %v812_v32 = vadd.f32 %v803_v26, %v796_v24  ;;  %v813_v33 = vadd.f32 %v807_v27, %v797_v25 }
 0x13b   : > { %v820_v34 = vadd.f32 %v816_v22, %v810_v30  ;;  %v821_v35 = vadd.f32 %v817_v23, %v811_v31  ;;  %v822_v36 = vadd.f32 %v818_v28, %v812_v32  ;;  %v823_v37 = vadd.f32 %v819_v29, %v813_v33 }
 0x13d   : > { %v824_v38 = vmax.f32 %v820_v34, 0.0  ;;  %v825_v39 = vmax.f32 %v821_v35, 0.0  ;;  %v826_v40 = vmax.f32 %v822_v36, 0.0  ;;  %v827_v41 = vmax.f32 %v823_v37, 0.0 }
 0x13f   : > { %v1064_v42 = vpack.c.bf16 %v825_v39, %v824_v38  ;;  %v1065_v43 = vpack.c.bf16 %v827_v41, %v826_v40 }
 0x141   : > { %840 = vst [vmem:[%s1394_s4] sm:$0xff] %v1064_v42  ;;  %841 = vst [vmem:[%s1394_s4 + $0x8] sm:$0xff] %v1065_v43 }
 0x142 PF: > { %s14_s19 = sadd.s32 1, %s1224_s19   ;;  %s1395_s15 = smov %s1212_s16 }
 0x143   : > { %p11_p12 = scmp.ge.s32.totalorder %s14_s19, 8   ;;  %s1396_s16 = smov %s1288_s23 }
 0x144   : > { %s1397_s17 = smov %s1220_s18  ;;  %s1398_s18 = smov %s1400_s20 }
 0x145   :  { %13 = sbr.rel (!%p11_p12) target bundleno = 3 (0x3), region = 120 }

// kernel: starting_network_forward.37
= control target key start
LH: loop header
LB: loop body
LE: loop exit
PB: predicated region body
PF: predicated region fallthrough
CT: control target
= control target key end

     0   :  { %s1148_s12 = smov 0   ;;  %s1150_s13 = smov 0   ;;  %s1279_s0 = inlined_call_operand.vmem [shape: bf16[16,2304], index: 0, kind: input, shape index: {}]   ;;  %s1280_s1 = inlined_call_operand.vmem [shape: bf16[2304,256], index: 1, kind: input, shape index: {}]   ;;  %s1281_s2 = inlined_call_operand.vmem [shape: f32[1,256], index: 2, kind: input, shape index: {}]   ;;  %s1282_s3 = inlined_call_operand.vmem [shape: bf16[16,256], index: 3, kind: output, shape index: {}]  }
   0x1   :  { %s1152_s14 = smov 0   ;;  %s1154_s15 = smov 0  }
   0x2   :  { %s1156_s16 = smov 0  }
   0x3 LB: > { %s25_s17 = sadd.s32 1, %s1120_s15  ;;  %p48_p1 = scmp.ne.s32.totalorder %s1112_s13, %s1108_s12  ;;  %s1124_s16 = sphi %s1156_s16, %s13_s16   ;;  %s1120_s15 = sphi %s1154_s15, %s1286_s15   ;;  %s1116_s14 = sphi %s1152_s14, %s1285_s14   ;;  %s1112_s13 = sphi %s1150_s13, %s1284_s13   ;;  %s1108_s12 = sphi %s1148_s12, %s1283_s12  }
   0x4   : > { %p26_p0 = scmp.ge.s32.totalorder %s25_s17, 6  ;;  %p49_p2 = scmp.eq.s32.totalorder %s1124_s16, 0 }
   0x5   : > { %s41_s19 = sadd.s32 1, %s1112_s13  ;;  %p894_p5 = scmp.ge.s32.totalorder %s1124_s16, 6 }
   0x6   : > { %s1288_s17 = smov (%p26_p0, %s25_s17), 0  ;;  %p50_p3 = por %p49_p2, %p48_p1 }
   0x7   : > { %s37_s18 = ssub.s32 %s1120_s15, %s1288_s17  ;;  %164 = sbr.rel (%p894_p5) target bundleno = 19 (0x13), region = 20 }
   0x8   : > { %p39_p4 = scmp.eq.s32.totalorder %s37_s18, 0 }
   0xa   : > { %s1183_s20 = scalar_select %p39_p4, %s1112_s13, %s41_s19  }
   0xc   : > { %167 = sbr.rel (!%p50_p3) target bundleno = 19 (0x13), region = 24  ;;  %s169_s21 = sand.u32 (%p50_p3), 1, %s1112_s13  }
   0xd   : > { %s962_s22 = smul.u32 (%p50_p3), 12, %s1120_s15 }
   0xe   : > { %s966_s23 = smul.u32 (%p50_p3), 24, %s169_s21 }
   0xf   : > { %s177_s26 = scalar_lea.vmem (%p50_p3), %s1279_s0, %s962_s22 }
  0x10   : > { %v192_v0 = vld [vmem:[%s177_s26] sm:$0xff] (%p50_p3)  ;;  %v194_v1 = vld [vmem:[%s177_s26 + $0x48] sm:$0xff] (%p50_p3)  ;;  %s171_s27 = scalar_lea.vmem (%p50_p3), [#allocation3], %s966_s23  ;;  %v898_v3 = vld [vmem:[%s177_s26 + $0x50] sm:$0xf] (%p50_p3) }
  0x11   : > { %v896_v2 = vld [vmem:[%s177_s26 + $0x8] sm:$0xf]  ;;  %193 = vst [vmem:[%s171_s27] sm:$0xff] %v192_v0  ;;  %195 = vst [vmem:[%s171_s27 + $0xc] sm:$0xff] %v194_v1 }
  0x12   : > { %897 = vst [vmem:[%s171_s27 + $0x8] sm:$0xf] %v896_v2  ;;  %899 = vst [vmem:[%s171_s27 + $0x14] sm:$0xf] %v898_v3 }
  0x13 PF: > { %p900_p6 = scmp.ge.s32.totalorder %s1124_s16, 1  ;;  %p227_p7 = scmp.lt.s32.totalorder %s1124_s16, 7 }
  0x15   : > { %p228_p8 = pnand %p900_p6, %p227_p7 }
  0x16   : > { %s234_s28 = sand.u32 (!%p228_p8), 1, %s1108_s12   ;;  %s278_s29 = smul.u32 (!%p228_p8), 48, %s1116_s14 }
  0x17   : > { %231 = sbr.rel (%p228_p8) target bundleno = 320 (0x140), region = 54  ;;  %p903_p10 = scmp.ne.s32.totalorder (!%p228_p8), %s1116_s14, 0 }
  0x18   : > { %s967_s30 = smul.u32 (!%p228_p8), 24, %s234_s28  ;;  %p280_p9 = scmp.lt.s32.totalorder (!%p228_p8), %s278_s29, 287 }
  0x1a   : > { %s1200_s8 = scalar_lea.vmem (!%p228_p8), [#allocation3], %s967_s30 }
  0x1c   : > { %s1290_s29 = smov (!%p280_p9, %s278_s29), 287  ;;  %311 = sbr.rel (%p903_p10) target bundleno = 36 (0x24), region = 62 }
  0x1d   : > { %s963_s4 = sshll.u32 %s1290_s29, 3 }
  0x1e   : > { %s1198_s7 = scalar_lea.vmem %s1280_s1, %s963_s4 }
  0x21   : > { %v1126_v4 = vmov 0.0  }
  0x22   : > { %312 = vst [vmem:[#allocation2 + $0x10] sm:$0xff] %v1126_v4  ;;  %313 = vst [vmem:[#allocation2] sm:$0xff] %v1126_v4 }
  0x23   : > { %314 = vst [vmem:[#allocation2 + $0x18] sm:$0xff] %v1126_v4  ;;  %315 = vst [vmem:[#allocation2 + $0x8] sm:$0xff] %v1126_v4 }
  0x24 PF: > { %v1010_v5 = vld [vmem:[%s1198_s7 + $0x74] ss:$8 sps:$4 sm:$0xff]   ;;  %v1012_v6 = vld [vmem:[%s1198_s7 + $0x70] ss:$8 sps:$4 sm:$0xff]   ;;  %v1127_v7 = vmov 0   ;;  %p955_p11 = scmp.ne.s32.totalorder %s1116_s14, 5 }
  0x25   : > { %703 = vmatprep.mubr.bf16.mxu1 %v1127_v7  ;;  %628 = vmatprep.subr.bf16.mxu0 %v1010_v5  ;;  %v1013_v8 = vld [vmem:[%s1198_s7 + $0x64] ss:$8 sps:$4 sm:$0xff]   ;;  %v1015_v9 = vld [vmem:[%s1198_s7 + $0x60] ss:$8 sps:$4 sm:$0xff]   ;;  %v1016_v10 = vld [vmem:[%s1198_s7 + $0x54] ss:$8 sps:$4 sm:$0xff]  }
  0x26   : > { %629 = vmatpush1.bf16.msra.mxu0 %v1012_v6  ;;  %v1018_v11 = vld [vmem:[%s1198_s7 + $0x50] ss:$8 sps:$4 sm:$0xff]   ;;  %v1019_v12 = vld [vmem:[%s1198_s7 + $0x44] ss:$8 sps:$4 sm:$0xff]   ;;  %v1031_v13 = vld [vmem:[%s1198_s7 + $0x174] ss:$8 sps:$4 sm:$0xff]  }
  0x27   : > { %630 = vmatprep.subr.bf16.mxu0 %v1013_v8  ;;  %v1033_v14 = vld [vmem:[%s1198_s7 + $0x170] ss:$8 sps:$4 sm:$0xff]   ;;  %v1021_v15 = vld [vmem:[%s1198_s7 + $0x40] ss:$8 sps:$4 sm:$0xff]   ;;  %v1022_v16 = vld [vmem:[%s1198_s7 + $0x34] ss:$8 sps:$4 sm:$0xff]   ;;  %671 = vmatprep.subr.bf16.mxu1 %v1031_v13 }
  0x28   : > { %v1037_v17 = vld [vmem:[%s1198_s7 + $0x164] ss:$8 sps:$4 sm:$0xff]   ;;  %672 = vmatpush1.bf16.msra.mxu1 %v1033_v14  ;;  %v1039_v18 = vld [vmem:[%s1198_s7 + $0x160] ss:$8 sps:$4 sm:$0xff]   ;;  %v1024_v19 = vld [vmem:[%s1198_s7 + $0x30] ss:$8 sps:$4 sm:$0xff]  }
  0x29   : > { %673 = vmatprep.subr.bf16.mxu1 %v1037_v17  ;;  %v1043_v20 = vld [vmem:[%s1198_s7 + $0x154] ss:$8 sps:$4 sm:$0xff]   ;;  %v1025_v21 = vld [vmem:[%s1198_s7 + $0x24] ss:$8 sps:$4 sm:$0xff]   ;;  %v1045_v22 = vld [vmem:[%s1198_s7 + $0x150] ss:$8 sps:$4 sm:$0xff]  }
  0x2a   : > { %631 = vmatpush1.bf16.msra.mxu0 %v1015_v9  ;;  %v1049_v23 = vld [vmem:[%s1198_s7 + $0x144] ss:$8 sps:$4 sm:$0xff]   ;;  %v1027_v24 = vld [vmem:[%s1198_s7 + $0x20] ss:$8 sps:$4 sm:$0xff]   ;;  %v1028_v25 = vld [vmem:[%s1198_s7 + $0x14] ss:$8 sps:$4 sm:$0xff]  }
  0x2b   : > { %632 = vmatprep.subr.bf16.mxu0 %v1016_v10  ;;  %v1051_v26 = vld [vmem:[%s1198_s7 + $0x140] ss:$8 sps:$4 sm:$0xff]   ;;  %v1055_v27 = vld [vmem:[%s1198_s7 + $0x134] ss:$8 sps:$4 sm:$0xff]   ;;  %v1030_v28 = vld [vmem:[%s1198_s7 + $0x10] ss:$8 sps:$4 sm:$0xff]  }
  0x2c   : > { %674 = vmatpush1.bf16.msra.mxu1 %v1039_v18  ;;  %v1034_v29 = vld [vmem:[%s1198_s7 + $0x4] ss:$8 sps:$4 sm:$0xff]   ;;  %v1057_v30 = vld [vmem:[%s1198_s7 + $0x130] ss:$8 sps:$4 sm:$0xff]   ;;  %v1036_v32 = vld [vmem:[%s1198_s7] ss:$8 sps:$4 sm:$0xff]  }
  0x2d   : > { %675 = vmatprep.subr.bf16.mxu1 %v1043_v20  ;;  %v1061_v31 = vld [vmem:[%s1198_s7 + $0x124] ss:$8 sps:$4 sm:$0xff]   ;;  %v1040_v33 = vld [vmem:[%s1198_s7 + $0xf4] ss:$8 sps:$4 sm:$0xff]   ;;  %v1063_v34 = vld [vmem:[%s1198_s7 + $0x120] ss:$8 sps:$4 sm:$0xff]  }
  0x2e   : > { %633 = vmatpush1.bf16.msra.mxu0 %v1018_v11  ;;  %v1067_v35 = vld [vmem:[%s1198_s7 + $0x114] ss:$8 sps:$4 sm:$0xff]   ;;  %v1042_v36 = vld [vmem:[%s1198_s7 + $0xf0] ss:$8 sps:$4 sm:$0xff]   ;;  %v1046_v37 = vld [vmem:[%s1198_s7 + $0xe4] ss:$8 sps:$4 sm:$0xff]  }
  0x2f   : > { %634 = vmatprep.subr.bf16.mxu0 %v1019_v12  ;;  %v1069_v38 = vld [vmem:[%s1198_s7 + $0x110] ss:$8 sps:$4 sm:$0xff]   ;;  %v1073_v39 = vld [vmem:[%s1198_s7 + $0x104] ss:$8 sps:$4 sm:$0xff]   ;;  %v1048_v41 = vld [vmem:[%s1198_s7 + $0xe0] ss:$8 sps:$4 sm:$0xff]  }
  0x30   : > { %676 = vmatpush1.bf16.msra.mxu1 %v1045_v22  ;;  %v1085_v40 = vld [vmem:[%s1200_s8 + $0x4] ss:$12 sps:$4 sm:$0xff]   ;;  %v1079_v46 = vld [vmem:[%s1200_s8 + $0x8] ss:$12 sps:$4 sm:$0xff]   ;;  %v1083_v56 = vld [vmem:[%s1200_s8] ss:$12 sps:$4 sm:$0xff]  }
  0x31   : > { %677 = vmatprep.subr.bf16.mxu1 %v1049_v23  ;;  %v1052_v42 = vld [vmem:[%s1198_s7 + $0xd4] ss:$8 sps:$4 sm:$0xff]   ;;  %660 = vmatprep.mubr.bf16.mxu0 %v1085_v40  ;;  %v1075_v43 = vld [vmem:[%s1198_s7 + $0x100] ss:$8 sps:$4 sm:$0xff]   ;;  %v1054_v44 = vld [vmem:[%s1198_s7 + $0xd0] ss:$8 sps:$4 sm:$0xff]  }
  0x32   : > { %635 = vmatpush1.bf16.msra.mxu0 %v1021_v15  ;;  %v1058_v45 = vld [vmem:[%s1198_s7 + $0xc4] ss:$8 sps:$4 sm:$0xff]   ;;  %v1060_v47 = vld [vmem:[%s1198_s7 + $0xc0] ss:$8 sps:$4 sm:$0xff]   ;;  %v1064_v48 = vld [vmem:[%s1198_s7 + $0xb4] ss:$8 sps:$4 sm:$0xff]  }
  0x33   : > { %636 = vmatprep.subr.bf16.mxu0 %v1022_v16  ;;  %v1066_v49 = vld [vmem:[%s1198_s7 + $0xb0] ss:$8 sps:$4 sm:$0xff]   ;;  %v1070_v50 = vld [vmem:[%s1198_s7 + $0xa4] ss:$8 sps:$4 sm:$0xff]   ;;  %v1072_v51 = vld [vmem:[%s1198_s7 + $0xa0] ss:$8 sps:$4 sm:$0xff]  }
  0x34   : > { %678 = vmatpush1.bf16.msra.mxu1 %v1051_v26  ;;  %v1076_v52 = vld [vmem:[%s1198_s7 + $0x94] ss:$8 sps:$4 sm:$0xff]   ;;  %v1078_v53 = vld [vmem:[%s1198_s7 + $0x90] ss:$8 sps:$4 sm:$0xff]   ;;  %v1080_v54 = vld [vmem:[%s1198_s7 + $0x84] ss:$8 sps:$4 sm:$0xff]  }
  0x35   : > { %679 = vmatprep.subr.bf16.mxu1 %v1055_v27  ;;  %v1082_v55 = vld [vmem:[%s1198_s7 + $0x80] ss:$8 sps:$4 sm:$0xff]   ;;  %v316_v59 = vld [vmem:[#allocation2 + $0x10] sm:$0xff]  ;;  %v318_v3 = vld [vmem:[#allocation2 + $0x18] sm:$0xff] }
  0x36   : > { %637 = vmatpush1.bf16.msra.mxu0 %v1024_v19  ;;  %v317_v63 = vld [vmem:[#allocation2] sm:$0xff]  ;;  %v319_v8 = vld [vmem:[#allocation2 + $0x8] sm:$0xff] }
  0x37   : > { %638 = vmatprep.subr.bf16.mxu0 %v1025_v21 }
  0x38   : > { %680 = vmatpush1.bf16.msra.mxu1 %v1057_v30 }
  0x39   : > { %681 = vmatprep.subr.bf16.mxu1 %v1061_v31 }
  0x3a   : > { %639 = vmatpush1.bf16.msra.mxu0 %v1027_v24 }
  0x3b   : > { %640 = vmatprep.subr.bf16.mxu0 %v1028_v25 }
  0x3c   : > { %682 = vmatpush1.bf16.msra.mxu1 %v1063_v34 }
  0x3d   : > { %683 = vmatprep.subr.bf16.mxu1 %v1067_v35 }
  0x3e   : > { %641 = vmatpush1.bf16.msra.mxu0 %v1030_v28 }
  0x3f   : > { %642 = vmatprep.subr.bf16.mxu0 %v1034_v29 }
  0x40   : > { %684 = vmatpush1.bf16.msra.mxu1 %v1069_v38 }
  0x41   : > { %685 = vmatprep.subr.bf16.mxu1 %v1073_v39 }
  0x42   : > { %643 = vmatpush1.bf16.msra.mxu0 %v1036_v32 }
  0x43   : > { %644 = vmatprep.subr.bf16.mxu0 %v1040_v33 }
  0x44   : > { %686 = vmatpush1.bf16.msra.mxu1 %v1075_v43 }
  0x46   : > { %645 = vmatpush2.bf16.msra.mxu0 %v1042_v36 }
  0x47   : > { %646 = vmatprep.subr.bf16.mxu0 %v1046_v37  ;;  %704 = vmatmul.mubr.bf16.vlgmr.msra.gmra.mxu1 %v1079_v46 }
  0x4a   : > { %647 = vmatpush2.bf16.msra.mxu0 %v1048_v41 }
  0x4b   : > { %648 = vmatprep.subr.bf16.mxu0 %v1052_v42 }
  0x4e   : > { %649 = vmatpush2.bf16.msra.mxu0 %v1054_v44 }
  0x4f   : > { %650 = vmatprep.subr.bf16.mxu0 %v1058_v45 }
  0x52   : > { %651 = vmatpush2.bf16.msra.mxu0 %v1060_v47 }
  0x53   : > { %652 = vmatprep.subr.bf16.mxu0 %v1064_v48 }
  0x56   : > { %653 = vmatpush2.bf16.msra.mxu0 %v1066_v49 }
  0x57   : > { %654 = vmatprep.subr.bf16.mxu0 %v1070_v50 }
  0x5a   : > { %655 = vmatpush2.bf16.msra.mxu0 %v1072_v51 }
  0x5b   : > { %656 = vmatprep.subr.bf16.mxu0 %v1076_v52 }
  0x5e   : > { %657 = vmatpush2.bf16.msra.mxu0 %v1078_v53 }
  0x5f   : > { %658 = vmatprep.subr.bf16.mxu0 %v1080_v54 }
  0x62   : > { %659 = vmatpush2.bf16.msra.mxu0 %v1082_v55 }
  0x65   : > { %661 = vmatmul.mubr.bf16.vlgmr.msra.gmra.mxu0 %v1083_v56 }
 0x107   : > { %v705_v57 = vpop.f32.mrf.mxu1 }
 0x109   : > { %v707_v58 = vpop.f32.mrf.mxu1 }
 0x10b   : > { %v709_v62 = vpop.f32.mrf.mxu1 }
 0x10d   : > { %v711_v7 = vpop.f32.mrf.mxu1 }
 0x125   : > { %v662_v60 = vpop.f32.mrf.mxu0 }
 0x126   : > { %v706_v61 = vadd.f32 %v705_v57, %v662_v60 }
 0x127   : > { %v664_v0 = vpop.f32.mrf.mxu0 }
 0x128   : > { %v714_v1 = vadd.f32 %v706_v61, %v316_v59  ;;  %v708_v2 = vadd.f32 %v707_v58, %v664_v0 }
 0x129   : > { %v666_v4 = vpop.f32.mrf.mxu0 }
 0x12a   : > { %718 = vst [vmem:[#allocation2 + $0x10] sm:$0xff] %v714_v1  ;;  %v715_v5 = vadd.f32 %v708_v2, %v317_v63  ;;  %v710_v6 = vadd.f32 %v709_v62, %v666_v4 }
 0x12b   : > { %v668_v9 = vpop.f32.mrf.mxu0 }
 0x12c   : > { %719 = vst [vmem:[#allocation2] sm:$0xff] %v715_v5  ;;  %v716_v10 = vadd.f32 %v710_v6, %v318_v3  ;;  %v712_v11 = vadd.f32 %v711_v7, %v668_v9  ;;  %725 = sbr.rel (%p955_p11) target bundleno = 320 (0x140), region = 66 }
 0x12e   : > { %720 = vst [vmem:[#allocation2 + $0x18] sm:$0xff] %v716_v10  ;;  %v717_v12 = vadd.f32 %v712_v11, %v319_v8 }
 0x130   : > { %721 = vst [vmem:[#allocation2 + $0x8] sm:$0xff] %v717_v12 }
 0x131   : > { %v732_v13 = vlaneseq  ;;  %v730_v15 = vld [vmem:[%s1281_s2] sm:$0x3]  ;;  %v726_v16 = vld [vmem:[#allocation2 + $0x10] sm:$0xff] }
 0x133   : > { %v733_v14 = vshrl.u32 %v732_v13, 7  ;;  %v727_v19 = vld [vmem:[#allocation2] sm:$0xff] }
 0x135   : > { %v734_v17 = vsub.s32 0, %v733_v14  ;;  %v738_v18 = vsub.s32 1, %v733_v14  ;;  %v728_v20 = vld [vmem:[#allocation2 + $0x18] sm:$0xff] }
 0x137   : > { %v729_v21 = vld [vmem:[#allocation2 + $0x8] sm:$0xff]  ;;  %v735_v22 = vrot.slane %v730_v15, %v734_v17  ;;  %v739_v23 = vrot.slane %v730_v15, %v738_v18 }
 0x139   : > { %v742_v24 = vadd.f32 %v735_v22, %v726_v16  ;;  %v743_v25 = vadd.f32 %v739_v23, %v727_v19  ;;  %v744_v26 = vadd.f32 %v735_v22, %v728_v20  ;;  %v745_v27 = vadd.f32 %v739_v23, %v729_v21 }
 0x13b   : > { %v746_v28 = vmax.f32 %v742_v24, 0.0  ;;  %v747_v29 = vmax.f32 %v743_v25, 0.0  ;;  %v748_v30 = vmax.f32 %v744_v26, 0.0  ;;  %v749_v31 = vmax.f32 %v745_v27, 0.0 }
 0x13d   : > { %v964_v32 = vpack.c.bf16 %v747_v29, %v746_v28  ;;  %v965_v33 = vpack.c.bf16 %v749_v31, %v748_v30 }
 0x13f   : > { %762 = vst [vmem:[%s1282_s3] sm:$0xff] %v964_v32  ;;  %763 = vst [vmem:[%s1282_s3 + $0x8] sm:$0xff] %v965_v33 }
 0x140 PF: > { %s13_s16 = sadd.s32 1, %s1124_s16   ;;  %s1283_s12 = smov %s1112_s13 }
 0x141   : > { %p10_p12 = scmp.ge.s32.totalorder %s13_s16, 8   ;;  %s1284_s13 = smov %s1183_s20 }
 0x142   : > { %s1285_s14 = smov %s1120_s15  ;;  %s1286_s15 = smov %s1288_s17 }
 0x143   :  { %12 = sbr.rel (!%p10_p12) target bundleno = 3 (0x3), region = 113 }

// kernel: starting_network_forward.39
= control target key start
LH: loop header
LB: loop body
LE: loop exit
PB: predicated region body
PF: predicated region fallthrough
CT: control target
= control target key end

     0   :  { %s1812_s0 = inlined_call_operand.vmem [shape: bf16[16,2304], index: 0, kind: input, shape index: {}]   ;;  %s1813_s1 = inlined_call_operand.vmem [shape: bf16[2304,512], index: 1, kind: input, shape index: {}]   ;;  %s1814_s2 = inlined_call_operand.vmem [shape: f32[1,512], index: 2, kind: input, shape index: {}]   ;;  %s1815_s3 = inlined_call_operand.vmem [shape: bf16[16,512], index: 3, kind: output, shape index: {}]  }
   0x1   :  { %1817 = sst [smem:[#allocation7_spill]] %s1812_s0 }
   0x2   :  { %1818 = sst [smem:[#allocation8_spill]] %s1813_s1 }
   0x3   :  { %s1479_s12 = smov 0   ;;  %s1481_s13 = smov 0  }
   0x4   :  { %s1483_s14 = smov 0   ;;  %s1485_s15 = smov 0  }
   0x5   :  { %s1487_s16 = smov 0   ;;  %s1489_s17 = smov 0  }
   0x6   :  { %s1491_s18 = smov 0   ;;  %s1493_s19 = smov 0  }
   0x7   :  { %s1495_s20 = smov 0   ;;  %s1497_s21 = smov 0  }
   0x8   :  { %s1499_s22 = smov 0  }
   0x9 LB: > { %s1119_s23 = sadd.s32 4294967295, %s1455_s22   ;;  %s25_s24 = sadd.s32 1, %s1447_s20  ;;  %s1455_s22 = sphi %s1499_s22, %s13_s22   ;;  %s1451_s21 = sphi %s1497_s21, %s1835_s21   ;;  %s1447_s20 = sphi %s1495_s20, %s1834_s20   ;;  %s1443_s19 = sphi %s1493_s19, %s1833_s19   ;;  %s1439_s18 = sphi %s1491_s18, %s1832_s18   ;;  %s1435_s17 = sphi %s1489_s17, %s1831_s17   ;;  %s1431_s16 = sphi %s1487_s16, %s1830_s16   ;;  %s1427_s15 = sphi %s1485_s15, %s1829_s15   ;;  %s1423_s14 = sphi %s1483_s14, %s1828_s14   ;;  %s1419_s13 = sphi %s1481_s13, %s1827_s13   ;;  %s1415_s12 = sphi %s1479_s12, %s1826_s12  }
   0xa   : > { %p26_p0 = scmp.ge.s32.totalorder %s25_s24, 6  ;;  %s28_s25 = sadd.s32 1, %s1451_s21 }
   0xb   : > { %s41_s26 = sadd.s32 1, %s1435_s17  ;;  %p48_p1 = scmp.ne.s32.totalorder %s1435_s17, %s1431_s16 }
   0xc   : > { %s1837_s24 = smov (%p26_p0, %s25_s24), 0  ;;  %s1839_s25 = smov (!%p26_p0, %s28_s25), %s1451_s21 }
   0xd   : > { %s37_s27 = ssub.s32 %s1447_s20, %s1837_s24  ;;  %p49_p2 = scmp.eq.s32.totalorder %s1455_s22, 0 }
   0xe   : > { %p30_p3 = scmp.ge.s32.totalorder %s1839_s25, 2  ;;  %p39_p4 = scmp.eq.s32.totalorder %s37_s27, 0 }
   0xf   : > { %p1546_p5 = por %p49_p2, %p48_p1  ;;  %s69_s29 = sadd.s32 1, %s1427_s15 }
  0x10   : > { %s1841_s25 = smov (%p30_p3, %s1839_s25), 0  ;;  %p76_p6 = scmp.ne.s32.totalorder %s1427_s15, %s1423_s14 }
  0x11   : > { %1820 = sst [smem:[#allocation6_spill]] %s1841_s25  ;;  %s65_s4 = ssub.s32 %s1451_s21, %s1841_s25 }
  0x12   : > { %s1554_s30 = scalar_select %p39_p4, %s1435_s17, %s41_s26  }
  0x13   : > { %s66_s5 = sor.u32 %s65_s4, %s37_s27  ;;  %p121_p7 = scmp.eq.s32.totalorder %s65_s4, 0 }
  0x14   : > { %p67_p8 = scmp.eq.s32.totalorder %s66_s5, 0  ;;  %p1560_p9 = por %p76_p6, %p49_p2 }
  0x15   : > { %s123_s7 = sadd.s32 1, %s1419_s13  ;;  %p133_p10 = scmp.ne.s32.totalorder %s1419_s13, %s1415_s12 }
  0x16   : > { %s1568_s8 = scalar_select %p67_p8, %s1427_s15, %s69_s29  }
  0x17   : > { %s1571_s9 = scalar_select %p121_p7, %s1419_s13, %s123_s7  }
  0x18   : > { %p134_p11 = scmp.eq.s32.totalorder %s1119_s23, 11  ;;  %p1122_p13 = scmp.ge.s32.totalorder %s1455_s22, 12 }
  0x1a   : > { %p1573_p12 = por %p134_p11, %p133_p10  ;;  %156 = sbr.rel (%p1122_p13) target bundleno = 76 (0x4c), region = 16 }
  0x1f   : > { %159 = sbr.rel (!%p1546_p5) target bundleno = 42 (0x2a), region = 20  ;;  %s161_s11 = sand.u32 (%p1546_p5), 1, %s1435_s17  }
  0x20   : > { %s1194_s26 = smul.u32 (%p1546_p5), 12, %s1447_s20  ;;  %s1823_s0 = sld [smem:[#allocation7_spill]] (%p1546_p5) }
  0x21   : > { %s1199_s27 = smul.u32 (%p1546_p5), 24, %s161_s11 }
  0x23   : > { %s163_s23 = scalar_lea.vmem (%p1546_p5), [#allocation3], %s1199_s27 }
  0x26   : > { %s169_s5 = scalar_lea.vmem %s1823_s0, %s1194_s26 }
  0x27   : > { %v184_v0 = vld [vmem:[%s169_s5] sm:$0xff]  ;;  %v186_v1 = vld [vmem:[%s169_s5 + $0x48] sm:$0xff]  ;;  %v1126_v3 = vld [vmem:[%s169_s5 + $0x50] sm:$0xf] }
  0x28   : > { %v1124_v2 = vld [vmem:[%s169_s5 + $0x8] sm:$0xf]  ;;  %185 = vst [vmem:[%s163_s23] sm:$0xff] %v184_v0  ;;  %187 = vst [vmem:[%s163_s23 + $0xc] sm:$0xff] %v186_v1 }
  0x29   : > { %1125 = vst [vmem:[%s163_s23 + $0x8] sm:$0xf] %v1124_v2  ;;  %1127 = vst [vmem:[%s163_s23 + $0x14] sm:$0xf] %v1126_v3 }
  0x2a PF: > { %205 = sbr.rel (!%p1560_p9) target bundleno = 76 (0x4c), region = 46  ;;  %s207_s28 = sand.u32 (%p1560_p9), 1, %s1427_s15  }
  0x2b   : > { %s1200_s7 = smul.u32 (%p1560_p9), 384, %s207_s28  ;;  %s1128_s11 = sshll.u32 (%p1560_p9), %s1451_s21, 1 }
  0x2c   : > { %s1195_s26 = smul.u32 (%p1560_p9), 192, %s1447_s20  ;;  %s1824_s1 = sld [smem:[#allocation8_spill]] (%p1560_p9) }
  0x2d   : > { %s1598_s6 = scalar_lea.vmem (%p1560_p9), [#allocation4], %s1200_s7 }
  0x2e   : > { %s213_s29 = sadd.s32 (%p1560_p9), %s1195_s26, %s1128_s11 }
  0x2f   : > { %s1130_s4 = sshll.u32 %s213_s29, 2 }
  0x32   : > { %s1593_s25 = scalar_lea.vmem %s1824_s1, %s1130_s4 }
  0x33   : > { %v338_v4 = vld [vmem:[%s1593_s25] sm:$0xff]  ;;  %v340_v5 = vld [vmem:[%s1593_s25 + $0x10] sm:$0xff] }
  0x34   : > { %v342_v6 = vld [vmem:[%s1593_s25 + $0x20] sm:$0xff]  ;;  %339 = vst [vmem:[%s1598_s6] sm:$0xff] %v338_v4  ;;  %341 = vst [vmem:[%s1598_s6 + $0x8] sm:$0xff] %v340_v5  ;;  %v344_v7 = vld [vmem:[%s1593_s25 + $0x30] sm:$0xff] }
  0x35   : > { %343 = vst [vmem:[%s1598_s6 + $0x10] sm:$0xff] %v342_v6  ;;  %v346_v8 = vld [vmem:[%s1593_s25 + $0x40] sm:$0xff]  ;;  %v348_v9 = vld [vmem:[%s1593_s25 + $0x50] sm:$0xff]  ;;  %345 = vst [vmem:[%s1598_s6 + $0x18] sm:$0xff] %v344_v7 }
  0x36   : > { %347 = vst [vmem:[%s1598_s6 + $0x20] sm:$0xff] %v346_v8  ;;  %349 = vst [vmem:[%s1598_s6 + $0x28] sm:$0xff] %v348_v9  ;;  %v350_v10 = vld [vmem:[%s1593_s25 + $0x60] sm:$0xff]  ;;  %v352_v11 = vld [vmem:[%s1593_s25 + $0x70] sm:$0xff] }
  0x37   : > { %v354_v12 = vld [vmem:[%s1593_s25 + $0x80] sm:$0xff]  ;;  %351 = vst [vmem:[%s1598_s6 + $0x30] sm:$0xff] %v350_v10  ;;  %353 = vst [vmem:[%s1598_s6 + $0x38] sm:$0xff] %v352_v11  ;;  %v356_v13 = vld [vmem:[%s1593_s25 + $0x90] sm:$0xff] }
  0x38   : > { %355 = vst [vmem:[%s1598_s6 + $0x40] sm:$0xff] %v354_v12  ;;  %v358_v14 = vld [vmem:[%s1593_s25 + $0xa0] sm:$0xff]  ;;  %v360_v15 = vld [vmem:[%s1593_s25 + $0xb0] sm:$0xff]  ;;  %357 = vst [vmem:[%s1598_s6 + $0x48] sm:$0xff] %v356_v13 }
  0x39   : > { %359 = vst [vmem:[%s1598_s6 + $0x50] sm:$0xff] %v358_v14  ;;  %361 = vst [vmem:[%s1598_s6 + $0x58] sm:$0xff] %v360_v15  ;;  %v362_v16 = vld [vmem:[%s1593_s25 + $0xc0] sm:$0xff]  ;;  %v364_v17 = vld [vmem:[%s1593_s25 + $0xd0] sm:$0xff] }
  0x3a   : > { %v366_v18 = vld [vmem:[%s1593_s25 + $0xe0] sm:$0xff]  ;;  %363 = vst [vmem:[%s1598_s6 + $0x60] sm:$0xff] %v362_v16  ;;  %365 = vst [vmem:[%s1598_s6 + $0x68] sm:$0xff] %v364_v17  ;;  %v368_v19 = vld [vmem:[%s1593_s25 + $0xf0] sm:$0xff] }
  0x3b   : > { %367 = vst [vmem:[%s1598_s6 + $0x70] sm:$0xff] %v366_v18  ;;  %v370_v20 = vld [vmem:[%s1593_s25 + $0x100] sm:$0xff]  ;;  %v372_v21 = vld [vmem:[%s1593_s25 + $0x110] sm:$0xff]  ;;  %369 = vst [vmem:[%s1598_s6 + $0x78] sm:$0xff] %v368_v19 }
  0x3c   : > { %371 = vst [vmem:[%s1598_s6 + $0x80] sm:$0xff] %v370_v20  ;;  %373 = vst [vmem:[%s1598_s6 + $0x88] sm:$0xff] %v372_v21  ;;  %v374_v22 = vld [vmem:[%s1593_s25 + $0x120] sm:$0xff]  ;;  %v376_v23 = vld [vmem:[%s1593_s25 + $0x130] sm:$0xff] }
  0x3d   : > { %v378_v24 = vld [vmem:[%s1593_s25 + $0x140] sm:$0xff]  ;;  %375 = vst [vmem:[%s1598_s6 + $0x90] sm:$0xff] %v374_v22  ;;  %377 = vst [vmem:[%s1598_s6 + $0x98] sm:$0xff] %v376_v23  ;;  %v380_v25 = vld [vmem:[%s1593_s25 + $0x150] sm:$0xff] }
  0x3e   : > { %379 = vst [vmem:[%s1598_s6 + $0xa0] sm:$0xff] %v378_v24  ;;  %v382_v26 = vld [vmem:[%s1593_s25 + $0x160] sm:$0xff]  ;;  %v384_v27 = vld [vmem:[%s1593_s25 + $0x170] sm:$0xff]  ;;  %381 = vst [vmem:[%s1598_s6 + $0xa8] sm:$0xff] %v380_v25 }
  0x3f   : > { %383 = vst [vmem:[%s1598_s6 + $0xb0] sm:$0xff] %v382_v26  ;;  %385 = vst [vmem:[%s1598_s6 + $0xb8] sm:$0xff] %v384_v27  ;;  %v386_v28 = vld [vmem:[%s1593_s25 + $0x180] sm:$0xff]  ;;  %v388_v29 = vld [vmem:[%s1593_s25 + $0x190] sm:$0xff] }
  0x40   : > { %v390_v30 = vld [vmem:[%s1593_s25 + $0x1a0] sm:$0xff]  ;;  %387 = vst [vmem:[%s1598_s6 + $0xc0] sm:$0xff] %v386_v28  ;;  %389 = vst [vmem:[%s1598_s6 + $0xc8] sm:$0xff] %v388_v29  ;;  %v392_v31 = vld [vmem:[%s1593_s25 + $0x1b0] sm:$0xff] }
  0x41   : > { %391 = vst [vmem:[%s1598_s6 + $0xd0] sm:$0xff] %v390_v30  ;;  %v394_v32 = vld [vmem:[%s1593_s25 + $0x1c0] sm:$0xff]  ;;  %v396_v33 = vld [vmem:[%s1593_s25 + $0x1d0] sm:$0xff]  ;;  %393 = vst [vmem:[%s1598_s6 + $0xd8] sm:$0xff] %v392_v31 }
  0x42   : > { %395 = vst [vmem:[%s1598_s6 + $0xe0] sm:$0xff] %v394_v32  ;;  %397 = vst [vmem:[%s1598_s6 + $0xe8] sm:$0xff] %v396_v33  ;;  %v398_v34 = vld [vmem:[%s1593_s25 + $0x1e0] sm:$0xff]  ;;  %v400_v35 = vld [vmem:[%s1593_s25 + $0x1f0] sm:$0xff] }
  0x43   : > { %v402_v36 = vld [vmem:[%s1593_s25 + $0x200] sm:$0xff]  ;;  %399 = vst [vmem:[%s1598_s6 + $0xf0] sm:$0xff] %v398_v34  ;;  %401 = vst [vmem:[%s1598_s6 + $0xf8] sm:$0xff] %v400_v35  ;;  %v404_v37 = vld [vmem:[%s1593_s25 + $0x210] sm:$0xff] }
  0x44   : > { %403 = vst [vmem:[%s1598_s6 + $0x100] sm:$0xff] %v402_v36  ;;  %v406_v38 = vld [vmem:[%s1593_s25 + $0x220] sm:$0xff]  ;;  %v408_v39 = vld [vmem:[%s1593_s25 + $0x230] sm:$0xff]  ;;  %405 = vst [vmem:[%s1598_s6 + $0x108] sm:$0xff] %v404_v37 }
  0x45   : > { %407 = vst [vmem:[%s1598_s6 + $0x110] sm:$0xff] %v406_v38  ;;  %409 = vst [vmem:[%s1598_s6 + $0x118] sm:$0xff] %v408_v39  ;;  %v410_v40 = vld [vmem:[%s1593_s25 + $0x240] sm:$0xff]  ;;  %v412_v41 = vld [vmem:[%s1593_s25 + $0x250] sm:$0xff] }
  0x46   : > { %v414_v42 = vld [vmem:[%s1593_s25 + $0x260] sm:$0xff]  ;;  %411 = vst [vmem:[%s1598_s6 + $0x120] sm:$0xff] %v410_v40  ;;  %413 = vst [vmem:[%s1598_s6 + $0x128] sm:$0xff] %v412_v41  ;;  %v416_v43 = vld [vmem:[%s1593_s25 + $0x270] sm:$0xff] }
  0x47   : > { %415 = vst [vmem:[%s1598_s6 + $0x130] sm:$0xff] %v414_v42  ;;  %v418_v44 = vld [vmem:[%s1593_s25 + $0x280] sm:$0xff]  ;;  %v420_v45 = vld [vmem:[%s1593_s25 + $0x290] sm:$0xff]  ;;  %417 = vst [vmem:[%s1598_s6 + $0x138] sm:$0xff] %v416_v43 }
  0x48   : > { %419 = vst [vmem:[%s1598_s6 + $0x140] sm:$0xff] %v418_v44  ;;  %421 = vst [vmem:[%s1598_s6 + $0x148] sm:$0xff] %v420_v45  ;;  %v422_v46 = vld [vmem:[%s1593_s25 + $0x2a0] sm:$0xff]  ;;  %v424_v47 = vld [vmem:[%s1593_s25 + $0x2b0] sm:$0xff] }
  0x49   : > { %v426_v48 = vld [vmem:[%s1593_s25 + $0x2c0] sm:$0xff]  ;;  %423 = vst [vmem:[%s1598_s6 + $0x150] sm:$0xff] %v422_v46  ;;  %425 = vst [vmem:[%s1598_s6 + $0x158] sm:$0xff] %v424_v47  ;;  %v428_v49 = vld [vmem:[%s1593_s25 + $0x2d0] sm:$0xff] }
  0x4a   : > { %427 = vst [vmem:[%s1598_s6 + $0x160] sm:$0xff] %v426_v48  ;;  %v430_v50 = vld [vmem:[%s1593_s25 + $0x2e0] sm:$0xff]  ;;  %v432_v51 = vld [vmem:[%s1593_s25 + $0x2f0] sm:$0xff]  ;;  %429 = vst [vmem:[%s1598_s6 + $0x168] sm:$0xff] %v428_v49 }
  0x4b   : > { %431 = vst [vmem:[%s1598_s6 + $0x170] sm:$0xff] %v430_v50  ;;  %433 = vst [vmem:[%s1598_s6 + $0x178] sm:$0xff] %v432_v51 }
  0x4c PF: > { %p1131_p0 = scmp.ge.s32.totalorder %s1455_s22, 1  ;;  %p446_p1 = scmp.lt.s32.totalorder %s1455_s22, 13 }
  0x4e   : > { %p447_p2 = pnand %p1131_p0, %p446_p1 }
  0x4f   : > { %s453_s0 = sand.u32 (!%p447_p2), 1, %s1431_s16   ;;  %s460_s5 = sand.u32 (!%p447_p2), 1, %s1423_s14  }
  0x50   : > { %450 = sbr.rel (%p447_p2) target bundleno = 387 (0x183), region = 88  ;;  %s487_s28 = sand.u32 (!%p447_p2), 1, %s1415_s12  }
  0x51   : > { %s1201_s23 = smul.u32 (!%p447_p2), 24, %s453_s0  ;;  %s1132_s7 = sshll.u32 (!%p447_p2), %s487_s28, 4 }
  0x52   : > { %s1202_s25 = smul.u32 (!%p447_p2), 384, %s460_s5  ;;  %s1133_s11 = sshll.u32 (!%p447_p2), %s1443_s19, 1 }
  0x53   : > { %p495_p3 = scmp.lt.s32.totalorder (!%p447_p2), %s1133_s11, 3  ;;  %s1705_s27 = scalar_lea.vmem (!%p447_p2), [#allocation3], %s1201_s23 }
  0x54   : > { %s1707_s6 = scalar_lea.vmem (!%p447_p2), [#allocation4], %s1202_s25  ;;  %s1709_s1 = scalar_lea.vmem (!%p447_p2), [#allocation5], %s1132_s7 }
  0x55   : > { %s1843_s11 = smov (!%p495_p3, %s1133_s11), 3  ;;  %p1134_p4 = scmp.ne.s32.totalorder %s1439_s18, 0 }
  0x56   : > { %s497_s4 = scalar_lea.vmem %s1814_s2, %s1843_s11 }
  0x57   : > { %505 = sbr.rel (%p1134_p4) target bundleno = 95 (0x5f), region = 100 }
  0x5c   : > { %v1457_v52 = vmov 0.0  }
  0x5d   : > { %506 = vst [vmem:[#allocation2 + $0x10] sm:$0xff] %v1457_v52  ;;  %507 = vst [vmem:[#allocation2] sm:$0xff] %v1457_v52 }
  0x5e   : > { %508 = vst [vmem:[#allocation2 + $0x18] sm:$0xff] %v1457_v52  ;;  %509 = vst [vmem:[#allocation2 + $0x8] sm:$0xff] %v1457_v52 }
  0x5f PF: > { %v1293_v53 = vld [vmem:[%s1707_s6 + $0x74] ss:$8 sps:$4 sm:$0xff]   ;;  %v1295_v54 = vld [vmem:[%s1707_s6 + $0x70] ss:$8 sps:$4 sm:$0xff]   ;;  %v1458_v55 = vmov 0   ;;  %p1186_p5 = scmp.ne.s32.totalorder %s1439_s18, 5 }
  0x60   : > { %897 = vmatprep.mubr.bf16.mxu1 %v1458_v55  ;;  %822 = vmatprep.subr.bf16.mxu0 %v1293_v53  ;;  %v1296_v56 = vld [vmem:[%s1707_s6 + $0x64] ss:$8 sps:$4 sm:$0xff]   ;;  %v1298_v57 = vld [vmem:[%s1707_s6 + $0x60] ss:$8 sps:$4 sm:$0xff]   ;;  %v1299_v58 = vld [vmem:[%s1707_s6 + $0x54] ss:$8 sps:$4 sm:$0xff]  }
  0x61   : > { %823 = vmatpush1.bf16.msra.mxu0 %v1295_v54  ;;  %v1301_v59 = vld [vmem:[%s1707_s6 + $0x50] ss:$8 sps:$4 sm:$0xff]   ;;  %v1302_v60 = vld [vmem:[%s1707_s6 + $0x44] ss:$8 sps:$4 sm:$0xff]   ;;  %v1314_v61 = vld [vmem:[%s1707_s6 + $0x174] ss:$8 sps:$4 sm:$0xff]  }
  0x62   : > { %824 = vmatprep.subr.bf16.mxu0 %v1296_v56  ;;  %v1316_v62 = vld [vmem:[%s1707_s6 + $0x170] ss:$8 sps:$4 sm:$0xff]   ;;  %v1304_v63 = vld [vmem:[%s1707_s6 + $0x40] ss:$8 sps:$4 sm:$0xff]   ;;  %v1305_v0 = vld [vmem:[%s1707_s6 + $0x34] ss:$8 sps:$4 sm:$0xff]   ;;  %865 = vmatprep.subr.bf16.mxu1 %v1314_v61 }
  0x63   : > { %v1320_v1 = vld [vmem:[%s1707_s6 + $0x164] ss:$8 sps:$4 sm:$0xff]   ;;  %866 = vmatpush1.bf16.msra.mxu1 %v1316_v62  ;;  %v1322_v2 = vld [vmem:[%s1707_s6 + $0x160] ss:$8 sps:$4 sm:$0xff]   ;;  %v1307_v3 = vld [vmem:[%s1707_s6 + $0x30] ss:$8 sps:$4 sm:$0xff]  }
  0x64   : > { %867 = vmatprep.subr.bf16.mxu1 %v1320_v1  ;;  %v1326_v4 = vld [vmem:[%s1707_s6 + $0x154] ss:$8 sps:$4 sm:$0xff]   ;;  %v1308_v5 = vld [vmem:[%s1707_s6 + $0x24] ss:$8 sps:$4 sm:$0xff]   ;;  %v1328_v6 = vld [vmem:[%s1707_s6 + $0x150] ss:$8 sps:$4 sm:$0xff]  }
  0x65   : > { %825 = vmatpush1.bf16.msra.mxu0 %v1298_v57  ;;  %v1332_v7 = vld [vmem:[%s1707_s6 + $0x144] ss:$8 sps:$4 sm:$0xff]   ;;  %v1310_v8 = vld [vmem:[%s1707_s6 + $0x20] ss:$8 sps:$4 sm:$0xff]   ;;  %v1311_v9 = vld [vmem:[%s1707_s6 + $0x14] ss:$8 sps:$4 sm:$0xff]  }
  0x66   : > { %826 = vmatprep.subr.bf16.mxu0 %v1299_v58  ;;  %v1334_v10 = vld [vmem:[%s1707_s6 + $0x140] ss:$8 sps:$4 sm:$0xff]   ;;  %v1338_v11 = vld [vmem:[%s1707_s6 + $0x134] ss:$8 sps:$4 sm:$0xff]   ;;  %v1313_v12 = vld [vmem:[%s1707_s6 + $0x10] ss:$8 sps:$4 sm:$0xff]  }
  0x67   : > { %868 = vmatpush1.bf16.msra.mxu1 %v1322_v2  ;;  %v1317_v13 = vld [vmem:[%s1707_s6 + $0x4] ss:$8 sps:$4 sm:$0xff]   ;;  %v1340_v14 = vld [vmem:[%s1707_s6 + $0x130] ss:$8 sps:$4 sm:$0xff]   ;;  %v1319_v16 = vld [vmem:[%s1707_s6] ss:$8 sps:$4 sm:$0xff]  }
  0x68   : > { %869 = vmatprep.subr.bf16.mxu1 %v1326_v4  ;;  %v1344_v15 = vld [vmem:[%s1707_s6 + $0x124] ss:$8 sps:$4 sm:$0xff]   ;;  %v1323_v17 = vld [vmem:[%s1707_s6 + $0xf4] ss:$8 sps:$4 sm:$0xff]   ;;  %v1346_v18 = vld [vmem:[%s1707_s6 + $0x120] ss:$8 sps:$4 sm:$0xff]  }
  0x69   : > { %827 = vmatpush1.bf16.msra.mxu0 %v1301_v59  ;;  %v1350_v19 = vld [vmem:[%s1707_s6 + $0x114] ss:$8 sps:$4 sm:$0xff]   ;;  %v1325_v20 = vld [vmem:[%s1707_s6 + $0xf0] ss:$8 sps:$4 sm:$0xff]   ;;  %v1329_v21 = vld [vmem:[%s1707_s6 + $0xe4] ss:$8 sps:$4 sm:$0xff]  }
  0x6a   : > { %828 = vmatprep.subr.bf16.mxu0 %v1302_v60  ;;  %v1352_v22 = vld [vmem:[%s1707_s6 + $0x110] ss:$8 sps:$4 sm:$0xff]   ;;  %v1356_v23 = vld [vmem:[%s1707_s6 + $0x104] ss:$8 sps:$4 sm:$0xff]   ;;  %v1331_v25 = vld [vmem:[%s1707_s6 + $0xe0] ss:$8 sps:$4 sm:$0xff]  }
  0x6b   : > { %870 = vmatpush1.bf16.msra.mxu1 %v1328_v6  ;;  %v1368_v24 = vld [vmem:[%s1705_s27 + $0x4] ss:$12 sps:$4 sm:$0xff]   ;;  %v1362_v30 = vld [vmem:[%s1705_s27 + $0x8] ss:$12 sps:$4 sm:$0xff]   ;;  %v1366_v40 = vld [vmem:[%s1705_s27] ss:$12 sps:$4 sm:$0xff]  }
  0x6c   : > { %871 = vmatprep.subr.bf16.mxu1 %v1332_v7  ;;  %v1335_v26 = vld [vmem:[%s1707_s6 + $0xd4] ss:$8 sps:$4 sm:$0xff]   ;;  %854 = vmatprep.mubr.bf16.mxu0 %v1368_v24  ;;  %v1358_v27 = vld [vmem:[%s1707_s6 + $0x100] ss:$8 sps:$4 sm:$0xff]   ;;  %v1337_v28 = vld [vmem:[%s1707_s6 + $0xd0] ss:$8 sps:$4 sm:$0xff]  }
  0x6d   : > { %829 = vmatpush1.bf16.msra.mxu0 %v1304_v63  ;;  %v1341_v29 = vld [vmem:[%s1707_s6 + $0xc4] ss:$8 sps:$4 sm:$0xff]   ;;  %v1343_v31 = vld [vmem:[%s1707_s6 + $0xc0] ss:$8 sps:$4 sm:$0xff]   ;;  %v1347_v32 = vld [vmem:[%s1707_s6 + $0xb4] ss:$8 sps:$4 sm:$0xff]  }
  0x6e   : > { %830 = vmatprep.subr.bf16.mxu0 %v1305_v0  ;;  %v1349_v33 = vld [vmem:[%s1707_s6 + $0xb0] ss:$8 sps:$4 sm:$0xff]   ;;  %v1353_v34 = vld [vmem:[%s1707_s6 + $0xa4] ss:$8 sps:$4 sm:$0xff]   ;;  %v1355_v35 = vld [vmem:[%s1707_s6 + $0xa0] ss:$8 sps:$4 sm:$0xff]  }
  0x6f   : > { %872 = vmatpush1.bf16.msra.mxu1 %v1334_v10  ;;  %v1359_v36 = vld [vmem:[%s1707_s6 + $0x94] ss:$8 sps:$4 sm:$0xff]   ;;  %v1361_v37 = vld [vmem:[%s1707_s6 + $0x90] ss:$8 sps:$4 sm:$0xff]   ;;  %v1363_v38 = vld [vmem:[%s1707_s6 + $0x84] ss:$8 sps:$4 sm:$0xff]  }
  0x70   : > { %873 = vmatprep.subr.bf16.mxu1 %v1338_v11  ;;  %v1365_v39 = vld [vmem:[%s1707_s6 + $0x80] ss:$8 sps:$4 sm:$0xff]   ;;  %v511_v47 = vld [vmem:[#allocation2] sm:$0xff]  ;;  %v513_v56 = vld [vmem:[#allocation2 + $0x8] sm:$0xff] }
  0x71   : > { %831 = vmatpush1.bf16.msra.mxu0 %v1307_v3  ;;  %v510_v43 = vld [vmem:[#allocation2 + $0x10] sm:$0xff]  ;;  %v512_v51 = vld [vmem:[#allocation2 + $0x18] sm:$0xff] }
  0x72   : > { %832 = vmatprep.subr.bf16.mxu0 %v1308_v5 }
  0x73   : > { %874 = vmatpush1.bf16.msra.mxu1 %v1340_v14 }
  0x74   : > { %875 = vmatprep.subr.bf16.mxu1 %v1344_v15 }
  0x75   : > { %833 = vmatpush1.bf16.msra.mxu0 %v1310_v8 }
  0x76   : > { %834 = vmatprep.subr.bf16.mxu0 %v1311_v9 }
  0x77   : > { %876 = vmatpush1.bf16.msra.mxu1 %v1346_v18 }
  0x78   : > { %877 = vmatprep.subr.bf16.mxu1 %v1350_v19 }
  0x79   : > { %835 = vmatpush1.bf16.msra.mxu0 %v1313_v12 }
  0x7a   : > { %836 = vmatprep.subr.bf16.mxu0 %v1317_v13 }
  0x7b   : > { %878 = vmatpush1.bf16.msra.mxu1 %v1352_v22 }
  0x7c   : > { %879 = vmatprep.subr.bf16.mxu1 %v1356_v23 }
  0x7d   : > { %837 = vmatpush1.bf16.msra.mxu0 %v1319_v16 }
  0x7e   : > { %838 = vmatprep.subr.bf16.mxu0 %v1323_v17 }
  0x7f   : > { %880 = vmatpush1.bf16.msra.mxu1 %v1358_v27 }
  0x81   : > { %839 = vmatpush2.bf16.msra.mxu0 %v1325_v20 }
  0x82   : > { %840 = vmatprep.subr.bf16.mxu0 %v1329_v21  ;;  %898 = vmatmul.mubr.bf16.vlgmr.msra.gmra.mxu1 %v1362_v30 }
  0x85   : > { %841 = vmatpush2.bf16.msra.mxu0 %v1331_v25 }
  0x86   : > { %842 = vmatprep.subr.bf16.mxu0 %v1335_v26 }
  0x89   : > { %843 = vmatpush2.bf16.msra.mxu0 %v1337_v28 }
  0x8a   : > { %844 = vmatprep.subr.bf16.mxu0 %v1341_v29 }
  0x8d   : > { %845 = vmatpush2.bf16.msra.mxu0 %v1343_v31 }
  0x8e   : > { %846 = vmatprep.subr.bf16.mxu0 %v1347_v32 }
  0x91   : > { %847 = vmatpush2.bf16.msra.mxu0 %v1349_v33 }
  0x92   : > { %848 = vmatprep.subr.bf16.mxu0 %v1353_v34 }
  0x95   : > { %849 = vmatpush2.bf16.msra.mxu0 %v1355_v35 }
  0x96   : > { %850 = vmatprep.subr.bf16.mxu0 %v1359_v36 }
  0x99   : > { %851 = vmatpush2.bf16.msra.mxu0 %v1361_v37 }
  0x9a   : > { %852 = vmatprep.subr.bf16.mxu0 %v1363_v38 }
  0x9d   : > { %853 = vmatpush2.bf16.msra.mxu0 %v1365_v39 }
  0xa0   : > { %855 = vmatmul.mubr.bf16.vlgmr.msra.gmra.mxu0 %v1366_v40 }
 0x142   : > { %v899_v41 = vpop.f32.mrf.mxu1 }
 0x144   : > { %v901_v42 = vpop.f32.mrf.mxu1 }
 0x146   : > { %v903_v46 = vpop.f32.mrf.mxu1 }
 0x148   : > { %v905_v55 = vpop.f32.mrf.mxu1 }
 0x160   : > { %v856_v44 = vpop.f32.mrf.mxu0 }
 0x161   : > { %v900_v45 = vadd.f32 %v899_v41, %v856_v44 }
 0x162   : > { %v858_v48 = vpop.f32.mrf.mxu0 }
 0x163   : > { %v908_v49 = vadd.f32 %v900_v45, %v510_v43  ;;  %v902_v50 = vadd.f32 %v901_v42, %v858_v48 }
 0x164   : > { %v860_v52 = vpop.f32.mrf.mxu0 }
 0x165   : > { %912 = vst [vmem:[#allocation2 + $0x10] sm:$0xff] %v908_v49  ;;  %v909_v53 = vadd.f32 %v902_v50, %v511_v47  ;;  %v904_v54 = vadd.f32 %v903_v46, %v860_v52 }
 0x166   : > { %v862_v57 = vpop.f32.mrf.mxu0 }
 0x167   : > { %913 = vst [vmem:[#allocation2] sm:$0xff] %v909_v53  ;;  %v910_v58 = vadd.f32 %v904_v54, %v512_v51  ;;  %v906_v59 = vadd.f32 %v905_v55, %v862_v57  ;;  %919 = sbr.rel (%p1186_p5) target bundleno = 379 (0x17b), region = 104 }
 0x169   : > { %914 = vst [vmem:[#allocation2 + $0x18] sm:$0xff] %v910_v58  ;;  %v911_v60 = vadd.f32 %v906_v59, %v513_v56 }
 0x16b   : > { %915 = vst [vmem:[#allocation2 + $0x8] sm:$0xff] %v911_v60 }
 0x16c   : > { %v926_v61 = vlaneseq  ;;  %v924_v63 = vld [vmem:[%s497_s4] sm:$0x3]  ;;  %v920_v0 = vld [vmem:[#allocation2 + $0x10] sm:$0xff] }
 0x16e   : > { %v927_v62 = vshrl.u32 %v926_v61, 7  ;;  %v921_v3 = vld [vmem:[#allocation2] sm:$0xff] }
 0x170   : > { %v928_v1 = vsub.s32 0, %v927_v62  ;;  %v932_v2 = vsub.s32 1, %v927_v62  ;;  %v922_v4 = vld [vmem:[#allocation2 + $0x18] sm:$0xff] }
 0x172   : > { %v923_v5 = vld [vmem:[#allocation2 + $0x8] sm:$0xff]  ;;  %v929_v6 = vrot.slane %v924_v63, %v928_v1  ;;  %v933_v7 = vrot.slane %v924_v63, %v932_v2 }
 0x174   : > { %v936_v8 = vadd.f32 %v929_v6, %v920_v0  ;;  %v937_v9 = vadd.f32 %v933_v7, %v921_v3  ;;  %v938_v10 = vadd.f32 %v929_v6, %v922_v4  ;;  %v939_v11 = vadd.f32 %v933_v7, %v923_v5 }
 0x176   : > { %v940_v12 = vmax.f32 %v936_v8, 0.0  ;;  %v941_v13 = vmax.f32 %v937_v9, 0.0  ;;  %v942_v14 = vmax.f32 %v938_v10, 0.0  ;;  %v943_v15 = vmax.f32 %v939_v11, 0.0 }
 0x178   : > { %v1196_v16 = vpack.c.bf16 %v941_v13, %v940_v12  ;;  %v1197_v17 = vpack.c.bf16 %v943_v15, %v942_v14 }
 0x17a   : > { %956 = vst [vmem:[%s1709_s1] sm:$0xff] %v1196_v16  ;;  %957 = vst [vmem:[%s1709_s1 + $0x8] sm:$0xff] %v1197_v17 }
 0x17b PF: > { %964 = sbr.rel (!%p1573_p12) target bundleno = 387 (0x183), region = 108  ;;  %s1198_s16 = sshll.u32 (%p1573_p12), %s1443_s19, 3 }
 0x17c   : > { %s970_s5 = scalar_lea.vmem (%p1573_p12), %s1815_s3, %s1198_s16 }
 0x181   : > { %v1001_v18 = vld [vmem:[%s1709_s1] sm:$0xff]  ;;  %v1003_v19 = vld [vmem:[%s1709_s1 + $0x8] sm:$0xff] }
 0x182   : > { %1002 = vst [vmem:[%s970_s5] sm:$0xff] %v1001_v18  ;;  %1004 = vst [vmem:[%s970_s5 + $0x10] sm:$0xff] %v1003_v19 }
 0x183 PF: > { %s13_s22 = sadd.s32 1, %s1455_s22   ;;  %s1825_s1 = sld [smem:[#allocation6_spill]] }
 0x184   : > { %p10_p6 = scmp.ge.s32.totalorder %s13_s22, 14   ;;  %s1826_s12 = smov %s1419_s13 }
 0x185   : > { %s1827_s13 = smov %s1571_s9  ;;  %s1828_s14 = smov %s1427_s15 }
 0x186   : > { %s1829_s15 = smov %s1568_s8  ;;  %s1830_s16 = smov %s1435_s17 }
 0x187   : > { %s1831_s17 = smov %s1554_s30  ;;  %s1832_s18 = smov %s1447_s20 }
 0x188   : > { %s1833_s19 = smov %s1451_s21  ;;  %s1834_s20 = smov %s1837_s24 }
 0x189   : > { %s1835_s21 = smov %s1825_s1  ;;  %12 = sbr.rel (!%p10_p6) target bundleno = 9 (0x9), region = 194 }

// kernel: starting_network_forward.40
= control target key start
LH: loop header
LB: loop body
LE: loop exit
PB: predicated region body
PF: predicated region fallthrough
CT: control target
= control target key end

     0   :  { %s1081_s12 = smov 0   ;;  %s1083_s13 = smov 0   ;;  %s1269_s0 = inlined_call_operand.vmem [shape: bf16[16,256], index: 0, kind: input, shape index: {}]   ;;  %s1270_s1 = inlined_call_operand.vmem [shape: bf16[256,512], index: 1, kind: input, shape index: {}]   ;;  %s1271_s2 = inlined_call_operand.vmem [shape: f32[1,512], index: 2, kind: input, shape index: {}]   ;;  %s1272_s3 = inlined_call_operand.vmem [shape: bf16[16,512], index: 3, kind: output, shape index: {}]  }
   0x1   :  { %s1085_s14 = smov 0   ;;  %s1087_s15 = smov 0  }
   0x2   :  { %s1089_s16 = smov 0  }
   0x3 LB: > { %s28_s17 = sadd.s32 1, %s1055_s15  ;;  %s873_s18 = sadd.s32 4294967295, %s1059_s16   ;;  %s1059_s16 = sphi %s1089_s16, %s13_s16   ;;  %s1055_s15 = sphi %s1087_s15, %s1277_s15   ;;  %s1051_s14 = sphi %s1085_s14, %s1276_s14   ;;  %s1047_s13 = sphi %s1083_s13, %s1275_s13   ;;  %s1043_s12 = sphi %s1081_s12, %s1274_s12  }
   0x4   : > { %p30_p0 = scmp.ge.s32.totalorder %s28_s17, 2  ;;  %p76_p1 = scmp.ne.s32.totalorder %s1047_s13, %s1043_s12 }
   0x5   : > { %p77_p2 = scmp.eq.s32.totalorder %s1059_s16, 0  ;;  %p134_p4 = scmp.eq.s32.totalorder %s873_s18, 1 }
   0x6   : > { %s1279_s17 = smov (%p30_p0, %s28_s17), 0  ;;  %s69_s20 = sadd.s32 1, %s1047_s13 }
   0x7   : > { %p78_p3 = por %p77_p2, %p76_p1  ;;  %s65_s19 = ssub.s32 %s1055_s15, %s1279_s17 }
   0x8   : > { %p67_p5 = scmp.eq.s32.totalorder %s65_s19, 0  ;;  %p1116_p6 = por %p134_p4, %p76_p1 }
   0x9   : > { %p877_p7 = scmp.ge.s32.totalorder %s1059_s16, 2 }
   0xa   : > { %s1121_s22 = scalar_select %p67_p5, %s1047_s13, %s69_s20  }
   0xb   : > { %171 = sbr.rel (%p877_p7) target bundleno = 36 (0x24), region = 20 }
  0x10   : > { %174 = sbr.rel (!%p78_p3) target bundleno = 36 (0x24), region = 24  ;;  %s176_s23 = sand.u32 (%p78_p3), 1, %s1047_s13  }
  0x11   : > { %s926_s24 = sshll.u32 (%p78_p3), %s1055_s15, 3  ;;  %s878_s25 = sshll.u32 (%p78_p3), %s176_s23, 8 }
  0x12   : > { %s1129_s28 = scalar_lea.vmem (%p78_p3), %s1270_s1, %s926_s24  ;;  %s1134_s29 = scalar_lea.vmem (%p78_p3), [#allocation3], %s878_s25 }
  0x13   : > { %v275_v0 = vld [vmem:[%s1129_s28] sm:$0xff] (%p78_p3)  ;;  %v277_v1 = vld [vmem:[%s1129_s28 + $0x10] sm:$0xff] (%p78_p3) }
  0x14   : > { %v279_v2 = vld [vmem:[%s1129_s28 + $0x20] sm:$0xff] (%p78_p3)  ;;  %276 = vst [vmem:[%s1134_s29] sm:$0xff] (%p78_p3), %v275_v0  ;;  %278 = vst [vmem:[%s1134_s29 + $0x8] sm:$0xff] (%p78_p3), %v277_v1  ;;  %v281_v3 = vld [vmem:[%s1129_s28 + $0x30] sm:$0xff] (%p78_p3) }
  0x15   : > { %280 = vst [vmem:[%s1134_s29 + $0x10] sm:$0xff] %v279_v2  ;;  %v283_v4 = vld [vmem:[%s1129_s28 + $0x40] sm:$0xff]  ;;  %v285_v5 = vld [vmem:[%s1129_s28 + $0x50] sm:$0xff]  ;;  %282 = vst [vmem:[%s1134_s29 + $0x18] sm:$0xff] %v281_v3 }
  0x16   : > { %284 = vst [vmem:[%s1134_s29 + $0x20] sm:$0xff] %v283_v4  ;;  %286 = vst [vmem:[%s1134_s29 + $0x28] sm:$0xff] %v285_v5  ;;  %v287_v6 = vld [vmem:[%s1129_s28 + $0x60] sm:$0xff]  ;;  %v289_v7 = vld [vmem:[%s1129_s28 + $0x70] sm:$0xff] }
  0x17   : > { %v291_v8 = vld [vmem:[%s1129_s28 + $0x80] sm:$0xff]  ;;  %288 = vst [vmem:[%s1134_s29 + $0x30] sm:$0xff] %v287_v6  ;;  %290 = vst [vmem:[%s1134_s29 + $0x38] sm:$0xff] %v289_v7  ;;  %v293_v9 = vld [vmem:[%s1129_s28 + $0x90] sm:$0xff] }
  0x18   : > { %292 = vst [vmem:[%s1134_s29 + $0x40] sm:$0xff] %v291_v8  ;;  %v295_v10 = vld [vmem:[%s1129_s28 + $0xa0] sm:$0xff]  ;;  %v297_v11 = vld [vmem:[%s1129_s28 + $0xb0] sm:$0xff]  ;;  %294 = vst [vmem:[%s1134_s29 + $0x48] sm:$0xff] %v293_v9 }
  0x19   : > { %296 = vst [vmem:[%s1134_s29 + $0x50] sm:$0xff] %v295_v10  ;;  %298 = vst [vmem:[%s1134_s29 + $0x58] sm:$0xff] %v297_v11  ;;  %v299_v12 = vld [vmem:[%s1129_s28 + $0xc0] sm:$0xff]  ;;  %v301_v13 = vld [vmem:[%s1129_s28 + $0xd0] sm:$0xff] }
  0x1a   : > { %v303_v14 = vld [vmem:[%s1129_s28 + $0xe0] sm:$0xff]  ;;  %300 = vst [vmem:[%s1134_s29 + $0x60] sm:$0xff] %v299_v12  ;;  %302 = vst [vmem:[%s1134_s29 + $0x68] sm:$0xff] %v301_v13  ;;  %v305_v15 = vld [vmem:[%s1129_s28 + $0xf0] sm:$0xff] }
  0x1b   : > { %304 = vst [vmem:[%s1134_s29 + $0x70] sm:$0xff] %v303_v14  ;;  %v307_v16 = vld [vmem:[%s1129_s28 + $0x100] sm:$0xff]  ;;  %v309_v17 = vld [vmem:[%s1129_s28 + $0x110] sm:$0xff]  ;;  %306 = vst [vmem:[%s1134_s29 + $0x78] sm:$0xff] %v305_v15 }
  0x1c   : > { %308 = vst [vmem:[%s1134_s29 + $0x80] sm:$0xff] %v307_v16  ;;  %310 = vst [vmem:[%s1134_s29 + $0x88] sm:$0xff] %v309_v17  ;;  %v311_v18 = vld [vmem:[%s1129_s28 + $0x120] sm:$0xff]  ;;  %v313_v19 = vld [vmem:[%s1129_s28 + $0x130] sm:$0xff] }
  0x1d   : > { %v315_v20 = vld [vmem:[%s1129_s28 + $0x140] sm:$0xff]  ;;  %312 = vst [vmem:[%s1134_s29 + $0x90] sm:$0xff] %v311_v18  ;;  %314 = vst [vmem:[%s1134_s29 + $0x98] sm:$0xff] %v313_v19  ;;  %v317_v21 = vld [vmem:[%s1129_s28 + $0x150] sm:$0xff] }
  0x1e   : > { %316 = vst [vmem:[%s1134_s29 + $0xa0] sm:$0xff] %v315_v20  ;;  %v319_v22 = vld [vmem:[%s1129_s28 + $0x160] sm:$0xff]  ;;  %v321_v23 = vld [vmem:[%s1129_s28 + $0x170] sm:$0xff]  ;;  %318 = vst [vmem:[%s1134_s29 + $0xa8] sm:$0xff] %v317_v21 }
  0x1f   : > { %320 = vst [vmem:[%s1134_s29 + $0xb0] sm:$0xff] %v319_v22  ;;  %322 = vst [vmem:[%s1134_s29 + $0xb8] sm:$0xff] %v321_v23  ;;  %v323_v24 = vld [vmem:[%s1129_s28 + $0x180] sm:$0xff]  ;;  %v325_v25 = vld [vmem:[%s1129_s28 + $0x190] sm:$0xff] }
  0x20   : > { %v327_v26 = vld [vmem:[%s1129_s28 + $0x1a0] sm:$0xff]  ;;  %324 = vst [vmem:[%s1134_s29 + $0xc0] sm:$0xff] %v323_v24  ;;  %326 = vst [vmem:[%s1134_s29 + $0xc8] sm:$0xff] %v325_v25  ;;  %v329_v27 = vld [vmem:[%s1129_s28 + $0x1b0] sm:$0xff] }
  0x21   : > { %328 = vst [vmem:[%s1134_s29 + $0xd0] sm:$0xff] %v327_v26  ;;  %v331_v28 = vld [vmem:[%s1129_s28 + $0x1c0] sm:$0xff]  ;;  %v333_v29 = vld [vmem:[%s1129_s28 + $0x1d0] sm:$0xff]  ;;  %330 = vst [vmem:[%s1134_s29 + $0xd8] sm:$0xff] %v329_v27 }
  0x22   : > { %332 = vst [vmem:[%s1134_s29 + $0xe0] sm:$0xff] %v331_v28  ;;  %334 = vst [vmem:[%s1134_s29 + $0xe8] sm:$0xff] %v333_v29  ;;  %v335_v30 = vld [vmem:[%s1129_s28 + $0x1e0] sm:$0xff]  ;;  %v337_v31 = vld [vmem:[%s1129_s28 + $0x1f0] sm:$0xff] }
  0x23   : > { %336 = vst [vmem:[%s1134_s29 + $0xf0] sm:$0xff] %v335_v30  ;;  %338 = vst [vmem:[%s1134_s29 + $0xf8] sm:$0xff] %v337_v31 }
  0x24 PF: > { %p881_p8 = scmp.ge.s32.totalorder %s1059_s16, 1  ;;  %p351_p9 = scmp.lt.s32.totalorder %s1059_s16, 3 }
  0x26   : > { %p352_p10 = pnand %p881_p8, %p351_p9 }
  0x27   : > { %s358_s30 = sand.u32 (!%p352_p10), 1, %s1043_s12   ;;  %s884_s10 = sshll.u32 (!%p352_p10), %s1051_s14, 1 }
  0x28   : > { %355 = sbr.rel (%p352_p10) target bundleno = 322 (0x142), region = 66  ;;  %s882_s4 = sshll.u32 (!%p352_p10), %s358_s30, 8 }
  0x29   : > { %s1205_s7 = scalar_lea.vmem (!%p352_p10), [#allocation3], %s882_s4  ;;  %p409_p11 = scmp.lt.s32.totalorder (!%p352_p10), %s884_s10, 3 }
  0x2a   : > { %s883_s20 = sshll.u32 (!%p352_p10), %s358_s30, 4 }
  0x2b   : > { %s393_s23 = scalar_lea.vmem (!%p352_p10), [#allocation4], %s883_s20 }
  0x2d   : > { %v1020_v32 = vld [vmem:[%s1269_s0 + $0x4] ss:$8 sps:$4 sm:$0xff]   ;;  %v970_v33 = vld [vmem:[%s1205_s7 + $0x74] ss:$8 sps:$4 sm:$0xff]   ;;  %v972_v34 = vld [vmem:[%s1205_s7 + $0x70] ss:$8 sps:$4 sm:$0xff]   ;;  %v691_v2 = vlaneseq }
  0x2e   : > { %663 = vmatprep.mubr.bf16.mxu0 %v1020_v32  ;;  %631 = vmatprep.subr.bf16.mxu0 %v970_v33  ;;  %v973_v35 = vld [vmem:[%s1205_s7 + $0x64] ss:$8 sps:$4 sm:$0xff]   ;;  %v975_v36 = vld [vmem:[%s1205_s7 + $0x60] ss:$8 sps:$4 sm:$0xff]   ;;  %v976_v37 = vld [vmem:[%s1205_s7 + $0x54] ss:$8 sps:$4 sm:$0xff]  }
  0x2f   : > { %632 = vmatpush1.bf16.msra.mxu0 %v972_v34  ;;  %v978_v38 = vld [vmem:[%s1205_s7 + $0x50] ss:$8 sps:$4 sm:$0xff]   ;;  %v979_v39 = vld [vmem:[%s1205_s7 + $0x44] ss:$8 sps:$4 sm:$0xff]   ;;  %v981_v40 = vld [vmem:[%s1205_s7 + $0x40] ss:$8 sps:$4 sm:$0xff]  }
  0x30   : > { %633 = vmatprep.subr.bf16.mxu0 %v973_v35  ;;  %v982_v41 = vld [vmem:[%s1205_s7 + $0x34] ss:$8 sps:$4 sm:$0xff]   ;;  %v984_v42 = vld [vmem:[%s1205_s7 + $0x30] ss:$8 sps:$4 sm:$0xff]   ;;  %v985_v43 = vld [vmem:[%s1205_s7 + $0x24] ss:$8 sps:$4 sm:$0xff]  }
  0x31   : > { %v987_v44 = vld [vmem:[%s1205_s7 + $0x20] ss:$8 sps:$4 sm:$0xff]   ;;  %v988_v45 = vld [vmem:[%s1205_s7 + $0x14] ss:$8 sps:$4 sm:$0xff]   ;;  %v990_v46 = vld [vmem:[%s1205_s7 + $0x10] ss:$8 sps:$4 sm:$0xff]  }
  0x32   : > { %v991_v47 = vld [vmem:[%s1205_s7 + $0x4] ss:$8 sps:$4 sm:$0xff]   ;;  %v993_v48 = vld [vmem:[%s1205_s7] ss:$8 sps:$4 sm:$0xff]   ;;  %v994_v49 = vld [vmem:[%s1205_s7 + $0xf4] ss:$8 sps:$4 sm:$0xff]  }
  0x33   : > { %634 = vmatpush1.bf16.msra.mxu0 %v975_v36  ;;  %v996_v50 = vld [vmem:[%s1205_s7 + $0xf0] ss:$8 sps:$4 sm:$0xff]   ;;  %v997_v51 = vld [vmem:[%s1205_s7 + $0xe4] ss:$8 sps:$4 sm:$0xff]   ;;  %v999_v52 = vld [vmem:[%s1205_s7 + $0xe0] ss:$8 sps:$4 sm:$0xff]  }
  0x34   : > { %635 = vmatprep.subr.bf16.mxu0 %v976_v37  ;;  %v1000_v53 = vld [vmem:[%s1205_s7 + $0xd4] ss:$8 sps:$4 sm:$0xff]   ;;  %v1002_v54 = vld [vmem:[%s1205_s7 + $0xd0] ss:$8 sps:$4 sm:$0xff]   ;;  %v1003_v55 = vld [vmem:[%s1205_s7 + $0xc4] ss:$8 sps:$4 sm:$0xff]  }
  0x35   : > { %v1005_v56 = vld [vmem:[%s1205_s7 + $0xc0] ss:$8 sps:$4 sm:$0xff]   ;;  %v1006_v57 = vld [vmem:[%s1205_s7 + $0xb4] ss:$8 sps:$4 sm:$0xff]   ;;  %v1008_v58 = vld [vmem:[%s1205_s7 + $0xb0] ss:$8 sps:$4 sm:$0xff]  }
  0x36   : > { %v1009_v59 = vld [vmem:[%s1205_s7 + $0xa4] ss:$8 sps:$4 sm:$0xff]   ;;  %v1011_v60 = vld [vmem:[%s1205_s7 + $0xa0] ss:$8 sps:$4 sm:$0xff]   ;;  %v1012_v61 = vld [vmem:[%s1205_s7 + $0x94] ss:$8 sps:$4 sm:$0xff]  }
  0x37   : > { %636 = vmatpush1.bf16.msra.mxu0 %v978_v38  ;;  %v1014_v62 = vld [vmem:[%s1205_s7 + $0x90] ss:$8 sps:$4 sm:$0xff]   ;;  %v1015_v63 = vld [vmem:[%s1205_s7 + $0x84] ss:$8 sps:$4 sm:$0xff]   ;;  %v1017_v0 = vld [vmem:[%s1205_s7 + $0x80] ss:$8 sps:$4 sm:$0xff]  }
  0x38   : > { %637 = vmatprep.subr.bf16.mxu0 %v979_v39  ;;  %v1018_v1 = vld [vmem:[%s1269_s0] ss:$8 sps:$4 sm:$0xff]   ;;  %s1281_s10 = smov (!%p409_p11, %s884_s10), 3  ;;  %v692_v3 = vshrl.u32 %v691_v2, 7  ;;  %s929_s24 = sshll.u32 (%p1116_p6), %s1051_s14, 3 }
  0x39   : > { %s411_s19 = scalar_lea.vmem %s1271_s2, %s1281_s10  ;;  %s731_s26 = scalar_lea.vmem (%p1116_p6), %s1272_s3, %s929_s24 }
  0x3a   : > { %v693_v4 = vsub.s32 0, %v692_v3  ;;  %v697_v5 = vsub.s32 1, %v692_v3  ;;  %v689_v6 = vld [vmem:[%s411_s19] sm:$0x3] }
  0x3b   : > { %638 = vmatpush1.bf16.msra.mxu0 %v981_v40 }
  0x3c   : > { %639 = vmatprep.subr.bf16.mxu0 %v982_v41  ;;  %v694_v7 = vrot.slane %v689_v6, %v693_v4  ;;  %v698_v8 = vrot.slane %v689_v6, %v697_v5 }
  0x3f   : > { %640 = vmatpush1.bf16.msra.mxu0 %v984_v42 }
  0x40   : > { %641 = vmatprep.subr.bf16.mxu0 %v985_v43 }
  0x43   : > { %642 = vmatpush1.bf16.msra.mxu0 %v987_v44 }
  0x44   : > { %643 = vmatprep.subr.bf16.mxu0 %v988_v45 }
  0x47   : > { %644 = vmatpush1.bf16.msra.mxu0 %v990_v46 }
  0x48   : > { %645 = vmatprep.subr.bf16.mxu0 %v991_v47 }
  0x4b   : > { %646 = vmatpush1.bf16.msra.mxu0 %v993_v48 }
  0x4c   : > { %647 = vmatprep.subr.bf16.mxu0 %v994_v49 }
  0x4f   : > { %648 = vmatpush2.bf16.msra.mxu0 %v996_v50 }
  0x50   : > { %649 = vmatprep.subr.bf16.mxu0 %v997_v51 }
  0x53   : > { %650 = vmatpush2.bf16.msra.mxu0 %v999_v52 }
  0x54   : > { %651 = vmatprep.subr.bf16.mxu0 %v1000_v53 }
  0x57   : > { %652 = vmatpush2.bf16.msra.mxu0 %v1002_v54 }
  0x58   : > { %653 = vmatprep.subr.bf16.mxu0 %v1003_v55 }
  0x5b   : > { %654 = vmatpush2.bf16.msra.mxu0 %v1005_v56 }
  0x5c   : > { %655 = vmatprep.subr.bf16.mxu0 %v1006_v57 }
  0x5f   : > { %656 = vmatpush2.bf16.msra.mxu0 %v1008_v58 }
  0x60   : > { %657 = vmatprep.subr.bf16.mxu0 %v1009_v59 }
  0x63   : > { %658 = vmatpush2.bf16.msra.mxu0 %v1011_v60 }
  0x64   : > { %659 = vmatprep.subr.bf16.mxu0 %v1012_v61 }
  0x67   : > { %660 = vmatpush2.bf16.msra.mxu0 %v1014_v62 }
  0x68   : > { %661 = vmatprep.subr.bf16.mxu0 %v1015_v63 }
  0x6b   : > { %662 = vmatpush2.bf16.msra.mxu0 %v1017_v0 }
  0x6e   : > { %664 = vmatmul.mubr.bf16.vlgmr.msra.gmra.mxu0 %v1018_v1 }
 0x12e   : > { %v665_v9 = vpop.f32.mrf.mxu0 }
 0x12f   : > { %v701_v11 = vadd.f32 %v694_v7, %v665_v9 }
 0x130   : > { %v667_v10 = vpop.f32.mrf.mxu0 }
 0x131   : > { %v702_v12 = vadd.f32 %v698_v8, %v667_v10 }
 0x132   : > { %v669_v13 = vpop.f32.mrf.mxu0 }
 0x133   : > { %v927_v14 = vpack.c.bf16 %v702_v12, %v701_v11  ;;  %v703_v16 = vadd.f32 %v694_v7, %v669_v13 }
 0x134   : > { %v671_v15 = vpop.f32.mrf.mxu0 }
 0x135   : > { %717 = vst [vmem:[%s393_s23] sm:$0xff] %v927_v14  ;;  %v704_v17 = vadd.f32 %v698_v8, %v671_v15  ;;  %725 = sbr.rel (!%p1116_p6) target bundleno = 322 (0x142), region = 82 }
 0x137   : > { %v928_v18 = vpack.c.bf16 %v704_v17, %v703_v16 }
 0x139   : > { %718 = vst [vmem:[%s393_s23 + $0x8] sm:$0xff] %v928_v18 }
 0x13c   : > { %v762_v19 = vld [vmem:[%s393_s23] sm:$0xff] }
 0x13d   : > { %763 = vst [vmem:[%s731_s26] sm:$0xff] %v762_v19 }
 0x140   : > { %v764_v20 = vld [vmem:[%s393_s23 + $0x8] sm:$0xff] }
 0x141   : > { %765 = vst [vmem:[%s731_s26 + $0x10] sm:$0xff] %v764_v20 }
 0x142 PF: > { %s13_s16 = sadd.s32 1, %s1059_s16   ;;  %s1274_s12 = smov %s1047_s13 }
 0x143   : > { %p10_p12 = scmp.ge.s32.totalorder %s13_s16, 4   ;;  %s1275_s13 = smov %s1121_s22 }
 0x144   : > { %s1276_s14 = smov %s1055_s15  ;;  %s1277_s15 = smov %s1279_s17 }
 0x145   :  { %12 = sbr.rel (!%p10_p12) target bundleno = 3 (0x3), region = 157 }

// kernel: starting_network_forward.41
= control target key start
LH: loop header
LB: loop body
LE: loop exit
PB: predicated region body
PF: predicated region fallthrough
CT: control target
= control target key end

     0   :  { %s2209_s0 = inlined_call_operand.vmem [shape: bf16[16,4608], index: 0, kind: input, shape index: {}]   ;;  %s2210_s1 = inlined_call_operand.vmem [shape: bf16[4608,512], index: 1, kind: input, shape index: {}]   ;;  %s2211_s2 = inlined_call_operand.vmem [shape: f32[1,512], index: 2, kind: input, shape index: {}]   ;;  %s2212_s3 = inlined_call_operand.vmem [shape: bf16[16,512], index: 3, kind: input, shape index: {}]   ;;  %s2213_s4 = inlined_call_operand.vmem [shape: bf16[16,512], index: 4, kind: output, shape index: {}]  }
   0x1   :  { %2216 = sst [smem:[#allocation10_spill]] %s2209_s0 }
   0x2   :  { %s1802_s15 = smov 0   ;;  %s1804_s16 = smov 0  }
   0x3   :  { %s1806_s17 = smov 0   ;;  %s1808_s18 = smov 0  }
   0x4   :  { %s1810_s19 = smov 0   ;;  %s1812_s20 = smov 0  }
   0x5   :  { %s1814_s21 = smov 0   ;;  %s1816_s22 = smov 0  }
   0x6   :  { %s1818_s23 = smov 0   ;;  %s1820_s24 = smov 0  }
   0x7   :  { %s1822_s25 = smov 0  }
   0x8 LB: > { %s1393_s26 = sadd.s32 4294967295, %s1774_s25   ;;  %s26_s27 = sadd.s32 1, %s1766_s23  ;;  %s1774_s25 = sphi %s1822_s25, %s14_s25   ;;  %s1770_s24 = sphi %s1820_s24, %s2237_s24   ;;  %s1766_s23 = sphi %s1818_s23, %s2236_s23   ;;  %s1762_s22 = sphi %s1816_s22, %s2235_s22   ;;  %s1758_s21 = sphi %s1814_s21, %s2234_s21   ;;  %s1754_s20 = sphi %s1812_s20, %s2233_s20   ;;  %s1750_s19 = sphi %s1810_s19, %s2232_s19   ;;  %s1746_s18 = sphi %s1808_s18, %s2231_s18   ;;  %s1742_s17 = sphi %s1806_s17, %s2230_s17   ;;  %s1738_s16 = sphi %s1804_s16, %s2229_s16   ;;  %s1734_s15 = sphi %s1802_s15, %s2228_s15  }
   0x9   : > { %p27_p0 = scmp.ge.s32.totalorder %s26_s27, 9  ;;  %s29_s28 = sadd.s32 1, %s1770_s24 }
   0xa   : > { %s42_s29 = sadd.s32 1, %s1754_s20  ;;  %p49_p1 = scmp.ne.s32.totalorder %s1754_s20, %s1750_s19 }
   0xb   : > { %s2239_s27 = smov (%p27_p0, %s26_s27), 0  ;;  %s2241_s28 = smov (!%p27_p0, %s29_s28), %s1770_s24 }
   0xc   : > { %2217 = sst [smem:[#allocation7_spill]] %s2239_s27  ;;  %s38_s30 = ssub.s32 %s1766_s23, %s2239_s27 }
   0xd   : > { %p50_p2 = scmp.eq.s32.totalorder %s1774_s25, 0  ;;  %p31_p3 = scmp.ge.s32.totalorder %s2241_s28, 2 }
   0xe   : > { %p40_p4 = scmp.eq.s32.totalorder %s38_s30, 0  ;;  %s70_s6 = sadd.s32 1, %s1746_s18 }
   0xf   : > { %p1871_p5 = por %p50_p2, %p49_p1  ;;  %s2243_s28 = smov (%p31_p3, %s2241_s28), 0 }
  0x10   : > { %2219 = sst [smem:[#allocation8_spill]] %s2243_s28  ;;  %s66_s8 = ssub.s32 %s1770_s24, %s2243_s28 }
  0x11   : > { %s1879_s7 = scalar_select %p40_p4, %s1754_s20, %s42_s29  }
  0x12   : > { %p77_p6 = scmp.ne.s32.totalorder %s1746_s18, %s1742_s17  ;;  %s67_s9 = sor.u32 %s66_s8, %s38_s30 }
  0x13   : > { %2220 = sst [smem:[#allocation9_spill]] %s1879_s7  ;;  %p122_p7 = scmp.eq.s32.totalorder %s66_s8, 0 }
  0x14   : > { %p68_p8 = scmp.eq.s32.totalorder %s67_s9, 0  ;;  %p1887_p9 = por %p77_p6, %p50_p2 }
  0x15   : > { %s124_s11 = sadd.s32 1, %s1738_s16  ;;  %p131_p10 = scmp.ne.s32.totalorder %s1738_s16, %s1734_s15 }
  0x16   : > { %s1895_s12 = scalar_select %p68_p8, %s1746_s18, %s70_s6  }
  0x17   : > { %s1898_s13 = scalar_select %p122_p7, %s1738_s16, %s124_s11  }
  0x18   : > { %p1902_p11 = por %p131_p10, %p50_p2  ;;  %p163_p12 = scmp.eq.s32.totalorder %s1393_s26, 17 }
  0x19   : > { %p1396_p0 = scmp.ge.s32.totalorder %s1774_s25, 18 }
  0x1a   : > { %p1906_p13 = por %p163_p12, %p131_p10 }
  0x1b   : > { %185 = sbr.rel (%p1396_p0) target bundleno = 88 (0x58), region = 16 }
  0x20   : > { %188 = sbr.rel (!%p1871_p5) target bundleno = 44 (0x2c), region = 20  ;;  %s190_s30 = sand.u32 (%p1871_p5), 1, %s1754_s20  }
  0x21   : > { %s1491_s6 = sshll.u32 (%p1871_p5), %s1766_s23, 4  ;;  %s1397_s8 = sshll.u32 (%p1871_p5), %s190_s30, 5 }
  0x22   : > { %s2224_s0 = sld [smem:[#allocation10_spill]] (%p1871_p5)  ;;  %s192_s26 = scalar_lea.vmem (%p1871_p5), [#allocation3], %s1397_s8 }
  0x28   : > { %s198_s28 = scalar_lea.vmem %s2224_s0, %s1491_s6 }
  0x29   : > { %v211_v0 = vld [vmem:[%s198_s28] sm:$0xff]  ;;  %v213_v1 = vld [vmem:[%s198_s28 + $0x8] sm:$0xff]  ;;  %v215_v2 = vld [vmem:[%s198_s28 + $0x90] sm:$0xff] }
  0x2a   : > { %212 = vst [vmem:[%s192_s26] sm:$0xff] %v211_v0  ;;  %214 = vst [vmem:[%s192_s26 + $0x8] sm:$0xff] %v213_v1  ;;  %v217_v3 = vld [vmem:[%s198_s28 + $0x98] sm:$0xff] }
  0x2b   : > { %216 = vst [vmem:[%s192_s26 + $0x10] sm:$0xff] %v215_v2  ;;  %218 = vst [vmem:[%s192_s26 + $0x18] sm:$0xff] %v217_v3 }
  0x2c PF: > { %224 = sbr.rel (!%p1887_p9) target bundleno = 83 (0x53), region = 43  ;;  %s226_s5 = sand.u32 (%p1887_p9), 1, %s1746_s18  }
  0x2d   : > { %s1402_s30 = sshll.u32 (%p1887_p9), %s1770_s24, 1  ;;  %s1400_s9 = sshll.u32 (%p1887_p9), %s226_s5, 9 }
  0x2e   : > { %s1492_s6 = sshll.u32 (%p1887_p9), %s1766_s23, 8  ;;  %s1931_s28 = scalar_lea.vmem (%p1887_p9), [#allocation4], %s1400_s9 }
  0x2f   : > { %s232_s11 = sadd.s32 (%p1887_p9), %s1492_s6, %s1402_s30 }
  0x30   : > { %s1404_s0 = sshll.u32 (%p1887_p9), %s232_s11, 2 }
  0x31   : > { %s1926_s7 = scalar_lea.vmem %s2210_s1, %s1404_s0 }
  0x32   : > { %v389_v4 = vld [vmem:[%s1926_s7] sm:$0xff]  ;;  %v391_v5 = vld [vmem:[%s1926_s7 + $0x10] sm:$0xff] }
  0x33   : > { %v393_v6 = vld [vmem:[%s1926_s7 + $0x20] sm:$0xff]  ;;  %390 = vst [vmem:[%s1931_s28] sm:$0xff] %v389_v4  ;;  %392 = vst [vmem:[%s1931_s28 + $0x8] sm:$0xff] %v391_v5  ;;  %v395_v7 = vld [vmem:[%s1926_s7 + $0x30] sm:$0xff] }
  0x34   : > { %394 = vst [vmem:[%s1931_s28 + $0x10] sm:$0xff] %v393_v6  ;;  %v397_v8 = vld [vmem:[%s1926_s7 + $0x40] sm:$0xff]  ;;  %v399_v9 = vld [vmem:[%s1926_s7 + $0x50] sm:$0xff]  ;;  %396 = vst [vmem:[%s1931_s28 + $0x18] sm:$0xff] %v395_v7 }
  0x35   : > { %398 = vst [vmem:[%s1931_s28 + $0x20] sm:$0xff] %v397_v8  ;;  %400 = vst [vmem:[%s1931_s28 + $0x28] sm:$0xff] %v399_v9  ;;  %v401_v10 = vld [vmem:[%s1926_s7 + $0x60] sm:$0xff]  ;;  %v403_v11 = vld [vmem:[%s1926_s7 + $0x70] sm:$0xff] }
  0x36   : > { %v405_v12 = vld [vmem:[%s1926_s7 + $0x80] sm:$0xff]  ;;  %402 = vst [vmem:[%s1931_s28 + $0x30] sm:$0xff] %v401_v10  ;;  %404 = vst [vmem:[%s1931_s28 + $0x38] sm:$0xff] %v403_v11  ;;  %v407_v13 = vld [vmem:[%s1926_s7 + $0x90] sm:$0xff] }
  0x37   : > { %406 = vst [vmem:[%s1931_s28 + $0x40] sm:$0xff] %v405_v12  ;;  %v409_v14 = vld [vmem:[%s1926_s7 + $0xa0] sm:$0xff]  ;;  %v411_v15 = vld [vmem:[%s1926_s7 + $0xb0] sm:$0xff]  ;;  %408 = vst [vmem:[%s1931_s28 + $0x48] sm:$0xff] %v407_v13 }
  0x38   : > { %410 = vst [vmem:[%s1931_s28 + $0x50] sm:$0xff] %v409_v14  ;;  %412 = vst [vmem:[%s1931_s28 + $0x58] sm:$0xff] %v411_v15  ;;  %v413_v16 = vld [vmem:[%s1926_s7 + $0xc0] sm:$0xff]  ;;  %v415_v17 = vld [vmem:[%s1926_s7 + $0xd0] sm:$0xff] }
  0x39   : > { %v417_v18 = vld [vmem:[%s1926_s7 + $0xe0] sm:$0xff]  ;;  %414 = vst [vmem:[%s1931_s28 + $0x60] sm:$0xff] %v413_v16  ;;  %416 = vst [vmem:[%s1931_s28 + $0x68] sm:$0xff] %v415_v17  ;;  %v419_v19 = vld [vmem:[%s1926_s7 + $0xf0] sm:$0xff] }
  0x3a   : > { %418 = vst [vmem:[%s1931_s28 + $0x70] sm:$0xff] %v417_v18  ;;  %v421_v20 = vld [vmem:[%s1926_s7 + $0x100] sm:$0xff]  ;;  %v423_v21 = vld [vmem:[%s1926_s7 + $0x110] sm:$0xff]  ;;  %420 = vst [vmem:[%s1931_s28 + $0x78] sm:$0xff] %v419_v19 }
  0x3b   : > { %422 = vst [vmem:[%s1931_s28 + $0x80] sm:$0xff] %v421_v20  ;;  %424 = vst [vmem:[%s1931_s28 + $0x88] sm:$0xff] %v423_v21  ;;  %v425_v22 = vld [vmem:[%s1926_s7 + $0x120] sm:$0xff]  ;;  %v427_v23 = vld [vmem:[%s1926_s7 + $0x130] sm:$0xff] }
  0x3c   : > { %v429_v24 = vld [vmem:[%s1926_s7 + $0x140] sm:$0xff]  ;;  %426 = vst [vmem:[%s1931_s28 + $0x90] sm:$0xff] %v425_v22  ;;  %428 = vst [vmem:[%s1931_s28 + $0x98] sm:$0xff] %v427_v23  ;;  %v431_v25 = vld [vmem:[%s1926_s7 + $0x150] sm:$0xff] }
  0x3d   : > { %430 = vst [vmem:[%s1931_s28 + $0xa0] sm:$0xff] %v429_v24  ;;  %v433_v26 = vld [vmem:[%s1926_s7 + $0x160] sm:$0xff]  ;;  %v435_v27 = vld [vmem:[%s1926_s7 + $0x170] sm:$0xff]  ;;  %432 = vst [vmem:[%s1931_s28 + $0xa8] sm:$0xff] %v431_v25 }
  0x3e   : > { %434 = vst [vmem:[%s1931_s28 + $0xb0] sm:$0xff] %v433_v26  ;;  %436 = vst [vmem:[%s1931_s28 + $0xb8] sm:$0xff] %v435_v27  ;;  %v437_v28 = vld [vmem:[%s1926_s7 + $0x180] sm:$0xff]  ;;  %v439_v29 = vld [vmem:[%s1926_s7 + $0x190] sm:$0xff] }
  0x3f   : > { %v441_v30 = vld [vmem:[%s1926_s7 + $0x1a0] sm:$0xff]  ;;  %438 = vst [vmem:[%s1931_s28 + $0xc0] sm:$0xff] %v437_v28  ;;  %440 = vst [vmem:[%s1931_s28 + $0xc8] sm:$0xff] %v439_v29  ;;  %v443_v31 = vld [vmem:[%s1926_s7 + $0x1b0] sm:$0xff] }
  0x40   : > { %442 = vst [vmem:[%s1931_s28 + $0xd0] sm:$0xff] %v441_v30  ;;  %v445_v32 = vld [vmem:[%s1926_s7 + $0x1c0] sm:$0xff]  ;;  %v447_v33 = vld [vmem:[%s1926_s7 + $0x1d0] sm:$0xff]  ;;  %444 = vst [vmem:[%s1931_s28 + $0xd8] sm:$0xff] %v443_v31 }
  0x41   : > { %446 = vst [vmem:[%s1931_s28 + $0xe0] sm:$0xff] %v445_v32  ;;  %448 = vst [vmem:[%s1931_s28 + $0xe8] sm:$0xff] %v447_v33  ;;  %v449_v34 = vld [vmem:[%s1926_s7 + $0x1e0] sm:$0xff]  ;;  %v451_v35 = vld [vmem:[%s1926_s7 + $0x1f0] sm:$0xff] }
  0x42   : > { %v453_v36 = vld [vmem:[%s1926_s7 + $0x200] sm:$0xff]  ;;  %450 = vst [vmem:[%s1931_s28 + $0xf0] sm:$0xff] %v449_v34  ;;  %452 = vst [vmem:[%s1931_s28 + $0xf8] sm:$0xff] %v451_v35  ;;  %v455_v37 = vld [vmem:[%s1926_s7 + $0x210] sm:$0xff] }
  0x43   : > { %454 = vst [vmem:[%s1931_s28 + $0x100] sm:$0xff] %v453_v36  ;;  %v457_v38 = vld [vmem:[%s1926_s7 + $0x220] sm:$0xff]  ;;  %v459_v39 = vld [vmem:[%s1926_s7 + $0x230] sm:$0xff]  ;;  %456 = vst [vmem:[%s1931_s28 + $0x108] sm:$0xff] %v455_v37 }
  0x44   : > { %458 = vst [vmem:[%s1931_s28 + $0x110] sm:$0xff] %v457_v38  ;;  %460 = vst [vmem:[%s1931_s28 + $0x118] sm:$0xff] %v459_v39  ;;  %v461_v40 = vld [vmem:[%s1926_s7 + $0x240] sm:$0xff]  ;;  %v463_v41 = vld [vmem:[%s1926_s7 + $0x250] sm:$0xff] }
  0x45   : > { %v465_v42 = vld [vmem:[%s1926_s7 + $0x260] sm:$0xff]  ;;  %462 = vst [vmem:[%s1931_s28 + $0x120] sm:$0xff] %v461_v40  ;;  %464 = vst [vmem:[%s1931_s28 + $0x128] sm:$0xff] %v463_v41  ;;  %v467_v43 = vld [vmem:[%s1926_s7 + $0x270] sm:$0xff] }
  0x46   : > { %466 = vst [vmem:[%s1931_s28 + $0x130] sm:$0xff] %v465_v42  ;;  %v469_v44 = vld [vmem:[%s1926_s7 + $0x280] sm:$0xff]  ;;  %v471_v45 = vld [vmem:[%s1926_s7 + $0x290] sm:$0xff]  ;;  %468 = vst [vmem:[%s1931_s28 + $0x138] sm:$0xff] %v467_v43 }
  0x47   : > { %470 = vst [vmem:[%s1931_s28 + $0x140] sm:$0xff] %v469_v44  ;;  %472 = vst [vmem:[%s1931_s28 + $0x148] sm:$0xff] %v471_v45  ;;  %v473_v46 = vld [vmem:[%s1926_s7 + $0x2a0] sm:$0xff]  ;;  %v475_v47 = vld [vmem:[%s1926_s7 + $0x2b0] sm:$0xff] }
  0x48   : > { %v477_v48 = vld [vmem:[%s1926_s7 + $0x2c0] sm:$0xff]  ;;  %474 = vst [vmem:[%s1931_s28 + $0x150] sm:$0xff] %v473_v46  ;;  %476 = vst [vmem:[%s1931_s28 + $0x158] sm:$0xff] %v475_v47  ;;  %v479_v49 = vld [vmem:[%s1926_s7 + $0x2d0] sm:$0xff] }
  0x49   : > { %478 = vst [vmem:[%s1931_s28 + $0x160] sm:$0xff] %v477_v48  ;;  %v481_v50 = vld [vmem:[%s1926_s7 + $0x2e0] sm:$0xff]  ;;  %v483_v51 = vld [vmem:[%s1926_s7 + $0x2f0] sm:$0xff]  ;;  %480 = vst [vmem:[%s1931_s28 + $0x168] sm:$0xff] %v479_v49 }
  0x4a   : > { %482 = vst [vmem:[%s1931_s28 + $0x170] sm:$0xff] %v481_v50  ;;  %484 = vst [vmem:[%s1931_s28 + $0x178] sm:$0xff] %v483_v51  ;;  %v485_v52 = vld [vmem:[%s1926_s7 + $0x300] sm:$0xff]  ;;  %v487_v53 = vld [vmem:[%s1926_s7 + $0x310] sm:$0xff] }
  0x4b   : > { %v489_v54 = vld [vmem:[%s1926_s7 + $0x320] sm:$0xff]  ;;  %486 = vst [vmem:[%s1931_s28 + $0x180] sm:$0xff] %v485_v52  ;;  %488 = vst [vmem:[%s1931_s28 + $0x188] sm:$0xff] %v487_v53  ;;  %v491_v55 = vld [vmem:[%s1926_s7 + $0x330] sm:$0xff] }
  0x4c   : > { %490 = vst [vmem:[%s1931_s28 + $0x190] sm:$0xff] %v489_v54  ;;  %v493_v56 = vld [vmem:[%s1926_s7 + $0x340] sm:$0xff]  ;;  %v495_v57 = vld [vmem:[%s1926_s7 + $0x350] sm:$0xff]  ;;  %492 = vst [vmem:[%s1931_s28 + $0x198] sm:$0xff] %v491_v55 }
  0x4d   : > { %494 = vst [vmem:[%s1931_s28 + $0x1a0] sm:$0xff] %v493_v56  ;;  %496 = vst [vmem:[%s1931_s28 + $0x1a8] sm:$0xff] %v495_v57  ;;  %v497_v58 = vld [vmem:[%s1926_s7 + $0x360] sm:$0xff]  ;;  %v499_v59 = vld [vmem:[%s1926_s7 + $0x370] sm:$0xff] }
  0x4e   : > { %v501_v60 = vld [vmem:[%s1926_s7 + $0x380] sm:$0xff]  ;;  %498 = vst [vmem:[%s1931_s28 + $0x1b0] sm:$0xff] %v497_v58  ;;  %500 = vst [vmem:[%s1931_s28 + $0x1b8] sm:$0xff] %v499_v59  ;;  %v503_v61 = vld [vmem:[%s1926_s7 + $0x390] sm:$0xff] }
  0x4f   : > { %502 = vst [vmem:[%s1931_s28 + $0x1c0] sm:$0xff] %v501_v60  ;;  %v505_v62 = vld [vmem:[%s1926_s7 + $0x3a0] sm:$0xff]  ;;  %v507_v63 = vld [vmem:[%s1926_s7 + $0x3b0] sm:$0xff]  ;;  %504 = vst [vmem:[%s1931_s28 + $0x1c8] sm:$0xff] %v503_v61 }
  0x50   : > { %506 = vst [vmem:[%s1931_s28 + $0x1d0] sm:$0xff] %v505_v62  ;;  %508 = vst [vmem:[%s1931_s28 + $0x1d8] sm:$0xff] %v507_v63  ;;  %v509_v0 = vld [vmem:[%s1926_s7 + $0x3c0] sm:$0xff]  ;;  %v511_v1 = vld [vmem:[%s1926_s7 + $0x3d0] sm:$0xff] }
  0x51   : > { %v513_v2 = vld [vmem:[%s1926_s7 + $0x3e0] sm:$0xff]  ;;  %510 = vst [vmem:[%s1931_s28 + $0x1e0] sm:$0xff] %v509_v0  ;;  %512 = vst [vmem:[%s1931_s28 + $0x1e8] sm:$0xff] %v511_v1  ;;  %v515_v3 = vld [vmem:[%s1926_s7 + $0x3f0] sm:$0xff] }
  0x52   : > { %514 = vst [vmem:[%s1931_s28 + $0x1f0] sm:$0xff] %v513_v2  ;;  %516 = vst [vmem:[%s1931_s28 + $0x1f8] sm:$0xff] %v515_v3 }
  0x53 PF: > { %530 = sbr.rel (!%p1902_p11) target bundleno = 88 (0x58), region = 85  ;;  %s532_s0 = sand.u32 (%p1902_p11), 1, %s1738_s16  }
  0x54   : > { %s1493_s27 = sshll.u32 (%p1902_p11), %s1770_s24, 3  ;;  %s1405_s10 = sshll.u32 (%p1902_p11), %s532_s0, 4 }
  0x55   : > { %s540_s30 = scalar_lea.vmem (%p1902_p11), %s2212_s3, %s1493_s27  ;;  %s534_s9 = scalar_lea.vmem (%p1902_p11), [#allocation5], %s1405_s10 }
  0x56   : > { %v571_v4 = vld [vmem:[%s540_s30] sm:$0xff] (%p1902_p11)  ;;  %v573_v5 = vld [vmem:[%s540_s30 + $0x10] sm:$0xff] (%p1902_p11) }
  0x57   : > { %572 = vst [vmem:[%s534_s9] sm:$0xff] (%p1902_p11), %v571_v4  ;;  %574 = vst [vmem:[%s534_s9 + $0x8] sm:$0xff] (%p1902_p11), %v573_v5 }
  0x58 PF: > { %p1408_p1 = scmp.ge.s32.totalorder %s1774_s25, 1  ;;  %p579_p2 = scmp.lt.s32.totalorder %s1774_s25, 19 }
  0x5a   : > { %p580_p3 = pnand %p1408_p1, %p579_p2 }
  0x5b   : > { %s586_s7 = sand.u32 (!%p580_p3), 1, %s1750_s19   ;;  %s593_s14 = sand.u32 (!%p580_p3), 1, %s1742_s17  }
  0x5c   : > { %583 = sbr.rel (%p580_p3) target bundleno = 403 (0x193), region = 123  ;;  %s1409_s6 = sshll.u32 (!%p580_p3), %s586_s7, 5 }
  0x5d   : > { %s1410_s11 = sshll.u32 (!%p580_p3), %s593_s14, 9  ;;  %s600_s8 = sand.u32 (!%p580_p3), 1, %s1734_s15  }
  0x5e   : > { %s1413_s28 = sshll.u32 (!%p580_p3), %s1762_s22, 1  ;;  %s2071_s0 = sshll.u32 (!%p580_p3), %s600_s8, 4 }
  0x5f   : > { %p641_p4 = scmp.lt.s32.totalorder (!%p580_p3), %s1413_s28, 3  ;;  %s2079_s5 = scalar_lea.vmem (!%p580_p3), [#allocation3], %s1409_s6 }
  0x60   : > { %s2081_s19 = scalar_lea.vmem (!%p580_p3), [#allocation4], %s1410_s11  ;;  %s602_s17 = scalar_lea.vmem (!%p580_p3), [#allocation5], %s2071_s0 }
  0x61   : > { %s2245_s28 = smov (!%p641_p4, %s1413_s28), 3  ;;  %s2085_s30 = scalar_lea.vmem [#allocation6], %s2071_s0 }
  0x62   : > { %s643_s26 = scalar_lea.vmem %s2211_s2, %s2245_s28  ;;  %p1414_p5 = scmp.ne.s32.totalorder %s1758_s21, 0 }
  0x64   : > { %652 = sbr.rel (%p1414_p5) target bundleno = 108 (0x6c), region = 139 }
  0x69   : > { %v1776_v6 = vmov 0.0  }
  0x6a   : > { %653 = vst [vmem:[#allocation2 + $0x10] sm:$0xff] %v1776_v6  ;;  %654 = vst [vmem:[#allocation2] sm:$0xff] %v1776_v6 }
  0x6b   : > { %655 = vst [vmem:[#allocation2 + $0x18] sm:$0xff] %v1776_v6  ;;  %656 = vst [vmem:[#allocation2 + $0x8] sm:$0xff] %v1776_v6 }
  0x6c PF: > { %v1586_v7 = vld [vmem:[%s2081_s19 + $0x74] ss:$8 sps:$4 sm:$0xff]   ;;  %v1590_v9 = vld [vmem:[%s2081_s19 + $0x70] ss:$8 sps:$4 sm:$0xff]   ;;  %v1592_v11 = vld [vmem:[%s2081_s19 + $0x64] ss:$8 sps:$4 sm:$0xff]  }
  0x6d   : > { %v1588_v8 = vld [vmem:[%s2081_s19 + $0x174] ss:$8 sps:$4 sm:$0xff]   ;;  %1069 = vmatprep.subr.bf16.mxu0 %v1586_v7  ;;  %v1591_v10 = vld [vmem:[%s2081_s19 + $0x170] ss:$8 sps:$4 sm:$0xff]   ;;  %v1594_v12 = vld [vmem:[%s2081_s19 + $0x164] ss:$8 sps:$4 sm:$0xff]  }
  0x6e   : > { %1112 = vmatprep.subr.bf16.mxu1 %v1588_v8  ;;  %1070 = vmatpush1.bf16.msra.mxu0 %v1590_v9  ;;  %v1596_v13 = vld [vmem:[%s2081_s19 + $0x60] ss:$8 sps:$4 sm:$0xff]   ;;  %v1598_v15 = vld [vmem:[%s2081_s19 + $0x54] ss:$8 sps:$4 sm:$0xff]   ;;  %v1602_v17 = vld [vmem:[%s2081_s19 + $0x50] ss:$8 sps:$4 sm:$0xff]  }
  0x6f   : > { %1113 = vmatpush1.bf16.msra.mxu1 %v1591_v10  ;;  %1071 = vmatprep.subr.bf16.mxu0 %v1592_v11  ;;  %v1597_v14 = vld [vmem:[%s2081_s19 + $0x160] ss:$8 sps:$4 sm:$0xff]   ;;  %v1600_v16 = vld [vmem:[%s2081_s19 + $0x154] ss:$8 sps:$4 sm:$0xff]   ;;  %v1603_v18 = vld [vmem:[%s2081_s19 + $0x150] ss:$8 sps:$4 sm:$0xff]  }
  0x70   : > { %1114 = vmatprep.subr.bf16.mxu1 %v1594_v12  ;;  %v1604_v19 = vld [vmem:[%s2081_s19 + $0x44] ss:$8 sps:$4 sm:$0xff]   ;;  %v1608_v21 = vld [vmem:[%s2081_s19 + $0x40] ss:$8 sps:$4 sm:$0xff]   ;;  %v1610_v23 = vld [vmem:[%s2081_s19 + $0x34] ss:$8 sps:$4 sm:$0xff]  }
  0x71   : > { %v1606_v20 = vld [vmem:[%s2081_s19 + $0x144] ss:$8 sps:$4 sm:$0xff]   ;;  %v1609_v22 = vld [vmem:[%s2081_s19 + $0x140] ss:$8 sps:$4 sm:$0xff]   ;;  %v1612_v24 = vld [vmem:[%s2081_s19 + $0x134] ss:$8 sps:$4 sm:$0xff]  }
  0x72   : > { %1072 = vmatpush1.bf16.msra.mxu0 %v1596_v13  ;;  %v1614_v25 = vld [vmem:[%s2081_s19 + $0x30] ss:$8 sps:$4 sm:$0xff]   ;;  %v1616_v27 = vld [vmem:[%s2081_s19 + $0x24] ss:$8 sps:$4 sm:$0xff]   ;;  %v1620_v29 = vld [vmem:[%s2081_s19 + $0x20] ss:$8 sps:$4 sm:$0xff]  }
  0x73   : > { %1115 = vmatpush1.bf16.msra.mxu1 %v1597_v14  ;;  %1073 = vmatprep.subr.bf16.mxu0 %v1598_v15  ;;  %v1615_v26 = vld [vmem:[%s2081_s19 + $0x130] ss:$8 sps:$4 sm:$0xff]   ;;  %v1618_v28 = vld [vmem:[%s2081_s19 + $0x124] ss:$8 sps:$4 sm:$0xff]   ;;  %v1621_v30 = vld [vmem:[%s2081_s19 + $0x120] ss:$8 sps:$4 sm:$0xff]  }
  0x74   : > { %1116 = vmatprep.subr.bf16.mxu1 %v1600_v16  ;;  %v1622_v31 = vld [vmem:[%s2081_s19 + $0x14] ss:$8 sps:$4 sm:$0xff]   ;;  %v1626_v33 = vld [vmem:[%s2081_s19 + $0x10] ss:$8 sps:$4 sm:$0xff]   ;;  %v1628_v35 = vld [vmem:[%s2081_s19 + $0x4] ss:$8 sps:$4 sm:$0xff]  }
  0x75   : > { %v1624_v32 = vld [vmem:[%s2081_s19 + $0x114] ss:$8 sps:$4 sm:$0xff]   ;;  %v1627_v34 = vld [vmem:[%s2081_s19 + $0x110] ss:$8 sps:$4 sm:$0xff]   ;;  %v1630_v36 = vld [vmem:[%s2081_s19 + $0x104] ss:$8 sps:$4 sm:$0xff]  }
  0x76   : > { %1074 = vmatpush1.bf16.msra.mxu0 %v1602_v17  ;;  %v1632_v37 = vld [vmem:[%s2081_s19] ss:$8 sps:$4 sm:$0xff]   ;;  %v1634_v39 = vld [vmem:[%s2081_s19 + $0xf4] ss:$8 sps:$4 sm:$0xff]   ;;  %v1638_v41 = vld [vmem:[%s2081_s19 + $0xf0] ss:$8 sps:$4 sm:$0xff]  }
  0x77   : > { %1117 = vmatpush1.bf16.msra.mxu1 %v1603_v18  ;;  %1075 = vmatprep.subr.bf16.mxu0 %v1604_v19  ;;  %v1633_v38 = vld [vmem:[%s2081_s19 + $0x100] ss:$8 sps:$4 sm:$0xff]   ;;  %v1636_v40 = vld [vmem:[%s2081_s19 + $0x1f4] ss:$8 sps:$4 sm:$0xff]   ;;  %v1639_v42 = vld [vmem:[%s2081_s19 + $0x1f0] ss:$8 sps:$4 sm:$0xff]  }
  0x78   : > { %1118 = vmatprep.subr.bf16.mxu1 %v1606_v20  ;;  %v1640_v43 = vld [vmem:[%s2081_s19 + $0xe4] ss:$8 sps:$4 sm:$0xff]   ;;  %v1644_v45 = vld [vmem:[%s2081_s19 + $0xe0] ss:$8 sps:$4 sm:$0xff]   ;;  %v1646_v47 = vld [vmem:[%s2081_s19 + $0xd4] ss:$8 sps:$4 sm:$0xff]  }
  0x79   : > { %v1642_v44 = vld [vmem:[%s2081_s19 + $0x1e4] ss:$8 sps:$4 sm:$0xff]   ;;  %v1645_v46 = vld [vmem:[%s2081_s19 + $0x1e0] ss:$8 sps:$4 sm:$0xff]   ;;  %v1648_v48 = vld [vmem:[%s2081_s19 + $0x1d4] ss:$8 sps:$4 sm:$0xff]  }
  0x7a   : > { %1076 = vmatpush1.bf16.msra.mxu0 %v1608_v21  ;;  %v1650_v49 = vld [vmem:[%s2081_s19 + $0xd0] ss:$8 sps:$4 sm:$0xff]   ;;  %v1652_v51 = vld [vmem:[%s2081_s19 + $0xc4] ss:$8 sps:$4 sm:$0xff]   ;;  %v1656_v53 = vld [vmem:[%s2081_s19 + $0xc0] ss:$8 sps:$4 sm:$0xff]  }
  0x7b   : > { %1119 = vmatpush1.bf16.msra.mxu1 %v1609_v22  ;;  %1077 = vmatprep.subr.bf16.mxu0 %v1610_v23  ;;  %v1651_v50 = vld [vmem:[%s2081_s19 + $0x1d0] ss:$8 sps:$4 sm:$0xff]   ;;  %v1654_v52 = vld [vmem:[%s2081_s19 + $0x1c4] ss:$8 sps:$4 sm:$0xff]   ;;  %v1657_v55 = vld [vmem:[%s2081_s19 + $0x1c0] ss:$8 sps:$4 sm:$0xff]  }
  0x7c   : > { %1120 = vmatprep.subr.bf16.mxu1 %v1612_v24  ;;  %v1684_v54 = vld [vmem:[%s2079_s5 + $0x4] ss:$16 sps:$4 sm:$0xff]   ;;  %v1687_v58 = vld [vmem:[%s2079_s5 + $0xc] ss:$16 sps:$4 sm:$0xff]   ;;  %v1662_v59 = vld [vmem:[%s2081_s19 + $0xb0] ss:$8 sps:$4 sm:$0xff]  }
  0x7d   : > { %v1658_v56 = vld [vmem:[%s2081_s19 + $0xb4] ss:$8 sps:$4 sm:$0xff]   ;;  %1101 = vmatprep.mubr.bf16.mxu0 %v1684_v54  ;;  %1144 = vmatprep.mubr.bf16.mxu1 %v1687_v58  ;;  %v1663_v60 = vld [vmem:[%s2081_s19 + $0x1b0] ss:$8 sps:$4 sm:$0xff]   ;;  %v1664_v61 = vld [vmem:[%s2081_s19 + $0xa4] ss:$8 sps:$4 sm:$0xff]  }
  0x7e   : > { %1078 = vmatpush1.bf16.msra.mxu0 %v1614_v25  ;;  %v1660_v57 = vld [vmem:[%s2081_s19 + $0x1b4] ss:$8 sps:$4 sm:$0xff]   ;;  %v1666_v62 = vld [vmem:[%s2081_s19 + $0x1a4] ss:$8 sps:$4 sm:$0xff]   ;;  %v1668_v63 = vld [vmem:[%s2081_s19 + $0xa0] ss:$8 sps:$4 sm:$0xff]  }
  0x7f   : > { %1121 = vmatpush1.bf16.msra.mxu1 %v1615_v26  ;;  %1079 = vmatprep.subr.bf16.mxu0 %v1616_v27  ;;  %v1669_v0 = vld [vmem:[%s2081_s19 + $0x1a0] ss:$8 sps:$4 sm:$0xff]   ;;  %v1670_v1 = vld [vmem:[%s2081_s19 + $0x94] ss:$8 sps:$4 sm:$0xff]   ;;  %v1674_v3 = vld [vmem:[%s2081_s19 + $0x90] ss:$8 sps:$4 sm:$0xff]  }
  0x80   : > { %1122 = vmatprep.subr.bf16.mxu1 %v1618_v28  ;;  %v1672_v2 = vld [vmem:[%s2081_s19 + $0x194] ss:$8 sps:$4 sm:$0xff]   ;;  %v1675_v4 = vld [vmem:[%s2081_s19 + $0x190] ss:$8 sps:$4 sm:$0xff]   ;;  %v1676_v5 = vld [vmem:[%s2081_s19 + $0x84] ss:$8 sps:$4 sm:$0xff]  }
  0x81   : > { %v1678_v6 = vld [vmem:[%s2081_s19 + $0x184] ss:$8 sps:$4 sm:$0xff]   ;;  %v1680_v7 = vld [vmem:[%s2081_s19 + $0x80] ss:$8 sps:$4 sm:$0xff]   ;;  %v657_v12 = vld [vmem:[#allocation2 + $0x10] sm:$0xff]  ;;  %p1483_p6 = scmp.ne.s32.totalorder %s1758_s21, 8 }
  0x82   : > { %1080 = vmatpush1.bf16.msra.mxu0 %v1620_v29  ;;  %v1681_v8 = vld [vmem:[%s2081_s19 + $0x180] ss:$8 sps:$4 sm:$0xff]   ;;  %v659_v21 = vld [vmem:[#allocation2 + $0x18] sm:$0xff] }
  0x83   : > { %1123 = vmatpush1.bf16.msra.mxu1 %v1621_v30  ;;  %1081 = vmatprep.subr.bf16.mxu0 %v1622_v31  ;;  %v1682_v9 = vld [vmem:[%s2079_s5] ss:$16 sps:$4 sm:$0xff]   ;;  %v1685_v10 = vld [vmem:[%s2079_s5 + $0x8] ss:$16 sps:$4 sm:$0xff]  }
  0x84   : > { %1124 = vmatprep.subr.bf16.mxu1 %v1624_v32  ;;  %v658_v16 = vld [vmem:[#allocation2] sm:$0xff]  ;;  %v660_v26 = vld [vmem:[#allocation2 + $0x8] sm:$0xff] }
  0x86   : > { %1082 = vmatpush1.bf16.msra.mxu0 %v1626_v33 }
  0x87   : > { %1125 = vmatpush1.bf16.msra.mxu1 %v1627_v34  ;;  %1083 = vmatprep.subr.bf16.mxu0 %v1628_v35 }
  0x88   : > { %1126 = vmatprep.subr.bf16.mxu1 %v1630_v36 }
  0x8a   : > { %1084 = vmatpush1.bf16.msra.mxu0 %v1632_v37 }
  0x8b   : > { %1127 = vmatpush1.bf16.msra.mxu1 %v1633_v38  ;;  %1085 = vmatprep.subr.bf16.mxu0 %v1634_v39 }
  0x8c   : > { %1128 = vmatprep.subr.bf16.mxu1 %v1636_v40 }
  0x8e   : > { %1086 = vmatpush2.bf16.msra.mxu0 %v1638_v41 }
  0x8f   : > { %1129 = vmatpush2.bf16.msra.mxu1 %v1639_v42  ;;  %1087 = vmatprep.subr.bf16.mxu0 %v1640_v43 }
  0x90   : > { %1130 = vmatprep.subr.bf16.mxu1 %v1642_v44 }
  0x92   : > { %1088 = vmatpush2.bf16.msra.mxu0 %v1644_v45 }
  0x93   : > { %1131 = vmatpush2.bf16.msra.mxu1 %v1645_v46  ;;  %1089 = vmatprep.subr.bf16.mxu0 %v1646_v47 }
  0x94   : > { %1132 = vmatprep.subr.bf16.mxu1 %v1648_v48 }
  0x96   : > { %1090 = vmatpush2.bf16.msra.mxu0 %v1650_v49 }
  0x97   : > { %1133 = vmatpush2.bf16.msra.mxu1 %v1651_v50  ;;  %1091 = vmatprep.subr.bf16.mxu0 %v1652_v51 }
  0x98   : > { %1134 = vmatprep.subr.bf16.mxu1 %v1654_v52 }
  0x9a   : > { %1092 = vmatpush2.bf16.msra.mxu0 %v1656_v53 }
  0x9b   : > { %1135 = vmatpush2.bf16.msra.mxu1 %v1657_v55  ;;  %1093 = vmatprep.subr.bf16.mxu0 %v1658_v56 }
  0x9c   : > { %1136 = vmatprep.subr.bf16.mxu1 %v1660_v57 }
  0x9e   : > { %1094 = vmatpush2.bf16.msra.mxu0 %v1662_v59 }
  0x9f   : > { %1137 = vmatpush2.bf16.msra.mxu1 %v1663_v60  ;;  %1095 = vmatprep.subr.bf16.mxu0 %v1664_v61 }
  0xa0   : > { %1138 = vmatprep.subr.bf16.mxu1 %v1666_v62 }
  0xa2   : > { %1096 = vmatpush2.bf16.msra.mxu0 %v1668_v63 }
  0xa3   : > { %1139 = vmatpush2.bf16.msra.mxu1 %v1669_v0  ;;  %1097 = vmatprep.subr.bf16.mxu0 %v1670_v1 }
  0xa4   : > { %1140 = vmatprep.subr.bf16.mxu1 %v1672_v2 }
  0xa6   : > { %1098 = vmatpush2.bf16.msra.mxu0 %v1674_v3 }
  0xa7   : > { %1141 = vmatpush2.bf16.msra.mxu1 %v1675_v4  ;;  %1099 = vmatprep.subr.bf16.mxu0 %v1676_v5 }
  0xa8   : > { %1142 = vmatprep.subr.bf16.mxu1 %v1678_v6 }
  0xaa   : > { %1100 = vmatpush2.bf16.msra.mxu0 %v1680_v7 }
  0xab   : > { %1143 = vmatpush2.bf16.msra.mxu1 %v1681_v8 }
  0xad   : > { %1102 = vmatmul.mubr.bf16.vlgmr.msra.gmra.mxu0 %v1682_v9 }
  0xae   : > { %1145 = vmatmul.mubr.bf16.vlgmr.msra.gmra.mxu1 %v1685_v10 }
 0x16d   : > { %v1103_v11 = vpop.f32.mrf.mxu0 }
 0x16e   : > { %v1146_v13 = vpop.f32.mrf.mxu1 }
 0x16f   : > { %v1147_v14 = vadd.f32 %v1146_v13, %v1103_v11  ;;  %v1105_v15 = vpop.f32.mrf.mxu0 }
 0x170   : > { %v1148_v17 = vpop.f32.mrf.mxu1 }
 0x171   : > { %v1155_v18 = vadd.f32 %v1147_v14, %v657_v12  ;;  %v1149_v19 = vadd.f32 %v1148_v17, %v1105_v15  ;;  %v1107_v20 = vpop.f32.mrf.mxu0 }
 0x172   : > { %v1150_v22 = vpop.f32.mrf.mxu1 }
 0x173   : > { %1159 = vst [vmem:[#allocation2 + $0x10] sm:$0xff] %v1155_v18  ;;  %v1156_v23 = vadd.f32 %v1149_v19, %v658_v16  ;;  %v1151_v24 = vadd.f32 %v1150_v22, %v1107_v20  ;;  %v1109_v25 = vpop.f32.mrf.mxu0 }
 0x174   : > { %v1152_v27 = vpop.f32.mrf.mxu1 }
 0x175   : > { %1160 = vst [vmem:[#allocation2] sm:$0xff] %v1156_v23  ;;  %v1157_v28 = vadd.f32 %v1151_v24, %v659_v21  ;;  %v1153_v29 = vadd.f32 %v1152_v27, %v1109_v25  ;;  %1166 = sbr.rel (%p1483_p6) target bundleno = 395 (0x18b), region = 143 }
 0x177   : > { %1161 = vst [vmem:[#allocation2 + $0x18] sm:$0xff] %v1157_v28  ;;  %v1158_v30 = vadd.f32 %v1153_v29, %v660_v26 }
 0x179   : > { %1162 = vst [vmem:[#allocation2 + $0x8] sm:$0xff] %v1158_v30 }
 0x17a   : > { %v1173_v31 = vlaneseq  ;;  %v1187_v33 = vld [vmem:[%s602_s17] sm:$0xff]  ;;  %v1188_v35 = vld [vmem:[%s602_s17 + $0x8] sm:$0xff] }
 0x17b   : > { %v1171_v34 = vld [vmem:[%s643_s26] sm:$0x3]  ;;  %v1167_v36 = vld [vmem:[#allocation2 + $0x10] sm:$0xff]  ;;  %v1189_v40 = vunpack.c.l.bf16 %v1187_v33  ;;  %v1190_v41 = vunpack.c.h.bf16 %v1187_v33  ;;  %v1191_v46 = vunpack.c.l.bf16 %v1188_v35  ;;  %v1192_v47 = vunpack.c.h.bf16 %v1188_v35 }
 0x17c   : > { %v1174_v32 = vshrl.u32 %v1173_v31, 7  ;;  %v1168_v39 = vld [vmem:[#allocation2] sm:$0xff] }
 0x17e   : > { %v1175_v37 = vsub.s32 0, %v1174_v32  ;;  %v1179_v38 = vsub.s32 1, %v1174_v32  ;;  %v1169_v42 = vld [vmem:[#allocation2 + $0x18] sm:$0xff] }
 0x180   : > { %v1170_v43 = vld [vmem:[#allocation2 + $0x8] sm:$0xff]  ;;  %v1176_v44 = vrot.slane %v1171_v34, %v1175_v37  ;;  %v1180_v45 = vrot.slane %v1171_v34, %v1179_v38 }
 0x182   : > { %v1183_v48 = vadd.f32 %v1176_v44, %v1167_v36  ;;  %v1184_v49 = vadd.f32 %v1180_v45, %v1168_v39  ;;  %v1185_v50 = vadd.f32 %v1176_v44, %v1169_v42  ;;  %v1186_v51 = vadd.f32 %v1180_v45, %v1170_v43 }
 0x184   : > { %v1193_v52 = vadd.f32 %v1189_v40, %v1183_v48  ;;  %v1194_v53 = vadd.f32 %v1190_v41, %v1184_v49  ;;  %v1195_v54 = vadd.f32 %v1191_v46, %v1185_v50  ;;  %v1196_v55 = vadd.f32 %v1192_v47, %v1186_v51 }
 0x186   : > { %v1197_v56 = vmax.f32 %v1193_v52, 0.0  ;;  %v1198_v57 = vmax.f32 %v1194_v53, 0.0  ;;  %v1199_v58 = vmax.f32 %v1195_v54, 0.0  ;;  %v1200_v59 = vmax.f32 %v1196_v55, 0.0 }
 0x188   : > { %v1494_v60 = vpack.c.bf16 %v1198_v57, %v1197_v56  ;;  %v1495_v61 = vpack.c.bf16 %v1200_v59, %v1199_v58 }
 0x18a   : > { %1213 = vst [vmem:[%s2085_s30] sm:$0xff] %v1494_v60  ;;  %1214 = vst [vmem:[%s2085_s30 + $0x8] sm:$0xff] %v1495_v61 }
 0x18b PF: > { %1221 = sbr.rel (!%p1906_p13) target bundleno = 403 (0x193), region = 147  ;;  %s1496_s21 = sshll.u32 (%p1906_p13), %s1762_s22, 3 }
 0x18c   : > { %s1227_s6 = scalar_lea.vmem (%p1906_p13), %s2213_s4, %s1496_s21 }
 0x191   : > { %v1258_v62 = vld [vmem:[%s2085_s30] sm:$0xff]  ;;  %v1260_v63 = vld [vmem:[%s2085_s30 + $0x8] sm:$0xff] }
 0x192   : > { %1259 = vst [vmem:[%s1227_s6] sm:$0xff] %v1258_v62  ;;  %1261 = vst [vmem:[%s1227_s6 + $0x10] sm:$0xff] %v1260_v63 }
 0x193 PF: > { %s14_s25 = sadd.s32 1, %s1774_s25   ;;  %s2225_s29 = sld [smem:[#allocation9_spill]] }
 0x194   : > { %p11_p7 = scmp.ge.s32.totalorder %s14_s25, 20   ;;  %s2226_s11 = sld [smem:[#allocation7_spill]] }
 0x195   : > { %s2227_s8 = sld [smem:[#allocation8_spill]]  ;;  %s2228_s15 = smov %s1738_s16 }
 0x196   : > { %s2229_s16 = smov %s1898_s13  ;;  %s2230_s17 = smov %s1746_s18 }
 0x197   : > { %s2231_s18 = smov %s1895_s12  ;;  %s2232_s19 = smov %s1754_s20 }
 0x198   : > { %s2234_s21 = smov %s1766_s23  ;;  %s2235_s22 = smov %s1770_s24 }
 0x199   : > { %s2233_s20 = smov %s2225_s29  ;;  %13 = sbr.rel (!%p11_p7) target bundleno = 8 (0x8), region = 235 }
 0x19a   : > { %s2236_s23 = smov %s2226_s11 }
 0x19b   : > { %s2237_s24 = smov %s2227_s8 }

// kernel: starting_network_forward.42
= control target key start
LH: loop header
LB: loop body
LE: loop exit
PB: predicated region body
PF: predicated region fallthrough
CT: control target
= control target key end

     0   :  { %s2049_s0 = inlined_call_operand.vmem [shape: bf16[16,4608], index: 0, kind: input, shape index: {}]   ;;  %s2050_s1 = inlined_call_operand.vmem [shape: bf16[4608,512], index: 1, kind: input, shape index: {}]   ;;  %s2051_s2 = inlined_call_operand.vmem [shape: f32[1,512], index: 2, kind: input, shape index: {}]   ;;  %s2052_s3 = inlined_call_operand.vmem [shape: bf16[16,512], index: 3, kind: output, shape index: {}]  }
   0x1   :  { %2054 = sst [smem:[#allocation7_spill]] %s2049_s0 }
   0x2   :  { %2055 = sst [smem:[#allocation8_spill]] %s2050_s1 }
   0x3   :  { %s1667_s12 = smov 0   ;;  %s1669_s13 = smov 0  }
   0x4   :  { %s1671_s14 = smov 0   ;;  %s1673_s15 = smov 0  }
   0x5   :  { %s1675_s16 = smov 0   ;;  %s1677_s17 = smov 0  }
   0x6   :  { %s1679_s18 = smov 0   ;;  %s1681_s19 = smov 0  }
   0x7   :  { %s1683_s20 = smov 0   ;;  %s1685_s21 = smov 0  }
   0x8   :  { %s1687_s22 = smov 0  }
   0x9 LB: > { %s1268_s23 = sadd.s32 4294967295, %s1644_s22   ;;  %s25_s24 = sadd.s32 1, %s1636_s20  ;;  %s1644_s22 = sphi %s1687_s22, %s13_s22   ;;  %s1640_s21 = sphi %s1685_s21, %s2072_s21   ;;  %s1636_s20 = sphi %s1683_s20, %s2071_s20   ;;  %s1632_s19 = sphi %s1681_s19, %s2070_s19   ;;  %s1628_s18 = sphi %s1679_s18, %s2069_s18   ;;  %s1624_s17 = sphi %s1677_s17, %s2068_s17   ;;  %s1620_s16 = sphi %s1675_s16, %s2067_s16   ;;  %s1616_s15 = sphi %s1673_s15, %s2066_s15   ;;  %s1612_s14 = sphi %s1671_s14, %s2065_s14   ;;  %s1608_s13 = sphi %s1669_s13, %s2064_s13   ;;  %s1604_s12 = sphi %s1667_s12, %s2063_s12  }
   0xa   : > { %p26_p0 = scmp.ge.s32.totalorder %s25_s24, 9  ;;  %s28_s25 = sadd.s32 1, %s1640_s21 }
   0xb   : > { %s41_s26 = sadd.s32 1, %s1624_s17  ;;  %p48_p1 = scmp.ne.s32.totalorder %s1624_s17, %s1620_s16 }
   0xc   : > { %s2074_s24 = smov (%p26_p0, %s25_s24), 0  ;;  %s2076_s25 = smov (!%p26_p0, %s28_s25), %s1640_s21 }
   0xd   : > { %s37_s27 = ssub.s32 %s1636_s20, %s2074_s24  ;;  %p49_p2 = scmp.eq.s32.totalorder %s1644_s22, 0 }
   0xe   : > { %p30_p3 = scmp.ge.s32.totalorder %s2076_s25, 2  ;;  %p39_p4 = scmp.eq.s32.totalorder %s37_s27, 0 }
   0xf   : > { %p1734_p5 = por %p49_p2, %p48_p1  ;;  %s69_s29 = sadd.s32 1, %s1616_s15 }
  0x10   : > { %s2078_s25 = smov (%p30_p3, %s2076_s25), 0  ;;  %p76_p6 = scmp.ne.s32.totalorder %s1616_s15, %s1612_s14 }
  0x11   : > { %2057 = sst [smem:[#allocation6_spill]] %s2078_s25  ;;  %s65_s4 = ssub.s32 %s1640_s21, %s2078_s25 }
  0x12   : > { %s1742_s30 = scalar_select %p39_p4, %s1624_s17, %s41_s26  }
  0x13   : > { %s66_s5 = sor.u32 %s65_s4, %s37_s27  ;;  %p121_p7 = scmp.eq.s32.totalorder %s65_s4, 0 }
  0x14   : > { %p67_p8 = scmp.eq.s32.totalorder %s66_s5, 0  ;;  %p1748_p9 = por %p76_p6, %p49_p2 }
  0x15   : > { %s123_s7 = sadd.s32 1, %s1608_s13  ;;  %p133_p10 = scmp.ne.s32.totalorder %s1608_s13, %s1604_s12 }
  0x16   : > { %s1756_s8 = scalar_select %p67_p8, %s1616_s15, %s69_s29  }
  0x17   : > { %s1759_s9 = scalar_select %p121_p7, %s1608_s13, %s123_s7  }
  0x18   : > { %p134_p11 = scmp.eq.s32.totalorder %s1268_s23, 17  ;;  %p1271_p13 = scmp.ge.s32.totalorder %s1644_s22, 18 }
  0x1a   : > { %p1761_p12 = por %p134_p11, %p133_p10  ;;  %156 = sbr.rel (%p1271_p13) target bundleno = 85 (0x55), region = 16 }
  0x1f   : > { %159 = sbr.rel (!%p1734_p5) target bundleno = 43 (0x2b), region = 20  ;;  %s161_s11 = sand.u32 (%p1734_p5), 1, %s1624_s17  }
  0x20   : > { %s1362_s26 = sshll.u32 (%p1734_p5), %s1636_s20, 4  ;;  %s1272_s27 = sshll.u32 (%p1734_p5), %s161_s11, 5 }
  0x21   : > { %s2060_s0 = sld [smem:[#allocation7_spill]] (%p1734_p5)  ;;  %s163_s23 = scalar_lea.vmem (%p1734_p5), [#allocation3], %s1272_s27 }
  0x27   : > { %s169_s5 = scalar_lea.vmem %s2060_s0, %s1362_s26 }
  0x28   : > { %v182_v0 = vld [vmem:[%s169_s5] sm:$0xff]  ;;  %v184_v1 = vld [vmem:[%s169_s5 + $0x8] sm:$0xff]  ;;  %v186_v2 = vld [vmem:[%s169_s5 + $0x90] sm:$0xff] }
  0x29   : > { %183 = vst [vmem:[%s163_s23] sm:$0xff] %v182_v0  ;;  %185 = vst [vmem:[%s163_s23 + $0x8] sm:$0xff] %v184_v1  ;;  %v188_v3 = vld [vmem:[%s169_s5 + $0x98] sm:$0xff] }
  0x2a   : > { %187 = vst [vmem:[%s163_s23 + $0x10] sm:$0xff] %v186_v2  ;;  %189 = vst [vmem:[%s163_s23 + $0x18] sm:$0xff] %v188_v3 }
  0x2b PF: > { %195 = sbr.rel (!%p1748_p9) target bundleno = 85 (0x55), region = 43  ;;  %s197_s28 = sand.u32 (%p1748_p9), 1, %s1616_s15  }
  0x2c   : > { %s1277_s7 = sshll.u32 (%p1748_p9), %s1640_s21, 1  ;;  %s1275_s11 = sshll.u32 (%p1748_p9), %s197_s28, 9 }
  0x2d   : > { %s1363_s26 = sshll.u32 (%p1748_p9), %s1636_s20, 8  ;;  %s2061_s1 = sld [smem:[#allocation8_spill]] (%p1748_p9) }
  0x2e   : > { %s203_s29 = sadd.s32 (%p1748_p9), %s1363_s26, %s1277_s7  ;;  %s1786_s6 = scalar_lea.vmem (%p1748_p9), [#allocation4], %s1275_s11 }
  0x2f   : > { %s1279_s4 = sshll.u32 (%p1748_p9), %s203_s29, 2 }
  0x33   : > { %s1781_s25 = scalar_lea.vmem %s2061_s1, %s1279_s4 }
  0x34   : > { %v360_v4 = vld [vmem:[%s1781_s25] sm:$0xff]  ;;  %v362_v5 = vld [vmem:[%s1781_s25 + $0x10] sm:$0xff] }
  0x35   : > { %v364_v6 = vld [vmem:[%s1781_s25 + $0x20] sm:$0xff]  ;;  %361 = vst [vmem:[%s1786_s6] sm:$0xff] %v360_v4  ;;  %363 = vst [vmem:[%s1786_s6 + $0x8] sm:$0xff] %v362_v5  ;;  %v366_v7 = vld [vmem:[%s1781_s25 + $0x30] sm:$0xff] }
  0x36   : > { %365 = vst [vmem:[%s1786_s6 + $0x10] sm:$0xff] %v364_v6  ;;  %v368_v8 = vld [vmem:[%s1781_s25 + $0x40] sm:$0xff]  ;;  %v370_v9 = vld [vmem:[%s1781_s25 + $0x50] sm:$0xff]  ;;  %367 = vst [vmem:[%s1786_s6 + $0x18] sm:$0xff] %v366_v7 }
  0x37   : > { %369 = vst [vmem:[%s1786_s6 + $0x20] sm:$0xff] %v368_v8  ;;  %371 = vst [vmem:[%s1786_s6 + $0x28] sm:$0xff] %v370_v9  ;;  %v372_v10 = vld [vmem:[%s1781_s25 + $0x60] sm:$0xff]  ;;  %v374_v11 = vld [vmem:[%s1781_s25 + $0x70] sm:$0xff] }
  0x38   : > { %v376_v12 = vld [vmem:[%s1781_s25 + $0x80] sm:$0xff]  ;;  %373 = vst [vmem:[%s1786_s6 + $0x30] sm:$0xff] %v372_v10  ;;  %375 = vst [vmem:[%s1786_s6 + $0x38] sm:$0xff] %v374_v11  ;;  %v378_v13 = vld [vmem:[%s1781_s25 + $0x90] sm:$0xff] }
  0x39   : > { %377 = vst [vmem:[%s1786_s6 + $0x40] sm:$0xff] %v376_v12  ;;  %v380_v14 = vld [vmem:[%s1781_s25 + $0xa0] sm:$0xff]  ;;  %v382_v15 = vld [vmem:[%s1781_s25 + $0xb0] sm:$0xff]  ;;  %379 = vst [vmem:[%s1786_s6 + $0x48] sm:$0xff] %v378_v13 }
  0x3a   : > { %381 = vst [vmem:[%s1786_s6 + $0x50] sm:$0xff] %v380_v14  ;;  %383 = vst [vmem:[%s1786_s6 + $0x58] sm:$0xff] %v382_v15  ;;  %v384_v16 = vld [vmem:[%s1781_s25 + $0xc0] sm:$0xff]  ;;  %v386_v17 = vld [vmem:[%s1781_s25 + $0xd0] sm:$0xff] }
  0x3b   : > { %v388_v18 = vld [vmem:[%s1781_s25 + $0xe0] sm:$0xff]  ;;  %385 = vst [vmem:[%s1786_s6 + $0x60] sm:$0xff] %v384_v16  ;;  %387 = vst [vmem:[%s1786_s6 + $0x68] sm:$0xff] %v386_v17  ;;  %v390_v19 = vld [vmem:[%s1781_s25 + $0xf0] sm:$0xff] }
  0x3c   : > { %389 = vst [vmem:[%s1786_s6 + $0x70] sm:$0xff] %v388_v18  ;;  %v392_v20 = vld [vmem:[%s1781_s25 + $0x100] sm:$0xff]  ;;  %v394_v21 = vld [vmem:[%s1781_s25 + $0x110] sm:$0xff]  ;;  %391 = vst [vmem:[%s1786_s6 + $0x78] sm:$0xff] %v390_v19 }
  0x3d   : > { %393 = vst [vmem:[%s1786_s6 + $0x80] sm:$0xff] %v392_v20  ;;  %395 = vst [vmem:[%s1786_s6 + $0x88] sm:$0xff] %v394_v21  ;;  %v396_v22 = vld [vmem:[%s1781_s25 + $0x120] sm:$0xff]  ;;  %v398_v23 = vld [vmem:[%s1781_s25 + $0x130] sm:$0xff] }
  0x3e   : > { %v400_v24 = vld [vmem:[%s1781_s25 + $0x140] sm:$0xff]  ;;  %397 = vst [vmem:[%s1786_s6 + $0x90] sm:$0xff] %v396_v22  ;;  %399 = vst [vmem:[%s1786_s6 + $0x98] sm:$0xff] %v398_v23  ;;  %v402_v25 = vld [vmem:[%s1781_s25 + $0x150] sm:$0xff] }
  0x3f   : > { %401 = vst [vmem:[%s1786_s6 + $0xa0] sm:$0xff] %v400_v24  ;;  %v404_v26 = vld [vmem:[%s1781_s25 + $0x160] sm:$0xff]  ;;  %v406_v27 = vld [vmem:[%s1781_s25 + $0x170] sm:$0xff]  ;;  %403 = vst [vmem:[%s1786_s6 + $0xa8] sm:$0xff] %v402_v25 }
  0x40   : > { %405 = vst [vmem:[%s1786_s6 + $0xb0] sm:$0xff] %v404_v26  ;;  %407 = vst [vmem:[%s1786_s6 + $0xb8] sm:$0xff] %v406_v27  ;;  %v408_v28 = vld [vmem:[%s1781_s25 + $0x180] sm:$0xff]  ;;  %v410_v29 = vld [vmem:[%s1781_s25 + $0x190] sm:$0xff] }
  0x41   : > { %v412_v30 = vld [vmem:[%s1781_s25 + $0x1a0] sm:$0xff]  ;;  %409 = vst [vmem:[%s1786_s6 + $0xc0] sm:$0xff] %v408_v28  ;;  %411 = vst [vmem:[%s1786_s6 + $0xc8] sm:$0xff] %v410_v29  ;;  %v414_v31 = vld [vmem:[%s1781_s25 + $0x1b0] sm:$0xff] }
  0x42   : > { %413 = vst [vmem:[%s1786_s6 + $0xd0] sm:$0xff] %v412_v30  ;;  %v416_v32 = vld [vmem:[%s1781_s25 + $0x1c0] sm:$0xff]  ;;  %v418_v33 = vld [vmem:[%s1781_s25 + $0x1d0] sm:$0xff]  ;;  %415 = vst [vmem:[%s1786_s6 + $0xd8] sm:$0xff] %v414_v31 }
  0x43   : > { %417 = vst [vmem:[%s1786_s6 + $0xe0] sm:$0xff] %v416_v32  ;;  %419 = vst [vmem:[%s1786_s6 + $0xe8] sm:$0xff] %v418_v33  ;;  %v420_v34 = vld [vmem:[%s1781_s25 + $0x1e0] sm:$0xff]  ;;  %v422_v35 = vld [vmem:[%s1781_s25 + $0x1f0] sm:$0xff] }
  0x44   : > { %v424_v36 = vld [vmem:[%s1781_s25 + $0x200] sm:$0xff]  ;;  %421 = vst [vmem:[%s1786_s6 + $0xf0] sm:$0xff] %v420_v34  ;;  %423 = vst [vmem:[%s1786_s6 + $0xf8] sm:$0xff] %v422_v35  ;;  %v426_v37 = vld [vmem:[%s1781_s25 + $0x210] sm:$0xff] }
  0x45   : > { %425 = vst [vmem:[%s1786_s6 + $0x100] sm:$0xff] %v424_v36  ;;  %v428_v38 = vld [vmem:[%s1781_s25 + $0x220] sm:$0xff]  ;;  %v430_v39 = vld [vmem:[%s1781_s25 + $0x230] sm:$0xff]  ;;  %427 = vst [vmem:[%s1786_s6 + $0x108] sm:$0xff] %v426_v37 }
  0x46   : > { %429 = vst [vmem:[%s1786_s6 + $0x110] sm:$0xff] %v428_v38  ;;  %431 = vst [vmem:[%s1786_s6 + $0x118] sm:$0xff] %v430_v39  ;;  %v432_v40 = vld [vmem:[%s1781_s25 + $0x240] sm:$0xff]  ;;  %v434_v41 = vld [vmem:[%s1781_s25 + $0x250] sm:$0xff] }
  0x47   : > { %v436_v42 = vld [vmem:[%s1781_s25 + $0x260] sm:$0xff]  ;;  %433 = vst [vmem:[%s1786_s6 + $0x120] sm:$0xff] %v432_v40  ;;  %435 = vst [vmem:[%s1786_s6 + $0x128] sm:$0xff] %v434_v41  ;;  %v438_v43 = vld [vmem:[%s1781_s25 + $0x270] sm:$0xff] }
  0x48   : > { %437 = vst [vmem:[%s1786_s6 + $0x130] sm:$0xff] %v436_v42  ;;  %v440_v44 = vld [vmem:[%s1781_s25 + $0x280] sm:$0xff]  ;;  %v442_v45 = vld [vmem:[%s1781_s25 + $0x290] sm:$0xff]  ;;  %439 = vst [vmem:[%s1786_s6 + $0x138] sm:$0xff] %v438_v43 }
  0x49   : > { %441 = vst [vmem:[%s1786_s6 + $0x140] sm:$0xff] %v440_v44  ;;  %443 = vst [vmem:[%s1786_s6 + $0x148] sm:$0xff] %v442_v45  ;;  %v444_v46 = vld [vmem:[%s1781_s25 + $0x2a0] sm:$0xff]  ;;  %v446_v47 = vld [vmem:[%s1781_s25 + $0x2b0] sm:$0xff] }
  0x4a   : > { %v448_v48 = vld [vmem:[%s1781_s25 + $0x2c0] sm:$0xff]  ;;  %445 = vst [vmem:[%s1786_s6 + $0x150] sm:$0xff] %v444_v46  ;;  %447 = vst [vmem:[%s1786_s6 + $0x158] sm:$0xff] %v446_v47  ;;  %v450_v49 = vld [vmem:[%s1781_s25 + $0x2d0] sm:$0xff] }
  0x4b   : > { %449 = vst [vmem:[%s1786_s6 + $0x160] sm:$0xff] %v448_v48  ;;  %v452_v50 = vld [vmem:[%s1781_s25 + $0x2e0] sm:$0xff]  ;;  %v454_v51 = vld [vmem:[%s1781_s25 + $0x2f0] sm:$0xff]  ;;  %451 = vst [vmem:[%s1786_s6 + $0x168] sm:$0xff] %v450_v49 }
  0x4c   : > { %453 = vst [vmem:[%s1786_s6 + $0x170] sm:$0xff] %v452_v50  ;;  %455 = vst [vmem:[%s1786_s6 + $0x178] sm:$0xff] %v454_v51  ;;  %v456_v52 = vld [vmem:[%s1781_s25 + $0x300] sm:$0xff]  ;;  %v458_v53 = vld [vmem:[%s1781_s25 + $0x310] sm:$0xff] }
  0x4d   : > { %v460_v54 = vld [vmem:[%s1781_s25 + $0x320] sm:$0xff]  ;;  %457 = vst [vmem:[%s1786_s6 + $0x180] sm:$0xff] %v456_v52  ;;  %459 = vst [vmem:[%s1786_s6 + $0x188] sm:$0xff] %v458_v53  ;;  %v462_v55 = vld [vmem:[%s1781_s25 + $0x330] sm:$0xff] }
  0x4e   : > { %461 = vst [vmem:[%s1786_s6 + $0x190] sm:$0xff] %v460_v54  ;;  %v464_v56 = vld [vmem:[%s1781_s25 + $0x340] sm:$0xff]  ;;  %v466_v57 = vld [vmem:[%s1781_s25 + $0x350] sm:$0xff]  ;;  %463 = vst [vmem:[%s1786_s6 + $0x198] sm:$0xff] %v462_v55 }
  0x4f   : > { %465 = vst [vmem:[%s1786_s6 + $0x1a0] sm:$0xff] %v464_v56  ;;  %467 = vst [vmem:[%s1786_s6 + $0x1a8] sm:$0xff] %v466_v57  ;;  %v468_v58 = vld [vmem:[%s1781_s25 + $0x360] sm:$0xff]  ;;  %v470_v59 = vld [vmem:[%s1781_s25 + $0x370] sm:$0xff] }
  0x50   : > { %v472_v60 = vld [vmem:[%s1781_s25 + $0x380] sm:$0xff]  ;;  %469 = vst [vmem:[%s1786_s6 + $0x1b0] sm:$0xff] %v468_v58  ;;  %471 = vst [vmem:[%s1786_s6 + $0x1b8] sm:$0xff] %v470_v59  ;;  %v474_v61 = vld [vmem:[%s1781_s25 + $0x390] sm:$0xff] }
  0x51   : > { %473 = vst [vmem:[%s1786_s6 + $0x1c0] sm:$0xff] %v472_v60  ;;  %v476_v62 = vld [vmem:[%s1781_s25 + $0x3a0] sm:$0xff]  ;;  %v478_v63 = vld [vmem:[%s1781_s25 + $0x3b0] sm:$0xff]  ;;  %475 = vst [vmem:[%s1786_s6 + $0x1c8] sm:$0xff] %v474_v61 }
  0x52   : > { %477 = vst [vmem:[%s1786_s6 + $0x1d0] sm:$0xff] %v476_v62  ;;  %479 = vst [vmem:[%s1786_s6 + $0x1d8] sm:$0xff] %v478_v63  ;;  %v480_v0 = vld [vmem:[%s1781_s25 + $0x3c0] sm:$0xff]  ;;  %v482_v1 = vld [vmem:[%s1781_s25 + $0x3d0] sm:$0xff] }
  0x53   : > { %v484_v2 = vld [vmem:[%s1781_s25 + $0x3e0] sm:$0xff]  ;;  %481 = vst [vmem:[%s1786_s6 + $0x1e0] sm:$0xff] %v480_v0  ;;  %483 = vst [vmem:[%s1786_s6 + $0x1e8] sm:$0xff] %v482_v1  ;;  %v486_v3 = vld [vmem:[%s1781_s25 + $0x3f0] sm:$0xff] }
  0x54   : > { %485 = vst [vmem:[%s1786_s6 + $0x1f0] sm:$0xff] %v484_v2  ;;  %487 = vst [vmem:[%s1786_s6 + $0x1f8] sm:$0xff] %v486_v3 }
  0x55 PF: > { %p1280_p0 = scmp.ge.s32.totalorder %s1644_s22, 1  ;;  %p500_p1 = scmp.lt.s32.totalorder %s1644_s22, 19 }
  0x57   : > { %p501_p2 = pnand %p1280_p0, %p500_p1 }
  0x58   : > { %s507_s0 = sand.u32 (!%p501_p2), 1, %s1620_s16   ;;  %s514_s5 = sand.u32 (!%p501_p2), 1, %s1612_s14  }
  0x59   : > { %504 = sbr.rel (%p501_p2) target bundleno = 397 (0x18d), region = 85  ;;  %s1281_s23 = sshll.u32 (!%p501_p2), %s507_s0, 5 }
  0x5a   : > { %s1282_s28 = sshll.u32 (!%p501_p2), %s514_s5, 9  ;;  %s541_s7 = sand.u32 (!%p501_p2), 1, %s1604_s12  }
  0x5b   : > { %s1284_s11 = sshll.u32 (!%p501_p2), %s1632_s19, 1  ;;  %s1283_s25 = sshll.u32 (!%p501_p2), %s541_s7, 4 }
  0x5c   : > { %p549_p3 = scmp.lt.s32.totalorder (!%p501_p2), %s1284_s11, 3  ;;  %s1925_s27 = scalar_lea.vmem (!%p501_p2), [#allocation3], %s1281_s23 }
  0x5d   : > { %s1927_s6 = scalar_lea.vmem (!%p501_p2), [#allocation4], %s1282_s28  ;;  %s1929_s1 = scalar_lea.vmem (!%p501_p2), [#allocation5], %s1283_s25 }
  0x5e   : > { %s2080_s11 = smov (!%p549_p3, %s1284_s11), 3  ;;  %p1285_p4 = scmp.ne.s32.totalorder %s1628_s18, 0 }
  0x5f   : > { %s551_s4 = scalar_lea.vmem %s2051_s2, %s2080_s11 }
  0x60   : > { %558 = sbr.rel (%p1285_p4) target bundleno = 104 (0x68), region = 97 }
  0x65   : > { %v1646_v4 = vmov 0.0  }
  0x66   : > { %559 = vst [vmem:[#allocation2 + $0x10] sm:$0xff] %v1646_v4  ;;  %560 = vst [vmem:[#allocation2] sm:$0xff] %v1646_v4 }
  0x67   : > { %561 = vst [vmem:[#allocation2 + $0x18] sm:$0xff] %v1646_v4  ;;  %562 = vst [vmem:[#allocation2 + $0x8] sm:$0xff] %v1646_v4 }
  0x68 PF: > { %v1456_v5 = vld [vmem:[%s1927_s6 + $0x74] ss:$8 sps:$4 sm:$0xff]   ;;  %v1460_v7 = vld [vmem:[%s1927_s6 + $0x70] ss:$8 sps:$4 sm:$0xff]   ;;  %v1462_v9 = vld [vmem:[%s1927_s6 + $0x64] ss:$8 sps:$4 sm:$0xff]  }
  0x69   : > { %v1458_v6 = vld [vmem:[%s1927_s6 + $0x174] ss:$8 sps:$4 sm:$0xff]   ;;  %975 = vmatprep.subr.bf16.mxu0 %v1456_v5  ;;  %v1461_v8 = vld [vmem:[%s1927_s6 + $0x170] ss:$8 sps:$4 sm:$0xff]   ;;  %v1464_v10 = vld [vmem:[%s1927_s6 + $0x164] ss:$8 sps:$4 sm:$0xff]  }
  0x6a   : > { %1018 = vmatprep.subr.bf16.mxu1 %v1458_v6  ;;  %976 = vmatpush1.bf16.msra.mxu0 %v1460_v7  ;;  %v1466_v11 = vld [vmem:[%s1927_s6 + $0x60] ss:$8 sps:$4 sm:$0xff]   ;;  %v1468_v13 = vld [vmem:[%s1927_s6 + $0x54] ss:$8 sps:$4 sm:$0xff]   ;;  %v1472_v15 = vld [vmem:[%s1927_s6 + $0x50] ss:$8 sps:$4 sm:$0xff]  }
  0x6b   : > { %1019 = vmatpush1.bf16.msra.mxu1 %v1461_v8  ;;  %977 = vmatprep.subr.bf16.mxu0 %v1462_v9  ;;  %v1467_v12 = vld [vmem:[%s1927_s6 + $0x160] ss:$8 sps:$4 sm:$0xff]   ;;  %v1470_v14 = vld [vmem:[%s1927_s6 + $0x154] ss:$8 sps:$4 sm:$0xff]   ;;  %v1473_v16 = vld [vmem:[%s1927_s6 + $0x150] ss:$8 sps:$4 sm:$0xff]  }
  0x6c   : > { %1020 = vmatprep.subr.bf16.mxu1 %v1464_v10  ;;  %v1474_v17 = vld [vmem:[%s1927_s6 + $0x44] ss:$8 sps:$4 sm:$0xff]   ;;  %v1478_v19 = vld [vmem:[%s1927_s6 + $0x40] ss:$8 sps:$4 sm:$0xff]   ;;  %v1480_v21 = vld [vmem:[%s1927_s6 + $0x34] ss:$8 sps:$4 sm:$0xff]  }
  0x6d   : > { %v1476_v18 = vld [vmem:[%s1927_s6 + $0x144] ss:$8 sps:$4 sm:$0xff]   ;;  %v1479_v20 = vld [vmem:[%s1927_s6 + $0x140] ss:$8 sps:$4 sm:$0xff]   ;;  %v1482_v22 = vld [vmem:[%s1927_s6 + $0x134] ss:$8 sps:$4 sm:$0xff]  }
  0x6e   : > { %978 = vmatpush1.bf16.msra.mxu0 %v1466_v11  ;;  %v1484_v23 = vld [vmem:[%s1927_s6 + $0x30] ss:$8 sps:$4 sm:$0xff]   ;;  %v1486_v25 = vld [vmem:[%s1927_s6 + $0x24] ss:$8 sps:$4 sm:$0xff]   ;;  %v1490_v27 = vld [vmem:[%s1927_s6 + $0x20] ss:$8 sps:$4 sm:$0xff]  }
  0x6f   : > { %1021 = vmatpush1.bf16.msra.mxu1 %v1467_v12  ;;  %979 = vmatprep.subr.bf16.mxu0 %v1468_v13  ;;  %v1485_v24 = vld [vmem:[%s1927_s6 + $0x130] ss:$8 sps:$4 sm:$0xff]   ;;  %v1488_v26 = vld [vmem:[%s1927_s6 + $0x124] ss:$8 sps:$4 sm:$0xff]   ;;  %v1491_v28 = vld [vmem:[%s1927_s6 + $0x120] ss:$8 sps:$4 sm:$0xff]  }
  0x70   : > { %1022 = vmatprep.subr.bf16.mxu1 %v1470_v14  ;;  %v1492_v29 = vld [vmem:[%s1927_s6 + $0x14] ss:$8 sps:$4 sm:$0xff]   ;;  %v1496_v31 = vld [vmem:[%s1927_s6 + $0x10] ss:$8 sps:$4 sm:$0xff]   ;;  %v1498_v33 = vld [vmem:[%s1927_s6 + $0x4] ss:$8 sps:$4 sm:$0xff]  }
  0x71   : > { %v1494_v30 = vld [vmem:[%s1927_s6 + $0x114] ss:$8 sps:$4 sm:$0xff]   ;;  %v1497_v32 = vld [vmem:[%s1927_s6 + $0x110] ss:$8 sps:$4 sm:$0xff]   ;;  %v1500_v34 = vld [vmem:[%s1927_s6 + $0x104] ss:$8 sps:$4 sm:$0xff]  }
  0x72   : > { %980 = vmatpush1.bf16.msra.mxu0 %v1472_v15  ;;  %v1502_v35 = vld [vmem:[%s1927_s6] ss:$8 sps:$4 sm:$0xff]   ;;  %v1504_v37 = vld [vmem:[%s1927_s6 + $0xf4] ss:$8 sps:$4 sm:$0xff]   ;;  %v1508_v39 = vld [vmem:[%s1927_s6 + $0xf0] ss:$8 sps:$4 sm:$0xff]  }
  0x73   : > { %1023 = vmatpush1.bf16.msra.mxu1 %v1473_v16  ;;  %981 = vmatprep.subr.bf16.mxu0 %v1474_v17  ;;  %v1503_v36 = vld [vmem:[%s1927_s6 + $0x100] ss:$8 sps:$4 sm:$0xff]   ;;  %v1506_v38 = vld [vmem:[%s1927_s6 + $0x1f4] ss:$8 sps:$4 sm:$0xff]   ;;  %v1509_v40 = vld [vmem:[%s1927_s6 + $0x1f0] ss:$8 sps:$4 sm:$0xff]  }
  0x74   : > { %1024 = vmatprep.subr.bf16.mxu1 %v1476_v18  ;;  %v1510_v41 = vld [vmem:[%s1927_s6 + $0xe4] ss:$8 sps:$4 sm:$0xff]   ;;  %v1514_v43 = vld [vmem:[%s1927_s6 + $0xe0] ss:$8 sps:$4 sm:$0xff]   ;;  %v1516_v45 = vld [vmem:[%s1927_s6 + $0xd4] ss:$8 sps:$4 sm:$0xff]  }
  0x75   : > { %v1512_v42 = vld [vmem:[%s1927_s6 + $0x1e4] ss:$8 sps:$4 sm:$0xff]   ;;  %v1515_v44 = vld [vmem:[%s1927_s6 + $0x1e0] ss:$8 sps:$4 sm:$0xff]   ;;  %v1518_v46 = vld [vmem:[%s1927_s6 + $0x1d4] ss:$8 sps:$4 sm:$0xff]  }
  0x76   : > { %982 = vmatpush1.bf16.msra.mxu0 %v1478_v19  ;;  %v1520_v47 = vld [vmem:[%s1927_s6 + $0xd0] ss:$8 sps:$4 sm:$0xff]   ;;  %v1522_v49 = vld [vmem:[%s1927_s6 + $0xc4] ss:$8 sps:$4 sm:$0xff]   ;;  %v1526_v51 = vld [vmem:[%s1927_s6 + $0xc0] ss:$8 sps:$4 sm:$0xff]  }
  0x77   : > { %1025 = vmatpush1.bf16.msra.mxu1 %v1479_v20  ;;  %983 = vmatprep.subr.bf16.mxu0 %v1480_v21  ;;  %v1521_v48 = vld [vmem:[%s1927_s6 + $0x1d0] ss:$8 sps:$4 sm:$0xff]   ;;  %v1524_v50 = vld [vmem:[%s1927_s6 + $0x1c4] ss:$8 sps:$4 sm:$0xff]   ;;  %v1527_v53 = vld [vmem:[%s1927_s6 + $0x1c0] ss:$8 sps:$4 sm:$0xff]  }
  0x78   : > { %1026 = vmatprep.subr.bf16.mxu1 %v1482_v22  ;;  %v1554_v52 = vld [vmem:[%s1925_s27 + $0x4] ss:$16 sps:$4 sm:$0xff]   ;;  %v1557_v56 = vld [vmem:[%s1925_s27 + $0xc] ss:$16 sps:$4 sm:$0xff]   ;;  %v1532_v57 = vld [vmem:[%s1927_s6 + $0xb0] ss:$8 sps:$4 sm:$0xff]  }
  0x79   : > { %v1528_v54 = vld [vmem:[%s1927_s6 + $0xb4] ss:$8 sps:$4 sm:$0xff]   ;;  %1007 = vmatprep.mubr.bf16.mxu0 %v1554_v52  ;;  %1050 = vmatprep.mubr.bf16.mxu1 %v1557_v56  ;;  %v1533_v58 = vld [vmem:[%s1927_s6 + $0x1b0] ss:$8 sps:$4 sm:$0xff]   ;;  %v1534_v59 = vld [vmem:[%s1927_s6 + $0xa4] ss:$8 sps:$4 sm:$0xff]  }
  0x7a   : > { %984 = vmatpush1.bf16.msra.mxu0 %v1484_v23  ;;  %v1530_v55 = vld [vmem:[%s1927_s6 + $0x1b4] ss:$8 sps:$4 sm:$0xff]   ;;  %v1536_v60 = vld [vmem:[%s1927_s6 + $0x1a4] ss:$8 sps:$4 sm:$0xff]   ;;  %v1538_v61 = vld [vmem:[%s1927_s6 + $0xa0] ss:$8 sps:$4 sm:$0xff]  }
  0x7b   : > { %1027 = vmatpush1.bf16.msra.mxu1 %v1485_v24  ;;  %985 = vmatprep.subr.bf16.mxu0 %v1486_v25  ;;  %v1539_v62 = vld [vmem:[%s1927_s6 + $0x1a0] ss:$8 sps:$4 sm:$0xff]   ;;  %v1540_v63 = vld [vmem:[%s1927_s6 + $0x94] ss:$8 sps:$4 sm:$0xff]   ;;  %v1544_v1 = vld [vmem:[%s1927_s6 + $0x90] ss:$8 sps:$4 sm:$0xff]  }
  0x7c   : > { %1028 = vmatprep.subr.bf16.mxu1 %v1488_v26  ;;  %v1542_v0 = vld [vmem:[%s1927_s6 + $0x194] ss:$8 sps:$4 sm:$0xff]   ;;  %v1545_v2 = vld [vmem:[%s1927_s6 + $0x190] ss:$8 sps:$4 sm:$0xff]   ;;  %v1546_v3 = vld [vmem:[%s1927_s6 + $0x84] ss:$8 sps:$4 sm:$0xff]  }
  0x7d   : > { %v1548_v4 = vld [vmem:[%s1927_s6 + $0x184] ss:$8 sps:$4 sm:$0xff]   ;;  %v1550_v5 = vld [vmem:[%s1927_s6 + $0x80] ss:$8 sps:$4 sm:$0xff]   ;;  %v563_v10 = vld [vmem:[#allocation2 + $0x10] sm:$0xff]  ;;  %p1354_p5 = scmp.ne.s32.totalorder %s1628_s18, 8 }
  0x7e   : > { %986 = vmatpush1.bf16.msra.mxu0 %v1490_v27  ;;  %v1551_v6 = vld [vmem:[%s1927_s6 + $0x180] ss:$8 sps:$4 sm:$0xff]   ;;  %v565_v19 = vld [vmem:[#allocation2 + $0x18] sm:$0xff] }
  0x7f   : > { %1029 = vmatpush1.bf16.msra.mxu1 %v1491_v28  ;;  %987 = vmatprep.subr.bf16.mxu0 %v1492_v29  ;;  %v1552_v7 = vld [vmem:[%s1925_s27] ss:$16 sps:$4 sm:$0xff]   ;;  %v1555_v8 = vld [vmem:[%s1925_s27 + $0x8] ss:$16 sps:$4 sm:$0xff]  }
  0x80   : > { %1030 = vmatprep.subr.bf16.mxu1 %v1494_v30  ;;  %v564_v14 = vld [vmem:[#allocation2] sm:$0xff]  ;;  %v566_v24 = vld [vmem:[#allocation2 + $0x8] sm:$0xff] }
  0x82   : > { %988 = vmatpush1.bf16.msra.mxu0 %v1496_v31 }
  0x83   : > { %1031 = vmatpush1.bf16.msra.mxu1 %v1497_v32  ;;  %989 = vmatprep.subr.bf16.mxu0 %v1498_v33 }
  0x84   : > { %1032 = vmatprep.subr.bf16.mxu1 %v1500_v34 }
  0x86   : > { %990 = vmatpush1.bf16.msra.mxu0 %v1502_v35 }
  0x87   : > { %1033 = vmatpush1.bf16.msra.mxu1 %v1503_v36  ;;  %991 = vmatprep.subr.bf16.mxu0 %v1504_v37 }
  0x88   : > { %1034 = vmatprep.subr.bf16.mxu1 %v1506_v38 }
  0x8a   : > { %992 = vmatpush2.bf16.msra.mxu0 %v1508_v39 }
  0x8b   : > { %1035 = vmatpush2.bf16.msra.mxu1 %v1509_v40  ;;  %993 = vmatprep.subr.bf16.mxu0 %v1510_v41 }
  0x8c   : > { %1036 = vmatprep.subr.bf16.mxu1 %v1512_v42 }
  0x8e   : > { %994 = vmatpush2.bf16.msra.mxu0 %v1514_v43 }
  0x8f   : > { %1037 = vmatpush2.bf16.msra.mxu1 %v1515_v44  ;;  %995 = vmatprep.subr.bf16.mxu0 %v1516_v45 }
  0x90   : > { %1038 = vmatprep.subr.bf16.mxu1 %v1518_v46 }
  0x92   : > { %996 = vmatpush2.bf16.msra.mxu0 %v1520_v47 }
  0x93   : > { %1039 = vmatpush2.bf16.msra.mxu1 %v1521_v48  ;;  %997 = vmatprep.subr.bf16.mxu0 %v1522_v49 }
  0x94   : > { %1040 = vmatprep.subr.bf16.mxu1 %v1524_v50 }
  0x96   : > { %998 = vmatpush2.bf16.msra.mxu0 %v1526_v51 }
  0x97   : > { %1041 = vmatpush2.bf16.msra.mxu1 %v1527_v53  ;;  %999 = vmatprep.subr.bf16.mxu0 %v1528_v54 }
  0x98   : > { %1042 = vmatprep.subr.bf16.mxu1 %v1530_v55 }
  0x9a   : > { %1000 = vmatpush2.bf16.msra.mxu0 %v1532_v57 }
  0x9b   : > { %1043 = vmatpush2.bf16.msra.mxu1 %v1533_v58  ;;  %1001 = vmatprep.subr.bf16.mxu0 %v1534_v59 }
  0x9c   : > { %1044 = vmatprep.subr.bf16.mxu1 %v1536_v60 }
  0x9e   : > { %1002 = vmatpush2.bf16.msra.mxu0 %v1538_v61 }
  0x9f   : > { %1045 = vmatpush2.bf16.msra.mxu1 %v1539_v62  ;;  %1003 = vmatprep.subr.bf16.mxu0 %v1540_v63 }
  0xa0   : > { %1046 = vmatprep.subr.bf16.mxu1 %v1542_v0 }
  0xa2   : > { %1004 = vmatpush2.bf16.msra.mxu0 %v1544_v1 }
  0xa3   : > { %1047 = vmatpush2.bf16.msra.mxu1 %v1545_v2  ;;  %1005 = vmatprep.subr.bf16.mxu0 %v1546_v3 }
  0xa4   : > { %1048 = vmatprep.subr.bf16.mxu1 %v1548_v4 }
  0xa6   : > { %1006 = vmatpush2.bf16.msra.mxu0 %v1550_v5 }
  0xa7   : > { %1049 = vmatpush2.bf16.msra.mxu1 %v1551_v6 }
  0xa9   : > { %1008 = vmatmul.mubr.bf16.vlgmr.msra.gmra.mxu0 %v1552_v7 }
  0xaa   : > { %1051 = vmatmul.mubr.bf16.vlgmr.msra.gmra.mxu1 %v1555_v8 }
 0x169   : > { %v1009_v9 = vpop.f32.mrf.mxu0 }
 0x16a   : > { %v1052_v11 = vpop.f32.mrf.mxu1 }
 0x16b   : > { %v1053_v12 = vadd.f32 %v1052_v11, %v1009_v9  ;;  %v1011_v13 = vpop.f32.mrf.mxu0 }
 0x16c   : > { %v1054_v15 = vpop.f32.mrf.mxu1 }
 0x16d   : > { %v1061_v16 = vadd.f32 %v1053_v12, %v563_v10  ;;  %v1055_v17 = vadd.f32 %v1054_v15, %v1011_v13  ;;  %v1013_v18 = vpop.f32.mrf.mxu0 }
 0x16e   : > { %v1056_v20 = vpop.f32.mrf.mxu1 }
 0x16f   : > { %1065 = vst [vmem:[#allocation2 + $0x10] sm:$0xff] %v1061_v16  ;;  %v1062_v21 = vadd.f32 %v1055_v17, %v564_v14  ;;  %v1057_v22 = vadd.f32 %v1056_v20, %v1013_v18  ;;  %v1015_v23 = vpop.f32.mrf.mxu0 }
 0x170   : > { %v1058_v25 = vpop.f32.mrf.mxu1 }
 0x171   : > { %1066 = vst [vmem:[#allocation2] sm:$0xff] %v1062_v21  ;;  %v1063_v26 = vadd.f32 %v1057_v22, %v565_v19  ;;  %v1059_v27 = vadd.f32 %v1058_v25, %v1015_v23  ;;  %1072 = sbr.rel (%p1354_p5) target bundleno = 389 (0x185), region = 101 }
 0x173   : > { %1067 = vst [vmem:[#allocation2 + $0x18] sm:$0xff] %v1063_v26  ;;  %v1064_v28 = vadd.f32 %v1059_v27, %v566_v24 }
 0x175   : > { %1068 = vst [vmem:[#allocation2 + $0x8] sm:$0xff] %v1064_v28 }
 0x176   : > { %v1079_v29 = vlaneseq  ;;  %v1077_v31 = vld [vmem:[%s551_s4] sm:$0x3]  ;;  %v1073_v32 = vld [vmem:[#allocation2 + $0x10] sm:$0xff] }
 0x178   : > { %v1080_v30 = vshrl.u32 %v1079_v29, 7  ;;  %v1074_v35 = vld [vmem:[#allocation2] sm:$0xff] }
 0x17a   : > { %v1081_v33 = vsub.s32 0, %v1080_v30  ;;  %v1085_v34 = vsub.s32 1, %v1080_v30  ;;  %v1075_v36 = vld [vmem:[#allocation2 + $0x18] sm:$0xff] }
 0x17c   : > { %v1076_v37 = vld [vmem:[#allocation2 + $0x8] sm:$0xff]  ;;  %v1082_v38 = vrot.slane %v1077_v31, %v1081_v33  ;;  %v1086_v39 = vrot.slane %v1077_v31, %v1085_v34 }
 0x17e   : > { %v1089_v40 = vadd.f32 %v1082_v38, %v1073_v32  ;;  %v1090_v41 = vadd.f32 %v1086_v39, %v1074_v35  ;;  %v1091_v42 = vadd.f32 %v1082_v38, %v1075_v36  ;;  %v1092_v43 = vadd.f32 %v1086_v39, %v1076_v37 }
 0x180   : > { %v1093_v44 = vmax.f32 %v1089_v40, 0.0  ;;  %v1094_v45 = vmax.f32 %v1090_v41, 0.0  ;;  %v1095_v46 = vmax.f32 %v1091_v42, 0.0  ;;  %v1096_v47 = vmax.f32 %v1092_v43, 0.0 }
 0x182   : > { %v1364_v48 = vpack.c.bf16 %v1094_v45, %v1093_v44  ;;  %v1365_v49 = vpack.c.bf16 %v1096_v47, %v1095_v46 }
 0x184   : > { %1109 = vst [vmem:[%s1929_s1] sm:$0xff] %v1364_v48  ;;  %1110 = vst [vmem:[%s1929_s1 + $0x8] sm:$0xff] %v1365_v49 }
 0x185 PF: > { %1117 = sbr.rel (!%p1761_p12) target bundleno = 397 (0x18d), region = 105  ;;  %s1366_s16 = sshll.u32 (%p1761_p12), %s1632_s19, 3 }
 0x186   : > { %s1123_s5 = scalar_lea.vmem (%p1761_p12), %s2052_s3, %s1366_s16 }
 0x18b   : > { %v1154_v50 = vld [vmem:[%s1929_s1] sm:$0xff]  ;;  %v1156_v51 = vld [vmem:[%s1929_s1 + $0x8] sm:$0xff] }
 0x18c   : > { %1155 = vst [vmem:[%s1123_s5] sm:$0xff] %v1154_v50  ;;  %1157 = vst [vmem:[%s1123_s5 + $0x10] sm:$0xff] %v1156_v51 }
 0x18d PF: > { %s13_s22 = sadd.s32 1, %s1644_s22   ;;  %s2062_s1 = sld [smem:[#allocation6_spill]] }
 0x18e   : > { %p10_p6 = scmp.ge.s32.totalorder %s13_s22, 20   ;;  %s2063_s12 = smov %s1608_s13 }
 0x18f   : > { %s2064_s13 = smov %s1759_s9  ;;  %s2065_s14 = smov %s1616_s15 }
 0x190   : > { %s2066_s15 = smov %s1756_s8  ;;  %s2067_s16 = smov %s1624_s17 }
 0x191   : > { %s2068_s17 = smov %s1742_s30  ;;  %s2069_s18 = smov %s1636_s20 }
 0x192   : > { %s2070_s19 = smov %s1640_s21  ;;  %s2071_s20 = smov %s2074_s24 }
 0x193   : > { %s2072_s21 = smov %s2062_s1  ;;  %12 = sbr.rel (!%p10_p6) target bundleno = 9 (0x9), region = 185 }

// kernel: starting_network_forward.44
= control target key start
LH: loop header
LB: loop body
LE: loop exit
PB: predicated region body
PF: predicated region fallthrough
CT: control target
= control target key end

     0   :  { %vm21_vm0 = vcmask 1041409   ;;  %vm23_vm1 = vcmask 1043459   ;;  %vm25_vm2 = vcmask 1045509   ;;  %vm27_vm3 = vcmask 1047559   ;;  %s55_s0 = inlined_call_operand.vmem [shape: bf16[2,1,512], index: 0, kind: input, shape index: {}]   ;;  %s56_s1 = inlined_call_operand.vmem [shape: f32[2,512], index: 1, kind: output, shape index: {}]  }
   0x1   :  { %v36_v0 = vld [vmem:[%s55_s0] sm:$0xff]  }
   0x2   :  { %v37_v1 = vunpack.c.l.bf16 %v36_v0  ;;  %v38_v2 = vunpack.c.h.bf16 %v36_v0 }
   0x4   :  { %v20_v3 = vrot.slane %v38_v2, 7 }
   0x6   :  { %v22_v4 = vsel %vm21_vm0, %v20_v3, %v37_v1 }
   0x7   :  { %v24_v5 = vsel %vm23_vm1, %v20_v3, %v22_v4 }
   0x8   :  { %v26_v6 = vsel %vm25_vm2, %v20_v3, %v24_v5 }
   0x9   :  { %v28_v7 = vsel %vm27_vm3, %v20_v3, %v26_v6 }
   0xa   :  { %30 = vst [vmem:[%s56_s1] sm:$0xff] %v28_v7 }

// kernel: starting_network_forward.45
= control target key start
LH: loop header
LB: loop body
LE: loop exit
PB: predicated region body
PF: predicated region fallthrough
CT: control target
= control target key end

     0   :  { %s665_s1 = inlined_call_operand.vmem [shape: bf16[512,128], index: 1, kind: input, shape index: {}]   ;;  %s666_s0 = inlined_call_operand.vmem [shape: bf16[16,512], index: 0, kind: input, shape index: {}]   ;;  %s667_s2 = inlined_call_operand.vmem [shape: f32[1,128], index: 2, kind: input, shape index: {}]   ;;  %s668_s3 = inlined_call_operand.vmem [shape: f32[16,128], index: 3, kind: output, shape index: {}]  }
   0x1   :  { %v490_v0 = vld [vmem:[%s665_s1 + $0x78] sm:$0xff]   ;;  %v494_v4 = vld [vmem:[%s665_s1 + $0x70] sm:$0xff]   ;;  %v498_v8 = vld [vmem:[%s665_s1 + $0x68] sm:$0xff]  }
   0x2   :  { %v491_v1 = vld [vmem:[%s665_s1 + $0xf8] sm:$0xff]   ;;  %446 = vmatprep.subr.bf16.mxu0 %v490_v0  ;;  %v495_v5 = vld [vmem:[%s665_s1 + $0xf0] sm:$0xff]   ;;  %v499_v9 = vld [vmem:[%s665_s1 + $0xe8] sm:$0xff]  }
   0x3   :  { %v492_v2 = vld [vmem:[%s665_s1 + $0x38] sm:$0xff]   ;;  %468 = vmatprep.subr.bf16.mxu1 %v491_v1  ;;  %v496_v6 = vld [vmem:[%s665_s1 + $0x30] sm:$0xff]   ;;  %v500_v10 = vld [vmem:[%s665_s1 + $0x28] sm:$0xff]  }
   0x4   :  { %v493_v3 = vld [vmem:[%s665_s1 + $0xb8] sm:$0xff]   ;;  %447 = vmatpush3.bf16.msra.mxu0 %v492_v2  ;;  %v497_v7 = vld [vmem:[%s665_s1 + $0xb0] sm:$0xff]   ;;  %v501_v11 = vld [vmem:[%s665_s1 + $0xa8] sm:$0xff]  }
   0x5   :  { %469 = vmatpush3.bf16.msra.mxu1 %v493_v3  ;;  %448 = vmatprep.subr.bf16.mxu0 %v494_v4  ;;  %v502_v12 = vld [vmem:[%s665_s1 + $0x60] sm:$0xff]   ;;  %v506_v16 = vld [vmem:[%s665_s1 + $0x58] sm:$0xff]   ;;  %v510_v20 = vld [vmem:[%s665_s1 + $0x50] sm:$0xff]  }
   0x6   :  { %470 = vmatprep.subr.bf16.mxu1 %v495_v5  ;;  %v503_v13 = vld [vmem:[%s665_s1 + $0xe0] sm:$0xff]   ;;  %v507_v17 = vld [vmem:[%s665_s1 + $0xd8] sm:$0xff]   ;;  %v511_v21 = vld [vmem:[%s665_s1 + $0xd0] sm:$0xff]  }
   0x7   :  { %v504_v14 = vld [vmem:[%s665_s1 + $0x20] sm:$0xff]   ;;  %v508_v18 = vld [vmem:[%s665_s1 + $0x18] sm:$0xff]   ;;  %v512_v22 = vld [vmem:[%s665_s1 + $0x10] sm:$0xff]  }
   0x8   :  { %449 = vmatpush3.bf16.msra.mxu0 %v496_v6  ;;  %v505_v15 = vld [vmem:[%s665_s1 + $0xa0] sm:$0xff]   ;;  %v509_v19 = vld [vmem:[%s665_s1 + $0x98] sm:$0xff]   ;;  %v513_v23 = vld [vmem:[%s665_s1 + $0x90] sm:$0xff]  }
   0x9   :  { %471 = vmatpush3.bf16.msra.mxu1 %v497_v7  ;;  %450 = vmatprep.subr.bf16.mxu0 %v498_v8  ;;  %v514_v24 = vld [vmem:[%s665_s1 + $0x48] sm:$0xff]   ;;  %v518_v28 = vld [vmem:[%s665_s1 + $0x40] sm:$0xff]  }
   0xa   :  { %472 = vmatprep.subr.bf16.mxu1 %v499_v9  ;;  %v515_v25 = vld [vmem:[%s665_s1 + $0xc8] sm:$0xff]   ;;  %v519_v29 = vld [vmem:[%s665_s1 + $0xc0] sm:$0xff]  }
   0xb   :  { %v516_v26 = vld [vmem:[%s665_s1 + $0x8] sm:$0xff]   ;;  %v520_v30 = vld [vmem:[%s665_s1] sm:$0xff]  }
   0xc   :  { %451 = vmatpush3.bf16.msra.mxu0 %v500_v10  ;;  %v517_v27 = vld [vmem:[%s665_s1 + $0x88] sm:$0xff]   ;;  %v521_v31 = vld [vmem:[%s665_s1 + $0x80] sm:$0xff]  }
   0xd   :  { %473 = vmatpush3.bf16.msra.mxu1 %v501_v11  ;;  %452 = vmatprep.subr.bf16.mxu0 %v502_v12  ;;  %v522_v32 = vld [vmem:[%s666_s0] ss:$16 sps:$4 sm:$0xff]   ;;  %v524_v33 = vld [vmem:[%s666_s0 + $0x4] ss:$16 sps:$4 sm:$0xff]   ;;  %v525_v34 = vld [vmem:[%s666_s0 + $0x8] ss:$16 sps:$4 sm:$0xff]  }
   0xe   :  { %474 = vmatprep.subr.bf16.mxu1 %v503_v13  ;;  %v527_v35 = vld [vmem:[%s666_s0 + $0xc] ss:$16 sps:$4 sm:$0xff]   ;;  %335 = vmatprep.mubr.bf16.mxu0 %v524_v33  ;;  %v445_v43 = vld [vmem:[%s667_s2] ss:$0 sm:$0xff] }
   0xf   :  { %376 = vmatprep.mubr.bf16.mxu1 %v527_v35 }
  0x10   :  { %453 = vmatpush3.bf16.msra.mxu0 %v504_v14 }
  0x11   :  { %475 = vmatpush3.bf16.msra.mxu1 %v505_v15  ;;  %454 = vmatprep.subr.bf16.mxu0 %v506_v16 }
  0x12   :  { %476 = vmatprep.subr.bf16.mxu1 %v507_v17 }
  0x14   :  { %455 = vmatpush3.bf16.msra.mxu0 %v508_v18 }
  0x15   :  { %477 = vmatpush3.bf16.msra.mxu1 %v509_v19  ;;  %456 = vmatprep.subr.bf16.mxu0 %v510_v20 }
  0x16   :  { %478 = vmatprep.subr.bf16.mxu1 %v511_v21 }
  0x18   :  { %457 = vmatpush3.bf16.msra.mxu0 %v512_v22 }
  0x19   :  { %479 = vmatpush3.bf16.msra.mxu1 %v513_v23  ;;  %458 = vmatprep.subr.bf16.mxu0 %v514_v24 }
  0x1a   :  { %480 = vmatprep.subr.bf16.mxu1 %v515_v25 }
  0x1c   :  { %459 = vmatpush3.bf16.msra.mxu0 %v516_v26 }
  0x1d   :  { %481 = vmatpush3.bf16.msra.mxu1 %v517_v27  ;;  %460 = vmatprep.subr.bf16.mxu0 %v518_v28 }
  0x1e   :  { %482 = vmatprep.subr.bf16.mxu1 %v519_v29 }
  0x20   :  { %461 = vmatpush3.bf16.msra.mxu0 %v520_v30 }
  0x21   :  { %483 = vmatpush3.bf16.msra.mxu1 %v521_v31 }
  0x23   :  { %336 = vmatmul.mubr.bf16.vlgmr.msra.gmra.mxu0 %v522_v32 }
  0x24   :  { %377 = vmatmul.mubr.bf16.vlgmr.msra.gmra.mxu1 %v525_v34 }
  0xe3   :  { %v462_v36 = vpop.f32.mrf.mxu0 }
  0xe4   :  { %v484_v37 = vpop.f32.mrf.mxu1 }
  0xe5   :  { %v463_v38 = vpop.f32.mrf.mxu0 }
  0xe6   :  { %v464_v39 = vadd.f32 %v463_v38, %v462_v36  ;;  %v485_v40 = vpop.f32.mrf.mxu1 }
  0xe7   :  { %v486_v41 = vadd.f32 %v485_v40, %v484_v37  ;;  %v465_v42 = vpop.f32.mrf.mxu0 }
  0xe8   :  { %v487_v44 = vpop.f32.mrf.mxu1 }
  0xe9   :  { %v379_v45 = vadd.f32 %v486_v41, %v464_v39  ;;  %v466_v46 = vpop.f32.mrf.mxu0 }
  0xea   :  { %v467_v47 = vadd.f32 %v466_v46, %v465_v42  ;;  %v488_v48 = vpop.f32.mrf.mxu1 }
  0xeb   :  { %v401_v49 = vadd.f32 %v445_v43, %v379_v45  ;;  %v489_v50 = vadd.f32 %v488_v48, %v487_v44 }
  0xed   :  { %403 = vst [vmem:[%s668_s3] sm:$0xff] %v401_v49  ;;  %v382_v51 = vadd.f32 %v489_v50, %v467_v47 }
  0xef   :  { %v402_v52 = vadd.f32 %v445_v43, %v382_v51 }
  0xf1   :  { %404 = vst [vmem:[%s668_s3 + $0x8] sm:$0xff] %v402_v52 }

</bundles_post_ra>
